<compile_context>
chip_gen: v6e
topology: v6e:2x2x1
jax: 0.10.0
libtpu: 0.0.40
codegen_flags: <defaults>
</compile_context>

<pallas_src>
import math
import numpy as np

import jax
import jax.numpy as jnp
from jax.experimental import pallas as pl
from jax.experimental.pallas import tpu as pltpu


def make_dcn_kernel(H, W, HW, K, dg, Cd, Cin, groups, Cin_g, Cout_g, mxu_dtype):
    def kernel(x_ref, sy_ref, sx_ref, m_ref, w_ref, b_ref, out_ref, col_ref):
        x_all = x_ref[0]          # (Cin, HW)   mxu_dtype, lane axis = HW
        sy = sy_ref[0]            # (dg*K, TP)  f32 absolute sampling y
        sx = sx_ref[0]            # (dg*K, TP)  f32 absolute sampling x
        msk = m_ref[0]            # (dg*K, TP)  f32 modulation mask

        # ---- per-tap / per-corner bilinear weights on small (dg*K, TP) arrays --
        h0f = jnp.floor(sy)
        w0f = jnp.floor(sx)
        lh = sy - h0f
        lw = sx - w0f
        h0 = h0f.astype(jnp.int32)
        w0 = w0f.astype(jnp.int32)
        h1 = h0 + 1
        w1 = w0 + 1

        vh0 = ((h0 >= 0) & (h0 < H)).astype(jnp.float32)
        vh1 = ((h1 >= 0) & (h1 < H)).astype(jnp.float32)
        vw0 = ((w0 >= 0) & (w0 < W)).astype(jnp.float32)
        vw1 = ((w1 >= 0) & (w1 < W)).astype(jnp.float32)

        # Modulation mask folded directly into the corner weights: removes the
        # per-tap (Cd, TP) multiply after the gather matmul.
        wt00 = (1.0 - lh) * (1.0 - lw) * vh0 * vw0 * msk
        wt01 = (1.0 - lh) * lw * vh0 * vw1 * msk
        wt10 = lh * (1.0 - lw) * vh1 * vw0 * msk
        wt11 = lh * lw * vh1 * vw1 * msk

        # Flat corner indices.  Out-of-bounds values never match the iota; any
        # alias (e.g. w0 == -1 wrapping into the previous row) carries a zero
        # corner weight, so it is benign (matches CUDA DCNv2 semantics).
        f00 = h0 * W + w0
        f01 = f00 + 1
        f10 = f00 + W
        f11 = f00 + W + 1

        # Single-column iota; broadcast against (1, TP) flat indices per corner.
        hw_iota = jax.lax.broadcasted_iota(jnp.int32, (HW, 1), 0)

        # ---- im2col: sample every tap, scatter into the (K*Cin, TP) scratch ----
        # scratch row layout: g*(K*Cin_g) + k*Cin_g + (cin - g*Cin_g)
        for k in range(K):
            for d in range(dg):
                c = d * K + k
                # (HW, TP) sampling matrix: fused compare -> select -> add.
                S = jnp.where(hw_iota == f00[c:c + 1, :], wt00[c:c + 1, :], 0.0)
                S = S + jnp.where(hw_iota == f01[c:c + 1, :], wt01[c:c + 1, :], 0.0)
                S = S + jnp.where(hw_iota == f10[c:c + 1, :], wt10[c:c + 1, :], 0.0)
                S = S + jnp.where(hw_iota == f11[c:c + 1, :], wt11[c:c + 1, :], 0.0)
                # Sublane (not lane) slice per deformable group; no-op when dg==1.
                xd = x_all if dg == 1 else x_all[d * Cd:(d + 1) * Cd, :]
                # Gather + bilinear interp on the MXU: (Cd, HW) @ (HW, TP).
                piece = jnp.dot(xd, S.astype(mxu_dtype),
                                preferred_element_type=jnp.float32)   # (Cd, TP) f32
                # Scatter rows of this piece into the group-major im2col scratch.
                c_lo = d * Cd
                for g in range(groups):
                    g_lo, g_hi = g * Cin_g, (g + 1) * Cin_g
                    lo = max(c_lo, g_lo)
                    hi = min(c_lo + Cd, g_hi)
                    if lo >= hi:
                        continue
                    dst = g * (K * Cin_g) + k * Cin_g + (lo - g_lo)
                    col_ref[dst:dst + (hi - lo), :] = piece[lo - c_lo:hi - c_lo, :]

        # ---- one conv matmul per group: (Cout_g, K*Cin_g) @ (K*Cin_g, TP) ------
        bias = b_ref[...]          # (Cout, 1) f32
        for g in range(groups):
            col_g = col_ref[g * (K * Cin_g):(g + 1) * (K * Cin_g), :]
            og = jnp.dot(w_ref[g], col_g.astype(mxu_dtype),
                         preferred_element_type=jnp.float32)          # (Cout_g, TP)
            og = og + bias[g * Cout_g:(g + 1) * Cout_g, :]
            out_ref[0, g * Cout_g:(g + 1) * Cout_g, :] = og.astype(out_ref.dtype)

    return kernel


def _pick_tile_p(P, HW):
    """Pick the output-pixel tile TP: a multiple of 128 dividing P, sized so the
    ~4 live (HW, TP) f32 sampling temporaries stay under ~8 MiB (safe for v7x's
    64 MiB VMEM with double-buffered blocks on top), leaving >= 2 grid steps on
    this axis when possible so both v7x TensorCores get work."""
    if P % 128 != 0:
        return P                              # small / ragged outputs: one block
    budget = 8 * 1024 * 1024
    cap = max(128, budget // (4 * HW * 4))
    best = 128
    t = 128
    while t <= P:
        if P % t == 0 and t <= cap and (2 * t <= P or P == 128):
            best = t
        t += 128
    return best


def modulated_deform_conv_pallas(x, offset, mask, weight, bias=None,
                                 stride=1, padding=0, dilation=1,
                                 groups=1, deformable_groups=1,
                                 mxu_dtype=jnp.bfloat16, tile_p=None):
    N, Cin, H, W = x.shape
    Cout, Cin_g, kh, kw = weight.shape
    K = kh * kw
    dg = deformable_groups
    Cd = Cin // dg
    Cout_g = Cout // groups
    Ho = (H + 2 * padding - (dilation * (kh - 1) + 1)) // stride + 1
    Wo = (W + 2 * padding - (dilation * (kw - 1) + 1)) // stride + 1
    P = Ho * Wo
    HW = H * W

    TP = _pick_tile_p(P, HW) if tile_p is None else tile_p
    assert P % TP == 0
    num_pt = P // TP

    # --- wrapper-side layout plumbing (cheap XLA reshapes, no transposes) ------
    # input: NCHW -> (N, Cin, H*W): channels on sublanes, pixels on lanes.
    x_cf = x.reshape(N, Cin, HW).astype(mxu_dtype)

    # offset channels: [dg, K, (y, x)] interleaved (DCNv2 CUDA convention)
    off = offset.reshape(N, dg, K, 2, Ho, Wo).astype(jnp.float32)
    off_y = off[:, :, :, 0].reshape(N, dg * K, P)
    off_x = off[:, :, :, 1].reshape(N, dg * K, P)
    msk = mask.reshape(N, dg * K, P).astype(jnp.float32)

    # absolute sampling coordinates = base conv grid + learned offsets, (dg*K, P)
    ki = np.arange(kh)
    kj = np.arange(kw)
    kk_y = (np.repeat(ki, kw) * dilation - padding).astype(np.float32)    # (K,)
    kk_x = (np.tile(kj, kh) * dilation - padding).astype(np.float32)      # (K,)
    i0 = (np.arange(Ho) * stride).astype(np.float32)
    j0 = (np.arange(Wo) * stride).astype(np.float32)
    base_y = (kk_y[:, None, None] + i0[None, :, None]
              + np.zeros((1, 1, Wo), np.float32)).reshape(K, P)
    base_x = (kk_x[:, None, None] + np.zeros((1, Ho, 1), np.float32)
              + j0[None, None, :]).reshape(K, P)
    base_y = np.tile(base_y, (dg, 1))                                     # (dg*K, P)
    base_x = np.tile(base_x, (dg, 1))
    sy = off_y + jnp.asarray(base_y)[None]
    sx = off_x + jnp.asarray(base_x)[None]

    # weight: (Cout, Cin_g, kh, kw) -> (groups, Cout_g, K*Cin_g), tap-major.
    wf = weight.reshape(groups, Cout_g, Cin_g, K)
    wf = jnp.transpose(wf, (0, 1, 3, 2)).reshape(groups, Cout_g, K * Cin_g)
    wf = wf.astype(mxu_dtype)

    b2 = bias if bias is not None else jnp.zeros((Cout,), jnp.float32)
    b2 = b2.reshape(Cout, 1).astype(jnp.float32)

    kernel = make_dcn_kernel(H, W, HW, K, dg, Cd, Cin, groups, Cin_g, Cout_g,
                             mxu_dtype)

    out = pl.pallas_call(
        kernel,
        out_shape=jax.ShapeDtypeStruct((N, Cout, P), x.dtype),
        grid_spec=pltpu.PrefetchScalarGridSpec(
            num_scalar_prefetch=0,
            grid=(N, num_pt),
            in_specs=[
                pl.BlockSpec((1, Cin, HW), lambda b, t: (b, 0, 0)),
                pl.BlockSpec((1, dg * K, TP), lambda b, t: (b, 0, t)),
                pl.BlockSpec((1, dg * K, TP), lambda b, t: (b, 0, t)),
                pl.BlockSpec((1, dg * K, TP), lambda b, t: (b, 0, t)),
                pl.BlockSpec((groups, Cout_g, K * Cin_g), lambda b, t: (0, 0, 0)),
                pl.BlockSpec((Cout, 1), lambda b, t: (0, 0)),
            ],
            out_specs=pl.BlockSpec((1, Cout, TP), lambda b, t: (b, 0, t)),
            scratch_shapes=[pltpu.VMEM((K * Cin, TP), jnp.float32)],
        ),
        compiler_params=pltpu.CompilerParams(
            dimension_semantics=("parallel", "parallel"),
            vmem_limit_bytes=32 * 1024 * 1024,
        ),
    )(x_cf, sy, sx, msk, wf, b2)

    # (N, Cout, P) reshapes straight to NCHW -- no transpose needed.
    return out.reshape(N, Cout, Ho, Wo)


def ref_dcn_numpy(x, offset, mask, weight, bias,
                  stride, padding, dilation, groups, dg):
    """Pure-numpy reference implementing the DCNv2 CUDA forward semantics."""
    x = np.asarray(x, np.float32)
    offset = np.asarray(offset, np.float32)
    mask = np.asarray(mask, np.float32)
    weight = np.asarray(weight, np.float32)
    bias = np.asarray(bias, np.float32)
    N, Cin, H, W = x.shape
    Cout, Cin_g, kh, kw = weight.shape
    K = kh * kw
    Ho = (H + 2 * padding - (dilation * (kh - 1) + 1)) // stride + 1
    Wo = (W + 2 * padding - (dilation * (kw - 1) + 1)) // stride + 1
    Cd = Cin // dg
    off = offset.reshape(N, dg, K, 2, Ho, Wo)
    msk = mask.reshape(N, dg, K, Ho, Wo)
    ho = np.arange(Ho) * stride - padding
    wo = np.arange(Wo) * stride - padding
    cols = np.zeros((N, Cin, K, Ho, Wo), np.float32)
    for d in range(dg):
        for k in range(K):
            ki, kj = divmod(k, kw)
            y = ho[None, :, None] + ki * dilation + off[:, d, k, 0]
            xx = wo[None, None, :] + kj * dilation + off[:, d, k, 1]
            h0 = np.floor(y).astype(np.int64)
            w0 = np.floor(xx).astype(np.int64)
            lh = y - h0
            lw = xx - w0
            val = np.zeros((N, Cd, Ho, Wo), np.float32)
            for dh, dw, wt in ((0, 0, (1 - lh) * (1 - lw)), (0, 1, (1 - lh) * lw),
                               (1, 0, lh * (1 - lw)), (1, 1, lh * lw)):
                hc = h0 + dh
                wc = w0 + dw
                valid = (hc >= 0) & (hc < H) & (wc >= 0) & (wc < W)
                hcc = np.clip(hc, 0, H - 1)
                wcc = np.clip(wc, 0, W - 1)
                g = x[np.arange(N)[:, None, None, None],
                      (np.arange(Cd) + d * Cd)[None, :, None, None],
                      hcc[:, None, :, :], wcc[:, None, :, :]]
                val += (wt * valid)[:, None] * g
            cols[:, d * Cd:(d + 1) * Cd, k] = val * msk[:, d, k][:, None]
    out = np.zeros((N, Cout, Ho, Wo), np.float32)
    Cout_g = Cout // groups
    wflat = weight.reshape(Cout, Cin_g, K)
    for g in range(groups):
        cg = cols[:, g * Cin_g:(g + 1) * Cin_g]
        wg = wflat[g * Cout_g:(g + 1) * Cout_g]
        out[:, g * Cout_g:(g + 1) * Cout_g] = np.einsum('ock,nckij->noij', wg, cg)
    out += bias[None, :, None, None]
    return out


if __name__ == "__main__":
    # ModulatedDeformConv(in_channels=4, out_channels=8, kernel_size=3,
    #                     stride=1, padding=1, dilation=1, groups=1,
    #                     deformable_groups=1, bias=True)
    N, Cin, H, W = 2, 4, 16, 16
    Cout, kh, kw = 8, 3, 3
    stride, padding, dilation = 1, 1, 1
    groups, dg = 1, 1
    K = kh * kw
    Ho = (H + 2 * padding - (dilation * (kh - 1) + 1)) // stride + 1
    Wo = (W + 2 * padding - (dilation * (kw - 1) + 1)) // stride + 1

    key = jax.random.PRNGKey(0)
    k1, k2, k3, k4 = jax.random.split(key, 4)

    x = jax.random.normal(k1, (N, Cin, H, W), jnp.float32)
    offset = 2.0 * jax.random.normal(k2, (N, 2 * dg * K, Ho, Wo), jnp.float32)
    mask = jax.nn.sigmoid(jax.random.normal(k3, (N, dg * K, Ho, Wo), jnp.float32))

    # parameters: kaiming_uniform_(nonlinearity='relu'), bias = 0 (module init)
    fan_in = (Cin // groups) * kh * kw
    bound = math.sqrt(3.0) * math.sqrt(2.0) / math.sqrt(fan_in)
    weight = jax.random.uniform(k4, (Cout, Cin // groups, kh, kw), jnp.float32,
                                minval=-bound, maxval=bound)
    bias = jnp.zeros((Cout,), jnp.float32)

    ref = ref_dcn_numpy(x, offset, mask, weight, bias,
                        stride, padding, dilation, groups, dg)

    # exact f32 path (validates the semantics tightly)
    out_f32 = modulated_deform_conv_pallas(
        x, offset, mask, weight, bias, stride=stride, padding=padding,
        dilation=dilation, groups=groups, deformable_groups=dg,
        mxu_dtype=jnp.float32)
    out_f32 = jax.block_until_ready(out_f32)
    assert out_f32.shape == (N, Cout, Ho, Wo)
    np.testing.assert_allclose(np.asarray(out_f32), ref, atol=2e-3, rtol=2e-3)

    # default bf16-MXU path (f32 accumulation); looser tolerance for bf16 operands
    out_bf16 = modulated_deform_conv_pallas(
        x, offset, mask, weight, bias, stride=stride, padding=padding,
        dilation=dilation, groups=groups, deformable_groups=dg)
    out_bf16 = jax.block_until_ready(out_bf16)
    assert out_bf16.shape == (N, Cout, Ho, Wo)
    np.testing.assert_allclose(np.asarray(out_bf16), ref, atol=8e-2, rtol=8e-2)

    print("KERNEL_OK")
</pallas_src>

<mosaic_0001>
module attributes {stable_mosaic.version = 11 : i64} {
  func.func @kernel(%arg0: i32, %arg1: i32, %arg2: memref<1x4x256xf32, #tpu.memory_space<vmem>>, %arg3: memref<1x9x128xf32, #tpu.memory_space<vmem>>, %arg4: memref<1x9x128xf32, #tpu.memory_space<vmem>>, %arg5: memref<1x9x128xf32, #tpu.memory_space<vmem>>, %arg6: memref<1x8x36xf32, #tpu.memory_space<vmem>>, %arg7: memref<8x1xf32, #tpu.memory_space<vmem>>, %arg8: memref<1x8x128xf32, #tpu.memory_space<vmem>>, %arg9: memref<36x128xf32, #tpu.memory_space<vmem>>) attributes {dimension_semantics = [#tpu.dimension_semantics<parallel>, #tpu.dimension_semantics<parallel>], iteration_bounds = array<i64: 2, 2>, scalar_prefetch = 0 : i64, scratch_operands = 1 : i64, tpu.core_type = #tpu.core_type<tc>, window_params = [{transform_indices = @transform_0, window_bounds = array<i64: 1, 4, 256>}, {transform_indices = @transform_1, window_bounds = array<i64: 1, 9, 128>}, {transform_indices = @transform_2, window_bounds = array<i64: 1, 9, 128>}, {transform_indices = @transform_3, window_bounds = array<i64: 1, 9, 128>}, {pipeline_mode = #tpu.pipeline_mode<synchronous>, transform_indices = @transform_4, window_bounds = array<i64: 1, 8, 36>}, {pipeline_mode = #tpu.pipeline_mode<synchronous>, transform_indices = @transform_5, window_bounds = array<i64: 8, 1>}, {transform_indices = @transform_6, window_bounds = array<i64: 1, 8, 128>}]} {
    %c0 = arith.constant 0 : index
    %c0_0 = arith.constant 0 : index
    %c0_1 = arith.constant 0 : index
    %0 = vector.load %arg2[%c0, %c0_0, %c0_1] : memref<1x4x256xf32, #tpu.memory_space<vmem>>, vector<1x4x256xf32>
    %1 = vector.shape_cast %0 : vector<1x4x256xf32> to vector<4x256xf32>
    %c0_2 = arith.constant 0 : index
    %c0_3 = arith.constant 0 : index
    %c0_4 = arith.constant 0 : index
    %2 = vector.load %arg3[%c0_2, %c0_3, %c0_4] : memref<1x9x128xf32, #tpu.memory_space<vmem>>, vector<1x9x128xf32>
    %3 = vector.shape_cast %2 : vector<1x9x128xf32> to vector<9x128xf32>
    %c0_5 = arith.constant 0 : index
    %c0_6 = arith.constant 0 : index
    %c0_7 = arith.constant 0 : index
    %4 = vector.load %arg4[%c0_5, %c0_6, %c0_7] : memref<1x9x128xf32, #tpu.memory_space<vmem>>, vector<1x9x128xf32>
    %5 = vector.shape_cast %4 : vector<1x9x128xf32> to vector<9x128xf32>
    %c0_8 = arith.constant 0 : index
    %c0_9 = arith.constant 0 : index
    %c0_10 = arith.constant 0 : index
    %6 = vector.load %arg5[%c0_8, %c0_9, %c0_10] : memref<1x9x128xf32, #tpu.memory_space<vmem>>, vector<1x9x128xf32>
    %7 = vector.shape_cast %6 : vector<1x9x128xf32> to vector<9x128xf32>
    %8 = math.floor %3 : vector<9x128xf32>
    %9 = math.floor %5 : vector<9x128xf32>
    %10 = arith.subf %3, %8 : vector<9x128xf32>
    %11 = arith.subf %5, %9 : vector<9x128xf32>
    %12 = arith.fptosi %8 : vector<9x128xf32> to vector<9x128xi32>
    %13 = arith.fptosi %9 : vector<9x128xf32> to vector<9x128xi32>
    %c1_i32 = arith.constant 1 : i32
    %14 = vector.broadcast %c1_i32 : i32 to vector<9x128xi32>
    %15 = arith.addi %12, %14 : vector<9x128xi32>
    %c1_i32_11 = arith.constant 1 : i32
    %16 = vector.broadcast %c1_i32_11 : i32 to vector<9x128xi32>
    %17 = arith.addi %13, %16 : vector<9x128xi32>
    %c0_i32 = arith.constant 0 : i32
    %18 = vector.broadcast %c0_i32 : i32 to vector<9x128xi32>
    %19 = arith.cmpi sge, %12, %18 : vector<9x128xi32>
    %c16_i32 = arith.constant 16 : i32
    %20 = vector.broadcast %c16_i32 : i32 to vector<9x128xi32>
    %21 = arith.cmpi slt, %12, %20 : vector<9x128xi32>
    %22 = arith.andi %19, %21 : vector<9x128xi1>
    %23 = arith.extui %22 : vector<9x128xi1> to vector<9x128xi32>
    %24 = arith.sitofp %23 : vector<9x128xi32> to vector<9x128xf32>
    %c0_i32_12 = arith.constant 0 : i32
    %25 = vector.broadcast %c0_i32_12 : i32 to vector<9x128xi32>
    %26 = arith.cmpi sge, %15, %25 : vector<9x128xi32>
    %c16_i32_13 = arith.constant 16 : i32
    %27 = vector.broadcast %c16_i32_13 : i32 to vector<9x128xi32>
    %28 = arith.cmpi slt, %15, %27 : vector<9x128xi32>
    %29 = arith.andi %26, %28 : vector<9x128xi1>
    %30 = arith.extui %29 : vector<9x128xi1> to vector<9x128xi32>
    %31 = arith.sitofp %30 : vector<9x128xi32> to vector<9x128xf32>
    %c0_i32_14 = arith.constant 0 : i32
    %32 = vector.broadcast %c0_i32_14 : i32 to vector<9x128xi32>
    %33 = arith.cmpi sge, %13, %32 : vector<9x128xi32>
    %c16_i32_15 = arith.constant 16 : i32
    %34 = vector.broadcast %c16_i32_15 : i32 to vector<9x128xi32>
    %35 = arith.cmpi slt, %13, %34 : vector<9x128xi32>
    %36 = arith.andi %33, %35 : vector<9x128xi1>
    %37 = arith.extui %36 : vector<9x128xi1> to vector<9x128xi32>
    %38 = arith.sitofp %37 : vector<9x128xi32> to vector<9x128xf32>
    %c0_i32_16 = arith.constant 0 : i32
    %39 = vector.broadcast %c0_i32_16 : i32 to vector<9x128xi32>
    %40 = arith.cmpi sge, %17, %39 : vector<9x128xi32>
    %c16_i32_17 = arith.constant 16 : i32
    %41 = vector.broadcast %c16_i32_17 : i32 to vector<9x128xi32>
    %42 = arith.cmpi slt, %17, %41 : vector<9x128xi32>
    %43 = arith.andi %40, %42 : vector<9x128xi1>
    %44 = arith.extui %43 : vector<9x128xi1> to vector<9x128xi32>
    %45 = arith.sitofp %44 : vector<9x128xi32> to vector<9x128xf32>
    %cst = arith.constant 1.000000e+00 : f32
    %46 = vector.broadcast %cst : f32 to vector<9x128xf32>
    %47 = arith.subf %46, %10 : vector<9x128xf32>
    %cst_18 = arith.constant 1.000000e+00 : f32
    %48 = vector.broadcast %cst_18 : f32 to vector<9x128xf32>
    %49 = arith.subf %48, %11 : vector<9x128xf32>
    %50 = arith.mulf %47, %49 : vector<9x128xf32>
    %51 = arith.mulf %50, %24 : vector<9x128xf32>
    %52 = arith.mulf %51, %38 : vector<9x128xf32>
    %53 = arith.mulf %52, %7 : vector<9x128xf32>
    %cst_19 = arith.constant 1.000000e+00 : f32
    %54 = vector.broadcast %cst_19 : f32 to vector<9x128xf32>
    %55 = arith.subf %54, %10 : vector<9x128xf32>
    %56 = arith.mulf %55, %11 : vector<9x128xf32>
    %57 = arith.mulf %56, %24 : vector<9x128xf32>
    %58 = arith.mulf %57, %45 : vector<9x128xf32>
    %59 = arith.mulf %58, %7 : vector<9x128xf32>
    %cst_20 = arith.constant 1.000000e+00 : f32
    %60 = vector.broadcast %cst_20 : f32 to vector<9x128xf32>
    %61 = arith.subf %60, %11 : vector<9x128xf32>
    %62 = arith.mulf %10, %61 : vector<9x128xf32>
    %63 = arith.mulf %62, %31 : vector<9x128xf32>
    %64 = arith.mulf %63, %38 : vector<9x128xf32>
    %65 = arith.mulf %64, %7 : vector<9x128xf32>
    %66 = arith.mulf %10, %11 : vector<9x128xf32>
    %67 = arith.mulf %66, %31 : vector<9x128xf32>
    %68 = arith.mulf %67, %45 : vector<9x128xf32>
    %69 = arith.mulf %68, %7 : vector<9x128xf32>
    %c16_i32_21 = arith.constant 16 : i32
    %70 = vector.broadcast %c16_i32_21 : i32 to vector<9x128xi32>
    %71 = arith.muli %12, %70 : vector<9x128xi32>
    %72 = arith.addi %71, %13 : vector<9x128xi32>
    %c1_i32_22 = arith.constant 1 : i32
    %73 = vector.broadcast %c1_i32_22 : i32 to vector<9x128xi32>
    %74 = arith.addi %72, %73 : vector<9x128xi32>
    %c16_i32_23 = arith.constant 16 : i32
    %75 = vector.broadcast %c16_i32_23 : i32 to vector<9x128xi32>
    %76 = arith.addi %72, %75 : vector<9x128xi32>
    %c16_i32_24 = arith.constant 16 : i32
    %77 = vector.broadcast %c16_i32_24 : i32 to vector<9x128xi32>
    %78 = arith.addi %72, %77 : vector<9x128xi32>
    %c1_i32_25 = arith.constant 1 : i32
    %79 = vector.broadcast %c1_i32_25 : i32 to vector<9x128xi32>
    %80 = arith.addi %78, %79 : vector<9x128xi32>
    %81 = tpu.iota {dimensions = array<i32: 0>} : vector<256x1xi32>
    %82 = vector.extract_strided_slice %72 {offsets = [0, 0], sizes = [1, 128], strides = [1, 1]} : vector<9x128xi32> to vector<1x128xi32>
    %83 = vector.broadcast %81 : vector<256x1xi32> to vector<256x128xi32>
    %84 = vector.broadcast %82 : vector<1x128xi32> to vector<256x128xi32>
    %85 = arith.cmpi eq, %83, %84 : vector<256x128xi32>
    %86 = vector.extract_strided_slice %53 {offsets = [0, 0], sizes = [1, 128], strides = [1, 1]} : vector<9x128xf32> to vector<1x128xf32>
    %cst_26 = arith.constant 0.000000e+00 : f32
    %87 = vector.shape_cast %86 : vector<1x128xf32> to vector<1x128xf32>
    %88 = vector.broadcast %87 : vector<1x128xf32> to vector<256x128xf32>
    %89 = vector.broadcast %cst_26 : f32 to vector<256x128xf32>
    %90 = arith.select %85, %88, %89 : vector<256x128xi1>, vector<256x128xf32>
    %91 = vector.extract_strided_slice %74 {offsets = [0, 0], sizes = [1, 128], strides = [1, 1]} : vector<9x128xi32> to vector<1x128xi32>
    %92 = vector.broadcast %81 : vector<256x1xi32> to vector<256x128xi32>
    %93 = vector.broadcast %91 : vector<1x128xi32> to vector<256x128xi32>
    %94 = arith.cmpi eq, %92, %93 : vector<256x128xi32>
    %95 = vector.extract_strided_slice %59 {offsets = [0, 0], sizes = [1, 128], strides = [1, 1]} : vector<9x128xf32> to vector<1x128xf32>
    %cst_27 = arith.constant 0.000000e+00 : f32
    %96 = vector.shape_cast %95 : vector<1x128xf32> to vector<1x128xf32>
    %97 = vector.broadcast %96 : vector<1x128xf32> to vector<256x128xf32>
    %98 = vector.broadcast %cst_27 : f32 to vector<256x128xf32>
    %99 = arith.select %94, %97, %98 : vector<256x128xi1>, vector<256x128xf32>
    %100 = arith.addf %90, %99 : vector<256x128xf32>
    %101 = vector.extract_strided_slice %76 {offsets = [0, 0], sizes = [1, 128], strides = [1, 1]} : vector<9x128xi32> to vector<1x128xi32>
    %102 = vector.broadcast %81 : vector<256x1xi32> to vector<256x128xi32>
    %103 = vector.broadcast %101 : vector<1x128xi32> to vector<256x128xi32>
    %104 = arith.cmpi eq, %102, %103 : vector<256x128xi32>
    %105 = vector.extract_strided_slice %65 {offsets = [0, 0], sizes = [1, 128], strides = [1, 1]} : vector<9x128xf32> to vector<1x128xf32>
    %cst_28 = arith.constant 0.000000e+00 : f32
    %106 = vector.shape_cast %105 : vector<1x128xf32> to vector<1x128xf32>
    %107 = vector.broadcast %106 : vector<1x128xf32> to vector<256x128xf32>
    %108 = vector.broadcast %cst_28 : f32 to vector<256x128xf32>
    %109 = arith.select %104, %107, %108 : vector<256x128xi1>, vector<256x128xf32>
    %110 = arith.addf %100, %109 : vector<256x128xf32>
    %111 = vector.extract_strided_slice %80 {offsets = [0, 0], sizes = [1, 128], strides = [1, 1]} : vector<9x128xi32> to vector<1x128xi32>
    %112 = vector.broadcast %81 : vector<256x1xi32> to vector<256x128xi32>
    %113 = vector.broadcast %111 : vector<1x128xi32> to vector<256x128xi32>
    %114 = arith.cmpi eq, %112, %113 : vector<256x128xi32>
    %115 = vector.extract_strided_slice %69 {offsets = [0, 0], sizes = [1, 128], strides = [1, 1]} : vector<9x128xf32> to vector<1x128xf32>
    %cst_29 = arith.constant 0.000000e+00 : f32
    %116 = vector.shape_cast %115 : vector<1x128xf32> to vector<1x128xf32>
    %117 = vector.broadcast %116 : vector<1x128xf32> to vector<256x128xf32>
    %118 = vector.broadcast %cst_29 : f32 to vector<256x128xf32>
    %119 = arith.select %114, %117, %118 : vector<256x128xi1>, vector<256x128xf32>
    %120 = arith.addf %110, %119 : vector<256x128xf32>
    %cst_30 = arith.constant dense<0.000000e+00> : vector<4x128xf32>
    %121 = tpu.matmul %1, %120, %cst_30 {dimension_numbers = #tpu.dot_dimension_numbers<[1], [0], [0], [1], [0, 0, 1, 1], [], []>} : vector<4x256xf32>, vector<256x128xf32>, vector<4x128xf32> -> vector<4x128xf32>
    %c0_31 = arith.constant 0 : index
    %c0_32 = arith.constant 0 : index
    %122 = vector.load %arg9[%c0_31, %c0_32] : memref<36x128xf32, #tpu.memory_space<vmem>>, vector<4x128xf32>
    tpu.vector_store %arg9[%c0_31, %c0_32], %121 {strides = array<i32>} : memref<36x128xf32, #tpu.memory_space<vmem>>, vector<4x128xf32>,
    %123 = vector.extract_strided_slice %72 {offsets = [1, 0], sizes = [1, 128], strides = [1, 1]} : vector<9x128xi32> to vector<1x128xi32>
    %124 = vector.broadcast %81 : vector<256x1xi32> to vector<256x128xi32>
    %125 = vector.broadcast %123 : vector<1x128xi32> to vector<256x128xi32>
    %126 = arith.cmpi eq, %124, %125 : vector<256x128xi32>
    %127 = vector.extract_strided_slice %53 {offsets = [1, 0], sizes = [1, 128], strides = [1, 1]} : vector<9x128xf32> to vector<1x128xf32>
    %cst_33 = arith.constant 0.000000e+00 : f32
    %128 = vector.shape_cast %127 : vector<1x128xf32> to vector<1x128xf32>
    %129 = vector.broadcast %128 : vector<1x128xf32> to vector<256x128xf32>
    %130 = vector.broadcast %cst_33 : f32 to vector<256x128xf32>
    %131 = arith.select %126, %129, %130 : vector<256x128xi1>, vector<256x128xf32>
    %132 = vector.extract_strided_slice %74 {offsets = [1, 0], sizes = [1, 128], strides = [1, 1]} : vector<9x128xi32> to vector<1x128xi32>
    %133 = vector.broadcast %81 : vector<256x1xi32> to vector<256x128xi32>
    %134 = vector.broadcast %132 : vector<1x128xi32> to vector<256x128xi32>
    %135 = arith.cmpi eq, %133, %134 : vector<256x128xi32>
    %136 = vector.extract_strided_slice %59 {offsets = [1, 0], sizes = [1, 128], strides = [1, 1]} : vector<9x128xf32> to vector<1x128xf32>
    %cst_34 = arith.constant 0.000000e+00 : f32
    %137 = vector.shape_cast %136 : vector<1x128xf32> to vector<1x128xf32>
    %138 = vector.broadcast %137 : vector<1x128xf32> to vector<256x128xf32>
    %139 = vector.broadcast %cst_34 : f32 to vector<256x128xf32>
    %140 = arith.select %135, %138, %139 : vector<256x128xi1>, vector<256x128xf32>
    %141 = arith.addf %131, %140 : vector<256x128xf32>
    %142 = vector.extract_strided_slice %76 {offsets = [1, 0], sizes = [1, 128], strides = [1, 1]} : vector<9x128xi32> to vector<1x128xi32>
    %143 = vector.broadcast %81 : vector<256x1xi32> to vector<256x128xi32>
    %144 = vector.broadcast %142 : vector<1x128xi32> to vector<256x128xi32>
    %145 = arith.cmpi eq, %143, %144 : vector<256x128xi32>
    %146 = vector.extract_strided_slice %65 {offsets = [1, 0], sizes = [1, 128], strides = [1, 1]} : vector<9x128xf32> to vector<1x128xf32>
    %cst_35 = arith.constant 0.000000e+00 : f32
    %147 = vector.shape_cast %146 : vector<1x128xf32> to vector<1x128xf32>
    %148 = vector.broadcast %147 : vector<1x128xf32> to vector<256x128xf32>
    %149 = vector.broadcast %cst_35 : f32 to vector<256x128xf32>
    %150 = arith.select %145, %148, %149 : vector<256x128xi1>, vector<256x128xf32>
    %151 = arith.addf %141, %150 : vector<256x128xf32>
    %152 = vector.extract_strided_slice %80 {offsets = [1, 0], sizes = [1, 128], strides = [1, 1]} : vector<9x128xi32> to vector<1x128xi32>
    %153 = vector.broadcast %81 : vector<256x1xi32> to vector<256x128xi32>
    %154 = vector.broadcast %152 : vector<1x128xi32> to vector<256x128xi32>
    %155 = arith.cmpi eq, %153, %154 : vector<256x128xi32>
    %156 = vector.extract_strided_slice %69 {offsets = [1, 0], sizes = [1, 128], strides = [1, 1]} : vector<9x128xf32> to vector<1x128xf32>
    %cst_36 = arith.constant 0.000000e+00 : f32
    %157 = vector.shape_cast %156 : vector<1x128xf32> to vector<1x128xf32>
    %158 = vector.broadcast %157 : vector<1x128xf32> to vector<256x128xf32>
    %159 = vector.broadcast %cst_36 : f32 to vector<256x128xf32>
    %160 = arith.select %155, %158, %159 : vector<256x128xi1>, vector<256x128xf32>
    %161 = arith.addf %151, %160 : vector<256x128xf32>
    %cst_37 = arith.constant dense<0.000000e+00> : vector<4x128xf32>
    %162 = tpu.matmul %1, %161, %cst_37 {dimension_numbers = #tpu.dot_dimension_numbers<[1], [0], [0], [1], [0, 0, 1, 1], [], []>} : vector<4x256xf32>, vector<256x128xf32>, vector<4x128xf32> -> vector<4x128xf32>
    %c4 = arith.constant 4 : index
    %c0_38 = arith.constant 0 : index
    %163 = vector.load %arg9[%c4, %c0_38] : memref<36x128xf32, #tpu.memory_space<vmem>>, vector<4x128xf32>
    tpu.vector_store %arg9[%c4, %c0_38], %162 {strides = array<i32>} : memref<36x128xf32, #tpu.memory_space<vmem>>, vector<4x128xf32>,
    %164 = vector.extract_strided_slice %72 {offsets = [2, 0], sizes = [1, 128], strides = [1, 1]} : vector<9x128xi32> to vector<1x128xi32>
    %165 = vector.broadcast %81 : vector<256x1xi32> to vector<256x128xi32>
    %166 = vector.broadcast %164 : vector<1x128xi32> to vector<256x128xi32>
    %167 = arith.cmpi eq, %165, %166 : vector<256x128xi32>
    %168 = vector.extract_strided_slice %53 {offsets = [2, 0], sizes = [1, 128], strides = [1, 1]} : vector<9x128xf32> to vector<1x128xf32>
    %cst_39 = arith.constant 0.000000e+00 : f32
    %169 = vector.shape_cast %168 : vector<1x128xf32> to vector<1x128xf32>
    %170 = vector.broadcast %169 : vector<1x128xf32> to vector<256x128xf32>
    %171 = vector.broadcast %cst_39 : f32 to vector<256x128xf32>
    %172 = arith.select %167, %170, %171 : vector<256x128xi1>, vector<256x128xf32>
    %173 = vector.extract_strided_slice %74 {offsets = [2, 0], sizes = [1, 128], strides = [1, 1]} : vector<9x128xi32> to vector<1x128xi32>
    %174 = vector.broadcast %81 : vector<256x1xi32> to vector<256x128xi32>
    %175 = vector.broadcast %173 : vector<1x128xi32> to vector<256x128xi32>
    %176 = arith.cmpi eq, %174, %175 : vector<256x128xi32>
    %177 = vector.extract_strided_slice %59 {offsets = [2, 0], sizes = [1, 128], strides = [1, 1]} : vector<9x128xf32> to vector<1x128xf32>
    %cst_40 = arith.constant 0.000000e+00 : f32
    %178 = vector.shape_cast %177 : vector<1x128xf32> to vector<1x128xf32>
    %179 = vector.broadcast %178 : vector<1x128xf32> to vector<256x128xf32>
    %180 = vector.broadcast %cst_40 : f32 to vector<256x128xf32>
    %181 = arith.select %176, %179, %180 : vector<256x128xi1>, vector<256x128xf32>
    %182 = arith.addf %172, %181 : vector<256x128xf32>
    %183 = vector.extract_strided_slice %76 {offsets = [2, 0], sizes = [1, 128], strides = [1, 1]} : vector<9x128xi32> to vector<1x128xi32>
    %184 = vector.broadcast %81 : vector<256x1xi32> to vector<256x128xi32>
    %185 = vector.broadcast %183 : vector<1x128xi32> to vector<256x128xi32>
    %186 = arith.cmpi eq, %184, %185 : vector<256x128xi32>
    %187 = vector.extract_strided_slice %65 {offsets = [2, 0], sizes = [1, 128], strides = [1, 1]} : vector<9x128xf32> to vector<1x128xf32>
    %cst_41 = arith.constant 0.000000e+00 : f32
    %188 = vector.shape_cast %187 : vector<1x128xf32> to vector<1x128xf32>
    %189 = vector.broadcast %188 : vector<1x128xf32> to vector<256x128xf32>
    %190 = vector.broadcast %cst_41 : f32 to vector<256x128xf32>
    %191 = arith.select %186, %189, %190 : vector<256x128xi1>, vector<256x128xf32>
    %192 = arith.addf %182, %191 : vector<256x128xf32>
    %193 = vector.extract_strided_slice %80 {offsets = [2, 0], sizes = [1, 128], strides = [1, 1]} : vector<9x128xi32> to vector<1x128xi32>
    %194 = vector.broadcast %81 : vector<256x1xi32> to vector<256x128xi32>
    %195 = vector.broadcast %193 : vector<1x128xi32> to vector<256x128xi32>
    %196 = arith.cmpi eq, %194, %195 : vector<256x128xi32>
    %197 = vector.extract_strided_slice %69 {offsets = [2, 0], sizes = [1, 128], strides = [1, 1]} : vector<9x128xf32> to vector<1x128xf32>
    %cst_42 = arith.constant 0.000000e+00 : f32
    %198 = vector.shape_cast %197 : vector<1x128xf32> to vector<1x128xf32>
    %199 = vector.broadcast %198 : vector<1x128xf32> to vector<256x128xf32>
    %200 = vector.broadcast %cst_42 : f32 to vector<256x128xf32>
    %201 = arith.select %196, %199, %200 : vector<256x128xi1>, vector<256x128xf32>
    %202 = arith.addf %192, %201 : vector<256x128xf32>
    %cst_43 = arith.constant dense<0.000000e+00> : vector<4x128xf32>
    %203 = tpu.matmul %1, %202, %cst_43 {dimension_numbers = #tpu.dot_dimension_numbers<[1], [0], [0], [1], [0, 0, 1, 1], [], []>} : vector<4x256xf32>, vector<256x128xf32>, vector<4x128xf32> -> vector<4x128xf32>
    %c8 = arith.constant 8 : index
    %c0_44 = arith.constant 0 : index
    %204 = vector.load %arg9[%c8, %c0_44] : memref<36x128xf32, #tpu.memory_space<vmem>>, vector<4x128xf32>
    tpu.vector_store %arg9[%c8, %c0_44], %203 {strides = array<i32>} : memref<36x128xf32, #tpu.memory_space<vmem>>, vector<4x128xf32>,
    %205 = vector.extract_strided_slice %72 {offsets = [3, 0], sizes = [1, 128], strides = [1, 1]} : vector<9x128xi32> to vector<1x128xi32>
    %206 = vector.broadcast %81 : vector<256x1xi32> to vector<256x128xi32>
    %207 = vector.broadcast %205 : vector<1x128xi32> to vector<256x128xi32>
    %208 = arith.cmpi eq, %206, %207 : vector<256x128xi32>
    %209 = vector.extract_strided_slice %53 {offsets = [3, 0], sizes = [1, 128], strides = [1, 1]} : vector<9x128xf32> to vector<1x128xf32>
    %cst_45 = arith.constant 0.000000e+00 : f32
    %210 = vector.shape_cast %209 : vector<1x128xf32> to vector<1x128xf32>
    %211 = vector.broadcast %210 : vector<1x128xf32> to vector<256x128xf32>
    %212 = vector.broadcast %cst_45 : f32 to vector<256x128xf32>
    %213 = arith.select %208, %211, %212 : vector<256x128xi1>, vector<256x128xf32>
    %214 = vector.extract_strided_slice %74 {offsets = [3, 0], sizes = [1, 128], strides = [1, 1]} : vector<9x128xi32> to vector<1x128xi32>
    %215 = vector.broadcast %81 : vector<256x1xi32> to vector<256x128xi32>
    %216 = vector.broadcast %214 : vector<1x128xi32> to vector<256x128xi32>
    %217 = arith.cmpi eq, %215, %216 : vector<256x128xi32>
    %218 = vector.extract_strided_slice %59 {offsets = [3, 0], sizes = [1, 128], strides = [1, 1]} : vector<9x128xf32> to vector<1x128xf32>
    %cst_46 = arith.constant 0.000000e+00 : f32
    %219 = vector.shape_cast %218 : vector<1x128xf32> to vector<1x128xf32>
    %220 = vector.broadcast %219 : vector<1x128xf32> to vector<256x128xf32>
    %221 = vector.broadcast %cst_46 : f32 to vector<256x128xf32>
    %222 = arith.select %217, %220, %221 : vector<256x128xi1>, vector<256x128xf32>
    %223 = arith.addf %213, %222 : vector<256x128xf32>
    %224 = vector.extract_strided_slice %76 {offsets = [3, 0], sizes = [1, 128], strides = [1, 1]} : vector<9x128xi32> to vector<1x128xi32>
    %225 = vector.broadcast %81 : vector<256x1xi32> to vector<256x128xi32>
    %226 = vector.broadcast %224 : vector<1x128xi32> to vector<256x128xi32>
    %227 = arith.cmpi eq, %225, %226 : vector<256x128xi32>
    %228 = vector.extract_strided_slice %65 {offsets = [3, 0], sizes = [1, 128], strides = [1, 1]} : vector<9x128xf32> to vector<1x128xf32>
    %cst_47 = arith.constant 0.000000e+00 : f32
    %229 = vector.shape_cast %228 : vector<1x128xf32> to vector<1x128xf32>
    %230 = vector.broadcast %229 : vector<1x128xf32> to vector<256x128xf32>
    %231 = vector.broadcast %cst_47 : f32 to vector<256x128xf32>
    %232 = arith.select %227, %230, %231 : vector<256x128xi1>, vector<256x128xf32>
    %233 = arith.addf %223, %232 : vector<256x128xf32>
    %234 = vector.extract_strided_slice %80 {offsets = [3, 0], sizes = [1, 128], strides = [1, 1]} : vector<9x128xi32> to vector<1x128xi32>
    %235 = vector.broadcast %81 : vector<256x1xi32> to vector<256x128xi32>
    %236 = vector.broadcast %234 : vector<1x128xi32> to vector<256x128xi32>
    %237 = arith.cmpi eq, %235, %236 : vector<256x128xi32>
    %238 = vector.extract_strided_slice %69 {offsets = [3, 0], sizes = [1, 128], strides = [1, 1]} : vector<9x128xf32> to vector<1x128xf32>
    %cst_48 = arith.constant 0.000000e+00 : f32
    %239 = vector.shape_cast %238 : vector<1x128xf32> to vector<1x128xf32>
    %240 = vector.broadcast %239 : vector<1x128xf32> to vector<256x128xf32>
    %241 = vector.broadcast %cst_48 : f32 to vector<256x128xf32>
    %242 = arith.select %237, %240, %241 : vector<256x128xi1>, vector<256x128xf32>
    %243 = arith.addf %233, %242 : vector<256x128xf32>
    %cst_49 = arith.constant dense<0.000000e+00> : vector<4x128xf32>
    %244 = tpu.matmul %1, %243, %cst_49 {dimension_numbers = #tpu.dot_dimension_numbers<[1], [0], [0], [1], [0, 0, 1, 1], [], []>} : vector<4x256xf32>, vector<256x128xf32>, vector<4x128xf32> -> vector<4x128xf32>
    %c12 = arith.constant 12 : index
    %c0_50 = arith.constant 0 : index
    %245 = vector.load %arg9[%c12, %c0_50] : memref<36x128xf32, #tpu.memory_space<vmem>>, vector<4x128xf32>
    tpu.vector_store %arg9[%c12, %c0_50], %244 {strides = array<i32>} : memref<36x128xf32, #tpu.memory_space<vmem>>, vector<4x128xf32>,
    %246 = vector.extract_strided_slice %72 {offsets = [4, 0], sizes = [1, 128], strides = [1, 1]} : vector<9x128xi32> to vector<1x128xi32>
    %247 = vector.broadcast %81 : vector<256x1xi32> to vector<256x128xi32>
    %248 = vector.broadcast %246 : vector<1x128xi32> to vector<256x128xi32>
    %249 = arith.cmpi eq, %247, %248 : vector<256x128xi32>
    %250 = vector.extract_strided_slice %53 {offsets = [4, 0], sizes = [1, 128], strides = [1, 1]} : vector<9x128xf32> to vector<1x128xf32>
    %cst_51 = arith.constant 0.000000e+00 : f32
    %251 = vector.shape_cast %250 : vector<1x128xf32> to vector<1x128xf32>
    %252 = vector.broadcast %251 : vector<1x128xf32> to vector<256x128xf32>
    %253 = vector.broadcast %cst_51 : f32 to vector<256x128xf32>
    %254 = arith.select %249, %252, %253 : vector<256x128xi1>, vector<256x128xf32>
    %255 = vector.extract_strided_slice %74 {offsets = [4, 0], sizes = [1, 128], strides = [1, 1]} : vector<9x128xi32> to vector<1x128xi32>
    %256 = vector.broadcast %81 : vector<256x1xi32> to vector<256x128xi32>
    %257 = vector.broadcast %255 : vector<1x128xi32> to vector<256x128xi32>
    %258 = arith.cmpi eq, %256, %257 : vector<256x128xi32>
    %259 = vector.extract_strided_slice %59 {offsets = [4, 0], sizes = [1, 128], strides = [1, 1]} : vector<9x128xf32> to vector<1x128xf32>
    %cst_52 = arith.constant 0.000000e+00 : f32
    %260 = vector.shape_cast %259 : vector<1x128xf32> to vector<1x128xf32>
    %261 = vector.broadcast %260 : vector<1x128xf32> to vector<256x128xf32>
    %262 = vector.broadcast %cst_52 : f32 to vector<256x128xf32>
    %263 = arith.select %258, %261, %262 : vector<256x128xi1>, vector<256x128xf32>
    %264 = arith.addf %254, %263 : vector<256x128xf32>
    %265 = vector.extract_strided_slice %76 {offsets = [4, 0], sizes = [1, 128], strides = [1, 1]} : vector<9x128xi32> to vector<1x128xi32>
    %266 = vector.broadcast %81 : vector<256x1xi32> to vector<256x128xi32>
    %267 = vector.broadcast %265 : vector<1x128xi32> to vector<256x128xi32>
    %268 = arith.cmpi eq, %266, %267 : vector<256x128xi32>
    %269 = vector.extract_strided_slice %65 {offsets = [4, 0], sizes = [1, 128], strides = [1, 1]} : vector<9x128xf32> to vector<1x128xf32>
    %cst_53 = arith.constant 0.000000e+00 : f32
    %270 = vector.shape_cast %269 : vector<1x128xf32> to vector<1x128xf32>
    %271 = vector.broadcast %270 : vector<1x128xf32> to vector<256x128xf32>
    %272 = vector.broadcast %cst_53 : f32 to vector<256x128xf32>
    %273 = arith.select %268, %271, %272 : vector<256x128xi1>, vector<256x128xf32>
    %274 = arith.addf %264, %273 : vector<256x128xf32>
    %275 = vector.extract_strided_slice %80 {offsets = [4, 0], sizes = [1, 128], strides = [1, 1]} : vector<9x128xi32> to vector<1x128xi32>
    %276 = vector.broadcast %81 : vector<256x1xi32> to vector<256x128xi32>
    %277 = vector.broadcast %275 : vector<1x128xi32> to vector<256x128xi32>
    %278 = arith.cmpi eq, %276, %277 : vector<256x128xi32>
    %279 = vector.extract_strided_slice %69 {offsets = [4, 0], sizes = [1, 128], strides = [1, 1]} : vector<9x128xf32> to vector<1x128xf32>
    %cst_54 = arith.constant 0.000000e+00 : f32
    %280 = vector.shape_cast %279 : vector<1x128xf32> to vector<1x128xf32>
    %281 = vector.broadcast %280 : vector<1x128xf32> to vector<256x128xf32>
    %282 = vector.broadcast %cst_54 : f32 to vector<256x128xf32>
    %283 = arith.select %278, %281, %282 : vector<256x128xi1>, vector<256x128xf32>
    %284 = arith.addf %274, %283 : vector<256x128xf32>
    %cst_55 = arith.constant dense<0.000000e+00> : vector<4x128xf32>
    %285 = tpu.matmul %1, %284, %cst_55 {dimension_numbers = #tpu.dot_dimension_numbers<[1], [0], [0], [1], [0, 0, 1, 1], [], []>} : vector<4x256xf32>, vector<256x128xf32>, vector<4x128xf32> -> vector<4x128xf32>
    %c16 = arith.constant 16 : index
    %c0_56 = arith.constant 0 : index
    %286 = vector.load %arg9[%c16, %c0_56] : memref<36x128xf32, #tpu.memory_space<vmem>>, vector<4x128xf32>
    tpu.vector_store %arg9[%c16, %c0_56], %285 {strides = array<i32>} : memref<36x128xf32, #tpu.memory_space<vmem>>, vector<4x128xf32>,
    %287 = vector.extract_strided_slice %72 {offsets = [5, 0], sizes = [1, 128], strides = [1, 1]} : vector<9x128xi32> to vector<1x128xi32>
    %288 = vector.broadcast %81 : vector<256x1xi32> to vector<256x128xi32>
    %289 = vector.broadcast %287 : vector<1x128xi32> to vector<256x128xi32>
    %290 = arith.cmpi eq, %288, %289 : vector<256x128xi32>
    %291 = vector.extract_strided_slice %53 {offsets = [5, 0], sizes = [1, 128], strides = [1, 1]} : vector<9x128xf32> to vector<1x128xf32>
    %cst_57 = arith.constant 0.000000e+00 : f32
    %292 = vector.shape_cast %291 : vector<1x128xf32> to vector<1x128xf32>
    %293 = vector.broadcast %292 : vector<1x128xf32> to vector<256x128xf32>
    %294 = vector.broadcast %cst_57 : f32 to vector<256x128xf32>
    %295 = arith.select %290, %293, %294 : vector<256x128xi1>, vector<256x128xf32>
    %296 = vector.extract_strided_slice %74 {offsets = [5, 0], sizes = [1, 128], strides = [1, 1]} : vector<9x128xi32> to vector<1x128xi32>
    %297 = vector.broadcast %81 : vector<256x1xi32> to vector<256x128xi32>
    %298 = vector.broadcast %296 : vector<1x128xi32> to vector<256x128xi32>
    %299 = arith.cmpi eq, %297, %298 : vector<256x128xi32>
    %300 = vector.extract_strided_slice %59 {offsets = [5, 0], sizes = [1, 128], strides = [1, 1]} : vector<9x128xf32> to vector<1x128xf32>
    %cst_58 = arith.constant 0.000000e+00 : f32
    %301 = vector.shape_cast %300 : vector<1x128xf32> to vector<1x128xf32>
    %302 = vector.broadcast %301 : vector<1x128xf32> to vector<256x128xf32>
    %303 = vector.broadcast %cst_58 : f32 to vector<256x128xf32>
    %304 = arith.select %299, %302, %303 : vector<256x128xi1>, vector<256x128xf32>
    %305 = arith.addf %295, %304 : vector<256x128xf32>
    %306 = vector.extract_strided_slice %76 {offsets = [5, 0], sizes = [1, 128], strides = [1, 1]} : vector<9x128xi32> to vector<1x128xi32>
    %307 = vector.broadcast %81 : vector<256x1xi32> to vector<256x128xi32>
    %308 = vector.broadcast %306 : vector<1x128xi32> to vector<256x128xi32>
    %309 = arith.cmpi eq, %307, %308 : vector<256x128xi32>
    %310 = vector.extract_strided_slice %65 {offsets = [5, 0], sizes = [1, 128], strides = [1, 1]} : vector<9x128xf32> to vector<1x128xf32>
    %cst_59 = arith.constant 0.000000e+00 : f32
    %311 = vector.shape_cast %310 : vector<1x128xf32> to vector<1x128xf32>
    %312 = vector.broadcast %311 : vector<1x128xf32> to vector<256x128xf32>
    %313 = vector.broadcast %cst_59 : f32 to vector<256x128xf32>
    %314 = arith.select %309, %312, %313 : vector<256x128xi1>, vector<256x128xf32>
    %315 = arith.addf %305, %314 : vector<256x128xf32>
    %316 = vector.extract_strided_slice %80 {offsets = [5, 0], sizes = [1, 128], strides = [1, 1]} : vector<9x128xi32> to vector<1x128xi32>
    %317 = vector.broadcast %81 : vector<256x1xi32> to vector<256x128xi32>
    %318 = vector.broadcast %316 : vector<1x128xi32> to vector<256x128xi32>
    %319 = arith.cmpi eq, %317, %318 : vector<256x128xi32>
    %320 = vector.extract_strided_slice %69 {offsets = [5, 0], sizes = [1, 128], strides = [1, 1]} : vector<9x128xf32> to vector<1x128xf32>
    %cst_60 = arith.constant 0.000000e+00 : f32
    %321 = vector.shape_cast %320 : vector<1x128xf32> to vector<1x128xf32>
    %322 = vector.broadcast %321 : vector<1x128xf32> to vector<256x128xf32>
    %323 = vector.broadcast %cst_60 : f32 to vector<256x128xf32>
    %324 = arith.select %319, %322, %323 : vector<256x128xi1>, vector<256x128xf32>
    %325 = arith.addf %315, %324 : vector<256x128xf32>
    %cst_61 = arith.constant dense<0.000000e+00> : vector<4x128xf32>
    %326 = tpu.matmul %1, %325, %cst_61 {dimension_numbers = #tpu.dot_dimension_numbers<[1], [0], [0], [1], [0, 0, 1, 1], [], []>} : vector<4x256xf32>, vector<256x128xf32>, vector<4x128xf32> -> vector<4x128xf32>
    %c20 = arith.constant 20 : index
    %c0_62 = arith.constant 0 : index
    %327 = vector.load %arg9[%c20, %c0_62] : memref<36x128xf32, #tpu.memory_space<vmem>>, vector<4x128xf32>
    tpu.vector_store %arg9[%c20, %c0_62], %326 {strides = array<i32>} : memref<36x128xf32, #tpu.memory_space<vmem>>, vector<4x128xf32>,
    %328 = vector.extract_strided_slice %72 {offsets = [6, 0], sizes = [1, 128], strides = [1, 1]} : vector<9x128xi32> to vector<1x128xi32>
    %329 = vector.broadcast %81 : vector<256x1xi32> to vector<256x128xi32>
    %330 = vector.broadcast %328 : vector<1x128xi32> to vector<256x128xi32>
    %331 = arith.cmpi eq, %329, %330 : vector<256x128xi32>
    %332 = vector.extract_strided_slice %53 {offsets = [6, 0], sizes = [1, 128], strides = [1, 1]} : vector<9x128xf32> to vector<1x128xf32>
    %cst_63 = arith.constant 0.000000e+00 : f32
    %333 = vector.shape_cast %332 : vector<1x128xf32> to vector<1x128xf32>
    %334 = vector.broadcast %333 : vector<1x128xf32> to vector<256x128xf32>
    %335 = vector.broadcast %cst_63 : f32 to vector<256x128xf32>
    %336 = arith.select %331, %334, %335 : vector<256x128xi1>, vector<256x128xf32>
    %337 = vector.extract_strided_slice %74 {offsets = [6, 0], sizes = [1, 128], strides = [1, 1]} : vector<9x128xi32> to vector<1x128xi32>
    %338 = vector.broadcast %81 : vector<256x1xi32> to vector<256x128xi32>
    %339 = vector.broadcast %337 : vector<1x128xi32> to vector<256x128xi32>
    %340 = arith.cmpi eq, %338, %339 : vector<256x128xi32>
    %341 = vector.extract_strided_slice %59 {offsets = [6, 0], sizes = [1, 128], strides = [1, 1]} : vector<9x128xf32> to vector<1x128xf32>
    %cst_64 = arith.constant 0.000000e+00 : f32
    %342 = vector.shape_cast %341 : vector<1x128xf32> to vector<1x128xf32>
    %343 = vector.broadcast %342 : vector<1x128xf32> to vector<256x128xf32>
    %344 = vector.broadcast %cst_64 : f32 to vector<256x128xf32>
    %345 = arith.select %340, %343, %344 : vector<256x128xi1>, vector<256x128xf32>
    %346 = arith.addf %336, %345 : vector<256x128xf32>
    %347 = vector.extract_strided_slice %76 {offsets = [6, 0], sizes = [1, 128], strides = [1, 1]} : vector<9x128xi32> to vector<1x128xi32>
    %348 = vector.broadcast %81 : vector<256x1xi32> to vector<256x128xi32>
    %349 = vector.broadcast %347 : vector<1x128xi32> to vector<256x128xi32>
    %350 = arith.cmpi eq, %348, %349 : vector<256x128xi32>
    %351 = vector.extract_strided_slice %65 {offsets = [6, 0], sizes = [1, 128], strides = [1, 1]} : vector<9x128xf32> to vector<1x128xf32>
    %cst_65 = arith.constant 0.000000e+00 : f32
    %352 = vector.shape_cast %351 : vector<1x128xf32> to vector<1x128xf32>
    %353 = vector.broadcast %352 : vector<1x128xf32> to vector<256x128xf32>
    %354 = vector.broadcast %cst_65 : f32 to vector<256x128xf32>
    %355 = arith.select %350, %353, %354 : vector<256x128xi1>, vector<256x128xf32>
    %356 = arith.addf %346, %355 : vector<256x128xf32>
    %357 = vector.extract_strided_slice %80 {offsets = [6, 0], sizes = [1, 128], strides = [1, 1]} : vector<9x128xi32> to vector<1x128xi32>
    %358 = vector.broadcast %81 : vector<256x1xi32> to vector<256x128xi32>
    %359 = vector.broadcast %357 : vector<1x128xi32> to vector<256x128xi32>
    %360 = arith.cmpi eq, %358, %359 : vector<256x128xi32>
    %361 = vector.extract_strided_slice %69 {offsets = [6, 0], sizes = [1, 128], strides = [1, 1]} : vector<9x128xf32> to vector<1x128xf32>
    %cst_66 = arith.constant 0.000000e+00 : f32
    %362 = vector.shape_cast %361 : vector<1x128xf32> to vector<1x128xf32>
    %363 = vector.broadcast %362 : vector<1x128xf32> to vector<256x128xf32>
    %364 = vector.broadcast %cst_66 : f32 to vector<256x128xf32>
    %365 = arith.select %360, %363, %364 : vector<256x128xi1>, vector<256x128xf32>
    %366 = arith.addf %356, %365 : vector<256x128xf32>
    %cst_67 = arith.constant dense<0.000000e+00> : vector<4x128xf32>
    %367 = tpu.matmul %1, %366, %cst_67 {dimension_numbers = #tpu.dot_dimension_numbers<[1], [0], [0], [1], [0, 0, 1, 1], [], []>} : vector<4x256xf32>, vector<256x128xf32>, vector<4x128xf32> -> vector<4x128xf32>
    %c24 = arith.constant 24 : index
    %c0_68 = arith.constant 0 : index
    %368 = vector.load %arg9[%c24, %c0_68] : memref<36x128xf32, #tpu.memory_space<vmem>>, vector<4x128xf32>
    tpu.vector_store %arg9[%c24, %c0_68], %367 {strides = array<i32>} : memref<36x128xf32, #tpu.memory_space<vmem>>, vector<4x128xf32>,
    %369 = vector.extract_strided_slice %72 {offsets = [7, 0], sizes = [1, 128], strides = [1, 1]} : vector<9x128xi32> to vector<1x128xi32>
    %370 = vector.broadcast %81 : vector<256x1xi32> to vector<256x128xi32>
    %371 = vector.broadcast %369 : vector<1x128xi32> to vector<256x128xi32>
    %372 = arith.cmpi eq, %370, %371 : vector<256x128xi32>
    %373 = vector.extract_strided_slice %53 {offsets = [7, 0], sizes = [1, 128], strides = [1, 1]} : vector<9x128xf32> to vector<1x128xf32>
    %cst_69 = arith.constant 0.000000e+00 : f32
    %374 = vector.shape_cast %373 : vector<1x128xf32> to vector<1x128xf32>
    %375 = vector.broadcast %374 : vector<1x128xf32> to vector<256x128xf32>
    %376 = vector.broadcast %cst_69 : f32 to vector<256x128xf32>
    %377 = arith.select %372, %375, %376 : vector<256x128xi1>, vector<256x128xf32>
    %378 = vector.extract_strided_slice %74 {offsets = [7, 0], sizes = [1, 128], strides = [1, 1]} : vector<9x128xi32> to vector<1x128xi32>
    %379 = vector.broadcast %81 : vector<256x1xi32> to vector<256x128xi32>
    %380 = vector.broadcast %378 : vector<1x128xi32> to vector<256x128xi32>
    %381 = arith.cmpi eq, %379, %380 : vector<256x128xi32>
    %382 = vector.extract_strided_slice %59 {offsets = [7, 0], sizes = [1, 128], strides = [1, 1]} : vector<9x128xf32> to vector<1x128xf32>
    %cst_70 = arith.constant 0.000000e+00 : f32
    %383 = vector.shape_cast %382 : vector<1x128xf32> to vector<1x128xf32>
    %384 = vector.broadcast %383 : vector<1x128xf32> to vector<256x128xf32>
    %385 = vector.broadcast %cst_70 : f32 to vector<256x128xf32>
    %386 = arith.select %381, %384, %385 : vector<256x128xi1>, vector<256x128xf32>
    %387 = arith.addf %377, %386 : vector<256x128xf32>
    %388 = vector.extract_strided_slice %76 {offsets = [7, 0], sizes = [1, 128], strides = [1, 1]} : vector<9x128xi32> to vector<1x128xi32>
    %389 = vector.broadcast %81 : vector<256x1xi32> to vector<256x128xi32>
    %390 = vector.broadcast %388 : vector<1x128xi32> to vector<256x128xi32>
    %391 = arith.cmpi eq, %389, %390 : vector<256x128xi32>
    %392 = vector.extract_strided_slice %65 {offsets = [7, 0], sizes = [1, 128], strides = [1, 1]} : vector<9x128xf32> to vector<1x128xf32>
    %cst_71 = arith.constant 0.000000e+00 : f32
    %393 = vector.shape_cast %392 : vector<1x128xf32> to vector<1x128xf32>
    %394 = vector.broadcast %393 : vector<1x128xf32> to vector<256x128xf32>
    %395 = vector.broadcast %cst_71 : f32 to vector<256x128xf32>
    %396 = arith.select %391, %394, %395 : vector<256x128xi1>, vector<256x128xf32>
    %397 = arith.addf %387, %396 : vector<256x128xf32>
    %398 = vector.extract_strided_slice %80 {offsets = [7, 0], sizes = [1, 128], strides = [1, 1]} : vector<9x128xi32> to vector<1x128xi32>
    %399 = vector.broadcast %81 : vector<256x1xi32> to vector<256x128xi32>
    %400 = vector.broadcast %398 : vector<1x128xi32> to vector<256x128xi32>
    %401 = arith.cmpi eq, %399, %400 : vector<256x128xi32>
    %402 = vector.extract_strided_slice %69 {offsets = [7, 0], sizes = [1, 128], strides = [1, 1]} : vector<9x128xf32> to vector<1x128xf32>
    %cst_72 = arith.constant 0.000000e+00 : f32
    %403 = vector.shape_cast %402 : vector<1x128xf32> to vector<1x128xf32>
    %404 = vector.broadcast %403 : vector<1x128xf32> to vector<256x128xf32>
    %405 = vector.broadcast %cst_72 : f32 to vector<256x128xf32>
    %406 = arith.select %401, %404, %405 : vector<256x128xi1>, vector<256x128xf32>
    %407 = arith.addf %397, %406 : vector<256x128xf32>
    %cst_73 = arith.constant dense<0.000000e+00> : vector<4x128xf32>
    %408 = tpu.matmul %1, %407, %cst_73 {dimension_numbers = #tpu.dot_dimension_numbers<[1], [0], [0], [1], [0, 0, 1, 1], [], []>} : vector<4x256xf32>, vector<256x128xf32>, vector<4x128xf32> -> vector<4x128xf32>
    %c28 = arith.constant 28 : index
    %c0_74 = arith.constant 0 : index
    %409 = vector.load %arg9[%c28, %c0_74] : memref<36x128xf32, #tpu.memory_space<vmem>>, vector<4x128xf32>
    tpu.vector_store %arg9[%c28, %c0_74], %408 {strides = array<i32>} : memref<36x128xf32, #tpu.memory_space<vmem>>, vector<4x128xf32>,
    %410 = vector.extract_strided_slice %72 {offsets = [8, 0], sizes = [1, 128], strides = [1, 1]} : vector<9x128xi32> to vector<1x128xi32>
    %411 = vector.broadcast %81 : vector<256x1xi32> to vector<256x128xi32>
    %412 = vector.broadcast %410 : vector<1x128xi32> to vector<256x128xi32>
    %413 = arith.cmpi eq, %411, %412 : vector<256x128xi32>
    %414 = vector.extract_strided_slice %53 {offsets = [8, 0], sizes = [1, 128], strides = [1, 1]} : vector<9x128xf32> to vector<1x128xf32>
    %cst_75 = arith.constant 0.000000e+00 : f32
    %415 = vector.shape_cast %414 : vector<1x128xf32> to vector<1x128xf32>
    %416 = vector.broadcast %415 : vector<1x128xf32> to vector<256x128xf32>
    %417 = vector.broadcast %cst_75 : f32 to vector<256x128xf32>
    %418 = arith.select %413, %416, %417 : vector<256x128xi1>, vector<256x128xf32>
    %419 = vector.extract_strided_slice %74 {offsets = [8, 0], sizes = [1, 128], strides = [1, 1]} : vector<9x128xi32> to vector<1x128xi32>
    %420 = vector.broadcast %81 : vector<256x1xi32> to vector<256x128xi32>
    %421 = vector.broadcast %419 : vector<1x128xi32> to vector<256x128xi32>
    %422 = arith.cmpi eq, %420, %421 : vector<256x128xi32>
    %423 = vector.extract_strided_slice %59 {offsets = [8, 0], sizes = [1, 128], strides = [1, 1]} : vector<9x128xf32> to vector<1x128xf32>
    %cst_76 = arith.constant 0.000000e+00 : f32
    %424 = vector.shape_cast %423 : vector<1x128xf32> to vector<1x128xf32>
    %425 = vector.broadcast %424 : vector<1x128xf32> to vector<256x128xf32>
    %426 = vector.broadcast %cst_76 : f32 to vector<256x128xf32>
    %427 = arith.select %422, %425, %426 : vector<256x128xi1>, vector<256x128xf32>
    %428 = arith.addf %418, %427 : vector<256x128xf32>
    %429 = vector.extract_strided_slice %76 {offsets = [8, 0], sizes = [1, 128], strides = [1, 1]} : vector<9x128xi32> to vector<1x128xi32>
    %430 = vector.broadcast %81 : vector<256x1xi32> to vector<256x128xi32>
    %431 = vector.broadcast %429 : vector<1x128xi32> to vector<256x128xi32>
    %432 = arith.cmpi eq, %430, %431 : vector<256x128xi32>
    %433 = vector.extract_strided_slice %65 {offsets = [8, 0], sizes = [1, 128], strides = [1, 1]} : vector<9x128xf32> to vector<1x128xf32>
    %cst_77 = arith.constant 0.000000e+00 : f32
    %434 = vector.shape_cast %433 : vector<1x128xf32> to vector<1x128xf32>
    %435 = vector.broadcast %434 : vector<1x128xf32> to vector<256x128xf32>
    %436 = vector.broadcast %cst_77 : f32 to vector<256x128xf32>
    %437 = arith.select %432, %435, %436 : vector<256x128xi1>, vector<256x128xf32>
    %438 = arith.addf %428, %437 : vector<256x128xf32>
    %439 = vector.extract_strided_slice %80 {offsets = [8, 0], sizes = [1, 128], strides = [1, 1]} : vector<9x128xi32> to vector<1x128xi32>
    %440 = vector.broadcast %81 : vector<256x1xi32> to vector<256x128xi32>
    %441 = vector.broadcast %439 : vector<1x128xi32> to vector<256x128xi32>
    %442 = arith.cmpi eq, %440, %441 : vector<256x128xi32>
    %443 = vector.extract_strided_slice %69 {offsets = [8, 0], sizes = [1, 128], strides = [1, 1]} : vector<9x128xf32> to vector<1x128xf32>
    %cst_78 = arith.constant 0.000000e+00 : f32
    %444 = vector.shape_cast %443 : vector<1x128xf32> to vector<1x128xf32>
    %445 = vector.broadcast %444 : vector<1x128xf32> to vector<256x128xf32>
    %446 = vector.broadcast %cst_78 : f32 to vector<256x128xf32>
    %447 = arith.select %442, %445, %446 : vector<256x128xi1>, vector<256x128xf32>
    %448 = arith.addf %438, %447 : vector<256x128xf32>
    %cst_79 = arith.constant dense<0.000000e+00> : vector<4x128xf32>
    %449 = tpu.matmul %1, %448, %cst_79 {dimension_numbers = #tpu.dot_dimension_numbers<[1], [0], [0], [1], [0, 0, 1, 1], [], []>} : vector<4x256xf32>, vector<256x128xf32>, vector<4x128xf32> -> vector<4x128xf32>
    %c32 = arith.constant 32 : index
    %c0_80 = arith.constant 0 : index
    %450 = vector.load %arg9[%c32, %c0_80] : memref<36x128xf32, #tpu.memory_space<vmem>>, vector<4x128xf32>
    tpu.vector_store %arg9[%c32, %c0_80], %449 {strides = array<i32>} : memref<36x128xf32, #tpu.memory_space<vmem>>, vector<4x128xf32>,
    %c0_81 = arith.constant 0 : index
    %c0_82 = arith.constant 0 : index
    %451 = vector.load %arg7[%c0_81, %c0_82] : memref<8x1xf32, #tpu.memory_space<vmem>>, vector<8x1xf32>
    %c0_83 = arith.constant 0 : index
    %c0_84 = arith.constant 0 : index
    %452 = vector.load %arg9[%c0_83, %c0_84] : memref<36x128xf32, #tpu.memory_space<vmem>>, vector<36x128xf32>
    %c0_85 = arith.constant 0 : index
    %c0_86 = arith.constant 0 : index
    %c0_87 = arith.constant 0 : index
    %453 = vector.load %arg6[%c0_85, %c0_86, %c0_87] : memref<1x8x36xf32, #tpu.memory_space<vmem>>, vector<1x8x36xf32>
    %454 = vector.shape_cast %453 : vector<1x8x36xf32> to vector<8x36xf32>
    %cst_88 = arith.constant dense<0.000000e+00> : vector<8x128xf32>
    %455 = tpu.matmul %454, %452, %cst_88 {dimension_numbers = #tpu.dot_dimension_numbers<[1], [0], [0], [1], [0, 0, 1, 1], [], []>} : vector<8x36xf32>, vector<36x128xf32>, vector<8x128xf32> -> vector<8x128xf32>
    %456 = vector.broadcast %451 : vector<8x1xf32> to vector<8x128xf32>
    %457 = arith.addf %455, %456 : vector<8x128xf32>
    %c0_89 = arith.constant 0 : index
    %c0_90 = arith.constant 0 : index
    %c0_91 = arith.constant 0 : index
    %458 = vector.load %arg8[%c0_89, %c0_90, %c0_91] : memref<1x8x128xf32, #tpu.memory_space<vmem>>, vector<1x8x128xf32>
    %459 = vector.shape_cast %458 : vector<1x8x128xf32> to vector<8x128xf32>
    %460 = vector.shape_cast %457 : vector<8x128xf32> to vector<1x8x128xf32>
    tpu.vector_store %arg8[%c0_89, %c0_90, %c0_91], %460 {strides = array<i32>} : memref<1x8x128xf32, #tpu.memory_space<vmem>>, vector<1x8x128xf32>,
    return
  }
  func.func @transform_0(%arg0: i32, %arg1: i32) -> (i32, i32, i32) {
    %c0_i32 = arith.constant 0 : i32
    %c0_i32_0 = arith.constant 0 : i32
    %c0_i32_1 = arith.constant 0 : i32
    return %arg0, %c0_i32, %c0_i32_0 : i32, i32, i32
  }
  func.func @transform_1(%arg0: i32, %arg1: i32) -> (i32, i32, i32) {
    %c0_i32 = arith.constant 0 : i32
    %c0_i32_0 = arith.constant 0 : i32
    return %arg0, %c0_i32, %arg1 : i32, i32, i32
  }
  func.func @transform_2(%arg0: i32, %arg1: i32) -> (i32, i32, i32) {
    %c0_i32 = arith.constant 0 : i32
    %c0_i32_0 = arith.constant 0 : i32
    return %arg0, %c0_i32, %arg1 : i32, i32, i32
  }
  func.func @transform_3(%arg0: i32, %arg1: i32) -> (i32, i32, i32) {
    %c0_i32 = arith.constant 0 : i32
    %c0_i32_0 = arith.constant 0 : i32
    return %arg0, %c0_i32, %arg1 : i32, i32, i32
  }
  func.func @transform_4(%arg0: i32, %arg1: i32) -> (i32, i32, i32) {
    %c0_i32 = arith.constant 0 : i32
    %c0_i32_0 = arith.constant 0 : i32
    %c0_i32_1 = arith.constant 0 : i32
    %c0_i32_2 = arith.constant 0 : i32
    return %c0_i32, %c0_i32_0, %c0_i32_1 : i32, i32, i32
  }
  func.func @transform_5(%arg0: i32, %arg1: i32) -> (i32, i32) {
    %c0_i32 = arith.constant 0 : i32
    %c0_i32_0 = arith.constant 0 : i32
    %c0_i32_1 = arith.constant 0 : i32
    return %c0_i32, %c0_i32_0 : i32, i32
  }
  func.func @transform_6(%arg0: i32, %arg1: i32) -> (i32, i32, i32) {
    %c0_i32 = arith.constant 0 : i32
    %c0_i32_0 = arith.constant 0 : i32
    return %arg0, %c0_i32, %arg1 : i32, i32, i32
  }
}

</mosaic_0001>

<bundles_post_ra>
// kernel: tpu_custom_call.1
= control target key start
LH: loop header
LB: loop body
LE: loop exit
PB: predicated region body
PF: predicated region fallthrough
CT: control target
= control target key end

     0   :  { %11 = vsyncpa [#allocation7], 0  ;;  %s9563_s0 = inlined_call_operand.vmem [shape: f32[2,4,256], index: 0, kind: input, shape index: {}]   ;;  %s9564_s1 = inlined_call_operand.vmem [shape: f32[2,9,256], index: 1, kind: input, shape index: {}]   ;;  %s9565_s2 = inlined_call_operand.vmem [shape: f32[2,9,256], index: 2, kind: input, shape index: {}]   ;;  %s9566_s3 = inlined_call_operand.vmem [shape: f32[2,9,256], index: 3, kind: input, shape index: {}]   ;;  %s9567_s4 = inlined_call_operand.vmem [shape: f32[1,8,36], index: 4, kind: input, shape index: {}]   ;;  %s9568_s5 = inlined_call_operand.vmem [shape: f32[8,1], index: 5, kind: input, shape index: {}]   ;;  %s9569_s6 = inlined_call_operand.hbm [shape: f32[2,8,256], index: 6, kind: output, shape index: {}]  }
   0x1   :  { %13 = vsyncpa [#allocation7 + $0x1], 0  ;;  %s5522_s21 = smov 0   ;;  %s5524_s22 = smov 0  }
   0x2   :  { %s5526_s23 = smov 0   ;;  %s5528_s24 = smov 0  }
   0x3   :  { %s5530_s25 = smov 0   ;;  %s5532_s26 = smov 0  }
   0x4   :  { %s5534_s27 = smov 0   ;;  %s5536_s28 = smov 0  }
   0x5 LB: > { %s4932_s29 = sadd.s32 4294967295, %s5481_s28   ;;  %s4933_s30 = sadd.s32 4294967294, %s5481_s28   ;;  %s5481_s28 = sphi %s5536_s28, %s19_s28   ;;  %s5477_s27 = sphi %s5534_s27, %s9654_s27   ;;  %s5473_s26 = sphi %s5532_s26, %s9653_s26   ;;  %s5469_s25 = sphi %s5530_s25, %s9652_s25   ;;  %s5465_s24 = sphi %s5528_s24, %s9651_s24   ;;  %s5461_s23 = sphi %s5526_s23, %s9650_s23   ;;  %s5457_s22 = sphi %s5524_s22, %s9649_s22   ;;  %s5453_s21 = sphi %s5522_s21, %s9648_s21  }
   0x6   : > { %s28_s7 = sadd.s32 1, %s5473_s26  ;;  %s31_s8 = sadd.s32 1, %s5477_s27 }
   0x7   : > { %p29_p0 = scmp.ge.s32.totalorder %s28_s7, 2  ;;  %p73_p1 = scmp.ne.s32.totalorder %s5461_s23, %s5457_s22 }
   0x8   : > { %p74_p2 = scmp.eq.s32.totalorder %s5481_s28, 0  ;;  %p203_p5 = scmp.eq.s32.totalorder %s4932_s29, 3 }
   0x9   : > { %s9656_s7 = smov (%p29_p0, %s28_s7), 0  ;;  %s9658_s8 = smov (!%p29_p0, %s31_s8), %s5477_s27 }
   0xa   : > { %9607 = sst [smem:[#allocation9_spill]] %s9656_s7  ;;  %s62_s9 = ssub.s32 %s5473_s26, %s9656_s7 }
   0xb   : > { %p5574_p3 = por %p74_p2, %p73_p1  ;;  %p33_p4 = scmp.ge.s32.totalorder %s9658_s8, 2 }
   0xc   : > { %p208_p6 = scmp.ne.s32.totalorder %s5457_s22, %s5453_s21  ;;  %p209_p7 = scmp.eq.s32.totalorder %s4933_s30, 3 }
   0xd   : > { %s9660_s8 = smov (%p33_p4, %s9658_s8), 0  ;;  %p5582_p8 = por %p203_p5, %p73_p1 }
   0xe   : > { %9609 = sst [smem:[#allocation10_spill]] %s9660_s8  ;;  %p5586_p9 = por %p209_p7, %p208_p6 }
   0xf   : > { %s61_s13 = ssub.s32 %s5477_s27, %s9660_s8  ;;  %s66_s15 = sadd.s32 1, %s5461_s23 }
  0x10   : > { %s63_s14 = sor.u32 %s62_s9, %s61_s13  ;;  %p4935_p11 = scmp.ge.s32.totalorder %s5481_s28, 4 }
  0x11   : > { %p64_p10 = scmp.eq.s32.totalorder %s63_s14, 0 }
  0x12   : > { %231 = sbr.rel (%p4935_p11) target bundleno = 44 (0x2c), region = 24 }
  0x13   : > { %s5594_s16 = scalar_select %p64_p10, %s5461_s23, %s66_s15  }
  0x17   : > { %242 = sbr.rel (!%p5574_p3) target bundleno = 30 (0x1e), region = 32  ;;  %s244_s17 = sand.u32 (%p5574_p3), 1, %s5461_s23  }
  0x18   : > { %s4937_s18 = sshll.u32 (%p5574_p3), %s5477_s27, 2  ;;  %s4936_s19 = sshll.u32 (%p5574_p3), %s244_s17, 4 }
  0x19   : > { %s248_s20 = sadd.s32 (%p5574_p3), %s5473_s26, %s4937_s18  ;;  %s246_s14 = scalar_lea.vmem (%p5574_p3), [#allocation3], %s4936_s19 }
  0x1a   : > { %s4938_s29 = sshll.u32 (%p5574_p3), %s248_s20, 3 }
  0x1b   : > { %s250_s13 = scalar_lea.vmem (%p5574_p3), %s9564_s1, %s4938_s29 }
  0x1c   : > { %v281_v0 = vld [vmem:[%s250_s13] sm:$0xff]  ;;  %v283_v1 = vld [vmem:[%s250_s13 + $0x10] sm:$0xff] }
  0x1d   : > { %282 = vst [vmem:[%s246_s14] sm:$0xff] %v281_v0  ;;  %284 = vst [vmem:[%s246_s14 + $0x8] sm:$0xff] %v283_v1 }
  0x1e PF: > { %290 = sbr.rel (!%p5574_p3) target bundleno = 37 (0x25), region = 70  ;;  %s292_s15 = sand.u32 (%p5574_p3), 1, %s5461_s23  }
  0x1f   : > { %s4940_s17 = sshll.u32 (%p5574_p3), %s5477_s27, 2  ;;  %s4939_s18 = sshll.u32 (%p5574_p3), %s292_s15, 4 }
  0x20   : > { %s296_s20 = sadd.s32 (%p5574_p3), %s5473_s26, %s4940_s17  ;;  %s294_s19 = scalar_lea.vmem (%p5574_p3), [#allocation4], %s4939_s18 }
  0x21   : > { %s4941_s8 = sshll.u32 (%p5574_p3), %s296_s20, 3 }
  0x22   : > { %s298_s29 = scalar_lea.vmem (%p5574_p3), %s9565_s2, %s4941_s8 }
  0x23   : > { %v329_v2 = vld [vmem:[%s298_s29] sm:$0xff]  ;;  %v331_v3 = vld [vmem:[%s298_s29 + $0x10] sm:$0xff] }
  0x24   : > { %330 = vst [vmem:[%s294_s19] sm:$0xff] %v329_v2  ;;  %332 = vst [vmem:[%s294_s19 + $0x8] sm:$0xff] %v331_v3 }
  0x25 PF: > { %338 = sbr.rel (!%p5574_p3) target bundleno = 44 (0x2c), region = 108  ;;  %s340_s9 = sand.u32 (%p5574_p3), 1, %s5461_s23  }
  0x26   : > { %s4943_s13 = sshll.u32 (%p5574_p3), %s5477_s27, 2  ;;  %s4942_s14 = sshll.u32 (%p5574_p3), %s340_s9, 4 }
  0x27   : > { %s344_s15 = sadd.s32 (%p5574_p3), %s5473_s26, %s4943_s13  ;;  %s342_s18 = scalar_lea.vmem (%p5574_p3), [#allocation5], %s4942_s14 }
  0x28   : > { %s4944_s17 = sshll.u32 (%p5574_p3), %s344_s15, 3 }
  0x29   : > { %s346_s8 = scalar_lea.vmem (%p5574_p3), %s9566_s3, %s4944_s17 }
  0x2a   : > { %v377_v4 = vld [vmem:[%s346_s8] sm:$0xff]  ;;  %v379_v5 = vld [vmem:[%s346_s8 + $0x10] sm:$0xff] }
  0x2b   : > { %378 = vst [vmem:[%s342_s18] sm:$0xff] %v377_v4  ;;  %380 = vst [vmem:[%s342_s18 + $0x8] sm:$0xff] %v379_v5 }
  0x2c PF: > { %p4945_p12 = scmp.ge.s32.totalorder %s5481_s28, 1  ;;  %p385_p13 = scmp.lt.s32.totalorder %s5481_s28, 5 }
  0x2e   : > { %p386_p0 = pnand %p4945_p12, %p385_p13 }
  0x30   : > { %389 = sbr.rel (%p386_p0) target bundleno = 1331 (0x533), region = 146 }
  0x35   : > { %s5624_s10 = sand.u32 1, %s5457_s22   ;;  %v562_v6 = vlaneseq  ;;  %v9572_v38 = vmov 0.0   ;;  %p448_p1 = scmp.lt.s32.totalorder %s5469_s25, 1 }
  0x36   : > { %s5627_s30 = sshll.u32 %s5624_s10, 4  ;;  %s4785_s8 = scalar_lea.sflag [#allocation7], %s5624_s10 }
  0x37   : > { %v5629_v7 = vshrl.u32 %v562_v6, 7  ;;  %s394_s29 = scalar_lea.vmem [#allocation3], %s5627_s30  ;;  %s401_s19 = scalar_lea.vmem [#allocation4], %s5627_s30 }
  0x38   : > { %v454_v8 = vld [vmem:[%s394_s29] sm:$0xff]  ;;  %s408_s9 = scalar_lea.vmem [#allocation5], %s5627_s30 }
  0x39   : > { %v456_v9 = vld [vmem:[%s401_s19] sm:$0xff]  ;;  %v460_v10 = vfloor.f32 %v454_v8  ;;  %v5638_v12 = vadd.s32 248, %v5629_v7  ;;  %v5641_v13 = vsub.s32 0, %v5629_v7  ;;  %v5644_v14 = vsub.s32 1, %v5629_v7  ;;  %s6529_s13 = scalar_select %p448_p1, %s5469_s25, 1 }
  0x3a   : > { %v462_v11 = vfloor.f32 %v456_v9  ;;  %v5647_v15 = vadd.s32 120, %v5629_v7  ;;  %v5650_v16 = vadd.s32 240, %v5629_v7  ;;  %v5653_v17 = vadd.s32 112, %v5629_v7  ;;  %v458_v43 = vld [vmem:[%s408_s9] sm:$0xff] }
  0x3b   : > { %9612 = vst [vmem:[#allocation11_spill] sm:$0xff] %v5641_v13  ;;  %v464_v18 = vsub.f32 %v454_v8, %v460_v10  ;;  %v5302_v20 = vtrunc.f32 %v460_v10  ;;  %v5656_v22 = vadd.s32 232, %v5629_v7  ;;  %v5659_v23 = vadd.s32 104, %v5629_v7  ;;  %s4967_s14 = sshll.u32 %s6529_s13, 3 }
  0x3c   : > { %v466_v19 = vsub.f32 %v456_v9, %v462_v11  ;;  %v5306_v21 = vtrunc.f32 %v462_v11  ;;  %v5662_v24 = vadd.s32 224, %v5629_v7  ;;  %v5665_v25 = vadd.s32 96, %v5629_v7  ;;  %s6567_s20 = scalar_lea.vmem %s9563_s0, %s4967_s14 }
  0x3d   : > { %v5303_v26 = vcvt.f32.s32 %v5302_v20  ;;  %v516_v28 = vsub.f32 1.0, %v464_v18  ;;  %v5668_v31 = vadd.s32 216, %v5629_v7  ;;  %v5671_v32 = vadd.s32 88, %v5629_v7 }
  0x3e   : > { %v5307_v27 = vcvt.f32.s32 %v5306_v21  ;;  %v518_v29 = vsub.f32 1.0, %v466_v19  ;;  %v544_v30 = vmul.f32 %v466_v19, %v464_v18  ;;  %v5674_v33 = vadd.s32 208, %v5629_v7 }
  0x3f   : > { %v472_v34 = vadd.s32 1, %v5303_v26  ;;  %vm476_vm0 = vcmp.ge.s32.totalorder %v5303_v26, 0  ;;  %vm478_vm1 = vcmp.lt.s32.totalorder %v5303_v26, 16  ;;  %v528_v37 = vmul.f32 %v516_v28, %v466_v19 }
  0x40   : > { %v474_v35 = vadd.s32 1, %v5307_v27  ;;  %vm480_vm2 = vmand %vm476_vm0, %vm478_vm1  ;;  %vm496_vm3 = vcmp.ge.s32.totalorder %v5307_v27, 0  ;;  %vm498_vm4 = vcmp.lt.s32.totalorder %v5307_v27, 16  ;;  %v520_v36 = vmul.f32 %v518_v29, %v516_v28 }
  0x41   : > { %v4952_v39 = vsel %vm480_vm2, 1.0, %v9572_v38  ;;  %vm486_vm5 = vcmp.ge.s32.totalorder %v472_v34, 0  ;;  %vm488_vm6 = vcmp.lt.s32.totalorder %v472_v34, 16  ;;  %vm500_vm7 = vmand %vm496_vm3, %vm498_vm4  ;;  %v536_v45 = vmul.f32 %v518_v29, %v464_v18 }
  0x42   : > { %vm506_vm8 = vcmp.ge.s32.totalorder %v474_v35, 0  ;;  %vm490_vm9 = vmand %vm486_vm5, %vm488_vm6  ;;  %v4956_v40 = vsel %vm500_vm7, 1.0, %v9572_v38  ;;  %vm508_vm10 = vcmp.lt.s32.totalorder %v474_v35, 16  ;;  %v522_v41 = vmul.f32 %v4952_v39, %v520_v36 }
  0x43   : > { %v530_v42 = vmul.f32 %v4952_v39, %v528_v37  ;;  %v4954_v44 = vsel %vm490_vm9, 1.0, %v9572_v38  ;;  %vm510_vm11 = vmand %vm506_vm8, %vm508_vm10  ;;  %v552_v46 = vmul.u32 16, %v5303_v26  ;;  %v5683_v47 = vadd.s32 80, %v5629_v7 }
  0x44   : > { %v4958_v48 = vsel %vm510_vm11, 1.0, %v9572_v38  ;;  %v524_v49 = vmul.f32 %v4956_v40, %v522_v41  ;;  %v546_v50 = vmul.f32 %v4954_v44, %v544_v30  ;;  %v5687_v51 = vadd.s32 200, %v5629_v7 }
  0x45   : > { %v532_v52 = vmul.f32 %v4958_v48, %v530_v42  ;;  %v538_v53 = vmul.f32 %v4954_v44, %v536_v45  ;;  %v5689_v54 = vadd.s32 %v5307_v27, %v552_v46  ;;  %v5692_v55 = vadd.s32 72, %v5629_v7 }
  0x46   : > { %v5694_v56 = vmul.f32 %v524_v49, %v458_v43  ;;  %v548_v57 = vmul.f32 %v4958_v48, %v546_v50  ;;  %v5697_v58 = vadd.s32 192, %v5629_v7  ;;  %v5700_v59 = vadd.s32 64, %v5629_v7 }
  0x47   : > { %v5702_v60 = vmul.f32 %v532_v52, %v458_v43  ;;  %v540_v61 = vmul.f32 %v4956_v40, %v538_v53  ;;  %v5705_v62 = vadd.s32 1, %v5689_v54  ;;  %v5708_v63 = vadd.s32 16, %v5689_v54 }
  0x48   : > { %v5710_v0 = vmul.f32 %v548_v57, %v458_v43  ;;  %v5714_v1 = vrot.slane %v5689_v54, %v5641_v13  ;;  %v5718_v2 = vrot.slane %v5694_v56, %v5641_v13  ;;  %v5722_v3 = vrot.slane %v5689_v54, %v5644_v14 }
  0x49   : > { %v5724_v4 = vmul.f32 %v540_v61, %v458_v43  ;;  %v5727_v5 = vadd.s32 1, %v5708_v63  ;;  %v5731_v6 = vrot.slane %v5705_v62, %v5641_v13  ;;  %v5735_v8 = vrot.slane %v5702_v60, %v5641_v13 }
  0x4a   : > { %9613 = vst [vmem:[#allocation12_spill] sm:$0xff] %v5710_v0  ;;  %vm630_vm12 = vcmp.eq.s32.totalorder %v5638_v12, %v5714_v1  ;;  %v5741_v9 = vrot.slane %v5708_v63, %v5641_v13  ;;  %v5745_v10 = vrot.slane %v5710_v0, %v5641_v13  ;;  %vm1088_vm13 = vcmp.eq.s32.totalorder %v5638_v12, %v5722_v3 }
  0x4b   : > { %v666_v11 = vsel %vm630_vm12, %v5718_v2, 0.0  ;;  %vm702_vm14 = vcmp.eq.s32.totalorder %v5638_v12, %v5731_v6  ;;  %v5754_v18 = vrot.slane %v5724_v4, %v5641_v13  ;;  %v5758_v19 = vrot.slane %v5727_v5, %v5641_v13 }
  0x4c   : > { %v738_v20 = vsel %vm702_vm14, %v5735_v8, 0.0  ;;  %vm806_vm15 = vcmp.eq.s32.totalorder %v5638_v12, %v5741_v9  ;;  %v5765_v21 = vrot.slane %v5694_v56, %v5644_v14  ;;  %v5769_v26 = vrot.slane %v5705_v62, %v5644_v14 }
  0x4d   : > { %v770_v27 = vadd.f32 %v738_v20, %v666_v11  ;;  %v842_v28 = vsel %vm806_vm15, %v5754_v18, 0.0  ;;  %vm910_vm0 = vcmp.eq.s32.totalorder %v5638_v12, %v5758_v19  ;;  %v5776_v29 = vrot.slane %v5702_v60, %v5644_v14 }
  0x4e   : > { %v946_v30 = vsel %vm910_vm0, %v5745_v10, 0.0  ;;  %v1124_v34 = vsel %vm1088_vm13, %v5765_v21, 0.0  ;;  %vm1160_vm1 = vcmp.eq.s32.totalorder %v5638_v12, %v5769_v26  ;;  %v5784_v35 = vrot.slane %v5708_v63, %v5644_v14 }
  0x4f   : > { %v874_v36 = vadd.f32 %v842_v28, %v770_v27  ;;  %v1196_v37 = vsel %vm1160_vm1, %v5776_v29, 0.0  ;;  %v5789_v39 = vrot.slane %v5724_v4, %v5644_v14  ;;  %v5793_v40 = vrot.slane %v5727_v5, %v5644_v14 }
  0x50   : > { %v1228_v41 = vadd.f32 %v1196_v37, %v1124_v34  ;;  %vm1264_vm2 = vcmp.eq.s32.totalorder %v5638_v12, %v5784_v35  ;;  %v5799_v42 = vrot.slane %v5710_v0, %v5644_v14  ;;  %vm614_vm3 = vcmp.eq.s32.totalorder %v5647_v15, %v5714_v1 }
  0x51   : > { %v978_v43 = vadd.f32 %v946_v30, %v874_v36  ;;  %v1300_v44 = vsel %vm1264_vm2, %v5789_v39, 0.0  ;;  %vm1368_vm4 = vcmp.eq.s32.totalorder %v5638_v12, %v5793_v40  ;;  %v650_v45 = vsel %vm614_vm3, %v5718_v2, 0.0 }
  0x52   : > { %v1332_v46 = vadd.f32 %v1300_v44, %v1228_v41  ;;  %v1404_v48 = vsel %vm1368_vm4, %v5799_v42, 0.0  ;;  %vm686_vm5 = vcmp.eq.s32.totalorder %v5647_v15, %v5731_v6  ;;  %vm790_vm6 = vcmp.eq.s32.totalorder %v5647_v15, %v5741_v9 }
  0x53   : > { %4968 = vmatprep.subr.mxu0 %v978_v43  ;;  %v722_v14 = vsel %vm686_vm5, %v5735_v8, 0.0  ;;  %v826_v49 = vsel %vm790_vm6, %v5754_v18, 0.0  ;;  %vm894_vm7 = vcmp.eq.s32.totalorder %v5647_v15, %v5758_v19  ;;  %vm1072_vm8 = vcmp.eq.s32.totalorder %v5647_v15, %v5722_v3 }
  0x54   : > { %v1436_v50 = vadd.f32 %v1404_v48, %v1332_v46  ;;  %v754_v52 = vadd.f32 %v722_v14, %v650_v45  ;;  %v930_v53 = vsel %vm894_vm7, %v5745_v10, 0.0  ;;  %v1108_v57 = vsel %vm1072_vm8, %v5765_v21, 0.0 }
  0x55   : > { %vm1144_vm9 = vcmp.eq.s32.totalorder %v5647_v15, %v5769_v26  ;;  %vm1248_vm10 = vcmp.eq.s32.totalorder %v5647_v15, %v5784_v35  ;;  %vm1352_vm11 = vcmp.eq.s32.totalorder %v5647_v15, %v5793_v40  ;;  %vm629_vm12 = vcmp.eq.s32.totalorder %v5650_v16, %v5714_v1 }
  0x56   : > { %5003 = vmatprep.subr.mxu1 %v1436_v50  ;;  %v858_v61 = vadd.f32 %v826_v49, %v754_v52  ;;  %v1180_v11 = vsel %vm1144_vm9, %v5776_v29, 0.0  ;;  %v1284_v20 = vsel %vm1248_vm10, %v5789_v39, 0.0  ;;  %v1388_v27 = vsel %vm1352_vm11, %v5799_v42, 0.0 }
  0x57   : > { %v1212_v28 = vadd.f32 %v1180_v11, %v1108_v57  ;;  %v665_v30 = vsel %vm629_vm12, %v5718_v2, 0.0  ;;  %vm701_vm13 = vcmp.eq.s32.totalorder %v5650_v16, %v5731_v6  ;;  %vm805_vm14 = vcmp.eq.s32.totalorder %v5650_v16, %v5741_v9 }
  0x58   : > { %v962_v34 = vadd.f32 %v930_v53, %v858_v61  ;;  %v737_v36 = vsel %vm701_vm13, %v5735_v8, 0.0  ;;  %v841_v37 = vsel %vm805_vm14, %v5754_v18, 0.0  ;;  %vm909_vm15 = vcmp.eq.s32.totalorder %v5650_v16, %v5758_v19 }
  0x59   : > { %v1316_v41 = vadd.f32 %v1284_v20, %v1212_v28  ;;  %v769_v43 = vadd.f32 %v737_v36, %v665_v30  ;;  %v945_v44 = vsel %vm909_vm15, %v5745_v10, 0.0  ;;  %vm1087_vm0 = vcmp.eq.s32.totalorder %v5650_v16, %v5722_v3 }
  0x5a   : > { %4969 = vmatpush3.msra.mxu0 %v962_v34  ;;  %v1123_v45 = vsel %vm1087_vm0, %v5765_v21, 0.0  ;;  %vm1159_vm1 = vcmp.eq.s32.totalorder %v5650_v16, %v5769_v26  ;;  %vm1263_vm2 = vcmp.eq.s32.totalorder %v5650_v16, %v5784_v35  ;;  %vm1367_vm3 = vcmp.eq.s32.totalorder %v5650_v16, %v5793_v40 }
  0x5b   : > { %v1420_v46 = vadd.f32 %v1388_v27, %v1316_v41  ;;  %v873_v48 = vadd.f32 %v841_v37, %v769_v43  ;;  %v1195_v14 = vsel %vm1159_vm1, %v5776_v29, 0.0  ;;  %v1299_v49 = vsel %vm1263_vm2, %v5789_v39, 0.0 }
  0x5c   : > { %v1227_v50 = vadd.f32 %v1195_v14, %v1123_v45  ;;  %v1403_v52 = vsel %vm1367_vm3, %v5799_v42, 0.0  ;;  %vm613_vm4 = vcmp.eq.s32.totalorder %v5653_v17, %v5714_v1  ;;  %vm685_vm5 = vcmp.eq.s32.totalorder %v5653_v17, %v5731_v6 }
  0x5d   : > { %5004 = vmatpush3.msra.mxu1 %v1420_v46  ;;  %v977_v53 = vadd.f32 %v945_v44, %v873_v48  ;;  %v649_v57 = vsel %vm613_vm4, %v5718_v2, 0.0  ;;  %v721_v61 = vsel %vm685_vm5, %v5735_v8, 0.0  ;;  %vm789_vm6 = vcmp.eq.s32.totalorder %v5653_v17, %v5741_v9 }
  0x5e   : > { %v1331_v11 = vadd.f32 %v1299_v49, %v1227_v50  ;;  %v753_v20 = vadd.f32 %v721_v61, %v649_v57  ;;  %v825_v27 = vsel %vm789_vm6, %v5754_v18, 0.0  ;;  %vm893_vm7 = vcmp.eq.s32.totalorder %v5653_v17, %v5758_v19 }
  0x5f   : > { %4970 = vmatprep.subr.mxu0 %v977_v53  ;;  %v929_v28 = vsel %vm893_vm7, %v5745_v10, 0.0  ;;  %vm1071_vm8 = vcmp.eq.s32.totalorder %v5653_v17, %v5722_v3  ;;  %vm1143_vm9 = vcmp.eq.s32.totalorder %v5653_v17, %v5769_v26  ;;  %vm1247_vm10 = vcmp.eq.s32.totalorder %v5653_v17, %v5784_v35 }
  0x60   : > { %v1435_v30 = vadd.f32 %v1403_v52, %v1331_v11  ;;  %v857_v34 = vadd.f32 %v825_v27, %v753_v20  ;;  %v1107_v36 = vsel %vm1071_vm8, %v5765_v21, 0.0  ;;  %v1179_v37 = vsel %vm1143_vm9, %v5776_v29, 0.0 }
  0x61   : > { %v1211_v41 = vadd.f32 %v1179_v37, %v1107_v36  ;;  %v1283_v43 = vsel %vm1247_vm10, %v5789_v39, 0.0  ;;  %vm1351_vm11 = vcmp.eq.s32.totalorder %v5653_v17, %v5793_v40  ;;  %vm628_vm12 = vcmp.eq.s32.totalorder %v5656_v22, %v5714_v1 }
  0x62   : > { %5005 = vmatprep.subr.mxu1 %v1435_v30  ;;  %v961_v44 = vadd.f32 %v929_v28, %v857_v34  ;;  %v1387_v45 = vsel %vm1351_vm11, %v5799_v42, 0.0  ;;  %v664_v46 = vsel %vm628_vm12, %v5718_v2, 0.0  ;;  %vm700_vm13 = vcmp.eq.s32.totalorder %v5656_v22, %v5731_v6 }
  0x63   : > { %v1315_v48 = vadd.f32 %v1283_v43, %v1211_v41  ;;  %v736_v14 = vsel %vm700_vm13, %v5735_v8, 0.0  ;;  %vm804_vm14 = vcmp.eq.s32.totalorder %v5656_v22, %v5741_v9  ;;  %vm908_vm15 = vcmp.eq.s32.totalorder %v5656_v22, %v5758_v19 }
  0x64   : > { %4971 = vmatpush3.msra.mxu0 %v961_v44  ;;  %v768_v49 = vadd.f32 %v736_v14, %v664_v46  ;;  %v840_v50 = vsel %vm804_vm14, %v5754_v18, 0.0  ;;  %v944_v52 = vsel %vm908_vm15, %v5745_v10, 0.0  ;;  %vm1086_vm0 = vcmp.eq.s32.totalorder %v5656_v22, %v5722_v3 }
  0x65   : > { %v1419_v53 = vadd.f32 %v1387_v45, %v1315_v48  ;;  %v1122_v57 = vsel %vm1086_vm0, %v5765_v21, 0.0  ;;  %vm1158_vm1 = vcmp.eq.s32.totalorder %v5656_v22, %v5769_v26  ;;  %vm1262_vm2 = vcmp.eq.s32.totalorder %v5656_v22, %v5784_v35 }
  0x66   : > { %v872_v61 = vadd.f32 %v840_v50, %v768_v49  ;;  %v1194_v11 = vsel %vm1158_vm1, %v5776_v29, 0.0  ;;  %v1298_v20 = vsel %vm1262_vm2, %v5789_v39, 0.0  ;;  %vm1366_vm3 = vcmp.eq.s32.totalorder %v5656_v22, %v5793_v40 }
  0x67   : > { %5006 = vmatpush3.msra.mxu1 %v1419_v53  ;;  %v1226_v27 = vadd.f32 %v1194_v11, %v1122_v57  ;;  %v1402_v28 = vsel %vm1366_vm3, %v5799_v42, 0.0  ;;  %vm612_vm4 = vcmp.eq.s32.totalorder %v5659_v23, %v5714_v1  ;;  %vm684_vm5 = vcmp.eq.s32.totalorder %v5659_v23, %v5731_v6 }
  0x68   : > { %v976_v30 = vadd.f32 %v944_v52, %v872_v61  ;;  %v648_v34 = vsel %vm612_vm4, %v5718_v2, 0.0  ;;  %v720_v36 = vsel %vm684_vm5, %v5735_v8, 0.0  ;;  %vm788_vm6 = vcmp.eq.s32.totalorder %v5659_v23, %v5741_v9 }
  0x69   : > { %v1330_v37 = vadd.f32 %v1298_v20, %v1226_v27  ;;  %v752_v41 = vadd.f32 %v720_v36, %v648_v34  ;;  %v824_v43 = vsel %vm788_vm6, %v5754_v18, 0.0  ;;  %vm892_vm7 = vcmp.eq.s32.totalorder %v5659_v23, %v5758_v19 }
  0x6a   : > { %4972 = vmatprep.subr.mxu0 %v976_v30  ;;  %v928_v44 = vsel %vm892_vm7, %v5745_v10, 0.0  ;;  %vm1070_vm8 = vcmp.eq.s32.totalorder %v5659_v23, %v5722_v3  ;;  %vm1142_vm9 = vcmp.eq.s32.totalorder %v5659_v23, %v5769_v26  ;;  %vm1246_vm10 = vcmp.eq.s32.totalorder %v5659_v23, %v5784_v35 }
  0x6b   : > { %v1434_v45 = vadd.f32 %v1402_v28, %v1330_v37  ;;  %v856_v46 = vadd.f32 %v824_v43, %v752_v41  ;;  %v1106_v48 = vsel %vm1070_vm8, %v5765_v21, 0.0  ;;  %v1178_v14 = vsel %vm1142_vm9, %v5776_v29, 0.0 }
  0x6c   : > { %v1210_v49 = vadd.f32 %v1178_v14, %v1106_v48  ;;  %v1282_v50 = vsel %vm1246_vm10, %v5789_v39, 0.0  ;;  %vm1350_vm11 = vcmp.eq.s32.totalorder %v5659_v23, %v5793_v40  ;;  %vm627_vm12 = vcmp.eq.s32.totalorder %v5662_v24, %v5714_v1 }
  0x6d   : > { %5007 = vmatprep.subr.mxu1 %v1434_v45  ;;  %v960_v52 = vadd.f32 %v928_v44, %v856_v46  ;;  %v1386_v53 = vsel %vm1350_vm11, %v5799_v42, 0.0  ;;  %v663_v57 = vsel %vm627_vm12, %v5718_v2, 0.0  ;;  %vm699_vm13 = vcmp.eq.s32.totalorder %v5662_v24, %v5731_v6 }
  0x6e   : > { %v1314_v61 = vadd.f32 %v1282_v50, %v1210_v49  ;;  %v735_v11 = vsel %vm699_vm13, %v5735_v8, 0.0  ;;  %vm803_vm14 = vcmp.eq.s32.totalorder %v5662_v24, %v5741_v9  ;;  %vm907_vm15 = vcmp.eq.s32.totalorder %v5662_v24, %v5758_v19 }
  0x6f   : > { %4973 = vmatpush3.msra.mxu0 %v960_v52  ;;  %v767_v20 = vadd.f32 %v735_v11, %v663_v57  ;;  %v839_v27 = vsel %vm803_vm14, %v5754_v18, 0.0  ;;  %v943_v28 = vsel %vm907_vm15, %v5745_v10, 0.0  ;;  %vm1085_vm0 = vcmp.eq.s32.totalorder %v5662_v24, %v5722_v3 }
  0x70   : > { %v1418_v30 = vadd.f32 %v1386_v53, %v1314_v61  ;;  %v1121_v34 = vsel %vm1085_vm0, %v5765_v21, 0.0  ;;  %vm1157_vm1 = vcmp.eq.s32.totalorder %v5662_v24, %v5769_v26  ;;  %vm1261_vm2 = vcmp.eq.s32.totalorder %v5662_v24, %v5784_v35 }
  0x71   : > { %v871_v36 = vadd.f32 %v839_v27, %v767_v20  ;;  %v1193_v37 = vsel %vm1157_vm1, %v5776_v29, 0.0  ;;  %v1297_v41 = vsel %vm1261_vm2, %v5789_v39, 0.0  ;;  %vm1365_vm3 = vcmp.eq.s32.totalorder %v5662_v24, %v5793_v40 }
  0x72   : > { %5008 = vmatpush3.msra.mxu1 %v1418_v30  ;;  %v1225_v43 = vadd.f32 %v1193_v37, %v1121_v34  ;;  %v1401_v44 = vsel %vm1365_vm3, %v5799_v42, 0.0  ;;  %vm611_vm4 = vcmp.eq.s32.totalorder %v5665_v25, %v5714_v1  ;;  %vm683_vm5 = vcmp.eq.s32.totalorder %v5665_v25, %v5731_v6 }
  0x73   : > { %v975_v45 = vadd.f32 %v943_v28, %v871_v36  ;;  %v647_v46 = vsel %vm611_vm4, %v5718_v2, 0.0  ;;  %v719_v48 = vsel %vm683_vm5, %v5735_v8, 0.0  ;;  %vm787_vm6 = vcmp.eq.s32.totalorder %v5665_v25, %v5741_v9 }
  0x74   : > { %v1329_v14 = vadd.f32 %v1297_v41, %v1225_v43  ;;  %v751_v49 = vadd.f32 %v719_v48, %v647_v46  ;;  %v823_v50 = vsel %vm787_vm6, %v5754_v18, 0.0  ;;  %vm891_vm7 = vcmp.eq.s32.totalorder %v5665_v25, %v5758_v19 }
  0x75   : > { %4974 = vmatprep.subr.mxu0 %v975_v45  ;;  %v927_v52 = vsel %vm891_vm7, %v5745_v10, 0.0  ;;  %vm1069_vm8 = vcmp.eq.s32.totalorder %v5665_v25, %v5722_v3  ;;  %vm1141_vm9 = vcmp.eq.s32.totalorder %v5665_v25, %v5769_v26  ;;  %vm1245_vm10 = vcmp.eq.s32.totalorder %v5665_v25, %v5784_v35 }
  0x76   : > { %v1433_v53 = vadd.f32 %v1401_v44, %v1329_v14  ;;  %v855_v57 = vadd.f32 %v823_v50, %v751_v49  ;;  %v1105_v61 = vsel %vm1069_vm8, %v5765_v21, 0.0  ;;  %v1177_v11 = vsel %vm1141_vm9, %v5776_v29, 0.0 }
  0x77   : > { %v1209_v20 = vadd.f32 %v1177_v11, %v1105_v61  ;;  %v1281_v27 = vsel %vm1245_vm10, %v5789_v39, 0.0  ;;  %vm1349_vm11 = vcmp.eq.s32.totalorder %v5665_v25, %v5793_v40  ;;  %vm626_vm12 = vcmp.eq.s32.totalorder %v5668_v31, %v5714_v1 }
  0x78   : > { %5009 = vmatprep.subr.mxu1 %v1433_v53  ;;  %v959_v28 = vadd.f32 %v927_v52, %v855_v57  ;;  %v1385_v30 = vsel %vm1349_vm11, %v5799_v42, 0.0  ;;  %v662_v34 = vsel %vm626_vm12, %v5718_v2, 0.0  ;;  %vm698_vm13 = vcmp.eq.s32.totalorder %v5668_v31, %v5731_v6 }
  0x79   : > { %v1313_v36 = vadd.f32 %v1281_v27, %v1209_v20  ;;  %v734_v37 = vsel %vm698_vm13, %v5735_v8, 0.0  ;;  %vm802_vm14 = vcmp.eq.s32.totalorder %v5668_v31, %v5741_v9  ;;  %vm906_vm15 = vcmp.eq.s32.totalorder %v5668_v31, %v5758_v19 }
  0x7a   : > { %4975 = vmatpush3.msra.mxu0 %v959_v28  ;;  %v766_v41 = vadd.f32 %v734_v37, %v662_v34  ;;  %v838_v43 = vsel %vm802_vm14, %v5754_v18, 0.0  ;;  %v942_v44 = vsel %vm906_vm15, %v5745_v10, 0.0  ;;  %vm1084_vm0 = vcmp.eq.s32.totalorder %v5668_v31, %v5722_v3 }
  0x7b   : > { %v1417_v45 = vadd.f32 %v1385_v30, %v1313_v36  ;;  %v1120_v46 = vsel %vm1084_vm0, %v5765_v21, 0.0  ;;  %vm1156_vm1 = vcmp.eq.s32.totalorder %v5668_v31, %v5769_v26  ;;  %vm1260_vm2 = vcmp.eq.s32.totalorder %v5668_v31, %v5784_v35 }
  0x7c   : > { %v870_v48 = vadd.f32 %v838_v43, %v766_v41  ;;  %v1192_v14 = vsel %vm1156_vm1, %v5776_v29, 0.0  ;;  %v1296_v49 = vsel %vm1260_vm2, %v5789_v39, 0.0  ;;  %vm1364_vm3 = vcmp.eq.s32.totalorder %v5668_v31, %v5793_v40 }
  0x7d   : > { %5010 = vmatpush3.msra.mxu1 %v1417_v45  ;;  %v1224_v50 = vadd.f32 %v1192_v14, %v1120_v46  ;;  %v1400_v52 = vsel %vm1364_vm3, %v5799_v42, 0.0  ;;  %vm610_vm4 = vcmp.eq.s32.totalorder %v5671_v32, %v5714_v1  ;;  %vm682_vm5 = vcmp.eq.s32.totalorder %v5671_v32, %v5731_v6 }
  0x7e   : > { %v974_v53 = vadd.f32 %v942_v44, %v870_v48  ;;  %v646_v57 = vsel %vm610_vm4, %v5718_v2, 0.0  ;;  %v718_v61 = vsel %vm682_vm5, %v5735_v8, 0.0  ;;  %vm786_vm6 = vcmp.eq.s32.totalorder %v5671_v32, %v5741_v9 }
  0x7f   : > { %v1328_v11 = vadd.f32 %v1296_v49, %v1224_v50  ;;  %v750_v20 = vadd.f32 %v718_v61, %v646_v57  ;;  %v822_v27 = vsel %vm786_vm6, %v5754_v18, 0.0  ;;  %vm890_vm7 = vcmp.eq.s32.totalorder %v5671_v32, %v5758_v19 }
  0x80   : > { %4976 = vmatprep.subr.mxu0 %v974_v53  ;;  %v926_v28 = vsel %vm890_vm7, %v5745_v10, 0.0  ;;  %vm1068_vm8 = vcmp.eq.s32.totalorder %v5671_v32, %v5722_v3  ;;  %vm1140_vm9 = vcmp.eq.s32.totalorder %v5671_v32, %v5769_v26  ;;  %vm1244_vm10 = vcmp.eq.s32.totalorder %v5671_v32, %v5784_v35 }
  0x81   : > { %v1432_v30 = vadd.f32 %v1400_v52, %v1328_v11  ;;  %v854_v34 = vadd.f32 %v822_v27, %v750_v20  ;;  %v1104_v36 = vsel %vm1068_vm8, %v5765_v21, 0.0  ;;  %v1176_v37 = vsel %vm1140_vm9, %v5776_v29, 0.0 }
  0x82   : > { %v1208_v41 = vadd.f32 %v1176_v37, %v1104_v36  ;;  %v1280_v43 = vsel %vm1244_vm10, %v5789_v39, 0.0  ;;  %vm1348_vm11 = vcmp.eq.s32.totalorder %v5671_v32, %v5793_v40  ;;  %vm625_vm12 = vcmp.eq.s32.totalorder %v5674_v33, %v5714_v1 }
  0x83   : > { %5011 = vmatprep.subr.mxu1 %v1432_v30  ;;  %v958_v44 = vadd.f32 %v926_v28, %v854_v34  ;;  %v1384_v45 = vsel %vm1348_vm11, %v5799_v42, 0.0  ;;  %v661_v46 = vsel %vm625_vm12, %v5718_v2, 0.0  ;;  %vm697_vm13 = vcmp.eq.s32.totalorder %v5674_v33, %v5731_v6 }
  0x84   : > { %v1312_v48 = vadd.f32 %v1280_v43, %v1208_v41  ;;  %v733_v14 = vsel %vm697_vm13, %v5735_v8, 0.0  ;;  %vm801_vm14 = vcmp.eq.s32.totalorder %v5674_v33, %v5741_v9  ;;  %vm905_vm15 = vcmp.eq.s32.totalorder %v5674_v33, %v5758_v19 }
  0x85   : > { %4977 = vmatpush3.msra.mxu0 %v958_v44  ;;  %v765_v49 = vadd.f32 %v733_v14, %v661_v46  ;;  %v837_v50 = vsel %vm801_vm14, %v5754_v18, 0.0  ;;  %v941_v52 = vsel %vm905_vm15, %v5745_v10, 0.0  ;;  %vm1083_vm0 = vcmp.eq.s32.totalorder %v5674_v33, %v5722_v3 }
  0x86   : > { %v1416_v53 = vadd.f32 %v1384_v45, %v1312_v48  ;;  %v1119_v57 = vsel %vm1083_vm0, %v5765_v21, 0.0  ;;  %vm1155_vm1 = vcmp.eq.s32.totalorder %v5674_v33, %v5769_v26  ;;  %vm1259_vm2 = vcmp.eq.s32.totalorder %v5674_v33, %v5784_v35 }
  0x87   : > { %v869_v61 = vadd.f32 %v837_v50, %v765_v49  ;;  %v1191_v11 = vsel %vm1155_vm1, %v5776_v29, 0.0  ;;  %v1295_v20 = vsel %vm1259_vm2, %v5789_v39, 0.0  ;;  %vm1363_vm3 = vcmp.eq.s32.totalorder %v5674_v33, %v5793_v40 }
  0x88   : > { %5012 = vmatpush3.msra.mxu1 %v1416_v53  ;;  %v1223_v27 = vadd.f32 %v1191_v11, %v1119_v57  ;;  %v1399_v28 = vsel %vm1363_vm3, %v5799_v42, 0.0  ;;  %vm609_vm4 = vcmp.eq.s32.totalorder %v5683_v47, %v5714_v1  ;;  %vm681_vm5 = vcmp.eq.s32.totalorder %v5683_v47, %v5731_v6 }
  0x89   : > { %v973_v30 = vadd.f32 %v941_v52, %v869_v61  ;;  %v645_v34 = vsel %vm609_vm4, %v5718_v2, 0.0  ;;  %v717_v36 = vsel %vm681_vm5, %v5735_v8, 0.0  ;;  %vm785_vm6 = vcmp.eq.s32.totalorder %v5683_v47, %v5741_v9 }
  0x8a   : > { %v1327_v37 = vadd.f32 %v1295_v20, %v1223_v27  ;;  %v749_v41 = vadd.f32 %v717_v36, %v645_v34  ;;  %v821_v43 = vsel %vm785_vm6, %v5754_v18, 0.0  ;;  %vm889_vm7 = vcmp.eq.s32.totalorder %v5683_v47, %v5758_v19 }
  0x8b   : > { %4978 = vmatprep.subr.mxu0 %v973_v30  ;;  %v925_v44 = vsel %vm889_vm7, %v5745_v10, 0.0  ;;  %vm1067_vm8 = vcmp.eq.s32.totalorder %v5683_v47, %v5722_v3  ;;  %vm1139_vm9 = vcmp.eq.s32.totalorder %v5683_v47, %v5769_v26  ;;  %vm1243_vm10 = vcmp.eq.s32.totalorder %v5683_v47, %v5784_v35 }
  0x8c   : > { %v1431_v45 = vadd.f32 %v1399_v28, %v1327_v37  ;;  %v853_v46 = vadd.f32 %v821_v43, %v749_v41  ;;  %v1103_v48 = vsel %vm1067_vm8, %v5765_v21, 0.0  ;;  %v1175_v14 = vsel %vm1139_vm9, %v5776_v29, 0.0 }
  0x8d   : > { %v1207_v49 = vadd.f32 %v1175_v14, %v1103_v48  ;;  %v1279_v50 = vsel %vm1243_vm10, %v5789_v39, 0.0  ;;  %vm1347_vm11 = vcmp.eq.s32.totalorder %v5683_v47, %v5793_v40  ;;  %vm624_vm12 = vcmp.eq.s32.totalorder %v5687_v51, %v5714_v1 }
  0x8e   : > { %5013 = vmatprep.subr.mxu1 %v1431_v45  ;;  %v957_v52 = vadd.f32 %v925_v44, %v853_v46  ;;  %v1383_v53 = vsel %vm1347_vm11, %v5799_v42, 0.0  ;;  %v660_v57 = vsel %vm624_vm12, %v5718_v2, 0.0  ;;  %vm696_vm13 = vcmp.eq.s32.totalorder %v5687_v51, %v5731_v6 }
  0x8f   : > { %v1311_v61 = vadd.f32 %v1279_v50, %v1207_v49  ;;  %v732_v11 = vsel %vm696_vm13, %v5735_v8, 0.0  ;;  %vm800_vm14 = vcmp.eq.s32.totalorder %v5687_v51, %v5741_v9  ;;  %vm904_vm15 = vcmp.eq.s32.totalorder %v5687_v51, %v5758_v19 }
  0x90   : > { %4979 = vmatpush3.msra.mxu0 %v957_v52  ;;  %v764_v20 = vadd.f32 %v732_v11, %v660_v57  ;;  %v836_v27 = vsel %vm800_vm14, %v5754_v18, 0.0  ;;  %v940_v28 = vsel %vm904_vm15, %v5745_v10, 0.0  ;;  %vm1082_vm0 = vcmp.eq.s32.totalorder %v5687_v51, %v5722_v3 }
  0x91   : > { %v1415_v30 = vadd.f32 %v1383_v53, %v1311_v61  ;;  %v1118_v34 = vsel %vm1082_vm0, %v5765_v21, 0.0  ;;  %vm1154_vm1 = vcmp.eq.s32.totalorder %v5687_v51, %v5769_v26  ;;  %vm1258_vm2 = vcmp.eq.s32.totalorder %v5687_v51, %v5784_v35 }
  0x92   : > { %v868_v36 = vadd.f32 %v836_v27, %v764_v20  ;;  %v1190_v37 = vsel %vm1154_vm1, %v5776_v29, 0.0  ;;  %v1294_v41 = vsel %vm1258_vm2, %v5789_v39, 0.0  ;;  %vm1362_vm3 = vcmp.eq.s32.totalorder %v5687_v51, %v5793_v40 }
  0x93   : > { %5014 = vmatpush3.msra.mxu1 %v1415_v30  ;;  %v1222_v43 = vadd.f32 %v1190_v37, %v1118_v34  ;;  %v1398_v44 = vsel %vm1362_vm3, %v5799_v42, 0.0  ;;  %vm608_vm4 = vcmp.eq.s32.totalorder %v5692_v55, %v5714_v1  ;;  %vm680_vm5 = vcmp.eq.s32.totalorder %v5692_v55, %v5731_v6 }
  0x94   : > { %v972_v45 = vadd.f32 %v940_v28, %v868_v36  ;;  %v644_v46 = vsel %vm608_vm4, %v5718_v2, 0.0  ;;  %v716_v48 = vsel %vm680_vm5, %v5735_v8, 0.0  ;;  %vm784_vm6 = vcmp.eq.s32.totalorder %v5692_v55, %v5741_v9 }
  0x95   : > { %v1326_v14 = vadd.f32 %v1294_v41, %v1222_v43  ;;  %v748_v49 = vadd.f32 %v716_v48, %v644_v46  ;;  %v820_v50 = vsel %vm784_vm6, %v5754_v18, 0.0  ;;  %vm888_vm7 = vcmp.eq.s32.totalorder %v5692_v55, %v5758_v19 }
  0x96   : > { %4980 = vmatprep.subr.mxu0 %v972_v45  ;;  %v924_v52 = vsel %vm888_vm7, %v5745_v10, 0.0  ;;  %vm1066_vm8 = vcmp.eq.s32.totalorder %v5692_v55, %v5722_v3  ;;  %vm1138_vm9 = vcmp.eq.s32.totalorder %v5692_v55, %v5769_v26  ;;  %vm1242_vm10 = vcmp.eq.s32.totalorder %v5692_v55, %v5784_v35 }
  0x97   : > { %v1430_v53 = vadd.f32 %v1398_v44, %v1326_v14  ;;  %v852_v57 = vadd.f32 %v820_v50, %v748_v49  ;;  %v1102_v61 = vsel %vm1066_vm8, %v5765_v21, 0.0  ;;  %v1174_v11 = vsel %vm1138_vm9, %v5776_v29, 0.0 }
  0x98   : > { %v1206_v20 = vadd.f32 %v1174_v11, %v1102_v61  ;;  %v1278_v27 = vsel %vm1242_vm10, %v5789_v39, 0.0  ;;  %vm1346_vm11 = vcmp.eq.s32.totalorder %v5692_v55, %v5793_v40  ;;  %vm623_vm12 = vcmp.eq.s32.totalorder %v5697_v58, %v5714_v1 }
  0x99   : > { %5015 = vmatprep.subr.mxu1 %v1430_v53  ;;  %v956_v28 = vadd.f32 %v924_v52, %v852_v57  ;;  %v1382_v30 = vsel %vm1346_vm11, %v5799_v42, 0.0  ;;  %v659_v34 = vsel %vm623_vm12, %v5718_v2, 0.0  ;;  %vm695_vm13 = vcmp.eq.s32.totalorder %v5697_v58, %v5731_v6 }
  0x9a   : > { %v1310_v36 = vadd.f32 %v1278_v27, %v1206_v20  ;;  %v731_v37 = vsel %vm695_vm13, %v5735_v8, 0.0  ;;  %vm799_vm14 = vcmp.eq.s32.totalorder %v5697_v58, %v5741_v9  ;;  %vm903_vm15 = vcmp.eq.s32.totalorder %v5697_v58, %v5758_v19 }
  0x9b   : > { %4981 = vmatpush3.msra.mxu0 %v956_v28  ;;  %v763_v41 = vadd.f32 %v731_v37, %v659_v34  ;;  %v835_v43 = vsel %vm799_vm14, %v5754_v18, 0.0  ;;  %v939_v44 = vsel %vm903_vm15, %v5745_v10, 0.0  ;;  %vm1081_vm0 = vcmp.eq.s32.totalorder %v5697_v58, %v5722_v3 }
  0x9c   : > { %v1414_v45 = vadd.f32 %v1382_v30, %v1310_v36  ;;  %v1117_v46 = vsel %vm1081_vm0, %v5765_v21, 0.0  ;;  %vm1153_vm1 = vcmp.eq.s32.totalorder %v5697_v58, %v5769_v26  ;;  %vm1257_vm2 = vcmp.eq.s32.totalorder %v5697_v58, %v5784_v35 }
  0x9d   : > { %v867_v48 = vadd.f32 %v835_v43, %v763_v41  ;;  %v1189_v14 = vsel %vm1153_vm1, %v5776_v29, 0.0  ;;  %v1293_v49 = vsel %vm1257_vm2, %v5789_v39, 0.0  ;;  %vm1361_vm3 = vcmp.eq.s32.totalorder %v5697_v58, %v5793_v40 }
  0x9e   : > { %5016 = vmatpush3.msra.mxu1 %v1414_v45  ;;  %v1221_v50 = vadd.f32 %v1189_v14, %v1117_v46  ;;  %v1397_v52 = vsel %vm1361_vm3, %v5799_v42, 0.0  ;;  %vm607_vm4 = vcmp.eq.s32.totalorder %v5700_v59, %v5714_v1  ;;  %vm679_vm5 = vcmp.eq.s32.totalorder %v5700_v59, %v5731_v6 }
  0x9f   : > { %v971_v53 = vadd.f32 %v939_v44, %v867_v48  ;;  %v643_v57 = vsel %vm607_vm4, %v5718_v2, 0.0  ;;  %v715_v61 = vsel %vm679_vm5, %v5735_v8, 0.0  ;;  %vm783_vm6 = vcmp.eq.s32.totalorder %v5700_v59, %v5741_v9 }
  0xa0   : > { %v1325_v11 = vadd.f32 %v1293_v49, %v1221_v50  ;;  %v747_v20 = vadd.f32 %v715_v61, %v643_v57  ;;  %v819_v27 = vsel %vm783_vm6, %v5754_v18, 0.0  ;;  %vm887_vm7 = vcmp.eq.s32.totalorder %v5700_v59, %v5758_v19 }
  0xa1   : > { %4982 = vmatprep.subr.mxu0 %v971_v53  ;;  %v923_v28 = vsel %vm887_vm7, %v5745_v10, 0.0  ;;  %vm1065_vm8 = vcmp.eq.s32.totalorder %v5700_v59, %v5722_v3  ;;  %vm1137_vm9 = vcmp.eq.s32.totalorder %v5700_v59, %v5769_v26  ;;  %vm1241_vm10 = vcmp.eq.s32.totalorder %v5700_v59, %v5784_v35 }
  0xa2   : > { %v1429_v30 = vadd.f32 %v1397_v52, %v1325_v11  ;;  %v851_v34 = vadd.f32 %v819_v27, %v747_v20  ;;  %v1101_v36 = vsel %vm1065_vm8, %v5765_v21, 0.0  ;;  %v1173_v37 = vsel %vm1137_vm9, %v5776_v29, 0.0 }
  0xa3   : > { %v1205_v41 = vadd.f32 %v1173_v37, %v1101_v36  ;;  %v1277_v43 = vsel %vm1241_vm10, %v5789_v39, 0.0  ;;  %vm1345_vm11 = vcmp.eq.s32.totalorder %v5700_v59, %v5793_v40  ;;  %v6165_v44 = vadd.s32 184, %v5629_v7 }
  0xa4   : > { %5017 = vmatprep.subr.mxu1 %v1429_v30  ;;  %v955_v45 = vadd.f32 %v923_v28, %v851_v34  ;;  %v1381_v46 = vsel %vm1345_vm11, %v5799_v42, 0.0  ;;  %v6169_v48 = vadd.s32 56, %v5629_v7  ;;  %v6172_v14 = vadd.s32 176, %v5629_v7 }
  0xa5   : > { %v1309_v49 = vadd.f32 %v1277_v43, %v1205_v41  ;;  %vm622_vm12 = vcmp.eq.s32.totalorder %v6165_v44, %v5714_v1  ;;  %vm694_vm13 = vcmp.eq.s32.totalorder %v6165_v44, %v5731_v6  ;;  %vm798_vm14 = vcmp.eq.s32.totalorder %v6165_v44, %v5741_v9 }
  0xa6   : > { %4983 = vmatpush3.msra.mxu0 %v955_v45  ;;  %v658_v50 = vsel %vm622_vm12, %v5718_v2, 0.0  ;;  %v730_v52 = vsel %vm694_vm13, %v5735_v8, 0.0  ;;  %v834_v53 = vsel %vm798_vm14, %v5754_v18, 0.0  ;;  %vm902_vm15 = vcmp.eq.s32.totalorder %v6165_v44, %v5758_v19 }
  0xa7   : > { %v1413_v57 = vadd.f32 %v1381_v46, %v1309_v49  ;;  %v762_v61 = vadd.f32 %v730_v52, %v658_v50  ;;  %v938_v11 = vsel %vm902_vm15, %v5745_v10, 0.0  ;;  %vm1080_vm0 = vcmp.eq.s32.totalorder %v6165_v44, %v5722_v3 }
  0xa8   : > { %v1116_v20 = vsel %vm1080_vm0, %v5765_v21, 0.0  ;;  %vm1152_vm1 = vcmp.eq.s32.totalorder %v6165_v44, %v5769_v26  ;;  %vm1256_vm2 = vcmp.eq.s32.totalorder %v6165_v44, %v5784_v35  ;;  %vm1360_vm3 = vcmp.eq.s32.totalorder %v6165_v44, %v5793_v40 }
  0xa9   : > { %5018 = vmatpush3.msra.mxu1 %v1413_v57  ;;  %v866_v27 = vadd.f32 %v834_v53, %v762_v61  ;;  %v1188_v28 = vsel %vm1152_vm1, %v5776_v29, 0.0  ;;  %v1292_v30 = vsel %vm1256_vm2, %v5789_v39, 0.0  ;;  %v1396_v34 = vsel %vm1360_vm3, %v5799_v42, 0.0 }
  0xaa   : > { %v1220_v36 = vadd.f32 %v1188_v28, %v1116_v20  ;;  %vm606_vm4 = vcmp.eq.s32.totalorder %v6169_v48, %v5714_v1  ;;  %vm678_vm5 = vcmp.eq.s32.totalorder %v6169_v48, %v5731_v6  ;;  %vm782_vm6 = vcmp.eq.s32.totalorder %v6169_v48, %v5741_v9 }
  0xab   : > { %v970_v37 = vadd.f32 %v938_v11, %v866_v27  ;;  %v642_v41 = vsel %vm606_vm4, %v5718_v2, 0.0  ;;  %v714_v43 = vsel %vm678_vm5, %v5735_v8, 0.0  ;;  %v818_v45 = vsel %vm782_vm6, %v5754_v18, 0.0 }
  0xac   : > { %v1324_v46 = vadd.f32 %v1292_v30, %v1220_v36  ;;  %v746_v49 = vadd.f32 %v714_v43, %v642_v41  ;;  %vm886_vm7 = vcmp.eq.s32.totalorder %v6169_v48, %v5758_v19  ;;  %vm1064_vm8 = vcmp.eq.s32.totalorder %v6169_v48, %v5722_v3 }
  0xad   : > { %4984 = vmatprep.subr.mxu0 %v970_v37  ;;  %v922_v50 = vsel %vm886_vm7, %v5745_v10, 0.0  ;;  %v1100_v52 = vsel %vm1064_vm8, %v5765_v21, 0.0  ;;  %vm1136_vm9 = vcmp.eq.s32.totalorder %v6169_v48, %v5769_v26  ;;  %vm1240_vm10 = vcmp.eq.s32.totalorder %v6169_v48, %v5784_v35 }
  0xae   : > { %v1428_v53 = vadd.f32 %v1396_v34, %v1324_v46  ;;  %v850_v57 = vadd.f32 %v818_v45, %v746_v49  ;;  %v1172_v61 = vsel %vm1136_vm9, %v5776_v29, 0.0  ;;  %v1276_v11 = vsel %vm1240_vm10, %v5789_v39, 0.0 }
  0xaf   : > { %v1204_v20 = vadd.f32 %v1172_v61, %v1100_v52  ;;  %vm1344_vm11 = vcmp.eq.s32.totalorder %v6169_v48, %v5793_v40  ;;  %vm621_vm12 = vcmp.eq.s32.totalorder %v6172_v14, %v5714_v1  ;;  %vm693_vm13 = vcmp.eq.s32.totalorder %v6172_v14, %v5731_v6 }
  0xb0   : > { %5019 = vmatprep.subr.mxu1 %v1428_v53  ;;  %v954_v27 = vadd.f32 %v922_v50, %v850_v57  ;;  %v1380_v28 = vsel %vm1344_vm11, %v5799_v42, 0.0  ;;  %v657_v30 = vsel %vm621_vm12, %v5718_v2, 0.0  ;;  %v729_v34 = vsel %vm693_vm13, %v5735_v8, 0.0 }
  0xb1   : > { %v1308_v36 = vadd.f32 %v1276_v11, %v1204_v20  ;;  %v761_v37 = vadd.f32 %v729_v34, %v657_v30  ;;  %vm797_vm14 = vcmp.eq.s32.totalorder %v6172_v14, %v5741_v9  ;;  %vm901_vm15 = vcmp.eq.s32.totalorder %v6172_v14, %v5758_v19 }
  0xb2   : > { %4985 = vmatpush3.msra.mxu0 %v954_v27  ;;  %v833_v41 = vsel %vm797_vm14, %v5754_v18, 0.0  ;;  %v937_v43 = vsel %vm901_vm15, %v5745_v10, 0.0  ;;  %vm1079_vm0 = vcmp.eq.s32.totalorder %v6172_v14, %v5722_v3  ;;  %vm1151_vm1 = vcmp.eq.s32.totalorder %v6172_v14, %v5769_v26 }
  0xb3   : > { %v1412_v45 = vadd.f32 %v1380_v28, %v1308_v36  ;;  %v865_v46 = vadd.f32 %v833_v41, %v761_v37  ;;  %v1115_v49 = vsel %vm1079_vm0, %v5765_v21, 0.0  ;;  %v1187_v50 = vsel %vm1151_vm1, %v5776_v29, 0.0 }
  0xb4   : > { %v1219_v52 = vadd.f32 %v1187_v50, %v1115_v49  ;;  %vm1255_vm2 = vcmp.eq.s32.totalorder %v6172_v14, %v5784_v35  ;;  %vm1359_vm3 = vcmp.eq.s32.totalorder %v6172_v14, %v5793_v40  ;;  %v6245_v53 = vadd.s32 48, %v5629_v7 }
  0xb5   : > { %5020 = vmatpush3.msra.mxu1 %v1412_v45  ;;  %v969_v57 = vadd.f32 %v937_v43, %v865_v46  ;;  %v1291_v61 = vsel %vm1255_vm2, %v5789_v39, 0.0  ;;  %v1395_v11 = vsel %vm1359_vm3, %v5799_v42, 0.0  ;;  %v6250_v20 = vadd.s32 168, %v5629_v7 }
  0xb6   : > { %v1323_v27 = vadd.f32 %v1291_v61, %v1219_v52  ;;  %vm605_vm4 = vcmp.eq.s32.totalorder %v6245_v53, %v5714_v1  ;;  %vm677_vm5 = vcmp.eq.s32.totalorder %v6245_v53, %v5731_v6  ;;  %vm781_vm6 = vcmp.eq.s32.totalorder %v6245_v53, %v5741_v9 }
  0xb7   : > { %4986 = vmatprep.subr.mxu0 %v969_v57  ;;  %v641_v28 = vsel %vm605_vm4, %v5718_v2, 0.0  ;;  %v713_v30 = vsel %vm677_vm5, %v5735_v8, 0.0  ;;  %v817_v34 = vsel %vm781_vm6, %v5754_v18, 0.0  ;;  %vm885_vm7 = vcmp.eq.s32.totalorder %v6245_v53, %v5758_v19 }
  0xb8   : > { %v1427_v36 = vadd.f32 %v1395_v11, %v1323_v27  ;;  %v745_v37 = vadd.f32 %v713_v30, %v641_v28  ;;  %v921_v41 = vsel %vm885_vm7, %v5745_v10, 0.0  ;;  %vm1063_vm8 = vcmp.eq.s32.totalorder %v6245_v53, %v5722_v3 }
  0xb9   : > { %v1099_v43 = vsel %vm1063_vm8, %v5765_v21, 0.0  ;;  %vm1135_vm9 = vcmp.eq.s32.totalorder %v6245_v53, %v5769_v26  ;;  %vm1239_vm10 = vcmp.eq.s32.totalorder %v6245_v53, %v5784_v35  ;;  %vm1343_vm11 = vcmp.eq.s32.totalorder %v6245_v53, %v5793_v40 }
  0xba   : > { %5021 = vmatprep.subr.mxu1 %v1427_v36  ;;  %v849_v45 = vadd.f32 %v817_v34, %v745_v37  ;;  %v1171_v46 = vsel %vm1135_vm9, %v5776_v29, 0.0  ;;  %v1275_v49 = vsel %vm1239_vm10, %v5789_v39, 0.0  ;;  %v1379_v50 = vsel %vm1343_vm11, %v5799_v42, 0.0 }
  0xbb   : > { %v1203_v52 = vadd.f32 %v1171_v46, %v1099_v43  ;;  %vm620_vm12 = vcmp.eq.s32.totalorder %v6250_v20, %v5714_v1  ;;  %vm692_vm13 = vcmp.eq.s32.totalorder %v6250_v20, %v5731_v6  ;;  %vm796_vm14 = vcmp.eq.s32.totalorder %v6250_v20, %v5741_v9 }
  0xbc   : > { %v953_v57 = vadd.f32 %v921_v41, %v849_v45  ;;  %v656_v61 = vsel %vm620_vm12, %v5718_v2, 0.0  ;;  %v728_v11 = vsel %vm692_vm13, %v5735_v8, 0.0  ;;  %v832_v27 = vsel %vm796_vm14, %v5754_v18, 0.0 }
  0xbd   : > { %v1307_v28 = vadd.f32 %v1275_v49, %v1203_v52  ;;  %v760_v30 = vadd.f32 %v728_v11, %v656_v61  ;;  %vm900_vm15 = vcmp.eq.s32.totalorder %v6250_v20, %v5758_v19  ;;  %vm1078_vm0 = vcmp.eq.s32.totalorder %v6250_v20, %v5722_v3 }
  0xbe   : > { %4987 = vmatpush3.msra.mxu0 %v953_v57  ;;  %v936_v34 = vsel %vm900_vm15, %v5745_v10, 0.0  ;;  %v1114_v36 = vsel %vm1078_vm0, %v5765_v21, 0.0  ;;  %vm1150_vm1 = vcmp.eq.s32.totalorder %v6250_v20, %v5769_v26  ;;  %vm1254_vm2 = vcmp.eq.s32.totalorder %v6250_v20, %v5784_v35 }
  0xbf   : > { %v1411_v37 = vadd.f32 %v1379_v50, %v1307_v28  ;;  %v864_v41 = vadd.f32 %v832_v27, %v760_v30  ;;  %v1186_v43 = vsel %vm1150_vm1, %v5776_v29, 0.0  ;;  %v1290_v45 = vsel %vm1254_vm2, %v5789_v39, 0.0 }
  0xc0   : > { %v1218_v46 = vadd.f32 %v1186_v43, %v1114_v36  ;;  %vm1358_vm3 = vcmp.eq.s32.totalorder %v6250_v20, %v5793_v40  ;;  %v6300_v49 = vadd.s32 40, %v5629_v7  ;;  %v6303_v52 = vadd.s32 160, %v5629_v7 }
  0xc1   : > { %5022 = vmatpush3.msra.mxu1 %v1411_v37  ;;  %v968_v57 = vadd.f32 %v936_v34, %v864_v41  ;;  %v1394_v61 = vsel %vm1358_vm3, %v5799_v42, 0.0  ;;  %v6307_v50 = vadd.s32 32, %v5629_v7  ;;  %v6310_v11 = vadd.s32 152, %v5629_v7 }
  0xc2   : > { %9614 = vst [vmem:[#allocation13_spill] sm:$0xff] %v6303_v52  ;;  %v1322_v27 = vadd.f32 %v1290_v45, %v1218_v46  ;;  %vm604_vm4 = vcmp.eq.s32.totalorder %v6300_v49, %v5714_v1  ;;  %vm676_vm5 = vcmp.eq.s32.totalorder %v6300_v49, %v5731_v6  ;;  %vm780_vm6 = vcmp.eq.s32.totalorder %v6300_v49, %v5741_v9 }
  0xc3   : > { %9615 = vst [vmem:[#allocation14_spill] sm:$0xff] %v6307_v50  ;;  %9616 = vst [vmem:[#allocation15_spill] sm:$0xff] %v6310_v11  ;;  %4988 = vmatprep.subr.mxu0 %v968_v57  ;;  %v640_v28 = vsel %vm604_vm4, %v5718_v2, 0.0  ;;  %v712_v30 = vsel %vm676_vm5, %v5735_v8, 0.0  ;;  %v816_v34 = vsel %vm780_vm6, %v5754_v18, 0.0  ;;  %vm884_vm7 = vcmp.eq.s32.totalorder %v6300_v49, %v5758_v19 }
  0xc4   : > { %v1426_v36 = vadd.f32 %v1394_v61, %v1322_v27  ;;  %v744_v37 = vadd.f32 %v712_v30, %v640_v28  ;;  %v920_v41 = vsel %vm884_vm7, %v5745_v10, 0.0  ;;  %vm1062_vm8 = vcmp.eq.s32.totalorder %v6300_v49, %v5722_v3 }
  0xc5   : > { %v1098_v43 = vsel %vm1062_vm8, %v5765_v21, 0.0  ;;  %vm1134_vm9 = vcmp.eq.s32.totalorder %v6300_v49, %v5769_v26  ;;  %vm1238_vm10 = vcmp.eq.s32.totalorder %v6300_v49, %v5784_v35  ;;  %vm1342_vm11 = vcmp.eq.s32.totalorder %v6300_v49, %v5793_v40 }
  0xc6   : > { %5023 = vmatprep.subr.mxu1 %v1426_v36  ;;  %v848_v45 = vadd.f32 %v816_v34, %v744_v37  ;;  %v1170_v46 = vsel %vm1134_vm9, %v5776_v29, 0.0  ;;  %v1274_v57 = vsel %vm1238_vm10, %v5789_v39, 0.0  ;;  %v1378_v61 = vsel %vm1342_vm11, %v5799_v42, 0.0 }
  0xc7   : > { %v1202_v27 = vadd.f32 %v1170_v46, %v1098_v43  ;;  %vm619_vm12 = vcmp.eq.s32.totalorder %v6303_v52, %v5714_v1  ;;  %vm691_vm13 = vcmp.eq.s32.totalorder %v6303_v52, %v5731_v6  ;;  %vm795_vm14 = vcmp.eq.s32.totalorder %v6303_v52, %v5741_v9 }
  0xc8   : > { %v952_v28 = vadd.f32 %v920_v41, %v848_v45  ;;  %v655_v30 = vsel %vm619_vm12, %v5718_v2, 0.0  ;;  %v727_v34 = vsel %vm691_vm13, %v5735_v8, 0.0  ;;  %v831_v36 = vsel %vm795_vm14, %v5754_v18, 0.0 }
  0xc9   : > { %v1306_v37 = vadd.f32 %v1274_v57, %v1202_v27  ;;  %v759_v38 = vadd.f32 %v727_v34, %v655_v30  ;;  %vm899_vm15 = vcmp.eq.s32.totalorder %v6303_v52, %v5758_v19  ;;  %vm1077_vm0 = vcmp.eq.s32.totalorder %v6303_v52, %v5722_v3 }
  0xca   : > { %4989 = vmatpush3.msra.mxu0 %v952_v28  ;;  %v935_v43 = vsel %vm899_vm15, %v5745_v10, 0.0  ;;  %v1113_v46 = vsel %vm1077_vm0, %v5765_v21, 0.0  ;;  %vm1149_vm1 = vcmp.eq.s32.totalorder %v6303_v52, %v5769_v26  ;;  %vm1253_vm2 = vcmp.eq.s32.totalorder %v6303_v52, %v5784_v35 }
  0xcb   : > { %v1410_v41 = vadd.f32 %v1378_v61, %v1306_v37  ;;  %v863_v45 = vadd.f32 %v831_v36, %v759_v38  ;;  %v1185_v57 = vsel %vm1149_vm1, %v5776_v29, 0.0  ;;  %v1289_v27 = vsel %vm1253_vm2, %v5789_v39, 0.0 }
  0xcc   : > { %v1217_v30 = vadd.f32 %v1185_v57, %v1113_v46  ;;  %vm1357_vm3 = vcmp.eq.s32.totalorder %v6303_v52, %v5793_v40  ;;  %vm603_vm4 = vcmp.eq.s32.totalorder %v6307_v50, %v5714_v1  ;;  %vm675_vm5 = vcmp.eq.s32.totalorder %v6307_v50, %v5731_v6 }
  0xcd   : > { %5024 = vmatpush3.msra.mxu1 %v1410_v41  ;;  %v967_v28 = vadd.f32 %v935_v43, %v863_v45  ;;  %v1393_v34 = vsel %vm1357_vm3, %v5799_v42, 0.0  ;;  %v639_v38 = vsel %vm603_vm4, %v5718_v2, 0.0  ;;  %v711_v61 = vsel %vm675_vm5, %v5735_v8, 0.0 }
  0xce   : > { %v1321_v36 = vadd.f32 %v1289_v27, %v1217_v30  ;;  %v743_v37 = vadd.f32 %v711_v61, %v639_v38  ;;  %vm779_vm6 = vcmp.eq.s32.totalorder %v6307_v50, %v5741_v9  ;;  %vm883_vm7 = vcmp.eq.s32.totalorder %v6307_v50, %v5758_v19 }
  0xcf   : > { %4990 = vmatprep.subr.mxu0 %v967_v28  ;;  %v815_v46 = vsel %vm779_vm6, %v5754_v18, 0.0  ;;  %v919_v41 = vsel %vm883_vm7, %v5745_v10, 0.0  ;;  %vm1061_vm8 = vcmp.eq.s32.totalorder %v6307_v50, %v5722_v3  ;;  %vm1133_vm9 = vcmp.eq.s32.totalorder %v6307_v50, %v5769_v26 }
  0xd0   : > { %v1425_v43 = vadd.f32 %v1393_v34, %v1321_v36  ;;  %v847_v45 = vadd.f32 %v815_v46, %v743_v37  ;;  %v1097_v57 = vsel %vm1061_vm8, %v5765_v21, 0.0  ;;  %v1169_v27 = vsel %vm1133_vm9, %v5776_v29, 0.0 }
  0xd1   : > { %v1201_v30 = vadd.f32 %v1169_v27, %v1097_v57  ;;  %vm1237_vm10 = vcmp.eq.s32.totalorder %v6307_v50, %v5784_v35  ;;  %vm1341_vm11 = vcmp.eq.s32.totalorder %v6307_v50, %v5793_v40  ;;  %vm618_vm12 = vcmp.eq.s32.totalorder %v6310_v11, %v5714_v1 }
  0xd2   : > { %5025 = vmatprep.subr.mxu1 %v1425_v43  ;;  %v951_v28 = vadd.f32 %v919_v41, %v847_v45  ;;  %v1273_v38 = vsel %vm1237_vm10, %v5789_v39, 0.0  ;;  %v1377_v34 = vsel %vm1341_vm11, %v5799_v42, 0.0  ;;  %v654_v61 = vsel %vm618_vm12, %v5718_v2, 0.0 }
  0xd3   : > { %v1305_v36 = vadd.f32 %v1273_v38, %v1201_v30  ;;  %vm690_vm13 = vcmp.eq.s32.totalorder %v6310_v11, %v5731_v6  ;;  %vm794_vm14 = vcmp.eq.s32.totalorder %v6310_v11, %v5741_v9  ;;  %vm898_vm15 = vcmp.eq.s32.totalorder %v6310_v11, %v5758_v19 }
  0xd4   : > { %4991 = vmatpush3.msra.mxu0 %v951_v28  ;;  %v726_v37 = vsel %vm690_vm13, %v5735_v8, 0.0  ;;  %v830_v46 = vsel %vm794_vm14, %v5754_v18, 0.0  ;;  %v934_v41 = vsel %vm898_vm15, %v5745_v10, 0.0  ;;  %vm1076_vm0 = vcmp.eq.s32.totalorder %v6310_v11, %v5722_v3 }
  0xd5   : > { %v1409_v43 = vadd.f32 %v1377_v34, %v1305_v36  ;;  %v758_v45 = vadd.f32 %v726_v37, %v654_v61  ;;  %v1112_v57 = vsel %vm1076_vm0, %v5765_v21, 0.0  ;;  %vm1148_vm1 = vcmp.eq.s32.totalorder %v6310_v11, %v5769_v26 }
  0xd6   : > { %v1184_v27 = vsel %vm1148_vm1, %v5776_v29, 0.0  ;;  %vm1252_vm2 = vcmp.eq.s32.totalorder %v6310_v11, %v5784_v35  ;;  %vm1356_vm3 = vcmp.eq.s32.totalorder %v6310_v11, %v5793_v40  ;;  %v6407_v30 = vadd.s32 24, %v5629_v7 }
  0xd7   : > { %5026 = vmatpush3.msra.mxu1 %v1409_v43  ;;  %v862_v28 = vadd.f32 %v830_v46, %v758_v45  ;;  %v1216_v38 = vadd.f32 %v1184_v27, %v1112_v57  ;;  %v1288_v34 = vsel %vm1252_vm2, %v5789_v39, 0.0  ;;  %v1392_v61 = vsel %vm1356_vm3, %v5799_v42, 0.0 }
  0xd8   : > { %9617 = vst [vmem:[#allocation16_spill] sm:$0xff] %v6407_v30  ;;  %vm602_vm4 = vcmp.eq.s32.totalorder %v6407_v30, %v5714_v1  ;;  %vm674_vm5 = vcmp.eq.s32.totalorder %v6407_v30, %v5731_v6  ;;  %vm778_vm6 = vcmp.eq.s32.totalorder %v6407_v30, %v5741_v9  ;;  %vm882_vm7 = vcmp.eq.s32.totalorder %v6407_v30, %v5758_v19 }
  0xd9   : > { %v966_v36 = vadd.f32 %v934_v41, %v862_v28  ;;  %v1320_v37 = vadd.f32 %v1288_v34, %v1216_v38  ;;  %v638_v46 = vsel %vm602_vm4, %v5718_v2, 0.0  ;;  %v710_v43 = vsel %vm674_vm5, %v5735_v8, 0.0 }
  0xda   : > { %v742_v45 = vadd.f32 %v710_v43, %v638_v46  ;;  %v814_v57 = vsel %vm778_vm6, %v5754_v18, 0.0  ;;  %v918_v27 = vsel %vm882_vm7, %v5745_v10, 0.0  ;;  %vm1060_vm8 = vcmp.eq.s32.totalorder %v6407_v30, %v5722_v3 }
  0xdb   : > { %4992 = vmatprep.subr.mxu0 %v966_v36  ;;  %v1424_v13 = vadd.f32 %v1392_v61, %v1320_v37  ;;  %v1096_v11 = vsel %vm1060_vm8, %v5765_v21, 0.0  ;;  %vm1132_vm9 = vcmp.eq.s32.totalorder %v6407_v30, %v5769_v26  ;;  %vm1236_vm10 = vcmp.eq.s32.totalorder %v6407_v30, %v5784_v35 }
  0xdc   : > { %v846_v41 = vadd.f32 %v814_v57, %v742_v45  ;;  %v1168_v28 = vsel %vm1132_vm9, %v5776_v29, 0.0  ;;  %v1272_v38 = vsel %vm1236_vm10, %v5789_v39, 0.0  ;;  %vm1340_vm11 = vcmp.eq.s32.totalorder %v6407_v30, %v5793_v40 }
  0xdd   : > { %5027 = vmatprep.subr.mxu1 %v1424_v13  ;;  %v1200_v34 = vadd.f32 %v1168_v28, %v1096_v11  ;;  %v1376_v61 = vsel %vm1340_vm11, %v5799_v42, 0.0  ;;  %v6436_v36 = vadd.s32 144, %v5629_v7  ;;  %v6439_v37 = vadd.s32 16, %v5629_v7 }
  0xde   : > { %v950_v46 = vadd.f32 %v918_v27, %v846_v41  ;;  %v6442_v43 = vadd.s32 136, %v5629_v7  ;;  %v6445_v45 = vadd.s32 8, %v5629_v7  ;;  %v6448_v57 = vadd.s32 128, %v5629_v7 }
  0xdf   : > { %9618 = vst [vmem:[#allocation17_spill] sm:$0xff] %v6436_v36  ;;  %9619 = vst [vmem:[#allocation18_spill] sm:$0xff] %v6439_v37  ;;  %v1304_v13 = vadd.f32 %v1272_v38, %v1200_v34  ;;  %vm617_vm12 = vcmp.eq.s32.totalorder %v6436_v36, %v5714_v1  ;;  %vm689_vm13 = vcmp.eq.s32.totalorder %v6436_v36, %v5731_v6 }
  0xe0   : > { %9620 = vst [vmem:[#allocation19_spill] sm:$0xff] %v6442_v43  ;;  %9621 = vst [vmem:[#allocation20_spill] sm:$0xff] %v6445_v45  ;;  %vm793_vm14 = vcmp.eq.s32.totalorder %v6436_v36, %v5741_v9  ;;  %4993 = vmatpush3.msra.mxu0 %v950_v46  ;;  %v653_v11 = vsel %vm617_vm12, %v5718_v2, 0.0  ;;  %v725_v27 = vsel %vm689_vm13, %v5735_v8, 0.0  ;;  %vm897_vm15 = vcmp.eq.s32.totalorder %v6436_v36, %v5758_v19 }
  0xe1   : > { %9622 = vst [vmem:[#allocation21_spill] sm:$0xff] %v6448_v57  ;;  %v829_v41 = vsel %vm793_vm14, %v5754_v18, 0.0  ;;  %v1408_v28 = vadd.f32 %v1376_v61, %v1304_v13  ;;  %v757_v38 = vadd.f32 %v725_v27, %v653_v11  ;;  %v933_v34 = vsel %vm897_vm15, %v5745_v10, 0.0 }
  0xe2   : > { %vm1075_vm0 = vcmp.eq.s32.totalorder %v6436_v36, %v5722_v3  ;;  %vm1147_vm1 = vcmp.eq.s32.totalorder %v6436_v36, %v5769_v26  ;;  %vm1251_vm2 = vcmp.eq.s32.totalorder %v6436_v36, %v5784_v35  ;;  %vm1355_vm3 = vcmp.eq.s32.totalorder %v6436_v36, %v5793_v40 }
  0xe3   : > { %v1111_v30 = vsel %vm1075_vm0, %v5765_v21, 0.0  ;;  %5028 = vmatpush3.msra.mxu1 %v1408_v28  ;;  %v861_v46 = vadd.f32 %v829_v41, %v757_v38  ;;  %v1183_v61 = vsel %vm1147_vm1, %v5776_v29, 0.0  ;;  %v1287_v13 = vsel %vm1251_vm2, %v5789_v39, 0.0 }
  0xe4   : > { %v1391_v11 = vsel %vm1355_vm3, %v5799_v42, 0.0  ;;  %v1215_v27 = vadd.f32 %v1183_v61, %v1111_v30  ;;  %vm601_vm4 = vcmp.eq.s32.totalorder %v6439_v37, %v5714_v1  ;;  %vm673_vm5 = vcmp.eq.s32.totalorder %v6439_v37, %v5731_v6 }
  0xe5   : > { %vm777_vm6 = vcmp.eq.s32.totalorder %v6439_v37, %v5741_v9  ;;  %v965_v50 = vadd.f32 %v933_v34, %v861_v46  ;;  %v637_v28 = vsel %vm601_vm4, %v5718_v2, 0.0  ;;  %v709_v41 = vsel %vm673_vm5, %v5735_v8, 0.0 }
  0xe6   : > { %v813_v38 = vsel %vm777_vm6, %v5754_v18, 0.0  ;;  %v1319_v36 = vadd.f32 %v1287_v13, %v1215_v27  ;;  %v741_v52 = vadd.f32 %v709_v41, %v637_v28  ;;  %vm881_vm7 = vcmp.eq.s32.totalorder %v6439_v37, %v5758_v19 }
  0xe7   : > { %vm1059_vm8 = vcmp.eq.s32.totalorder %v6439_v37, %v5722_v3  ;;  %4994 = vmatprep.subr.mxu0 %v965_v50  ;;  %v917_v30 = vsel %vm881_vm7, %v5745_v10, 0.0  ;;  %vm1131_vm9 = vcmp.eq.s32.totalorder %v6439_v37, %v5769_v26  ;;  %vm1235_vm10 = vcmp.eq.s32.totalorder %v6439_v37, %v5784_v35 }
  0xe8   : > { %v1095_v61 = vsel %vm1059_vm8, %v5765_v21, 0.0  ;;  %v1423_v34 = vadd.f32 %v1391_v11, %v1319_v36  ;;  %v845_v46 = vadd.f32 %v813_v38, %v741_v52  ;;  %v1167_v13 = vsel %vm1131_vm9, %v5776_v29, 0.0 }
  0xe9   : > { %v1271_v27 = vsel %vm1235_vm10, %v5789_v39, 0.0  ;;  %v1199_v28 = vadd.f32 %v1167_v13, %v1095_v61  ;;  %vm1339_vm11 = vcmp.eq.s32.totalorder %v6439_v37, %v5793_v40  ;;  %vm616_vm12 = vcmp.eq.s32.totalorder %v6442_v43, %v5714_v1 }
  0xea   : > { %vm688_vm13 = vcmp.eq.s32.totalorder %v6442_v43, %v5731_v6  ;;  %5029 = vmatprep.subr.mxu1 %v1423_v34  ;;  %v949_v50 = vadd.f32 %v917_v30, %v845_v46  ;;  %v1375_v36 = vsel %vm1339_vm11, %v5799_v42, 0.0  ;;  %v652_v52 = vsel %vm616_vm12, %v5718_v2, 0.0 }
  0xeb   : > { %v724_v11 = vsel %vm688_vm13, %v5735_v8, 0.0  ;;  %v1303_v41 = vadd.f32 %v1271_v27, %v1199_v28  ;;  %vm792_vm14 = vcmp.eq.s32.totalorder %v6442_v43, %v5741_v9  ;;  %vm896_vm15 = vcmp.eq.s32.totalorder %v6442_v43, %v5758_v19 }
  0xec   : > { %v756_v38 = vadd.f32 %v724_v11, %v652_v52  ;;  %4995 = vmatpush3.msra.mxu0 %v949_v50  ;;  %v828_v61 = vsel %vm792_vm14, %v5754_v18, 0.0  ;;  %v932_v30 = vsel %vm896_vm15, %v5745_v10, 0.0  ;;  %vm1074_vm0 = vcmp.eq.s32.totalorder %v6442_v43, %v5722_v3 }
  0xed   : > { %vm1146_vm1 = vcmp.eq.s32.totalorder %v6442_v43, %v5769_v26  ;;  %v1407_v34 = vadd.f32 %v1375_v36, %v1303_v41  ;;  %v1110_v13 = vsel %vm1074_vm0, %v5765_v21, 0.0  ;;  %vm1250_vm2 = vcmp.eq.s32.totalorder %v6442_v43, %v5784_v35 }
  0xee   : > { %v860_v46 = vadd.f32 %v828_v61, %v756_v38  ;;  %v1182_v27 = vsel %vm1146_vm1, %v5776_v29, 0.0  ;;  %vm1354_vm3 = vcmp.eq.s32.totalorder %v6442_v43, %v5793_v40  ;;  %vm600_vm4 = vcmp.eq.s32.totalorder %v6445_v45, %v5714_v1 }
  0xef   : > { %v1214_v28 = vadd.f32 %v1182_v27, %v1110_v13  ;;  %5030 = vmatpush3.msra.mxu1 %v1407_v34  ;;  %v1286_v52 = vsel %vm1250_vm2, %v5789_v39, 0.0  ;;  %v1390_v36 = vsel %vm1354_vm3, %v5799_v42, 0.0  ;;  %v636_v11 = vsel %vm600_vm4, %v5718_v2, 0.0 }
  0xf0   : > { %v964_v50 = vadd.f32 %v932_v30, %v860_v46  ;;  %vm672_vm5 = vcmp.eq.s32.totalorder %v6445_v45, %v5731_v6  ;;  %vm776_vm6 = vcmp.eq.s32.totalorder %v6445_v45, %v5741_v9  ;;  %vm880_vm7 = vcmp.eq.s32.totalorder %v6445_v45, %v5758_v19 }
  0xf1   : > { %v1318_v41 = vadd.f32 %v1286_v52, %v1214_v28  ;;  %v708_v38 = vsel %vm672_vm5, %v5735_v8, 0.0  ;;  %v812_v61 = vsel %vm776_vm6, %v5754_v18, 0.0  ;;  %v916_v30 = vsel %vm880_vm7, %v5745_v10, 0.0 }
  0xf2   : > { %4996 = vmatprep.subr.mxu0 %v964_v50  ;;  %vm1058_vm8 = vcmp.eq.s32.totalorder %v6445_v45, %v5722_v3  ;;  %v740_v46 = vadd.f32 %v708_v38, %v636_v11  ;;  %vm1130_vm9 = vcmp.eq.s32.totalorder %v6445_v45, %v5769_v26  ;;  %vm1234_vm10 = vcmp.eq.s32.totalorder %v6445_v45, %v5784_v35 }
  0xf3   : > { %v1422_v34 = vadd.f32 %v1390_v36, %v1318_v41  ;;  %v1094_v13 = vsel %vm1058_vm8, %v5765_v21, 0.0  ;;  %v1166_v27 = vsel %vm1130_vm9, %v5776_v29, 0.0  ;;  %vm1338_vm11 = vcmp.eq.s32.totalorder %v6445_v45, %v5793_v40 }
  0xf4   : > { %vm615_vm12 = vcmp.eq.s32.totalorder %v6448_v57, %v5714_v1  ;;  %v844_v28 = vadd.f32 %v812_v61, %v740_v46  ;;  %v1198_v50 = vadd.f32 %v1166_v27, %v1094_v13  ;;  %v1270_v52 = vsel %vm1234_vm10, %v5789_v39, 0.0 }
  0xf5   : > { %5031 = vmatprep.subr.mxu1 %v1422_v34  ;;  %v1374_v36 = vsel %vm1338_vm11, %v5799_v42, 0.0  ;;  %v651_v11 = vsel %vm615_vm12, %v5718_v2, 0.0  ;;  %vm687_vm13 = vcmp.eq.s32.totalorder %v6448_v57, %v5731_v6  ;;  %vm791_vm14 = vcmp.eq.s32.totalorder %v6448_v57, %v5741_v9 }
  0xf6   : > { %vm895_vm15 = vcmp.eq.s32.totalorder %v6448_v57, %v5758_v19  ;;  %v948_v41 = vadd.f32 %v916_v30, %v844_v28  ;;  %v1302_v38 = vadd.f32 %v1270_v52, %v1198_v50  ;;  %v723_v61 = vsel %vm687_vm13, %v5735_v8, 0.0 }
  0xf7   : > { %v827_v34 = vsel %vm791_vm14, %v5754_v18, 0.0  ;;  %v755_v46 = vadd.f32 %v723_v61, %v651_v11  ;;  %v931_v13 = vsel %vm895_vm15, %v5745_v10, 0.0  ;;  %vm1073_vm0 = vcmp.eq.s32.totalorder %v6448_v57, %v5722_v3  ;;  %v453_v61 = vld [vmem:[%s6567_s20] sm:$0xff] }
  0xf8   : > { %vm1145_vm1 = vcmp.eq.s32.totalorder %v6448_v57, %v5769_v26  ;;  %4997 = vmatpush3.msra.mxu0 %v948_v41  ;;  %v1406_v30 = vadd.f32 %v1374_v36, %v1302_v38  ;;  %v1109_v27 = vsel %vm1073_vm0, %v5765_v21, 0.0  ;;  %vm1249_vm2 = vcmp.eq.s32.totalorder %v6448_v57, %v5784_v35 }
  0xf9   : > { %v1181_v28 = vsel %vm1145_vm1, %v5776_v29, 0.0  ;;  %v859_v50 = vadd.f32 %v827_v34, %v755_v46  ;;  %v1285_v11 = vsel %vm1249_vm2, %v5789_v39, 0.0  ;;  %vm1353_vm3 = vcmp.eq.s32.totalorder %v6448_v57, %v5793_v40 }
  0xfa   : > { %v1213_v52 = vadd.f32 %v1181_v28, %v1109_v27  ;;  %5032 = vmatpush3.msra.mxu1 %v1406_v30  ;;  %v1389_v45 = vsel %vm1353_vm3, %v5799_v42, 0.0  ;;  %vm599_vm4 = vcmp.eq.s32.totalorder %v5629_v7, %v5714_v1  ;;  %vm671_vm5 = vcmp.eq.s32.totalorder %v5629_v7, %v5731_v6 }
  0xfb   : > { %vm775_vm6 = vcmp.eq.s32.totalorder %v5629_v7, %v5741_v9  ;;  %v963_v36 = vadd.f32 %v931_v13, %v859_v50  ;;  %v635_v38 = vsel %vm599_vm4, %v5718_v2, 0.0  ;;  %v707_v34 = vsel %vm671_vm5, %v5735_v8, 0.0 }
  0xfc   : > { %v1317_v41 = vadd.f32 %v1285_v11, %v1213_v52  ;;  %v739_v46 = vadd.f32 %v707_v34, %v635_v38  ;;  %v811_v30 = vsel %vm775_vm6, %v5754_v18, 0.0  ;;  %vm879_vm7 = vcmp.eq.s32.totalorder %v5629_v7, %v5758_v19 }
  0xfd   : > { %v6594_v27 = vcombine.high %v453_v61, %v453_v61  ;;  %4998 = vmatprep.subr.mxu0 %v963_v36  ;;  %v915_v6 = vsel %vm879_vm7, %v5745_v10, 0.0  ;;  %vm1057_vm8 = vcmp.eq.s32.totalorder %v5629_v7, %v5722_v3  ;;  %vm1129_vm9 = vcmp.eq.s32.totalorder %v5629_v7, %v5769_v26 }
  0xfe   : > { %v1421_v1 = vadd.f32 %v1389_v45, %v1317_v41  ;;  %v843_v2 = vadd.f32 %v811_v30, %v739_v46  ;;  %v1093_v8 = vsel %vm1057_vm8, %v5765_v21, 0.0  ;;  %v1165_v9 = vsel %vm1129_vm9, %v5776_v29, 0.0 }
  0xff   : > { %9623 = vst [vmem:[#allocation22_spill] sm:$0xff] %v6594_v27  ;;  %1046 = vmatprep.mubr.f32.mxu0 %v6594_v27  ;;  %vm1233_vm10 = vcmp.eq.s32.totalorder %v5629_v7, %v5784_v35  ;;  %1501 = vmatprep.mubr.f32.mxu1 %v6594_v27  ;;  %v1197_v10 = vadd.f32 %v1165_v9, %v1093_v8  ;;  %v1510_v3 = vsub.s32 2, %v5629_v7  ;;  %v1965_v21 = vsub.s32 3, %v5629_v7 }
 0x100   : > { %5033 = vmatprep.subr.mxu1 %v1421_v1  ;;  %v1269_v18 = vsel %vm1233_vm10, %v5789_v39, 0.0  ;;  %vm1337_vm11 = vcmp.eq.s32.totalorder %v5629_v7, %v5793_v40  ;;  %v947_v19 = vadd.f32 %v915_v6, %v843_v2 }
 0x101   : > { %v1373_v26 = vsel %vm1337_vm11, %v5799_v42, 0.0  ;;  %v1301_v29 = vadd.f32 %v1269_v18, %v1197_v10  ;;  %v6614_v45 = vrot.slane %v5689_v54, %v1510_v3  ;;  %v6617_v35 = vrot.slane %v5694_v56, %v1510_v3 }
 0x102   : > { %v6620_v13 = vrot.slane %v5705_v62, %v1510_v3  ;;  %4999 = vmatpush3.msra.mxu0 %v947_v19  ;;  %v6623_v39 = vrot.slane %v5702_v60, %v1510_v3  ;;  %v6626_v40 = vrot.slane %v5708_v63, %v1510_v3  ;;  %v6629_v42 = vrot.slane %v5724_v4, %v1510_v3 }
 0x103   : > { %v6632_v28 = vrot.slane %v5727_v5, %v1510_v3  ;;  %v1405_v50 = vadd.f32 %v1373_v26, %v1301_v29  ;;  %1047 = vmatmul.mubr.f32.vlgmr.msra.gmra.mxu0 %v453_v61  ;;  %vm1543_vm12 = vcmp.eq.s32.totalorder %v5638_v12, %v6614_v45  ;;  %v6639_v52 = vrot.slane %v5710_v0, %v1510_v3 }
 0x104   : > { %vm1615_vm13 = vcmp.eq.s32.totalorder %v5638_v12, %v6620_v13  ;;  %v1579_v11 = vsel %vm1543_vm12, %v6617_v35, 0.0  ;;  %vm1719_vm14 = vcmp.eq.s32.totalorder %v5638_v12, %v6626_v40  ;;  %1956 = vmatprep.mubr.f32.mxu0 %v6594_v27  ;;  %v6651_v46 = vrot.slane %v5689_v54, %v1965_v21 }
 0x105   : > { %v1651_v36 = vsel %vm1615_vm13, %v6623_v39, 0.0  ;;  %vm1823_vm15 = vcmp.eq.s32.totalorder %v5638_v12, %v6632_v28  ;;  %5034 = vmatpush3.msra.mxu1 %v1405_v50  ;;  %v1755_v38 = vsel %vm1719_vm14, %v6629_v42, 0.0  ;;  %v6654_v30 = vrot.slane %v5694_v56, %v1965_v21 }
 0x106   : > { %v1683_v41 = vadd.f32 %v1651_v36, %v1579_v11  ;;  %v1859_v34 = vsel %vm1823_vm15, %v6639_v52, 0.0  ;;  %1502 = vmatmul.mubr.f32.vlgmr.msra.gmra.mxu1 %v453_v61  ;;  %v6657_v1 = vrot.slane %v5705_v62, %v1965_v21  ;;  %v6660_v6 = vrot.slane %v5702_v60, %v1965_v21 }
 0x107   : > { %v6663_v2 = vrot.slane %v5708_v63, %v1965_v21  ;;  %vm1998_vm0 = vcmp.eq.s32.totalorder %v5638_v12, %v6651_v46  ;;  %v6668_v9 = vrot.slane %v5724_v4, %v1965_v21  ;;  %v6671_v61 = vrot.slane %v5727_v5, %v1965_v21  ;;  %2411 = vmatprep.mubr.f32.mxu1 %v6594_v27 }
 0x108   : > { %v1787_v8 = vadd.f32 %v1755_v38, %v1683_v41  ;;  %v2034_v10 = vsel %vm1998_vm0, %v6654_v30, 0.0  ;;  %vm2070_vm1 = vcmp.eq.s32.totalorder %v5638_v12, %v6657_v1  ;;  %v6680_v18 = vrot.slane %v5710_v0, %v1965_v21 }
 0x109   : > { %vm2174_vm2 = vcmp.eq.s32.totalorder %v5638_v12, %v6663_v2  ;;  %v2106_v19 = vsel %vm2070_vm1, %v6660_v6, 0.0  ;;  %vm2278_vm3 = vcmp.eq.s32.totalorder %v5638_v12, %v6671_v61  ;;  %vm1527_vm4 = vcmp.eq.s32.totalorder %v5647_v15, %v6614_v45 }
 0x10a   : > { %v1891_v3 = vadd.f32 %v1859_v34, %v1787_v8  ;;  %v2210_v26 = vsel %vm2174_vm2, %v6668_v9, 0.0  ;;  %v2138_v29 = vadd.f32 %v2106_v19, %v2034_v10  ;;  %v2314_v50 = vsel %vm2278_vm3, %v6680_v18, 0.0 }
 0x10b   : > { %vm1599_vm5 = vcmp.eq.s32.totalorder %v5647_v15, %v6620_v13  ;;  %v1563_v21 = vsel %vm1527_vm4, %v6617_v35, 0.0  ;;  %vm1703_vm6 = vcmp.eq.s32.totalorder %v5647_v15, %v6626_v40  ;;  %vm1807_vm7 = vcmp.eq.s32.totalorder %v5647_v15, %v6632_v28 }
 0x10c   : > { %5038 = vmatprep.subr.mxu0 %v1891_v3  ;;  %v1635_v11 = vsel %vm1599_vm5, %v6623_v39, 0.0  ;;  %v2242_v36 = vadd.f32 %v2210_v26, %v2138_v29  ;;  %v1739_v38 = vsel %vm1703_vm6, %v6629_v42, 0.0  ;;  %v1843_v34 = vsel %vm1807_vm7, %v6639_v52, 0.0 }
 0x10d   : > { %v1667_v41 = vadd.f32 %v1635_v11, %v1563_v21  ;;  %vm1982_vm8 = vcmp.eq.s32.totalorder %v5647_v15, %v6651_v46  ;;  %vm2054_vm9 = vcmp.eq.s32.totalorder %v5647_v15, %v6657_v1  ;;  %vm2158_vm10 = vcmp.eq.s32.totalorder %v5647_v15, %v6663_v2 }
 0x10e   : > { %vm2262_vm11 = vcmp.eq.s32.totalorder %v5647_v15, %v6671_v61  ;;  %v2346_v8 = vadd.f32 %v2314_v50, %v2242_v36  ;;  %v2018_v3 = vsel %vm1982_vm8, %v6654_v30, 0.0  ;;  %v2090_v19 = vsel %vm2054_vm9, %v6660_v6, 0.0 }
 0x10f   : > { %v1771_v10 = vadd.f32 %v1739_v38, %v1667_v41  ;;  %v2122_v26 = vadd.f32 %v2090_v19, %v2018_v3  ;;  %v2194_v29 = vsel %vm2158_vm10, %v6668_v9, 0.0  ;;  %v2298_v21 = vsel %vm2262_vm11, %v6680_v18, 0.0 }
 0x110   : > { %vm1542_vm12 = vcmp.eq.s32.totalorder %v5650_v16, %v6614_v45  ;;  %5073 = vmatprep.subr.mxu1 %v2346_v8  ;;  %vm1614_vm13 = vcmp.eq.s32.totalorder %v5650_v16, %v6620_v13  ;;  %vm1718_vm14 = vcmp.eq.s32.totalorder %v5650_v16, %v6626_v40  ;;  %vm1822_vm15 = vcmp.eq.s32.totalorder %v5650_v16, %v6632_v28 }
 0x111   : > { %v1875_v11 = vadd.f32 %v1843_v34, %v1771_v10  ;;  %v1578_v27 = vsel %vm1542_vm12, %v6617_v35, 0.0  ;;  %v2226_v50 = vadd.f32 %v2194_v29, %v2122_v26  ;;  %v1650_v36 = vsel %vm1614_vm13, %v6623_v39, 0.0 }
 0x112   : > { %v1754_v41 = vsel %vm1718_vm14, %v6629_v42, 0.0  ;;  %v1682_v38 = vadd.f32 %v1650_v36, %v1578_v27  ;;  %v1858_v34 = vsel %vm1822_vm15, %v6639_v52, 0.0  ;;  %vm1997_vm0 = vcmp.eq.s32.totalorder %v5650_v16, %v6651_v46 }
 0x113   : > { %5039 = vmatpush3.msra.mxu0 %v1875_v11  ;;  %vm2069_vm1 = vcmp.eq.s32.totalorder %v5650_v16, %v6657_v1  ;;  %v2330_v8 = vadd.f32 %v2298_v21, %v2226_v50  ;;  %v2033_v10 = vsel %vm1997_vm0, %v6654_v30, 0.0  ;;  %vm2173_vm2 = vcmp.eq.s32.totalorder %v5650_v16, %v6663_v2 }
 0x114   : > { %v2105_v3 = vsel %vm2069_vm1, %v6660_v6, 0.0  ;;  %v1786_v19 = vadd.f32 %v1754_v41, %v1682_v38  ;;  %v2209_v27 = vsel %vm2173_vm2, %v6668_v9, 0.0  ;;  %vm2277_vm3 = vcmp.eq.s32.totalorder %v5650_v16, %v6671_v61 }
 0x115   : > { %v2137_v26 = vadd.f32 %v2105_v3, %v2033_v10  ;;  %5074 = vmatpush3.msra.mxu1 %v2330_v8  ;;  %v2313_v29 = vsel %vm2277_vm3, %v6680_v18, 0.0  ;;  %vm1526_vm4 = vcmp.eq.s32.totalorder %v5653_v17, %v6614_v45  ;;  %vm1598_vm5 = vcmp.eq.s32.totalorder %v5653_v17, %v6620_v13 }
 0x116   : > { %vm1702_vm6 = vcmp.eq.s32.totalorder %v5653_v17, %v6626_v40  ;;  %v1890_v21 = vadd.f32 %v1858_v34, %v1786_v19  ;;  %v1562_v50 = vsel %vm1526_vm4, %v6617_v35, 0.0  ;;  %v1634_v36 = vsel %vm1598_vm5, %v6623_v39, 0.0 }
 0x117   : > { %v2241_v11 = vadd.f32 %v2209_v27, %v2137_v26  ;;  %v1666_v41 = vadd.f32 %v1634_v36, %v1562_v50  ;;  %v1738_v38 = vsel %vm1702_vm6, %v6629_v42, 0.0  ;;  %vm1806_vm7 = vcmp.eq.s32.totalorder %v5653_v17, %v6632_v28 }
 0x118   : > { %vm1981_vm8 = vcmp.eq.s32.totalorder %v5653_v17, %v6651_v46  ;;  %5040 = vmatprep.subr.mxu0 %v1890_v21  ;;  %v1842_v10 = vsel %vm1806_vm7, %v6639_v52, 0.0  ;;  %vm2053_vm9 = vcmp.eq.s32.totalorder %v5653_v17, %v6657_v1  ;;  %vm2157_vm10 = vcmp.eq.s32.totalorder %v5653_v17, %v6663_v2 }
 0x119   : > { %v2345_v8 = vadd.f32 %v2313_v29, %v2241_v11  ;;  %v2017_v34 = vsel %vm1981_vm8, %v6654_v30, 0.0  ;;  %v1770_v3 = vadd.f32 %v1738_v38, %v1666_v41  ;;  %v2089_v19 = vsel %vm2053_vm9, %v6660_v6, 0.0 }
 0x11a   : > { %vm2261_vm11 = vcmp.eq.s32.totalorder %v5653_v17, %v6671_v61  ;;  %v2121_v26 = vadd.f32 %v2089_v19, %v2017_v34  ;;  %v2193_v27 = vsel %vm2157_vm10, %v6668_v9, 0.0  ;;  %vm1541_vm12 = vcmp.eq.s32.totalorder %v5656_v22, %v6614_v45 }
 0x11b   : > { %5075 = vmatprep.subr.mxu1 %v2345_v8  ;;  %v2297_v29 = vsel %vm2261_vm11, %v6680_v18, 0.0  ;;  %v1874_v21 = vadd.f32 %v1842_v10, %v1770_v3  ;;  %v1577_v11 = vsel %vm1541_vm12, %v6617_v35, 0.0  ;;  %vm1613_vm13 = vcmp.eq.s32.totalorder %v5656_v22, %v6620_v13 }
 0x11c   : > { %vm1717_vm14 = vcmp.eq.s32.totalorder %v5656_v22, %v6626_v40  ;;  %v2225_v50 = vadd.f32 %v2193_v27, %v2121_v26  ;;  %v1649_v36 = vsel %vm1613_vm13, %v6623_v39, 0.0  ;;  %vm1821_vm15 = vcmp.eq.s32.totalorder %v5656_v22, %v6632_v28 }
 0x11d   : > { %v1753_v41 = vsel %vm1717_vm14, %v6629_v42, 0.0  ;;  %5041 = vmatpush3.msra.mxu0 %v1874_v21  ;;  %v1681_v38 = vadd.f32 %v1649_v36, %v1577_v11  ;;  %v1857_v8 = vsel %vm1821_vm15, %v6639_v52, 0.0  ;;  %vm1996_vm0 = vcmp.eq.s32.totalorder %v5656_v22, %v6651_v46 }
 0x11e   : > { %vm2068_vm1 = vcmp.eq.s32.totalorder %v5656_v22, %v6657_v1  ;;  %v2329_v10 = vadd.f32 %v2297_v29, %v2225_v50  ;;  %v2032_v34 = vsel %vm1996_vm0, %v6654_v30, 0.0  ;;  %vm2172_vm2 = vcmp.eq.s32.totalorder %v5656_v22, %v6663_v2 }
 0x11f   : > { %v2104_v3 = vsel %vm2068_vm1, %v6660_v6, 0.0  ;;  %v1785_v19 = vadd.f32 %v1753_v41, %v1681_v38  ;;  %v2208_v27 = vsel %vm2172_vm2, %v6668_v9, 0.0  ;;  %vm2276_vm3 = vcmp.eq.s32.totalorder %v5656_v22, %v6671_v61 }
 0x120   : > { %v2136_v26 = vadd.f32 %v2104_v3, %v2032_v34  ;;  %5076 = vmatpush3.msra.mxu1 %v2329_v10  ;;  %v2312_v21 = vsel %vm2276_vm3, %v6680_v18, 0.0  ;;  %vm1525_vm4 = vcmp.eq.s32.totalorder %v5659_v23, %v6614_v45  ;;  %vm1597_vm5 = vcmp.eq.s32.totalorder %v5659_v23, %v6620_v13 }
 0x121   : > { %vm1701_vm6 = vcmp.eq.s32.totalorder %v5659_v23, %v6626_v40  ;;  %v1889_v29 = vadd.f32 %v1857_v8, %v1785_v19  ;;  %v1561_v50 = vsel %vm1525_vm4, %v6617_v35, 0.0  ;;  %v1633_v36 = vsel %vm1597_vm5, %v6623_v39, 0.0 }
 0x122   : > { %v2240_v11 = vadd.f32 %v2208_v27, %v2136_v26  ;;  %v1665_v41 = vadd.f32 %v1633_v36, %v1561_v50  ;;  %v1737_v38 = vsel %vm1701_vm6, %v6629_v42, 0.0  ;;  %vm1805_vm7 = vcmp.eq.s32.totalorder %v5659_v23, %v6632_v28 }
 0x123   : > { %vm1980_vm8 = vcmp.eq.s32.totalorder %v5659_v23, %v6651_v46  ;;  %5042 = vmatprep.subr.mxu0 %v1889_v29  ;;  %v1841_v34 = vsel %vm1805_vm7, %v6639_v52, 0.0  ;;  %vm2052_vm9 = vcmp.eq.s32.totalorder %v5659_v23, %v6657_v1  ;;  %vm2156_vm10 = vcmp.eq.s32.totalorder %v5659_v23, %v6663_v2 }
 0x124   : > { %v2344_v10 = vadd.f32 %v2312_v21, %v2240_v11  ;;  %v2016_v8 = vsel %vm1980_vm8, %v6654_v30, 0.0  ;;  %v1769_v3 = vadd.f32 %v1737_v38, %v1665_v41  ;;  %v2088_v19 = vsel %vm2052_vm9, %v6660_v6, 0.0 }
 0x125   : > { %vm2260_vm11 = vcmp.eq.s32.totalorder %v5659_v23, %v6671_v61  ;;  %v2120_v26 = vadd.f32 %v2088_v19, %v2016_v8  ;;  %v2192_v27 = vsel %vm2156_vm10, %v6668_v9, 0.0  ;;  %vm1540_vm12 = vcmp.eq.s32.totalorder %v5662_v24, %v6614_v45 }
 0x126   : > { %5077 = vmatprep.subr.mxu1 %v2344_v10  ;;  %v2296_v21 = vsel %vm2260_vm11, %v6680_v18, 0.0  ;;  %v1873_v29 = vadd.f32 %v1841_v34, %v1769_v3  ;;  %v1576_v11 = vsel %vm1540_vm12, %v6617_v35, 0.0  ;;  %vm1612_vm13 = vcmp.eq.s32.totalorder %v5662_v24, %v6620_v13 }
 0x127   : > { %vm1716_vm14 = vcmp.eq.s32.totalorder %v5662_v24, %v6626_v40  ;;  %v2224_v50 = vadd.f32 %v2192_v27, %v2120_v26  ;;  %v1648_v36 = vsel %vm1612_vm13, %v6623_v39, 0.0  ;;  %vm1820_vm15 = vcmp.eq.s32.totalorder %v5662_v24, %v6632_v28 }
 0x128   : > { %v1752_v41 = vsel %vm1716_vm14, %v6629_v42, 0.0  ;;  %5043 = vmatpush3.msra.mxu0 %v1873_v29  ;;  %v1680_v38 = vadd.f32 %v1648_v36, %v1576_v11  ;;  %v1856_v10 = vsel %vm1820_vm15, %v6639_v52, 0.0  ;;  %vm1995_vm0 = vcmp.eq.s32.totalorder %v5662_v24, %v6651_v46 }
 0x129   : > { %vm2067_vm1 = vcmp.eq.s32.totalorder %v5662_v24, %v6657_v1  ;;  %v2328_v34 = vadd.f32 %v2296_v21, %v2224_v50  ;;  %v2031_v8 = vsel %vm1995_vm0, %v6654_v30, 0.0  ;;  %vm2171_vm2 = vcmp.eq.s32.totalorder %v5662_v24, %v6663_v2 }
 0x12a   : > { %v2103_v3 = vsel %vm2067_vm1, %v6660_v6, 0.0  ;;  %v1784_v19 = vadd.f32 %v1752_v41, %v1680_v38  ;;  %v2207_v27 = vsel %vm2171_vm2, %v6668_v9, 0.0  ;;  %vm2275_vm3 = vcmp.eq.s32.totalorder %v5662_v24, %v6671_v61 }
 0x12b   : > { %v2135_v26 = vadd.f32 %v2103_v3, %v2031_v8  ;;  %5078 = vmatpush3.msra.mxu1 %v2328_v34  ;;  %v2311_v29 = vsel %vm2275_vm3, %v6680_v18, 0.0  ;;  %vm1524_vm4 = vcmp.eq.s32.totalorder %v5665_v25, %v6614_v45  ;;  %vm1596_vm5 = vcmp.eq.s32.totalorder %v5665_v25, %v6620_v13 }
 0x12c   : > { %vm1700_vm6 = vcmp.eq.s32.totalorder %v5665_v25, %v6626_v40  ;;  %v1888_v21 = vadd.f32 %v1856_v10, %v1784_v19  ;;  %v1560_v50 = vsel %vm1524_vm4, %v6617_v35, 0.0  ;;  %v1632_v36 = vsel %vm1596_vm5, %v6623_v39, 0.0 }
 0x12d   : > { %v2239_v11 = vadd.f32 %v2207_v27, %v2135_v26  ;;  %v1664_v41 = vadd.f32 %v1632_v36, %v1560_v50  ;;  %v1736_v38 = vsel %vm1700_vm6, %v6629_v42, 0.0  ;;  %vm1804_vm7 = vcmp.eq.s32.totalorder %v5665_v25, %v6632_v28 }
 0x12e   : > { %vm1979_vm8 = vcmp.eq.s32.totalorder %v5665_v25, %v6651_v46  ;;  %5044 = vmatprep.subr.mxu0 %v1888_v21  ;;  %v1840_v8 = vsel %vm1804_vm7, %v6639_v52, 0.0  ;;  %vm2051_vm9 = vcmp.eq.s32.totalorder %v5665_v25, %v6657_v1  ;;  %vm2155_vm10 = vcmp.eq.s32.totalorder %v5665_v25, %v6663_v2 }
 0x12f   : > { %v2343_v34 = vadd.f32 %v2311_v29, %v2239_v11  ;;  %v2015_v10 = vsel %vm1979_vm8, %v6654_v30, 0.0  ;;  %v1768_v3 = vadd.f32 %v1736_v38, %v1664_v41  ;;  %v2087_v19 = vsel %vm2051_vm9, %v6660_v6, 0.0 }
 0x130   : > { %vm2259_vm11 = vcmp.eq.s32.totalorder %v5665_v25, %v6671_v61  ;;  %v2119_v26 = vadd.f32 %v2087_v19, %v2015_v10  ;;  %v2191_v27 = vsel %vm2155_vm10, %v6668_v9, 0.0  ;;  %vm1539_vm12 = vcmp.eq.s32.totalorder %v5668_v31, %v6614_v45 }
 0x131   : > { %5079 = vmatprep.subr.mxu1 %v2343_v34  ;;  %v2295_v29 = vsel %vm2259_vm11, %v6680_v18, 0.0  ;;  %v1872_v21 = vadd.f32 %v1840_v8, %v1768_v3  ;;  %v1575_v11 = vsel %vm1539_vm12, %v6617_v35, 0.0  ;;  %vm1611_vm13 = vcmp.eq.s32.totalorder %v5668_v31, %v6620_v13 }
 0x132   : > { %vm1715_vm14 = vcmp.eq.s32.totalorder %v5668_v31, %v6626_v40  ;;  %v2223_v50 = vadd.f32 %v2191_v27, %v2119_v26  ;;  %v1647_v36 = vsel %vm1611_vm13, %v6623_v39, 0.0  ;;  %vm1819_vm15 = vcmp.eq.s32.totalorder %v5668_v31, %v6632_v28 }
 0x133   : > { %v1751_v41 = vsel %vm1715_vm14, %v6629_v42, 0.0  ;;  %5045 = vmatpush3.msra.mxu0 %v1872_v21  ;;  %v1679_v38 = vadd.f32 %v1647_v36, %v1575_v11  ;;  %v1855_v34 = vsel %vm1819_vm15, %v6639_v52, 0.0  ;;  %vm1994_vm0 = vcmp.eq.s32.totalorder %v5668_v31, %v6651_v46 }
 0x134   : > { %vm2066_vm1 = vcmp.eq.s32.totalorder %v5668_v31, %v6657_v1  ;;  %v2327_v8 = vadd.f32 %v2295_v29, %v2223_v50  ;;  %v2030_v10 = vsel %vm1994_vm0, %v6654_v30, 0.0  ;;  %vm2170_vm2 = vcmp.eq.s32.totalorder %v5668_v31, %v6663_v2 }
 0x135   : > { %v2102_v3 = vsel %vm2066_vm1, %v6660_v6, 0.0  ;;  %v1783_v19 = vadd.f32 %v1751_v41, %v1679_v38  ;;  %v2206_v27 = vsel %vm2170_vm2, %v6668_v9, 0.0  ;;  %vm2274_vm3 = vcmp.eq.s32.totalorder %v5668_v31, %v6671_v61 }
 0x136   : > { %v2134_v26 = vadd.f32 %v2102_v3, %v2030_v10  ;;  %5080 = vmatpush3.msra.mxu1 %v2327_v8  ;;  %v2310_v21 = vsel %vm2274_vm3, %v6680_v18, 0.0  ;;  %vm1523_vm4 = vcmp.eq.s32.totalorder %v5671_v32, %v6614_v45  ;;  %vm1595_vm5 = vcmp.eq.s32.totalorder %v5671_v32, %v6620_v13 }
 0x137   : > { %vm1699_vm6 = vcmp.eq.s32.totalorder %v5671_v32, %v6626_v40  ;;  %v1887_v29 = vadd.f32 %v1855_v34, %v1783_v19  ;;  %v1559_v50 = vsel %vm1523_vm4, %v6617_v35, 0.0  ;;  %v1631_v36 = vsel %vm1595_vm5, %v6623_v39, 0.0 }
 0x138   : > { %v2238_v11 = vadd.f32 %v2206_v27, %v2134_v26  ;;  %v1663_v41 = vadd.f32 %v1631_v36, %v1559_v50  ;;  %v1735_v38 = vsel %vm1699_vm6, %v6629_v42, 0.0  ;;  %vm1803_vm7 = vcmp.eq.s32.totalorder %v5671_v32, %v6632_v28 }
 0x139   : > { %vm1978_vm8 = vcmp.eq.s32.totalorder %v5671_v32, %v6651_v46  ;;  %5046 = vmatprep.subr.mxu0 %v1887_v29  ;;  %v1839_v10 = vsel %vm1803_vm7, %v6639_v52, 0.0  ;;  %vm2050_vm9 = vcmp.eq.s32.totalorder %v5671_v32, %v6657_v1  ;;  %vm2154_vm10 = vcmp.eq.s32.totalorder %v5671_v32, %v6663_v2 }
 0x13a   : > { %v2342_v8 = vadd.f32 %v2310_v21, %v2238_v11  ;;  %v2014_v34 = vsel %vm1978_vm8, %v6654_v30, 0.0  ;;  %v1767_v3 = vadd.f32 %v1735_v38, %v1663_v41  ;;  %v2086_v19 = vsel %vm2050_vm9, %v6660_v6, 0.0 }
 0x13b   : > { %vm2258_vm11 = vcmp.eq.s32.totalorder %v5671_v32, %v6671_v61  ;;  %v2118_v26 = vadd.f32 %v2086_v19, %v2014_v34  ;;  %v2190_v27 = vsel %vm2154_vm10, %v6668_v9, 0.0  ;;  %vm1538_vm12 = vcmp.eq.s32.totalorder %v5674_v33, %v6614_v45 }
 0x13c   : > { %5081 = vmatprep.subr.mxu1 %v2342_v8  ;;  %v2294_v21 = vsel %vm2258_vm11, %v6680_v18, 0.0  ;;  %v1871_v29 = vadd.f32 %v1839_v10, %v1767_v3  ;;  %v1574_v11 = vsel %vm1538_vm12, %v6617_v35, 0.0  ;;  %vm1610_vm13 = vcmp.eq.s32.totalorder %v5674_v33, %v6620_v13 }
 0x13d   : > { %vm1714_vm14 = vcmp.eq.s32.totalorder %v5674_v33, %v6626_v40  ;;  %v2222_v50 = vadd.f32 %v2190_v27, %v2118_v26  ;;  %v1646_v36 = vsel %vm1610_vm13, %v6623_v39, 0.0  ;;  %vm1818_vm15 = vcmp.eq.s32.totalorder %v5674_v33, %v6632_v28 }
 0x13e   : > { %v1750_v41 = vsel %vm1714_vm14, %v6629_v42, 0.0  ;;  %5047 = vmatpush3.msra.mxu0 %v1871_v29  ;;  %v1678_v38 = vadd.f32 %v1646_v36, %v1574_v11  ;;  %v1854_v8 = vsel %vm1818_vm15, %v6639_v52, 0.0  ;;  %vm1993_vm0 = vcmp.eq.s32.totalorder %v5674_v33, %v6651_v46 }
 0x13f   : > { %vm2065_vm1 = vcmp.eq.s32.totalorder %v5674_v33, %v6657_v1  ;;  %v2326_v10 = vadd.f32 %v2294_v21, %v2222_v50  ;;  %v2029_v34 = vsel %vm1993_vm0, %v6654_v30, 0.0  ;;  %vm2169_vm2 = vcmp.eq.s32.totalorder %v5674_v33, %v6663_v2 }
 0x140   : > { %v2101_v3 = vsel %vm2065_vm1, %v6660_v6, 0.0  ;;  %v1782_v19 = vadd.f32 %v1750_v41, %v1678_v38  ;;  %v2205_v27 = vsel %vm2169_vm2, %v6668_v9, 0.0  ;;  %vm2273_vm3 = vcmp.eq.s32.totalorder %v5674_v33, %v6671_v61 }
 0x141   : > { %v2133_v26 = vadd.f32 %v2101_v3, %v2029_v34  ;;  %5082 = vmatpush3.msra.mxu1 %v2326_v10  ;;  %v2309_v29 = vsel %vm2273_vm3, %v6680_v18, 0.0  ;;  %vm1522_vm4 = vcmp.eq.s32.totalorder %v5683_v47, %v6614_v45  ;;  %vm1594_vm5 = vcmp.eq.s32.totalorder %v5683_v47, %v6620_v13 }
 0x142   : > { %vm1698_vm6 = vcmp.eq.s32.totalorder %v5683_v47, %v6626_v40  ;;  %v1886_v21 = vadd.f32 %v1854_v8, %v1782_v19  ;;  %v1558_v50 = vsel %vm1522_vm4, %v6617_v35, 0.0  ;;  %v1630_v36 = vsel %vm1594_vm5, %v6623_v39, 0.0 }
 0x143   : > { %v2237_v11 = vadd.f32 %v2205_v27, %v2133_v26  ;;  %v1662_v41 = vadd.f32 %v1630_v36, %v1558_v50  ;;  %v1734_v38 = vsel %vm1698_vm6, %v6629_v42, 0.0  ;;  %vm1802_vm7 = vcmp.eq.s32.totalorder %v5683_v47, %v6632_v28 }
 0x144   : > { %vm1977_vm8 = vcmp.eq.s32.totalorder %v5683_v47, %v6651_v46  ;;  %5048 = vmatprep.subr.mxu0 %v1886_v21  ;;  %v1838_v34 = vsel %vm1802_vm7, %v6639_v52, 0.0  ;;  %vm2049_vm9 = vcmp.eq.s32.totalorder %v5683_v47, %v6657_v1  ;;  %vm2153_vm10 = vcmp.eq.s32.totalorder %v5683_v47, %v6663_v2 }
 0x145   : > { %v2341_v10 = vadd.f32 %v2309_v29, %v2237_v11  ;;  %v2013_v8 = vsel %vm1977_vm8, %v6654_v30, 0.0  ;;  %v1766_v3 = vadd.f32 %v1734_v38, %v1662_v41  ;;  %v2085_v19 = vsel %vm2049_vm9, %v6660_v6, 0.0 }
 0x146   : > { %vm2257_vm11 = vcmp.eq.s32.totalorder %v5683_v47, %v6671_v61  ;;  %v2117_v26 = vadd.f32 %v2085_v19, %v2013_v8  ;;  %v2189_v27 = vsel %vm2153_vm10, %v6668_v9, 0.0  ;;  %vm1537_vm12 = vcmp.eq.s32.totalorder %v5687_v51, %v6614_v45 }
 0x147   : > { %5083 = vmatprep.subr.mxu1 %v2341_v10  ;;  %v2293_v29 = vsel %vm2257_vm11, %v6680_v18, 0.0  ;;  %v1870_v21 = vadd.f32 %v1838_v34, %v1766_v3  ;;  %v1573_v11 = vsel %vm1537_vm12, %v6617_v35, 0.0  ;;  %vm1609_vm13 = vcmp.eq.s32.totalorder %v5687_v51, %v6620_v13 }
 0x148   : > { %vm1713_vm14 = vcmp.eq.s32.totalorder %v5687_v51, %v6626_v40  ;;  %v2221_v50 = vadd.f32 %v2189_v27, %v2117_v26  ;;  %v1645_v36 = vsel %vm1609_vm13, %v6623_v39, 0.0  ;;  %vm1817_vm15 = vcmp.eq.s32.totalorder %v5687_v51, %v6632_v28 }
 0x149   : > { %v1749_v41 = vsel %vm1713_vm14, %v6629_v42, 0.0  ;;  %5049 = vmatpush3.msra.mxu0 %v1870_v21  ;;  %v1677_v38 = vadd.f32 %v1645_v36, %v1573_v11  ;;  %v1853_v10 = vsel %vm1817_vm15, %v6639_v52, 0.0  ;;  %vm1992_vm0 = vcmp.eq.s32.totalorder %v5687_v51, %v6651_v46 }
 0x14a   : > { %vm2064_vm1 = vcmp.eq.s32.totalorder %v5687_v51, %v6657_v1  ;;  %v2325_v34 = vadd.f32 %v2293_v29, %v2221_v50  ;;  %v2028_v8 = vsel %vm1992_vm0, %v6654_v30, 0.0  ;;  %vm2168_vm2 = vcmp.eq.s32.totalorder %v5687_v51, %v6663_v2 }
 0x14b   : > { %v2100_v3 = vsel %vm2064_vm1, %v6660_v6, 0.0  ;;  %v1781_v19 = vadd.f32 %v1749_v41, %v1677_v38  ;;  %v2204_v27 = vsel %vm2168_vm2, %v6668_v9, 0.0  ;;  %vm2272_vm3 = vcmp.eq.s32.totalorder %v5687_v51, %v6671_v61 }
 0x14c   : > { %v2132_v26 = vadd.f32 %v2100_v3, %v2028_v8  ;;  %5084 = vmatpush3.msra.mxu1 %v2325_v34  ;;  %v2308_v21 = vsel %vm2272_vm3, %v6680_v18, 0.0  ;;  %vm1521_vm4 = vcmp.eq.s32.totalorder %v5692_v55, %v6614_v45  ;;  %vm1593_vm5 = vcmp.eq.s32.totalorder %v5692_v55, %v6620_v13 }
 0x14d   : > { %vm1697_vm6 = vcmp.eq.s32.totalorder %v5692_v55, %v6626_v40  ;;  %v1885_v29 = vadd.f32 %v1853_v10, %v1781_v19  ;;  %v1557_v50 = vsel %vm1521_vm4, %v6617_v35, 0.0  ;;  %v1629_v36 = vsel %vm1593_vm5, %v6623_v39, 0.0 }
 0x14e   : > { %v2236_v11 = vadd.f32 %v2204_v27, %v2132_v26  ;;  %v1661_v41 = vadd.f32 %v1629_v36, %v1557_v50  ;;  %v1733_v38 = vsel %vm1697_vm6, %v6629_v42, 0.0  ;;  %vm1801_vm7 = vcmp.eq.s32.totalorder %v5692_v55, %v6632_v28 }
 0x14f   : > { %vm1976_vm8 = vcmp.eq.s32.totalorder %v5692_v55, %v6651_v46  ;;  %5050 = vmatprep.subr.mxu0 %v1885_v29  ;;  %v1837_v8 = vsel %vm1801_vm7, %v6639_v52, 0.0  ;;  %vm2048_vm9 = vcmp.eq.s32.totalorder %v5692_v55, %v6657_v1  ;;  %vm2152_vm10 = vcmp.eq.s32.totalorder %v5692_v55, %v6663_v2 }
 0x150   : > { %v2340_v34 = vadd.f32 %v2308_v21, %v2236_v11  ;;  %v2012_v10 = vsel %vm1976_vm8, %v6654_v30, 0.0  ;;  %v1765_v3 = vadd.f32 %v1733_v38, %v1661_v41  ;;  %v2084_v19 = vsel %vm2048_vm9, %v6660_v6, 0.0 }
 0x151   : > { %vm2256_vm11 = vcmp.eq.s32.totalorder %v5692_v55, %v6671_v61  ;;  %v2116_v26 = vadd.f32 %v2084_v19, %v2012_v10  ;;  %v2188_v27 = vsel %vm2152_vm10, %v6668_v9, 0.0  ;;  %vm1536_vm12 = vcmp.eq.s32.totalorder %v5697_v58, %v6614_v45 }
 0x152   : > { %5085 = vmatprep.subr.mxu1 %v2340_v34  ;;  %v2292_v21 = vsel %vm2256_vm11, %v6680_v18, 0.0  ;;  %v1869_v29 = vadd.f32 %v1837_v8, %v1765_v3  ;;  %v1572_v11 = vsel %vm1536_vm12, %v6617_v35, 0.0  ;;  %vm1608_vm13 = vcmp.eq.s32.totalorder %v5697_v58, %v6620_v13 }
 0x153   : > { %vm1712_vm14 = vcmp.eq.s32.totalorder %v5697_v58, %v6626_v40  ;;  %v2220_v50 = vadd.f32 %v2188_v27, %v2116_v26  ;;  %v1644_v36 = vsel %vm1608_vm13, %v6623_v39, 0.0  ;;  %vm1816_vm15 = vcmp.eq.s32.totalorder %v5697_v58, %v6632_v28 }
 0x154   : > { %v1748_v41 = vsel %vm1712_vm14, %v6629_v42, 0.0  ;;  %5051 = vmatpush3.msra.mxu0 %v1869_v29  ;;  %v1676_v38 = vadd.f32 %v1644_v36, %v1572_v11  ;;  %v1852_v34 = vsel %vm1816_vm15, %v6639_v52, 0.0  ;;  %vm1991_vm0 = vcmp.eq.s32.totalorder %v5697_v58, %v6651_v46 }
 0x155   : > { %vm2063_vm1 = vcmp.eq.s32.totalorder %v5697_v58, %v6657_v1  ;;  %v2324_v8 = vadd.f32 %v2292_v21, %v2220_v50  ;;  %v2027_v10 = vsel %vm1991_vm0, %v6654_v30, 0.0  ;;  %vm2167_vm2 = vcmp.eq.s32.totalorder %v5697_v58, %v6663_v2 }
 0x156   : > { %v2099_v3 = vsel %vm2063_vm1, %v6660_v6, 0.0  ;;  %v1780_v19 = vadd.f32 %v1748_v41, %v1676_v38  ;;  %v2203_v27 = vsel %vm2167_vm2, %v6668_v9, 0.0  ;;  %vm2271_vm3 = vcmp.eq.s32.totalorder %v5697_v58, %v6671_v61 }
 0x157   : > { %v2131_v26 = vadd.f32 %v2099_v3, %v2027_v10  ;;  %5086 = vmatpush3.msra.mxu1 %v2324_v8  ;;  %v2307_v29 = vsel %vm2271_vm3, %v6680_v18, 0.0  ;;  %vm1520_vm4 = vcmp.eq.s32.totalorder %v5700_v59, %v6614_v45  ;;  %vm1592_vm5 = vcmp.eq.s32.totalorder %v5700_v59, %v6620_v13 }
 0x158   : > { %vm1696_vm6 = vcmp.eq.s32.totalorder %v5700_v59, %v6626_v40  ;;  %v1884_v21 = vadd.f32 %v1852_v34, %v1780_v19  ;;  %v1556_v50 = vsel %vm1520_vm4, %v6617_v35, 0.0  ;;  %v1628_v36 = vsel %vm1592_vm5, %v6623_v39, 0.0 }
 0x159   : > { %v2235_v11 = vadd.f32 %v2203_v27, %v2131_v26  ;;  %v1660_v41 = vadd.f32 %v1628_v36, %v1556_v50  ;;  %v1732_v38 = vsel %vm1696_vm6, %v6629_v42, 0.0  ;;  %vm1800_vm7 = vcmp.eq.s32.totalorder %v5700_v59, %v6632_v28 }
 0x15a   : > { %vm1975_vm8 = vcmp.eq.s32.totalorder %v5700_v59, %v6651_v46  ;;  %5052 = vmatprep.subr.mxu0 %v1884_v21  ;;  %v1836_v10 = vsel %vm1800_vm7, %v6639_v52, 0.0  ;;  %vm2047_vm9 = vcmp.eq.s32.totalorder %v5700_v59, %v6657_v1  ;;  %vm2151_vm10 = vcmp.eq.s32.totalorder %v5700_v59, %v6663_v2 }
 0x15b   : > { %v2339_v8 = vadd.f32 %v2307_v29, %v2235_v11  ;;  %v2011_v34 = vsel %vm1975_vm8, %v6654_v30, 0.0  ;;  %v1764_v3 = vadd.f32 %v1732_v38, %v1660_v41  ;;  %v2083_v19 = vsel %vm2047_vm9, %v6660_v6, 0.0 }
 0x15c   : > { %vm2255_vm11 = vcmp.eq.s32.totalorder %v5700_v59, %v6671_v61  ;;  %v2115_v26 = vadd.f32 %v2083_v19, %v2011_v34  ;;  %v2187_v27 = vsel %vm2151_vm10, %v6668_v9, 0.0  ;;  %vm1535_vm12 = vcmp.eq.s32.totalorder %v6165_v44, %v6614_v45 }
 0x15d   : > { %5087 = vmatprep.subr.mxu1 %v2339_v8  ;;  %v2291_v29 = vsel %vm2255_vm11, %v6680_v18, 0.0  ;;  %v1868_v21 = vadd.f32 %v1836_v10, %v1764_v3  ;;  %v1571_v11 = vsel %vm1535_vm12, %v6617_v35, 0.0  ;;  %vm1607_vm13 = vcmp.eq.s32.totalorder %v6165_v44, %v6620_v13 }
 0x15e   : > { %vm1711_vm14 = vcmp.eq.s32.totalorder %v6165_v44, %v6626_v40  ;;  %v2219_v50 = vadd.f32 %v2187_v27, %v2115_v26  ;;  %v1643_v36 = vsel %vm1607_vm13, %v6623_v39, 0.0  ;;  %vm1815_vm15 = vcmp.eq.s32.totalorder %v6165_v44, %v6632_v28 }
 0x15f   : > { %v1747_v41 = vsel %vm1711_vm14, %v6629_v42, 0.0  ;;  %5053 = vmatpush3.msra.mxu0 %v1868_v21  ;;  %v1675_v38 = vadd.f32 %v1643_v36, %v1571_v11  ;;  %v1851_v8 = vsel %vm1815_vm15, %v6639_v52, 0.0  ;;  %vm1990_vm0 = vcmp.eq.s32.totalorder %v6165_v44, %v6651_v46 }
 0x160   : > { %vm2062_vm1 = vcmp.eq.s32.totalorder %v6165_v44, %v6657_v1  ;;  %v2323_v10 = vadd.f32 %v2291_v29, %v2219_v50  ;;  %v2026_v34 = vsel %vm1990_vm0, %v6654_v30, 0.0  ;;  %vm2166_vm2 = vcmp.eq.s32.totalorder %v6165_v44, %v6663_v2 }
 0x161   : > { %v2098_v3 = vsel %vm2062_vm1, %v6660_v6, 0.0  ;;  %v1779_v19 = vadd.f32 %v1747_v41, %v1675_v38  ;;  %v2202_v27 = vsel %vm2166_vm2, %v6668_v9, 0.0  ;;  %vm2270_vm3 = vcmp.eq.s32.totalorder %v6165_v44, %v6671_v61 }
 0x162   : > { %v2130_v26 = vadd.f32 %v2098_v3, %v2026_v34  ;;  %5088 = vmatpush3.msra.mxu1 %v2323_v10  ;;  %v2306_v21 = vsel %vm2270_vm3, %v6680_v18, 0.0  ;;  %vm1519_vm4 = vcmp.eq.s32.totalorder %v6169_v48, %v6614_v45  ;;  %vm1591_vm5 = vcmp.eq.s32.totalorder %v6169_v48, %v6620_v13 }
 0x163   : > { %vm1695_vm6 = vcmp.eq.s32.totalorder %v6169_v48, %v6626_v40  ;;  %v1883_v29 = vadd.f32 %v1851_v8, %v1779_v19  ;;  %v1555_v50 = vsel %vm1519_vm4, %v6617_v35, 0.0  ;;  %v1627_v36 = vsel %vm1591_vm5, %v6623_v39, 0.0 }
 0x164   : > { %v2234_v11 = vadd.f32 %v2202_v27, %v2130_v26  ;;  %v1659_v41 = vadd.f32 %v1627_v36, %v1555_v50  ;;  %v1731_v38 = vsel %vm1695_vm6, %v6629_v42, 0.0  ;;  %vm1799_vm7 = vcmp.eq.s32.totalorder %v6169_v48, %v6632_v28 }
 0x165   : > { %vm1974_vm8 = vcmp.eq.s32.totalorder %v6169_v48, %v6651_v46  ;;  %5054 = vmatprep.subr.mxu0 %v1883_v29  ;;  %v1835_v34 = vsel %vm1799_vm7, %v6639_v52, 0.0  ;;  %vm2046_vm9 = vcmp.eq.s32.totalorder %v6169_v48, %v6657_v1  ;;  %vm2150_vm10 = vcmp.eq.s32.totalorder %v6169_v48, %v6663_v2 }
 0x166   : > { %v2338_v10 = vadd.f32 %v2306_v21, %v2234_v11  ;;  %v2010_v8 = vsel %vm1974_vm8, %v6654_v30, 0.0  ;;  %v1763_v3 = vadd.f32 %v1731_v38, %v1659_v41  ;;  %v2082_v19 = vsel %vm2046_vm9, %v6660_v6, 0.0 }
 0x167   : > { %vm2254_vm11 = vcmp.eq.s32.totalorder %v6169_v48, %v6671_v61  ;;  %v2114_v26 = vadd.f32 %v2082_v19, %v2010_v8  ;;  %v2186_v27 = vsel %vm2150_vm10, %v6668_v9, 0.0  ;;  %vm1534_vm12 = vcmp.eq.s32.totalorder %v6172_v14, %v6614_v45 }
 0x168   : > { %5089 = vmatprep.subr.mxu1 %v2338_v10  ;;  %v2290_v21 = vsel %vm2254_vm11, %v6680_v18, 0.0  ;;  %v1867_v29 = vadd.f32 %v1835_v34, %v1763_v3  ;;  %v1570_v11 = vsel %vm1534_vm12, %v6617_v35, 0.0  ;;  %vm1606_vm13 = vcmp.eq.s32.totalorder %v6172_v14, %v6620_v13 }
 0x169   : > { %vm1710_vm14 = vcmp.eq.s32.totalorder %v6172_v14, %v6626_v40  ;;  %v2218_v50 = vadd.f32 %v2186_v27, %v2114_v26  ;;  %v1642_v36 = vsel %vm1606_vm13, %v6623_v39, 0.0  ;;  %vm1814_vm15 = vcmp.eq.s32.totalorder %v6172_v14, %v6632_v28 }
 0x16a   : > { %v1746_v41 = vsel %vm1710_vm14, %v6629_v42, 0.0  ;;  %5055 = vmatpush3.msra.mxu0 %v1867_v29  ;;  %v1674_v38 = vadd.f32 %v1642_v36, %v1570_v11  ;;  %v1850_v10 = vsel %vm1814_vm15, %v6639_v52, 0.0  ;;  %vm1989_vm0 = vcmp.eq.s32.totalorder %v6172_v14, %v6651_v46 }
 0x16b   : > { %vm2061_vm1 = vcmp.eq.s32.totalorder %v6172_v14, %v6657_v1  ;;  %v2322_v34 = vadd.f32 %v2290_v21, %v2218_v50  ;;  %v2025_v8 = vsel %vm1989_vm0, %v6654_v30, 0.0  ;;  %vm2165_vm2 = vcmp.eq.s32.totalorder %v6172_v14, %v6663_v2 }
 0x16c   : > { %v2097_v3 = vsel %vm2061_vm1, %v6660_v6, 0.0  ;;  %v1778_v19 = vadd.f32 %v1746_v41, %v1674_v38  ;;  %v2201_v27 = vsel %vm2165_vm2, %v6668_v9, 0.0  ;;  %vm2269_vm3 = vcmp.eq.s32.totalorder %v6172_v14, %v6671_v61 }
 0x16d   : > { %v2129_v26 = vadd.f32 %v2097_v3, %v2025_v8  ;;  %5090 = vmatpush3.msra.mxu1 %v2322_v34  ;;  %v2305_v29 = vsel %vm2269_vm3, %v6680_v18, 0.0  ;;  %vm1518_vm4 = vcmp.eq.s32.totalorder %v6245_v53, %v6614_v45  ;;  %vm1590_vm5 = vcmp.eq.s32.totalorder %v6245_v53, %v6620_v13 }
 0x16e   : > { %vm1694_vm6 = vcmp.eq.s32.totalorder %v6245_v53, %v6626_v40  ;;  %v1882_v21 = vadd.f32 %v1850_v10, %v1778_v19  ;;  %v1554_v50 = vsel %vm1518_vm4, %v6617_v35, 0.0  ;;  %v1626_v36 = vsel %vm1590_vm5, %v6623_v39, 0.0 }
 0x16f   : > { %v2233_v11 = vadd.f32 %v2201_v27, %v2129_v26  ;;  %v1658_v41 = vadd.f32 %v1626_v36, %v1554_v50  ;;  %v1730_v38 = vsel %vm1694_vm6, %v6629_v42, 0.0  ;;  %vm1798_vm7 = vcmp.eq.s32.totalorder %v6245_v53, %v6632_v28 }
 0x170   : > { %vm1973_vm8 = vcmp.eq.s32.totalorder %v6245_v53, %v6651_v46  ;;  %5056 = vmatprep.subr.mxu0 %v1882_v21  ;;  %v1834_v8 = vsel %vm1798_vm7, %v6639_v52, 0.0  ;;  %vm2045_vm9 = vcmp.eq.s32.totalorder %v6245_v53, %v6657_v1  ;;  %vm2149_vm10 = vcmp.eq.s32.totalorder %v6245_v53, %v6663_v2 }
 0x171   : > { %v2337_v34 = vadd.f32 %v2305_v29, %v2233_v11  ;;  %v2009_v10 = vsel %vm1973_vm8, %v6654_v30, 0.0  ;;  %v1762_v3 = vadd.f32 %v1730_v38, %v1658_v41  ;;  %v2081_v19 = vsel %vm2045_vm9, %v6660_v6, 0.0 }
 0x172   : > { %vm2253_vm11 = vcmp.eq.s32.totalorder %v6245_v53, %v6671_v61  ;;  %v2113_v26 = vadd.f32 %v2081_v19, %v2009_v10  ;;  %v2185_v27 = vsel %vm2149_vm10, %v6668_v9, 0.0  ;;  %vm1533_vm12 = vcmp.eq.s32.totalorder %v6250_v20, %v6614_v45 }
 0x173   : > { %5091 = vmatprep.subr.mxu1 %v2337_v34  ;;  %v2289_v29 = vsel %vm2253_vm11, %v6680_v18, 0.0  ;;  %v1866_v21 = vadd.f32 %v1834_v8, %v1762_v3  ;;  %v1569_v11 = vsel %vm1533_vm12, %v6617_v35, 0.0  ;;  %vm1605_vm13 = vcmp.eq.s32.totalorder %v6250_v20, %v6620_v13 }
 0x174   : > { %vm1709_vm14 = vcmp.eq.s32.totalorder %v6250_v20, %v6626_v40  ;;  %v2217_v50 = vadd.f32 %v2185_v27, %v2113_v26  ;;  %v1641_v36 = vsel %vm1605_vm13, %v6623_v39, 0.0  ;;  %vm1813_vm15 = vcmp.eq.s32.totalorder %v6250_v20, %v6632_v28 }
 0x175   : > { %v1745_v41 = vsel %vm1709_vm14, %v6629_v42, 0.0  ;;  %5057 = vmatpush3.msra.mxu0 %v1866_v21  ;;  %v1673_v38 = vadd.f32 %v1641_v36, %v1569_v11  ;;  %v1849_v34 = vsel %vm1813_vm15, %v6639_v52, 0.0  ;;  %vm1988_vm0 = vcmp.eq.s32.totalorder %v6250_v20, %v6651_v46 }
 0x176   : > { %vm2060_vm1 = vcmp.eq.s32.totalorder %v6250_v20, %v6657_v1  ;;  %v2321_v8 = vadd.f32 %v2289_v29, %v2217_v50  ;;  %v2024_v10 = vsel %vm1988_vm0, %v6654_v30, 0.0  ;;  %vm2164_vm2 = vcmp.eq.s32.totalorder %v6250_v20, %v6663_v2 }
 0x177   : > { %v2096_v3 = vsel %vm2060_vm1, %v6660_v6, 0.0  ;;  %v1777_v19 = vadd.f32 %v1745_v41, %v1673_v38  ;;  %v2200_v27 = vsel %vm2164_vm2, %v6668_v9, 0.0  ;;  %vm2268_vm3 = vcmp.eq.s32.totalorder %v6250_v20, %v6671_v61 }
 0x178   : > { %v2128_v26 = vadd.f32 %v2096_v3, %v2024_v10  ;;  %5092 = vmatpush3.msra.mxu1 %v2321_v8  ;;  %v2304_v21 = vsel %vm2268_vm3, %v6680_v18, 0.0  ;;  %vm1517_vm4 = vcmp.eq.s32.totalorder %v6300_v49, %v6614_v45  ;;  %vm1589_vm5 = vcmp.eq.s32.totalorder %v6300_v49, %v6620_v13 }
 0x179   : > { %vm1693_vm6 = vcmp.eq.s32.totalorder %v6300_v49, %v6626_v40  ;;  %v1881_v29 = vadd.f32 %v1849_v34, %v1777_v19  ;;  %v1553_v50 = vsel %vm1517_vm4, %v6617_v35, 0.0  ;;  %v1625_v36 = vsel %vm1589_vm5, %v6623_v39, 0.0 }
 0x17a   : > { %v2232_v11 = vadd.f32 %v2200_v27, %v2128_v26  ;;  %v1657_v41 = vadd.f32 %v1625_v36, %v1553_v50  ;;  %v1729_v38 = vsel %vm1693_vm6, %v6629_v42, 0.0  ;;  %vm1797_vm7 = vcmp.eq.s32.totalorder %v6300_v49, %v6632_v28 }
 0x17b   : > { %vm1972_vm8 = vcmp.eq.s32.totalorder %v6300_v49, %v6651_v46  ;;  %5058 = vmatprep.subr.mxu0 %v1881_v29  ;;  %v1833_v10 = vsel %vm1797_vm7, %v6639_v52, 0.0  ;;  %vm2044_vm9 = vcmp.eq.s32.totalorder %v6300_v49, %v6657_v1  ;;  %vm2148_vm10 = vcmp.eq.s32.totalorder %v6300_v49, %v6663_v2  ;;  %v9624_v29 = vld [vmem:[#allocation13_spill] sm:$0xff] }
 0x17c   : > { %v2336_v8 = vadd.f32 %v2304_v21, %v2232_v11  ;;  %v2008_v34 = vsel %vm1972_vm8, %v6654_v30, 0.0  ;;  %v1761_v3 = vadd.f32 %v1729_v38, %v1657_v41  ;;  %v2080_v19 = vsel %vm2044_vm9, %v6660_v6, 0.0 }
 0x17d   : > { %vm2252_vm11 = vcmp.eq.s32.totalorder %v6300_v49, %v6671_v61  ;;  %v2112_v26 = vadd.f32 %v2080_v19, %v2008_v34  ;;  %v2184_v27 = vsel %vm2148_vm10, %v6668_v9, 0.0  ;;  %vm1532_vm12 = vcmp.eq.s32.totalorder %v9624_v29, %v6614_v45 }
 0x17e   : > { %5093 = vmatprep.subr.mxu1 %v2336_v8  ;;  %v2288_v21 = vsel %vm2252_vm11, %v6680_v18, 0.0  ;;  %v1865_v11 = vadd.f32 %v1833_v10, %v1761_v3  ;;  %v1568_v50 = vsel %vm1532_vm12, %v6617_v35, 0.0  ;;  %vm1604_vm13 = vcmp.eq.s32.totalorder %v9624_v29, %v6620_v13 }
 0x17f   : > { %vm1708_vm14 = vcmp.eq.s32.totalorder %v9624_v29, %v6626_v40  ;;  %v2216_v36 = vadd.f32 %v2184_v27, %v2112_v26  ;;  %v1640_v41 = vsel %vm1604_vm13, %v6623_v39, 0.0  ;;  %vm1812_vm15 = vcmp.eq.s32.totalorder %v9624_v29, %v6632_v28 }
 0x180   : > { %v1744_v38 = vsel %vm1708_vm14, %v6629_v42, 0.0  ;;  %5059 = vmatpush3.msra.mxu0 %v1865_v11  ;;  %v1672_v8 = vadd.f32 %v1640_v41, %v1568_v50  ;;  %v1848_v10 = vsel %vm1812_vm15, %v6639_v52, 0.0  ;;  %vm1987_vm0 = vcmp.eq.s32.totalorder %v9624_v29, %v6651_v46  ;;  %v9625_v41 = vld [vmem:[#allocation14_spill] sm:$0xff] }
 0x181   : > { %vm2059_vm1 = vcmp.eq.s32.totalorder %v9624_v29, %v6657_v1  ;;  %v2320_v34 = vadd.f32 %v2288_v21, %v2216_v36  ;;  %v2023_v3 = vsel %vm1987_vm0, %v6654_v30, 0.0  ;;  %vm2163_vm2 = vcmp.eq.s32.totalorder %v9624_v29, %v6663_v2 }
 0x182   : > { %v2095_v19 = vsel %vm2059_vm1, %v6660_v6, 0.0  ;;  %v1776_v26 = vadd.f32 %v1744_v38, %v1672_v8  ;;  %v2199_v11 = vsel %vm2163_vm2, %v6668_v9, 0.0  ;;  %vm2267_vm3 = vcmp.eq.s32.totalorder %v9624_v29, %v6671_v61 }
 0x183   : > { %v2127_v27 = vadd.f32 %v2095_v19, %v2023_v3  ;;  %5094 = vmatpush3.msra.mxu1 %v2320_v34  ;;  %v2303_v50 = vsel %vm2267_vm3, %v6680_v18, 0.0  ;;  %vm1516_vm4 = vcmp.eq.s32.totalorder %v9625_v41, %v6614_v45  ;;  %vm1588_vm5 = vcmp.eq.s32.totalorder %v9625_v41, %v6620_v13 }
 0x184   : > { %vm1692_vm6 = vcmp.eq.s32.totalorder %v9625_v41, %v6626_v40  ;;  %v1880_v21 = vadd.f32 %v1848_v10, %v1776_v26  ;;  %v1552_v38 = vsel %vm1516_vm4, %v6617_v35, 0.0  ;;  %v1624_v8 = vsel %vm1588_vm5, %v6623_v39, 0.0 }
 0x185   : > { %v2231_v36 = vadd.f32 %v2199_v11, %v2127_v27  ;;  %v1656_v3 = vadd.f32 %v1624_v8, %v1552_v38  ;;  %v1728_v34 = vsel %vm1692_vm6, %v6629_v42, 0.0  ;;  %vm1796_vm7 = vcmp.eq.s32.totalorder %v9625_v41, %v6632_v28 }
 0x186   : > { %vm1971_vm8 = vcmp.eq.s32.totalorder %v9625_v41, %v6651_v46  ;;  %5060 = vmatprep.subr.mxu0 %v1880_v21  ;;  %v1832_v29 = vsel %vm1796_vm7, %v6639_v52, 0.0  ;;  %vm2043_vm9 = vcmp.eq.s32.totalorder %v9625_v41, %v6657_v1  ;;  %vm2147_vm10 = vcmp.eq.s32.totalorder %v9625_v41, %v6663_v2 }
 0x187   : > { %v2335_v19 = vadd.f32 %v2303_v50, %v2231_v36  ;;  %v2007_v10 = vsel %vm1971_vm8, %v6654_v30, 0.0  ;;  %v1760_v26 = vadd.f32 %v1728_v34, %v1656_v3  ;;  %v2079_v27 = vsel %vm2043_vm9, %v6660_v6, 0.0  ;;  %v9626_v36 = vld [vmem:[#allocation15_spill] sm:$0xff] }
 0x188   : > { %vm2251_vm11 = vcmp.eq.s32.totalorder %v9625_v41, %v6671_v61  ;;  %v2111_v11 = vadd.f32 %v2079_v27, %v2007_v10  ;;  %v2183_v50 = vsel %vm2147_vm10, %v6668_v9, 0.0  ;;  %vm1531_vm12 = vcmp.eq.s32.totalorder %v9626_v36, %v6614_v45 }
 0x189   : > { %5095 = vmatprep.subr.mxu1 %v2335_v19  ;;  %v2287_v21 = vsel %vm2251_vm11, %v6680_v18, 0.0  ;;  %v1864_v38 = vadd.f32 %v1832_v29, %v1760_v26  ;;  %v1567_v8 = vsel %vm1531_vm12, %v6617_v35, 0.0  ;;  %vm1603_vm13 = vcmp.eq.s32.totalorder %v9626_v36, %v6620_v13 }
 0x18a   : > { %vm1707_vm14 = vcmp.eq.s32.totalorder %v9626_v36, %v6626_v40  ;;  %v2215_v3 = vadd.f32 %v2183_v50, %v2111_v11  ;;  %v1639_v34 = vsel %vm1603_vm13, %v6623_v39, 0.0  ;;  %vm1811_vm15 = vcmp.eq.s32.totalorder %v9626_v36, %v6632_v28 }
 0x18b   : > { %v1743_v19 = vsel %vm1707_vm14, %v6629_v42, 0.0  ;;  %5061 = vmatpush3.msra.mxu0 %v1864_v38  ;;  %v1671_v10 = vadd.f32 %v1639_v34, %v1567_v8  ;;  %v1847_v29 = vsel %vm1811_vm15, %v6639_v52, 0.0  ;;  %vm1986_vm0 = vcmp.eq.s32.totalorder %v9626_v36, %v6651_v46  ;;  %v9627_v34 = vld [vmem:[#allocation16_spill] sm:$0xff] }
 0x18c   : > { %vm2058_vm1 = vcmp.eq.s32.totalorder %v9626_v36, %v6657_v1  ;;  %v2319_v26 = vadd.f32 %v2287_v21, %v2215_v3  ;;  %v2022_v27 = vsel %vm1986_vm0, %v6654_v30, 0.0  ;;  %vm2162_vm2 = vcmp.eq.s32.totalorder %v9626_v36, %v6663_v2 }
 0x18d   : > { %v2094_v11 = vsel %vm2058_vm1, %v6660_v6, 0.0  ;;  %v1775_v50 = vadd.f32 %v1743_v19, %v1671_v10  ;;  %v2198_v38 = vsel %vm2162_vm2, %v6668_v9, 0.0  ;;  %vm2266_vm3 = vcmp.eq.s32.totalorder %v9626_v36, %v6671_v61 }
 0x18e   : > { %v2126_v41 = vadd.f32 %v2094_v11, %v2022_v27  ;;  %5096 = vmatpush3.msra.mxu1 %v2319_v26  ;;  %v2302_v8 = vsel %vm2266_vm3, %v6680_v18, 0.0  ;;  %vm1515_vm4 = vcmp.eq.s32.totalorder %v9627_v34, %v6614_v45  ;;  %vm1587_vm5 = vcmp.eq.s32.totalorder %v9627_v34, %v6620_v13 }
 0x18f   : > { %vm1691_vm6 = vcmp.eq.s32.totalorder %v9627_v34, %v6626_v40  ;;  %v1879_v21 = vadd.f32 %v1847_v29, %v1775_v50  ;;  %v1551_v19 = vsel %vm1515_vm4, %v6617_v35, 0.0  ;;  %v1623_v10 = vsel %vm1587_vm5, %v6623_v39, 0.0 }
 0x190   : > { %v2230_v3 = vadd.f32 %v2198_v38, %v2126_v41  ;;  %v1655_v27 = vadd.f32 %v1623_v10, %v1551_v19  ;;  %v1727_v26 = vsel %vm1691_vm6, %v6629_v42, 0.0  ;;  %vm1795_vm7 = vcmp.eq.s32.totalorder %v9627_v34, %v6632_v28 }
 0x191   : > { %vm1970_vm8 = vcmp.eq.s32.totalorder %v9627_v34, %v6651_v46  ;;  %5062 = vmatprep.subr.mxu0 %v1879_v21  ;;  %v1831_v36 = vsel %vm1795_vm7, %v6639_v52, 0.0  ;;  %vm2042_vm9 = vcmp.eq.s32.totalorder %v9627_v34, %v6657_v1  ;;  %vm2146_vm10 = vcmp.eq.s32.totalorder %v9627_v34, %v6663_v2 }
 0x192   : > { %v2334_v11 = vadd.f32 %v2302_v8, %v2230_v3  ;;  %v2006_v29 = vsel %vm1970_vm8, %v6654_v30, 0.0  ;;  %v1759_v41 = vadd.f32 %v1727_v26, %v1655_v27  ;;  %v2078_v50 = vsel %vm2042_vm9, %v6660_v6, 0.0  ;;  %v9628_v3 = vld [vmem:[#allocation17_spill] sm:$0xff] }
 0x193   : > { %vm2250_vm11 = vcmp.eq.s32.totalorder %v9627_v34, %v6671_v61  ;;  %v2110_v38 = vadd.f32 %v2078_v50, %v2006_v29  ;;  %v2182_v8 = vsel %vm2146_vm10, %v6668_v9, 0.0  ;;  %vm1530_vm12 = vcmp.eq.s32.totalorder %v9628_v3, %v6614_v45 }
 0x194   : > { %5097 = vmatprep.subr.mxu1 %v2334_v11  ;;  %v2286_v21 = vsel %vm2250_vm11, %v6680_v18, 0.0  ;;  %v1863_v19 = vadd.f32 %v1831_v36, %v1759_v41  ;;  %v1566_v10 = vsel %vm1530_vm12, %v6617_v35, 0.0  ;;  %vm1602_vm13 = vcmp.eq.s32.totalorder %v9628_v3, %v6620_v13 }
 0x195   : > { %vm1706_vm14 = vcmp.eq.s32.totalorder %v9628_v3, %v6626_v40  ;;  %v2214_v27 = vadd.f32 %v2182_v8, %v2110_v38  ;;  %v1638_v26 = vsel %vm1602_vm13, %v6623_v39, 0.0  ;;  %vm1810_vm15 = vcmp.eq.s32.totalorder %v9628_v3, %v6632_v28 }
 0x196   : > { %v1742_v11 = vsel %vm1706_vm14, %v6629_v42, 0.0  ;;  %5063 = vmatpush3.msra.mxu0 %v1863_v19  ;;  %v1670_v29 = vadd.f32 %v1638_v26, %v1566_v10  ;;  %v1846_v36 = vsel %vm1810_vm15, %v6639_v52, 0.0  ;;  %vm1985_vm0 = vcmp.eq.s32.totalorder %v9628_v3, %v6651_v46 }
 0x197   : > { %vm2057_vm1 = vcmp.eq.s32.totalorder %v9628_v3, %v6657_v1  ;;  %v2318_v41 = vadd.f32 %v2286_v21, %v2214_v27  ;;  %v2021_v50 = vsel %vm1985_vm0, %v6654_v30, 0.0  ;;  %vm2161_vm2 = vcmp.eq.s32.totalorder %v9628_v3, %v6663_v2 }
 0x198   : > { %v2093_v38 = vsel %vm2057_vm1, %v6660_v6, 0.0  ;;  %v1774_v8 = vadd.f32 %v1742_v11, %v1670_v29  ;;  %v2197_v19 = vsel %vm2161_vm2, %v6668_v9, 0.0  ;;  %vm2265_vm3 = vcmp.eq.s32.totalorder %v9628_v3, %v6671_v61 }
 0x199   : > { %v2125_v34 = vadd.f32 %v2093_v38, %v2021_v50  ;;  %5098 = vmatpush3.msra.mxu1 %v2318_v41  ;;  %v2301_v10 = vsel %vm2265_vm3, %v6680_v18, 0.0  ;;  %vm1514_vm4 = vcmp.eq.s32.totalorder %v6439_v37, %v6614_v45  ;;  %vm1586_vm5 = vcmp.eq.s32.totalorder %v6439_v37, %v6620_v13 }
 0x19a   : > { %vm1690_vm6 = vcmp.eq.s32.totalorder %v6439_v37, %v6626_v40  ;;  %v1878_v21 = vadd.f32 %v1846_v36, %v1774_v8  ;;  %v1550_v26 = vsel %vm1514_vm4, %v6617_v35, 0.0  ;;  %v1622_v11 = vsel %vm1586_vm5, %v6623_v39, 0.0 }
 0x19b   : > { %v2229_v27 = vadd.f32 %v2197_v19, %v2125_v34  ;;  %v1654_v29 = vadd.f32 %v1622_v11, %v1550_v26  ;;  %v1726_v41 = vsel %vm1690_vm6, %v6629_v42, 0.0  ;;  %vm1794_vm7 = vcmp.eq.s32.totalorder %v6439_v37, %v6632_v28 }
 0x19c   : > { %vm1969_vm8 = vcmp.eq.s32.totalorder %v6439_v37, %v6651_v46  ;;  %5064 = vmatprep.subr.mxu0 %v1878_v21  ;;  %v1830_v38 = vsel %vm1794_vm7, %v6639_v52, 0.0  ;;  %vm2041_vm9 = vcmp.eq.s32.totalorder %v6439_v37, %v6657_v1  ;;  %vm2145_vm10 = vcmp.eq.s32.totalorder %v6439_v37, %v6663_v2 }
 0x19d   : > { %v2333_v50 = vadd.f32 %v2301_v10, %v2229_v27  ;;  %v2005_v36 = vsel %vm1969_vm8, %v6654_v30, 0.0  ;;  %v1758_v34 = vadd.f32 %v1726_v41, %v1654_v29  ;;  %v2077_v8 = vsel %vm2041_vm9, %v6660_v6, 0.0 }
 0x19e   : > { %vm2249_vm11 = vcmp.eq.s32.totalorder %v6439_v37, %v6671_v61  ;;  %v2109_v19 = vadd.f32 %v2077_v8, %v2005_v36  ;;  %v2181_v10 = vsel %vm2145_vm10, %v6668_v9, 0.0  ;;  %vm1529_vm12 = vcmp.eq.s32.totalorder %v6442_v43, %v6614_v45 }
 0x19f   : > { %5099 = vmatprep.subr.mxu1 %v2333_v50  ;;  %v2285_v21 = vsel %vm2249_vm11, %v6680_v18, 0.0  ;;  %v1862_v27 = vadd.f32 %v1830_v38, %v1758_v34  ;;  %v1565_v26 = vsel %vm1529_vm12, %v6617_v35, 0.0  ;;  %vm1601_vm13 = vcmp.eq.s32.totalorder %v6442_v43, %v6620_v13 }
 0x1a0   : > { %vm1705_vm14 = vcmp.eq.s32.totalorder %v6442_v43, %v6626_v40  ;;  %v2213_v11 = vadd.f32 %v2181_v10, %v2109_v19  ;;  %v1637_v29 = vsel %vm1601_vm13, %v6623_v39, 0.0  ;;  %vm1809_vm15 = vcmp.eq.s32.totalorder %v6442_v43, %v6632_v28 }
 0x1a1   : > { %v1741_v41 = vsel %vm1705_vm14, %v6629_v42, 0.0  ;;  %5065 = vmatpush3.msra.mxu0 %v1862_v27  ;;  %v1669_v50 = vadd.f32 %v1637_v29, %v1565_v26  ;;  %v1845_v38 = vsel %vm1809_vm15, %v6639_v52, 0.0  ;;  %vm1984_vm0 = vcmp.eq.s32.totalorder %v6442_v43, %v6651_v46  ;;  %v9629_v29 = vld [vmem:[#allocation20_spill] sm:$0xff] }
 0x1a2   : > { %vm2056_vm1 = vcmp.eq.s32.totalorder %v6442_v43, %v6657_v1  ;;  %v2317_v36 = vadd.f32 %v2285_v21, %v2213_v11  ;;  %v2020_v34 = vsel %vm1984_vm0, %v6654_v30, 0.0  ;;  %vm2160_vm2 = vcmp.eq.s32.totalorder %v6442_v43, %v6663_v2 }
 0x1a3   : > { %v2092_v8 = vsel %vm2056_vm1, %v6660_v6, 0.0  ;;  %v1773_v19 = vadd.f32 %v1741_v41, %v1669_v50  ;;  %v2196_v27 = vsel %vm2160_vm2, %v6668_v9, 0.0  ;;  %vm2264_vm3 = vcmp.eq.s32.totalorder %v6442_v43, %v6671_v61 }
 0x1a4   : > { %v2124_v10 = vadd.f32 %v2092_v8, %v2020_v34  ;;  %5100 = vmatpush3.msra.mxu1 %v2317_v36  ;;  %v2300_v26 = vsel %vm2264_vm3, %v6680_v18, 0.0  ;;  %vm1513_vm4 = vcmp.eq.s32.totalorder %v9629_v29, %v6614_v45  ;;  %vm1585_vm5 = vcmp.eq.s32.totalorder %v9629_v29, %v6620_v13 }
 0x1a5   : > { %vm1689_vm6 = vcmp.eq.s32.totalorder %v9629_v29, %v6626_v40  ;;  %v1877_v21 = vadd.f32 %v1845_v38, %v1773_v19  ;;  %v1549_v41 = vsel %vm1513_vm4, %v6617_v35, 0.0  ;;  %v1621_v50 = vsel %vm1585_vm5, %v6623_v39, 0.0 }
 0x1a6   : > { %v2228_v11 = vadd.f32 %v2196_v27, %v2124_v10  ;;  %v1653_v34 = vadd.f32 %v1621_v50, %v1549_v41  ;;  %v1725_v36 = vsel %vm1689_vm6, %v6629_v42, 0.0  ;;  %vm1793_vm7 = vcmp.eq.s32.totalorder %v9629_v29, %v6632_v28 }
 0x1a7   : > { %vm1968_vm8 = vcmp.eq.s32.totalorder %v9629_v29, %v6651_v46  ;;  %5066 = vmatprep.subr.mxu0 %v1877_v21  ;;  %v1829_v43 = vsel %vm1793_vm7, %v6639_v52, 0.0  ;;  %vm2040_vm9 = vcmp.eq.s32.totalorder %v9629_v29, %v6657_v1  ;;  %vm2144_vm10 = vcmp.eq.s32.totalorder %v9629_v29, %v6663_v2 }
 0x1a8   : > { %v2332_v8 = vadd.f32 %v2300_v26, %v2228_v11  ;;  %v2004_v38 = vsel %vm1968_vm8, %v6654_v30, 0.0  ;;  %v1757_v19 = vadd.f32 %v1725_v36, %v1653_v34  ;;  %v2076_v10 = vsel %vm2040_vm9, %v6660_v6, 0.0 }
 0x1a9   : > { %vm2248_vm11 = vcmp.eq.s32.totalorder %v9629_v29, %v6671_v61  ;;  %v2108_v27 = vadd.f32 %v2076_v10, %v2004_v38  ;;  %v2180_v26 = vsel %vm2144_vm10, %v6668_v9, 0.0  ;;  %vm1528_vm12 = vcmp.eq.s32.totalorder %v6448_v57, %v6614_v45 }
 0x1aa   : > { %5101 = vmatprep.subr.mxu1 %v2332_v8  ;;  %v2284_v21 = vsel %vm2248_vm11, %v6680_v18, 0.0  ;;  %v1861_v11 = vadd.f32 %v1829_v43, %v1757_v19  ;;  %v1564_v41 = vsel %vm1528_vm12, %v6617_v35, 0.0  ;;  %vm1600_vm13 = vcmp.eq.s32.totalorder %v6448_v57, %v6620_v13 }
 0x1ab   : > { %vm1704_vm14 = vcmp.eq.s32.totalorder %v6448_v57, %v6626_v40  ;;  %v2212_v50 = vadd.f32 %v2180_v26, %v2108_v27  ;;  %v1636_v34 = vsel %vm1600_vm13, %v6623_v39, 0.0  ;;  %vm1808_vm15 = vcmp.eq.s32.totalorder %v6448_v57, %v6632_v28 }
 0x1ac   : > { %v1740_v36 = vsel %vm1704_vm14, %v6629_v42, 0.0  ;;  %5067 = vmatpush3.msra.mxu0 %v1861_v11  ;;  %v1668_v8 = vadd.f32 %v1636_v34, %v1564_v41  ;;  %v1844_v43 = vsel %vm1808_vm15, %v6639_v52, 0.0  ;;  %vm1983_vm0 = vcmp.eq.s32.totalorder %v6448_v57, %v6651_v46 }
 0x1ad   : > { %vm2055_vm1 = vcmp.eq.s32.totalorder %v6448_v57, %v6657_v1  ;;  %v2316_v38 = vadd.f32 %v2284_v21, %v2212_v50  ;;  %v2019_v19 = vsel %vm1983_vm0, %v6654_v30, 0.0  ;;  %vm2159_vm2 = vcmp.eq.s32.totalorder %v6448_v57, %v6663_v2 }
 0x1ae   : > { %v2091_v10 = vsel %vm2055_vm1, %v6660_v6, 0.0  ;;  %v1772_v27 = vadd.f32 %v1740_v36, %v1668_v8  ;;  %v2195_v11 = vsel %vm2159_vm2, %v6668_v9, 0.0  ;;  %vm2263_vm3 = vcmp.eq.s32.totalorder %v6448_v57, %v6671_v61 }
 0x1af   : > { %v2123_v26 = vadd.f32 %v2091_v10, %v2019_v19  ;;  %5102 = vmatpush3.msra.mxu1 %v2316_v38  ;;  %v2299_v41 = vsel %vm2263_vm3, %v6680_v18, 0.0  ;;  %vm1512_vm4 = vcmp.eq.s32.totalorder %v5629_v7, %v6614_v45  ;;  %vm1584_vm5 = vcmp.eq.s32.totalorder %v5629_v7, %v6620_v13 }
 0x1b0   : > { %vm1688_vm6 = vcmp.eq.s32.totalorder %v5629_v7, %v6626_v40  ;;  %v1876_v21 = vadd.f32 %v1844_v43, %v1772_v27  ;;  %v1548_v34 = vsel %vm1512_vm4, %v6617_v35, 0.0  ;;  %v1620_v36 = vsel %vm1584_vm5, %v6623_v39, 0.0 }
 0x1b1   : > { %v2227_v50 = vadd.f32 %v2195_v11, %v2123_v26  ;;  %v1652_v8 = vadd.f32 %v1620_v36, %v1548_v34  ;;  %v1724_v38 = vsel %vm1688_vm6, %v6629_v42, 0.0  ;;  %vm1792_vm7 = vcmp.eq.s32.totalorder %v5629_v7, %v6632_v28  ;;  %v5386_v26 = vld [vmem:[%s6567_s20] sm:$0xff] }
 0x1b2   : > { %vm1967_vm8 = vcmp.eq.s32.totalorder %v5629_v7, %v6651_v46  ;;  %5068 = vmatprep.subr.mxu0 %v1876_v21  ;;  %v1828_v13 = vsel %vm1792_vm7, %v6639_v52, 0.0  ;;  %vm2039_vm9 = vcmp.eq.s32.totalorder %v5629_v7, %v6657_v1  ;;  %vm2143_vm10 = vcmp.eq.s32.totalorder %v5629_v7, %v6663_v2 }
 0x1b3   : > { %v2331_v45 = vadd.f32 %v2299_v41, %v2227_v50  ;;  %v2003_v40 = vsel %vm1967_vm8, %v6654_v30, 0.0  ;;  %v1756_v35 = vadd.f32 %v1724_v38, %v1652_v8  ;;  %v2075_v39 = vsel %vm2039_vm9, %v6660_v6, 0.0  ;;  %v9630_v50 = vld [vmem:[#allocation22_spill] sm:$0xff] }
 0x1b4   : > { %vm2247_vm11 = vcmp.eq.s32.totalorder %v5629_v7, %v6671_v61  ;;  %v2107_v42 = vadd.f32 %v2075_v39, %v2003_v40  ;;  %v2179_v28 = vsel %vm2143_vm10, %v6668_v9, 0.0  ;;  %v2420_v52 = vsub.s32 4, %v5629_v7 }
 0x1b5   : > { %5103 = vmatprep.subr.mxu1 %v2331_v45  ;;  %v1860_v46 = vadd.f32 %v1828_v13, %v1756_v35  ;;  %v2283_v30 = vsel %vm2247_vm11, %v6680_v18, 0.0  ;;  %v2875_v1 = vsub.s32 5, %v5629_v7 }
 0x1b6   : > { %v2211_v43 = vadd.f32 %v2179_v28, %v2107_v42  ;;  %v7434_v6 = vrot.slane %v5689_v54, %v2420_v52  ;;  %v7437_v2 = vrot.slane %v5694_v56, %v2420_v52  ;;  %v7440_v61 = vrot.slane %v5705_v62, %v2420_v52 }
 0x1b7   : > { %5069 = vmatpush3.msra.mxu0 %v1860_v46  ;;  %v7443_v9 = vrot.slane %v5702_v60, %v2420_v52  ;;  %v7446_v19 = vrot.slane %v5708_v63, %v2420_v52  ;;  %v7449_v18 = vrot.slane %v5724_v4, %v2420_v52  ;;  %v7452_v10 = vrot.slane %v5727_v5, %v2420_v52 }
 0x1b8   : > { %v2315_v27 = vadd.f32 %v2283_v30, %v2211_v43  ;;  %1957 = vmatmul.mubr.f32.vlgmr.msra.gmra.mxu0 %v5386_v26  ;;  %vm2453_vm12 = vcmp.eq.s32.totalorder %v5638_v12, %v7434_v6  ;;  %vm2525_vm13 = vcmp.eq.s32.totalorder %v5638_v12, %v7440_v61  ;;  %v7460_v11 = vrot.slane %v5710_v0, %v2420_v52 }
 0x1b9   : > { %v2489_v41 = vsel %vm2453_vm12, %v7437_v2, 0.0  ;;  %v2561_v21 = vsel %vm2525_vm13, %v7443_v9, 0.0  ;;  %vm2629_vm14 = vcmp.eq.s32.totalorder %v5638_v12, %v7446_v19  ;;  %vm2733_vm15 = vcmp.eq.s32.totalorder %v5638_v12, %v7452_v10  ;;  %2866 = vmatprep.mubr.f32.mxu0 %v9630_v50 }
 0x1ba   : > { %5104 = vmatpush3.msra.mxu1 %v2315_v27  ;;  %v2593_v34 = vadd.f32 %v2561_v21, %v2489_v41  ;;  %v2665_v36 = vsel %vm2629_vm14, %v7449_v18, 0.0  ;;  %v2769_v8 = vsel %vm2733_vm15, %v7460_v11, 0.0  ;;  %v7472_v38 = vrot.slane %v5689_v54, %v2875_v1 }
 0x1bb   : > { %2412 = vmatmul.mubr.f32.vlgmr.msra.gmra.mxu1 %v5386_v26  ;;  %v7475_v45 = vrot.slane %v5694_v56, %v2875_v1  ;;  %v7478_v13 = vrot.slane %v5705_v62, %v2875_v1  ;;  %v7481_v40 = vrot.slane %v5702_v60, %v2875_v1  ;;  %v7484_v35 = vrot.slane %v5708_v63, %v2875_v1 }
 0x1bc   : > { %v2697_v39 = vadd.f32 %v2665_v36, %v2593_v34  ;;  %vm2908_vm0 = vcmp.eq.s32.totalorder %v5638_v12, %v7472_v38  ;;  %v7489_v42 = vrot.slane %v5724_v4, %v2875_v1  ;;  %v7492_v28 = vrot.slane %v5727_v5, %v2875_v1  ;;  %3321 = vmatprep.mubr.f32.mxu1 %v9630_v50 }
 0x1bd   : > { %v2944_v52 = vsel %vm2908_vm0, %v7475_v45, 0.0  ;;  %vm2980_vm1 = vcmp.eq.s32.totalorder %v5638_v12, %v7478_v13  ;;  %vm3084_vm2 = vcmp.eq.s32.totalorder %v5638_v12, %v7484_v35  ;;  %v7501_v46 = vrot.slane %v5710_v0, %v2875_v1 }
 0x1be   : > { %v2801_v30 = vadd.f32 %v2769_v8, %v2697_v39  ;;  %v3016_v43 = vsel %vm2980_vm1, %v7481_v40, 0.0  ;;  %v3120_v27 = vsel %vm3084_vm2, %v7489_v42, 0.0  ;;  %vm3188_vm3 = vcmp.eq.s32.totalorder %v5638_v12, %v7492_v28 }
 0x1bf   : > { %v3048_v26 = vadd.f32 %v3016_v43, %v2944_v52  ;;  %v3224_v41 = vsel %vm3188_vm3, %v7501_v46, 0.0  ;;  %vm2437_vm4 = vcmp.eq.s32.totalorder %v5647_v15, %v7434_v6  ;;  %vm2509_vm5 = vcmp.eq.s32.totalorder %v5647_v15, %v7440_v61 }
 0x1c0   : > { %5108 = vmatprep.subr.mxu0 %v2801_v30  ;;  %v2473_v1 = vsel %vm2437_vm4, %v7437_v2, 0.0  ;;  %v2545_v21 = vsel %vm2509_vm5, %v7443_v9, 0.0  ;;  %vm2613_vm6 = vcmp.eq.s32.totalorder %v5647_v15, %v7446_v19  ;;  %vm2717_vm7 = vcmp.eq.s32.totalorder %v5647_v15, %v7452_v10 }
 0x1c1   : > { %v3152_v34 = vadd.f32 %v3120_v27, %v3048_v26  ;;  %v2577_v36 = vadd.f32 %v2545_v21, %v2473_v1  ;;  %v2649_v8 = vsel %vm2613_vm6, %v7449_v18, 0.0  ;;  %v2753_v39 = vsel %vm2717_vm7, %v7460_v11, 0.0 }
 0x1c2   : > { %vm2892_vm8 = vcmp.eq.s32.totalorder %v5647_v15, %v7472_v38  ;;  %vm2964_vm9 = vcmp.eq.s32.totalorder %v5647_v15, %v7478_v13  ;;  %vm3068_vm10 = vcmp.eq.s32.totalorder %v5647_v15, %v7484_v35  ;;  %vm3172_vm11 = vcmp.eq.s32.totalorder %v5647_v15, %v7492_v28 }
 0x1c3   : > { %v3256_v52 = vadd.f32 %v3224_v41, %v3152_v34  ;;  %v2681_v30 = vadd.f32 %v2649_v8, %v2577_v36  ;;  %v2928_v43 = vsel %vm2892_vm8, %v7475_v45, 0.0  ;;  %v3000_v27 = vsel %vm2964_vm9, %v7481_v40, 0.0 }
 0x1c4   : > { %v3032_v26 = vadd.f32 %v3000_v27, %v2928_v43  ;;  %v3104_v1 = vsel %vm3068_vm10, %v7489_v42, 0.0  ;;  %v3208_v21 = vsel %vm3172_vm11, %v7501_v46, 0.0  ;;  %vm2452_vm12 = vcmp.eq.s32.totalorder %v5650_v16, %v7434_v6 }
 0x1c5   : > { %5143 = vmatprep.subr.mxu1 %v3256_v52  ;;  %v2785_v50 = vadd.f32 %v2753_v39, %v2681_v30  ;;  %v2488_v0 = vsel %vm2452_vm12, %v7437_v2, 0.0  ;;  %vm2524_vm13 = vcmp.eq.s32.totalorder %v5650_v16, %v7440_v61  ;;  %vm2628_vm14 = vcmp.eq.s32.totalorder %v5650_v16, %v7446_v19 }
 0x1c6   : > { %v3136_v41 = vadd.f32 %v3104_v1, %v3032_v26  ;;  %v2560_v34 = vsel %vm2524_vm13, %v7443_v9, 0.0  ;;  %v2664_v36 = vsel %vm2628_vm14, %v7449_v18, 0.0  ;;  %vm2732_vm15 = vcmp.eq.s32.totalorder %v5650_v16, %v7452_v10 }
 0x1c7   : > { %5109 = vmatpush3.msra.mxu0 %v2785_v50  ;;  %v2592_v8 = vadd.f32 %v2560_v34, %v2488_v0  ;;  %v2768_v39 = vsel %vm2732_vm15, %v7460_v11, 0.0  ;;  %vm2907_vm0 = vcmp.eq.s32.totalorder %v5650_v16, %v7472_v38  ;;  %vm2979_vm1 = vcmp.eq.s32.totalorder %v5650_v16, %v7478_v13 }
 0x1c8   : > { %v3240_v52 = vadd.f32 %v3208_v21, %v3136_v41  ;;  %v2943_v30 = vsel %vm2907_vm0, %v7475_v45, 0.0  ;;  %v3015_v43 = vsel %vm2979_vm1, %v7481_v40, 0.0  ;;  %vm3083_vm2 = vcmp.eq.s32.totalorder %v5650_v16, %v7484_v35 }
 0x1c9   : > { %v2696_v27 = vadd.f32 %v2664_v36, %v2592_v8  ;;  %v3047_v26 = vadd.f32 %v3015_v43, %v2943_v30  ;;  %v3119_v0 = vsel %vm3083_vm2, %v7489_v42, 0.0  ;;  %vm3187_vm3 = vcmp.eq.s32.totalorder %v5650_v16, %v7492_v28 }
 0x1ca   : > { %5144 = vmatpush3.msra.mxu1 %v3240_v52  ;;  %v3223_v50 = vsel %vm3187_vm3, %v7501_v46, 0.0  ;;  %vm2436_vm4 = vcmp.eq.s32.totalorder %v5653_v17, %v7434_v6  ;;  %vm2508_vm5 = vcmp.eq.s32.totalorder %v5653_v17, %v7440_v61  ;;  %vm2612_vm6 = vcmp.eq.s32.totalorder %v5653_v17, %v7446_v19 }
 0x1cb   : > { %v2800_v1 = vadd.f32 %v2768_v39, %v2696_v27  ;;  %v3151_v21 = vadd.f32 %v3119_v0, %v3047_v26  ;;  %v2472_v41 = vsel %vm2436_vm4, %v7437_v2, 0.0  ;;  %v2544_v34 = vsel %vm2508_vm5, %v7443_v9, 0.0 }
 0x1cc   : > { %v2576_v36 = vadd.f32 %v2544_v34, %v2472_v41  ;;  %v2648_v8 = vsel %vm2612_vm6, %v7449_v18, 0.0  ;;  %vm2716_vm7 = vcmp.eq.s32.totalorder %v5653_v17, %v7452_v10  ;;  %vm2891_vm8 = vcmp.eq.s32.totalorder %v5653_v17, %v7472_v38 }
 0x1cd   : > { %5110 = vmatprep.subr.mxu0 %v2800_v1  ;;  %v3255_v52 = vadd.f32 %v3223_v50, %v3151_v21  ;;  %v2752_v30 = vsel %vm2716_vm7, %v7460_v11, 0.0  ;;  %v2927_v39 = vsel %vm2891_vm8, %v7475_v45, 0.0  ;;  %vm2963_vm9 = vcmp.eq.s32.totalorder %v5653_v17, %v7478_v13 }
 0x1ce   : > { %v2680_v43 = vadd.f32 %v2648_v8, %v2576_v36  ;;  %v2999_v27 = vsel %vm2963_vm9, %v7481_v40, 0.0  ;;  %vm3067_vm10 = vcmp.eq.s32.totalorder %v5653_v17, %v7484_v35  ;;  %vm3171_vm11 = vcmp.eq.s32.totalorder %v5653_v17, %v7492_v28 }
 0x1cf   : > { %5145 = vmatprep.subr.mxu1 %v3255_v52  ;;  %v3031_v26 = vadd.f32 %v2999_v27, %v2927_v39  ;;  %v3103_v0 = vsel %vm3067_vm10, %v7489_v42, 0.0  ;;  %v3207_v50 = vsel %vm3171_vm11, %v7501_v46, 0.0  ;;  %vm2451_vm12 = vcmp.eq.s32.totalorder %v5656_v22, %v7434_v6 }
 0x1d0   : > { %v2784_v1 = vadd.f32 %v2752_v30, %v2680_v43  ;;  %v2487_v21 = vsel %vm2451_vm12, %v7437_v2, 0.0  ;;  %vm2523_vm13 = vcmp.eq.s32.totalorder %v5656_v22, %v7440_v61  ;;  %vm2627_vm14 = vcmp.eq.s32.totalorder %v5656_v22, %v7446_v19 }
 0x1d1   : > { %v3135_v41 = vadd.f32 %v3103_v0, %v3031_v26  ;;  %v2559_v34 = vsel %vm2523_vm13, %v7443_v9, 0.0  ;;  %v2663_v36 = vsel %vm2627_vm14, %v7449_v18, 0.0  ;;  %vm2731_vm15 = vcmp.eq.s32.totalorder %v5656_v22, %v7452_v10 }
 0x1d2   : > { %5111 = vmatpush3.msra.mxu0 %v2784_v1  ;;  %v2591_v8 = vadd.f32 %v2559_v34, %v2487_v21  ;;  %v2767_v52 = vsel %vm2731_vm15, %v7460_v11, 0.0  ;;  %vm2906_vm0 = vcmp.eq.s32.totalorder %v5656_v22, %v7472_v38  ;;  %vm2978_vm1 = vcmp.eq.s32.totalorder %v5656_v22, %v7478_v13 }
 0x1d3   : > { %v3239_v30 = vadd.f32 %v3207_v50, %v3135_v41  ;;  %v2942_v39 = vsel %vm2906_vm0, %v7475_v45, 0.0  ;;  %v3014_v43 = vsel %vm2978_vm1, %v7481_v40, 0.0  ;;  %vm3082_vm2 = vcmp.eq.s32.totalorder %v5656_v22, %v7484_v35 }
 0x1d4   : > { %v2695_v27 = vadd.f32 %v2663_v36, %v2591_v8  ;;  %v3046_v26 = vadd.f32 %v3014_v43, %v2942_v39  ;;  %v3118_v0 = vsel %vm3082_vm2, %v7489_v42, 0.0  ;;  %vm3186_vm3 = vcmp.eq.s32.totalorder %v5656_v22, %v7492_v28 }
 0x1d5   : > { %5146 = vmatpush3.msra.mxu1 %v3239_v30  ;;  %v3222_v1 = vsel %vm3186_vm3, %v7501_v46, 0.0  ;;  %vm2435_vm4 = vcmp.eq.s32.totalorder %v5659_v23, %v7434_v6  ;;  %vm2507_vm5 = vcmp.eq.s32.totalorder %v5659_v23, %v7440_v61  ;;  %vm2611_vm6 = vcmp.eq.s32.totalorder %v5659_v23, %v7446_v19 }
 0x1d6   : > { %v2799_v50 = vadd.f32 %v2767_v52, %v2695_v27  ;;  %v3150_v21 = vadd.f32 %v3118_v0, %v3046_v26  ;;  %v2471_v41 = vsel %vm2435_vm4, %v7437_v2, 0.0  ;;  %v2543_v34 = vsel %vm2507_vm5, %v7443_v9, 0.0 }
 0x1d7   : > { %v2575_v36 = vadd.f32 %v2543_v34, %v2471_v41  ;;  %v2647_v8 = vsel %vm2611_vm6, %v7449_v18, 0.0  ;;  %vm2715_vm7 = vcmp.eq.s32.totalorder %v5659_v23, %v7452_v10  ;;  %vm2890_vm8 = vcmp.eq.s32.totalorder %v5659_v23, %v7472_v38 }
 0x1d8   : > { %5112 = vmatprep.subr.mxu0 %v2799_v50  ;;  %v3254_v30 = vadd.f32 %v3222_v1, %v3150_v21  ;;  %v2751_v39 = vsel %vm2715_vm7, %v7460_v11, 0.0  ;;  %v2926_v52 = vsel %vm2890_vm8, %v7475_v45, 0.0  ;;  %vm2962_vm9 = vcmp.eq.s32.totalorder %v5659_v23, %v7478_v13 }
 0x1d9   : > { %v2679_v43 = vadd.f32 %v2647_v8, %v2575_v36  ;;  %v2998_v27 = vsel %vm2962_vm9, %v7481_v40, 0.0  ;;  %vm3066_vm10 = vcmp.eq.s32.totalorder %v5659_v23, %v7484_v35  ;;  %vm3170_vm11 = vcmp.eq.s32.totalorder %v5659_v23, %v7492_v28 }
 0x1da   : > { %5147 = vmatprep.subr.mxu1 %v3254_v30  ;;  %v3030_v26 = vadd.f32 %v2998_v27, %v2926_v52  ;;  %v3102_v0 = vsel %vm3066_vm10, %v7489_v42, 0.0  ;;  %v3206_v1 = vsel %vm3170_vm11, %v7501_v46, 0.0  ;;  %vm2450_vm12 = vcmp.eq.s32.totalorder %v5662_v24, %v7434_v6 }
 0x1db   : > { %v2783_v50 = vadd.f32 %v2751_v39, %v2679_v43  ;;  %v2486_v21 = vsel %vm2450_vm12, %v7437_v2, 0.0  ;;  %vm2522_vm13 = vcmp.eq.s32.totalorder %v5662_v24, %v7440_v61  ;;  %vm2626_vm14 = vcmp.eq.s32.totalorder %v5662_v24, %v7446_v19 }
 0x1dc   : > { %v3134_v41 = vadd.f32 %v3102_v0, %v3030_v26  ;;  %v2558_v34 = vsel %vm2522_vm13, %v7443_v9, 0.0  ;;  %v2662_v36 = vsel %vm2626_vm14, %v7449_v18, 0.0  ;;  %vm2730_vm15 = vcmp.eq.s32.totalorder %v5662_v24, %v7452_v10 }
 0x1dd   : > { %5113 = vmatpush3.msra.mxu0 %v2783_v50  ;;  %v2590_v8 = vadd.f32 %v2558_v34, %v2486_v21  ;;  %v2766_v30 = vsel %vm2730_vm15, %v7460_v11, 0.0  ;;  %vm2905_vm0 = vcmp.eq.s32.totalorder %v5662_v24, %v7472_v38  ;;  %vm2977_vm1 = vcmp.eq.s32.totalorder %v5662_v24, %v7478_v13 }
 0x1de   : > { %v3238_v39 = vadd.f32 %v3206_v1, %v3134_v41  ;;  %v2941_v52 = vsel %vm2905_vm0, %v7475_v45, 0.0  ;;  %v3013_v43 = vsel %vm2977_vm1, %v7481_v40, 0.0  ;;  %vm3081_vm2 = vcmp.eq.s32.totalorder %v5662_v24, %v7484_v35 }
 0x1df   : > { %v2694_v27 = vadd.f32 %v2662_v36, %v2590_v8  ;;  %v3045_v26 = vadd.f32 %v3013_v43, %v2941_v52  ;;  %v3117_v0 = vsel %vm3081_vm2, %v7489_v42, 0.0  ;;  %vm3185_vm3 = vcmp.eq.s32.totalorder %v5662_v24, %v7492_v28 }
 0x1e0   : > { %5148 = vmatpush3.msra.mxu1 %v3238_v39  ;;  %v3221_v50 = vsel %vm3185_vm3, %v7501_v46, 0.0  ;;  %vm2434_vm4 = vcmp.eq.s32.totalorder %v5665_v25, %v7434_v6  ;;  %vm2506_vm5 = vcmp.eq.s32.totalorder %v5665_v25, %v7440_v61  ;;  %vm2610_vm6 = vcmp.eq.s32.totalorder %v5665_v25, %v7446_v19 }
 0x1e1   : > { %v2798_v1 = vadd.f32 %v2766_v30, %v2694_v27  ;;  %v3149_v21 = vadd.f32 %v3117_v0, %v3045_v26  ;;  %v2470_v41 = vsel %vm2434_vm4, %v7437_v2, 0.0  ;;  %v2542_v34 = vsel %vm2506_vm5, %v7443_v9, 0.0 }
 0x1e2   : > { %v2574_v36 = vadd.f32 %v2542_v34, %v2470_v41  ;;  %v2646_v8 = vsel %vm2610_vm6, %v7449_v18, 0.0  ;;  %vm2714_vm7 = vcmp.eq.s32.totalorder %v5665_v25, %v7452_v10  ;;  %vm2889_vm8 = vcmp.eq.s32.totalorder %v5665_v25, %v7472_v38 }
 0x1e3   : > { %5114 = vmatprep.subr.mxu0 %v2798_v1  ;;  %v3253_v39 = vadd.f32 %v3221_v50, %v3149_v21  ;;  %v2750_v52 = vsel %vm2714_vm7, %v7460_v11, 0.0  ;;  %v2925_v30 = vsel %vm2889_vm8, %v7475_v45, 0.0  ;;  %vm2961_vm9 = vcmp.eq.s32.totalorder %v5665_v25, %v7478_v13 }
 0x1e4   : > { %v2678_v43 = vadd.f32 %v2646_v8, %v2574_v36  ;;  %v2997_v27 = vsel %vm2961_vm9, %v7481_v40, 0.0  ;;  %vm3065_vm10 = vcmp.eq.s32.totalorder %v5665_v25, %v7484_v35  ;;  %vm3169_vm11 = vcmp.eq.s32.totalorder %v5665_v25, %v7492_v28 }
 0x1e5   : > { %5149 = vmatprep.subr.mxu1 %v3253_v39  ;;  %v3029_v26 = vadd.f32 %v2997_v27, %v2925_v30  ;;  %v3101_v0 = vsel %vm3065_vm10, %v7489_v42, 0.0  ;;  %v3205_v50 = vsel %vm3169_vm11, %v7501_v46, 0.0  ;;  %vm2449_vm12 = vcmp.eq.s32.totalorder %v5668_v31, %v7434_v6 }
 0x1e6   : > { %v2782_v1 = vadd.f32 %v2750_v52, %v2678_v43  ;;  %v2485_v21 = vsel %vm2449_vm12, %v7437_v2, 0.0  ;;  %vm2521_vm13 = vcmp.eq.s32.totalorder %v5668_v31, %v7440_v61  ;;  %vm2625_vm14 = vcmp.eq.s32.totalorder %v5668_v31, %v7446_v19 }
 0x1e7   : > { %v3133_v41 = vadd.f32 %v3101_v0, %v3029_v26  ;;  %v2557_v34 = vsel %vm2521_vm13, %v7443_v9, 0.0  ;;  %v2661_v36 = vsel %vm2625_vm14, %v7449_v18, 0.0  ;;  %vm2729_vm15 = vcmp.eq.s32.totalorder %v5668_v31, %v7452_v10 }
 0x1e8   : > { %5115 = vmatpush3.msra.mxu0 %v2782_v1  ;;  %v2589_v8 = vadd.f32 %v2557_v34, %v2485_v21  ;;  %v2765_v39 = vsel %vm2729_vm15, %v7460_v11, 0.0  ;;  %vm2904_vm0 = vcmp.eq.s32.totalorder %v5668_v31, %v7472_v38  ;;  %vm2976_vm1 = vcmp.eq.s32.totalorder %v5668_v31, %v7478_v13 }
 0x1e9   : > { %v3237_v52 = vadd.f32 %v3205_v50, %v3133_v41  ;;  %v2940_v30 = vsel %vm2904_vm0, %v7475_v45, 0.0  ;;  %v3012_v43 = vsel %vm2976_vm1, %v7481_v40, 0.0  ;;  %vm3080_vm2 = vcmp.eq.s32.totalorder %v5668_v31, %v7484_v35 }
 0x1ea   : > { %v2693_v27 = vadd.f32 %v2661_v36, %v2589_v8  ;;  %v3044_v26 = vadd.f32 %v3012_v43, %v2940_v30  ;;  %v3116_v0 = vsel %vm3080_vm2, %v7489_v42, 0.0  ;;  %vm3184_vm3 = vcmp.eq.s32.totalorder %v5668_v31, %v7492_v28 }
 0x1eb   : > { %5150 = vmatpush3.msra.mxu1 %v3237_v52  ;;  %v3220_v1 = vsel %vm3184_vm3, %v7501_v46, 0.0  ;;  %vm2433_vm4 = vcmp.eq.s32.totalorder %v5671_v32, %v7434_v6  ;;  %vm2505_vm5 = vcmp.eq.s32.totalorder %v5671_v32, %v7440_v61  ;;  %vm2609_vm6 = vcmp.eq.s32.totalorder %v5671_v32, %v7446_v19 }
 0x1ec   : > { %v2797_v50 = vadd.f32 %v2765_v39, %v2693_v27  ;;  %v3148_v21 = vadd.f32 %v3116_v0, %v3044_v26  ;;  %v2469_v41 = vsel %vm2433_vm4, %v7437_v2, 0.0  ;;  %v2541_v34 = vsel %vm2505_vm5, %v7443_v9, 0.0 }
 0x1ed   : > { %v2573_v36 = vadd.f32 %v2541_v34, %v2469_v41  ;;  %v2645_v8 = vsel %vm2609_vm6, %v7449_v18, 0.0  ;;  %vm2713_vm7 = vcmp.eq.s32.totalorder %v5671_v32, %v7452_v10  ;;  %vm2888_vm8 = vcmp.eq.s32.totalorder %v5671_v32, %v7472_v38 }
 0x1ee   : > { %5116 = vmatprep.subr.mxu0 %v2797_v50  ;;  %v3252_v52 = vadd.f32 %v3220_v1, %v3148_v21  ;;  %v2749_v30 = vsel %vm2713_vm7, %v7460_v11, 0.0  ;;  %v2924_v39 = vsel %vm2888_vm8, %v7475_v45, 0.0  ;;  %vm2960_vm9 = vcmp.eq.s32.totalorder %v5671_v32, %v7478_v13 }
 0x1ef   : > { %v2677_v43 = vadd.f32 %v2645_v8, %v2573_v36  ;;  %v2996_v27 = vsel %vm2960_vm9, %v7481_v40, 0.0  ;;  %vm3064_vm10 = vcmp.eq.s32.totalorder %v5671_v32, %v7484_v35  ;;  %vm3168_vm11 = vcmp.eq.s32.totalorder %v5671_v32, %v7492_v28 }
 0x1f0   : > { %5151 = vmatprep.subr.mxu1 %v3252_v52  ;;  %v3028_v26 = vadd.f32 %v2996_v27, %v2924_v39  ;;  %v3100_v0 = vsel %vm3064_vm10, %v7489_v42, 0.0  ;;  %v3204_v1 = vsel %vm3168_vm11, %v7501_v46, 0.0  ;;  %vm2448_vm12 = vcmp.eq.s32.totalorder %v5674_v33, %v7434_v6 }
 0x1f1   : > { %v2781_v50 = vadd.f32 %v2749_v30, %v2677_v43  ;;  %v2484_v21 = vsel %vm2448_vm12, %v7437_v2, 0.0  ;;  %vm2520_vm13 = vcmp.eq.s32.totalorder %v5674_v33, %v7440_v61  ;;  %vm2624_vm14 = vcmp.eq.s32.totalorder %v5674_v33, %v7446_v19 }
 0x1f2   : > { %v3132_v41 = vadd.f32 %v3100_v0, %v3028_v26  ;;  %v2556_v34 = vsel %vm2520_vm13, %v7443_v9, 0.0  ;;  %v2660_v36 = vsel %vm2624_vm14, %v7449_v18, 0.0  ;;  %vm2728_vm15 = vcmp.eq.s32.totalorder %v5674_v33, %v7452_v10 }
 0x1f3   : > { %5117 = vmatpush3.msra.mxu0 %v2781_v50  ;;  %v2588_v8 = vadd.f32 %v2556_v34, %v2484_v21  ;;  %v2764_v52 = vsel %vm2728_vm15, %v7460_v11, 0.0  ;;  %vm2903_vm0 = vcmp.eq.s32.totalorder %v5674_v33, %v7472_v38  ;;  %vm2975_vm1 = vcmp.eq.s32.totalorder %v5674_v33, %v7478_v13 }
 0x1f4   : > { %v3236_v30 = vadd.f32 %v3204_v1, %v3132_v41  ;;  %v2939_v39 = vsel %vm2903_vm0, %v7475_v45, 0.0  ;;  %v3011_v43 = vsel %vm2975_vm1, %v7481_v40, 0.0  ;;  %vm3079_vm2 = vcmp.eq.s32.totalorder %v5674_v33, %v7484_v35 }
 0x1f5   : > { %v2692_v27 = vadd.f32 %v2660_v36, %v2588_v8  ;;  %v3043_v26 = vadd.f32 %v3011_v43, %v2939_v39  ;;  %v3115_v0 = vsel %vm3079_vm2, %v7489_v42, 0.0  ;;  %vm3183_vm3 = vcmp.eq.s32.totalorder %v5674_v33, %v7492_v28 }
 0x1f6   : > { %5152 = vmatpush3.msra.mxu1 %v3236_v30  ;;  %v3219_v50 = vsel %vm3183_vm3, %v7501_v46, 0.0  ;;  %vm2432_vm4 = vcmp.eq.s32.totalorder %v5683_v47, %v7434_v6  ;;  %vm2504_vm5 = vcmp.eq.s32.totalorder %v5683_v47, %v7440_v61  ;;  %vm2608_vm6 = vcmp.eq.s32.totalorder %v5683_v47, %v7446_v19 }
 0x1f7   : > { %v2796_v1 = vadd.f32 %v2764_v52, %v2692_v27  ;;  %v3147_v21 = vadd.f32 %v3115_v0, %v3043_v26  ;;  %v2468_v41 = vsel %vm2432_vm4, %v7437_v2, 0.0  ;;  %v2540_v34 = vsel %vm2504_vm5, %v7443_v9, 0.0 }
 0x1f8   : > { %v2572_v36 = vadd.f32 %v2540_v34, %v2468_v41  ;;  %v2644_v8 = vsel %vm2608_vm6, %v7449_v18, 0.0  ;;  %vm2712_vm7 = vcmp.eq.s32.totalorder %v5683_v47, %v7452_v10  ;;  %vm2887_vm8 = vcmp.eq.s32.totalorder %v5683_v47, %v7472_v38 }
 0x1f9   : > { %5118 = vmatprep.subr.mxu0 %v2796_v1  ;;  %v3251_v30 = vadd.f32 %v3219_v50, %v3147_v21  ;;  %v2748_v39 = vsel %vm2712_vm7, %v7460_v11, 0.0  ;;  %v2923_v52 = vsel %vm2887_vm8, %v7475_v45, 0.0  ;;  %vm2959_vm9 = vcmp.eq.s32.totalorder %v5683_v47, %v7478_v13 }
 0x1fa   : > { %v2676_v43 = vadd.f32 %v2644_v8, %v2572_v36  ;;  %v2995_v27 = vsel %vm2959_vm9, %v7481_v40, 0.0  ;;  %vm3063_vm10 = vcmp.eq.s32.totalorder %v5683_v47, %v7484_v35  ;;  %vm3167_vm11 = vcmp.eq.s32.totalorder %v5683_v47, %v7492_v28 }
 0x1fb   : > { %5153 = vmatprep.subr.mxu1 %v3251_v30  ;;  %v3027_v26 = vadd.f32 %v2995_v27, %v2923_v52  ;;  %v3099_v0 = vsel %vm3063_vm10, %v7489_v42, 0.0  ;;  %v3203_v50 = vsel %vm3167_vm11, %v7501_v46, 0.0  ;;  %vm2447_vm12 = vcmp.eq.s32.totalorder %v5687_v51, %v7434_v6 }
 0x1fc   : > { %v2780_v1 = vadd.f32 %v2748_v39, %v2676_v43  ;;  %v2483_v21 = vsel %vm2447_vm12, %v7437_v2, 0.0  ;;  %vm2519_vm13 = vcmp.eq.s32.totalorder %v5687_v51, %v7440_v61  ;;  %vm2623_vm14 = vcmp.eq.s32.totalorder %v5687_v51, %v7446_v19 }
 0x1fd   : > { %v3131_v41 = vadd.f32 %v3099_v0, %v3027_v26  ;;  %v2555_v34 = vsel %vm2519_vm13, %v7443_v9, 0.0  ;;  %v2659_v36 = vsel %vm2623_vm14, %v7449_v18, 0.0  ;;  %vm2727_vm15 = vcmp.eq.s32.totalorder %v5687_v51, %v7452_v10 }
 0x1fe   : > { %5119 = vmatpush3.msra.mxu0 %v2780_v1  ;;  %v2587_v8 = vadd.f32 %v2555_v34, %v2483_v21  ;;  %v2763_v30 = vsel %vm2727_vm15, %v7460_v11, 0.0  ;;  %vm2902_vm0 = vcmp.eq.s32.totalorder %v5687_v51, %v7472_v38  ;;  %vm2974_vm1 = vcmp.eq.s32.totalorder %v5687_v51, %v7478_v13 }
 0x1ff   : > { %v3235_v39 = vadd.f32 %v3203_v50, %v3131_v41  ;;  %v2938_v52 = vsel %vm2902_vm0, %v7475_v45, 0.0  ;;  %v3010_v43 = vsel %vm2974_vm1, %v7481_v40, 0.0  ;;  %vm3078_vm2 = vcmp.eq.s32.totalorder %v5687_v51, %v7484_v35 }
 0x200   : > { %v2691_v27 = vadd.f32 %v2659_v36, %v2587_v8  ;;  %v3042_v26 = vadd.f32 %v3010_v43, %v2938_v52  ;;  %v3114_v0 = vsel %vm3078_vm2, %v7489_v42, 0.0  ;;  %vm3182_vm3 = vcmp.eq.s32.totalorder %v5687_v51, %v7492_v28 }
 0x201   : > { %5154 = vmatpush3.msra.mxu1 %v3235_v39  ;;  %v3218_v1 = vsel %vm3182_vm3, %v7501_v46, 0.0  ;;  %vm2431_vm4 = vcmp.eq.s32.totalorder %v5692_v55, %v7434_v6  ;;  %vm2503_vm5 = vcmp.eq.s32.totalorder %v5692_v55, %v7440_v61  ;;  %vm2607_vm6 = vcmp.eq.s32.totalorder %v5692_v55, %v7446_v19 }
 0x202   : > { %v2795_v50 = vadd.f32 %v2763_v30, %v2691_v27  ;;  %v3146_v21 = vadd.f32 %v3114_v0, %v3042_v26  ;;  %v2467_v41 = vsel %vm2431_vm4, %v7437_v2, 0.0  ;;  %v2539_v34 = vsel %vm2503_vm5, %v7443_v9, 0.0 }
 0x203   : > { %v2571_v36 = vadd.f32 %v2539_v34, %v2467_v41  ;;  %v2643_v8 = vsel %vm2607_vm6, %v7449_v18, 0.0  ;;  %vm2711_vm7 = vcmp.eq.s32.totalorder %v5692_v55, %v7452_v10  ;;  %vm2886_vm8 = vcmp.eq.s32.totalorder %v5692_v55, %v7472_v38 }
 0x204   : > { %5120 = vmatprep.subr.mxu0 %v2795_v50  ;;  %v3250_v39 = vadd.f32 %v3218_v1, %v3146_v21  ;;  %v2747_v52 = vsel %vm2711_vm7, %v7460_v11, 0.0  ;;  %v2922_v30 = vsel %vm2886_vm8, %v7475_v45, 0.0  ;;  %vm2958_vm9 = vcmp.eq.s32.totalorder %v5692_v55, %v7478_v13 }
 0x205   : > { %v2675_v43 = vadd.f32 %v2643_v8, %v2571_v36  ;;  %v2994_v27 = vsel %vm2958_vm9, %v7481_v40, 0.0  ;;  %vm3062_vm10 = vcmp.eq.s32.totalorder %v5692_v55, %v7484_v35  ;;  %vm3166_vm11 = vcmp.eq.s32.totalorder %v5692_v55, %v7492_v28 }
 0x206   : > { %5155 = vmatprep.subr.mxu1 %v3250_v39  ;;  %v3026_v26 = vadd.f32 %v2994_v27, %v2922_v30  ;;  %v3098_v0 = vsel %vm3062_vm10, %v7489_v42, 0.0  ;;  %v3202_v1 = vsel %vm3166_vm11, %v7501_v46, 0.0  ;;  %vm2446_vm12 = vcmp.eq.s32.totalorder %v5697_v58, %v7434_v6 }
 0x207   : > { %v2779_v50 = vadd.f32 %v2747_v52, %v2675_v43  ;;  %v2482_v21 = vsel %vm2446_vm12, %v7437_v2, 0.0  ;;  %vm2518_vm13 = vcmp.eq.s32.totalorder %v5697_v58, %v7440_v61  ;;  %vm2622_vm14 = vcmp.eq.s32.totalorder %v5697_v58, %v7446_v19 }
 0x208   : > { %v3130_v41 = vadd.f32 %v3098_v0, %v3026_v26  ;;  %v2554_v34 = vsel %vm2518_vm13, %v7443_v9, 0.0  ;;  %v2658_v36 = vsel %vm2622_vm14, %v7449_v18, 0.0  ;;  %vm2726_vm15 = vcmp.eq.s32.totalorder %v5697_v58, %v7452_v10 }
 0x209   : > { %5121 = vmatpush3.msra.mxu0 %v2779_v50  ;;  %v2586_v8 = vadd.f32 %v2554_v34, %v2482_v21  ;;  %v2762_v39 = vsel %vm2726_vm15, %v7460_v11, 0.0  ;;  %vm2901_vm0 = vcmp.eq.s32.totalorder %v5697_v58, %v7472_v38  ;;  %vm2973_vm1 = vcmp.eq.s32.totalorder %v5697_v58, %v7478_v13 }
 0x20a   : > { %v3234_v52 = vadd.f32 %v3202_v1, %v3130_v41  ;;  %v2937_v30 = vsel %vm2901_vm0, %v7475_v45, 0.0  ;;  %v3009_v43 = vsel %vm2973_vm1, %v7481_v40, 0.0  ;;  %vm3077_vm2 = vcmp.eq.s32.totalorder %v5697_v58, %v7484_v35 }
 0x20b   : > { %v2690_v27 = vadd.f32 %v2658_v36, %v2586_v8  ;;  %v3041_v26 = vadd.f32 %v3009_v43, %v2937_v30  ;;  %v3113_v0 = vsel %vm3077_vm2, %v7489_v42, 0.0  ;;  %vm3181_vm3 = vcmp.eq.s32.totalorder %v5697_v58, %v7492_v28 }
 0x20c   : > { %5156 = vmatpush3.msra.mxu1 %v3234_v52  ;;  %v3217_v50 = vsel %vm3181_vm3, %v7501_v46, 0.0  ;;  %vm2430_vm4 = vcmp.eq.s32.totalorder %v5700_v59, %v7434_v6  ;;  %vm2502_vm5 = vcmp.eq.s32.totalorder %v5700_v59, %v7440_v61  ;;  %vm2606_vm6 = vcmp.eq.s32.totalorder %v5700_v59, %v7446_v19 }
 0x20d   : > { %v2794_v1 = vadd.f32 %v2762_v39, %v2690_v27  ;;  %v3145_v21 = vadd.f32 %v3113_v0, %v3041_v26  ;;  %v2466_v41 = vsel %vm2430_vm4, %v7437_v2, 0.0  ;;  %v2538_v34 = vsel %vm2502_vm5, %v7443_v9, 0.0 }
 0x20e   : > { %v2570_v36 = vadd.f32 %v2538_v34, %v2466_v41  ;;  %v2642_v8 = vsel %vm2606_vm6, %v7449_v18, 0.0  ;;  %vm2710_vm7 = vcmp.eq.s32.totalorder %v5700_v59, %v7452_v10  ;;  %vm2885_vm8 = vcmp.eq.s32.totalorder %v5700_v59, %v7472_v38 }
 0x20f   : > { %5122 = vmatprep.subr.mxu0 %v2794_v1  ;;  %v3249_v52 = vadd.f32 %v3217_v50, %v3145_v21  ;;  %v2746_v30 = vsel %vm2710_vm7, %v7460_v11, 0.0  ;;  %v2921_v39 = vsel %vm2885_vm8, %v7475_v45, 0.0  ;;  %vm2957_vm9 = vcmp.eq.s32.totalorder %v5700_v59, %v7478_v13 }
 0x210   : > { %v2674_v43 = vadd.f32 %v2642_v8, %v2570_v36  ;;  %v2993_v27 = vsel %vm2957_vm9, %v7481_v40, 0.0  ;;  %vm3061_vm10 = vcmp.eq.s32.totalorder %v5700_v59, %v7484_v35  ;;  %vm3165_vm11 = vcmp.eq.s32.totalorder %v5700_v59, %v7492_v28 }
 0x211   : > { %5157 = vmatprep.subr.mxu1 %v3249_v52  ;;  %v3025_v26 = vadd.f32 %v2993_v27, %v2921_v39  ;;  %v3097_v0 = vsel %vm3061_vm10, %v7489_v42, 0.0  ;;  %v3201_v50 = vsel %vm3165_vm11, %v7501_v46, 0.0  ;;  %vm2445_vm12 = vcmp.eq.s32.totalorder %v6165_v44, %v7434_v6 }
 0x212   : > { %v2778_v1 = vadd.f32 %v2746_v30, %v2674_v43  ;;  %v2481_v21 = vsel %vm2445_vm12, %v7437_v2, 0.0  ;;  %vm2517_vm13 = vcmp.eq.s32.totalorder %v6165_v44, %v7440_v61  ;;  %vm2621_vm14 = vcmp.eq.s32.totalorder %v6165_v44, %v7446_v19 }
 0x213   : > { %v3129_v41 = vadd.f32 %v3097_v0, %v3025_v26  ;;  %v2553_v34 = vsel %vm2517_vm13, %v7443_v9, 0.0  ;;  %v2657_v36 = vsel %vm2621_vm14, %v7449_v18, 0.0  ;;  %vm2725_vm15 = vcmp.eq.s32.totalorder %v6165_v44, %v7452_v10 }
 0x214   : > { %5123 = vmatpush3.msra.mxu0 %v2778_v1  ;;  %v2585_v8 = vadd.f32 %v2553_v34, %v2481_v21  ;;  %v2761_v52 = vsel %vm2725_vm15, %v7460_v11, 0.0  ;;  %vm2900_vm0 = vcmp.eq.s32.totalorder %v6165_v44, %v7472_v38  ;;  %vm2972_vm1 = vcmp.eq.s32.totalorder %v6165_v44, %v7478_v13 }
 0x215   : > { %v3233_v30 = vadd.f32 %v3201_v50, %v3129_v41  ;;  %v2936_v39 = vsel %vm2900_vm0, %v7475_v45, 0.0  ;;  %v3008_v43 = vsel %vm2972_vm1, %v7481_v40, 0.0  ;;  %vm3076_vm2 = vcmp.eq.s32.totalorder %v6165_v44, %v7484_v35 }
 0x216   : > { %v2689_v27 = vadd.f32 %v2657_v36, %v2585_v8  ;;  %v3040_v26 = vadd.f32 %v3008_v43, %v2936_v39  ;;  %v3112_v0 = vsel %vm3076_vm2, %v7489_v42, 0.0  ;;  %vm3180_vm3 = vcmp.eq.s32.totalorder %v6165_v44, %v7492_v28 }
 0x217   : > { %5158 = vmatpush3.msra.mxu1 %v3233_v30  ;;  %v3216_v1 = vsel %vm3180_vm3, %v7501_v46, 0.0  ;;  %vm2429_vm4 = vcmp.eq.s32.totalorder %v6169_v48, %v7434_v6  ;;  %vm2501_vm5 = vcmp.eq.s32.totalorder %v6169_v48, %v7440_v61  ;;  %vm2605_vm6 = vcmp.eq.s32.totalorder %v6169_v48, %v7446_v19 }
 0x218   : > { %v2793_v50 = vadd.f32 %v2761_v52, %v2689_v27  ;;  %v3144_v21 = vadd.f32 %v3112_v0, %v3040_v26  ;;  %v2465_v41 = vsel %vm2429_vm4, %v7437_v2, 0.0  ;;  %v2537_v34 = vsel %vm2501_vm5, %v7443_v9, 0.0 }
 0x219   : > { %v2569_v36 = vadd.f32 %v2537_v34, %v2465_v41  ;;  %v2641_v8 = vsel %vm2605_vm6, %v7449_v18, 0.0  ;;  %vm2709_vm7 = vcmp.eq.s32.totalorder %v6169_v48, %v7452_v10  ;;  %vm2884_vm8 = vcmp.eq.s32.totalorder %v6169_v48, %v7472_v38 }
 0x21a   : > { %5124 = vmatprep.subr.mxu0 %v2793_v50  ;;  %v3248_v30 = vadd.f32 %v3216_v1, %v3144_v21  ;;  %v2745_v39 = vsel %vm2709_vm7, %v7460_v11, 0.0  ;;  %v2920_v52 = vsel %vm2884_vm8, %v7475_v45, 0.0  ;;  %vm2956_vm9 = vcmp.eq.s32.totalorder %v6169_v48, %v7478_v13 }
 0x21b   : > { %v2673_v43 = vadd.f32 %v2641_v8, %v2569_v36  ;;  %v2992_v27 = vsel %vm2956_vm9, %v7481_v40, 0.0  ;;  %vm3060_vm10 = vcmp.eq.s32.totalorder %v6169_v48, %v7484_v35  ;;  %vm3164_vm11 = vcmp.eq.s32.totalorder %v6169_v48, %v7492_v28 }
 0x21c   : > { %5159 = vmatprep.subr.mxu1 %v3248_v30  ;;  %v3024_v26 = vadd.f32 %v2992_v27, %v2920_v52  ;;  %v3096_v0 = vsel %vm3060_vm10, %v7489_v42, 0.0  ;;  %v3200_v1 = vsel %vm3164_vm11, %v7501_v46, 0.0  ;;  %vm2444_vm12 = vcmp.eq.s32.totalorder %v6172_v14, %v7434_v6 }
 0x21d   : > { %v2777_v50 = vadd.f32 %v2745_v39, %v2673_v43  ;;  %v2480_v21 = vsel %vm2444_vm12, %v7437_v2, 0.0  ;;  %vm2516_vm13 = vcmp.eq.s32.totalorder %v6172_v14, %v7440_v61  ;;  %vm2620_vm14 = vcmp.eq.s32.totalorder %v6172_v14, %v7446_v19 }
 0x21e   : > { %v3128_v41 = vadd.f32 %v3096_v0, %v3024_v26  ;;  %v2552_v34 = vsel %vm2516_vm13, %v7443_v9, 0.0  ;;  %v2656_v36 = vsel %vm2620_vm14, %v7449_v18, 0.0  ;;  %vm2724_vm15 = vcmp.eq.s32.totalorder %v6172_v14, %v7452_v10 }
 0x21f   : > { %5125 = vmatpush3.msra.mxu0 %v2777_v50  ;;  %v2584_v8 = vadd.f32 %v2552_v34, %v2480_v21  ;;  %v2760_v30 = vsel %vm2724_vm15, %v7460_v11, 0.0  ;;  %vm2899_vm0 = vcmp.eq.s32.totalorder %v6172_v14, %v7472_v38  ;;  %vm2971_vm1 = vcmp.eq.s32.totalorder %v6172_v14, %v7478_v13 }
 0x220   : > { %v3232_v39 = vadd.f32 %v3200_v1, %v3128_v41  ;;  %v2935_v52 = vsel %vm2899_vm0, %v7475_v45, 0.0  ;;  %v3007_v43 = vsel %vm2971_vm1, %v7481_v40, 0.0  ;;  %vm3075_vm2 = vcmp.eq.s32.totalorder %v6172_v14, %v7484_v35 }
 0x221   : > { %v2688_v27 = vadd.f32 %v2656_v36, %v2584_v8  ;;  %v3039_v26 = vadd.f32 %v3007_v43, %v2935_v52  ;;  %v3111_v0 = vsel %vm3075_vm2, %v7489_v42, 0.0  ;;  %vm3179_vm3 = vcmp.eq.s32.totalorder %v6172_v14, %v7492_v28 }
 0x222   : > { %5160 = vmatpush3.msra.mxu1 %v3232_v39  ;;  %v3215_v50 = vsel %vm3179_vm3, %v7501_v46, 0.0  ;;  %vm2428_vm4 = vcmp.eq.s32.totalorder %v6245_v53, %v7434_v6  ;;  %vm2500_vm5 = vcmp.eq.s32.totalorder %v6245_v53, %v7440_v61  ;;  %vm2604_vm6 = vcmp.eq.s32.totalorder %v6245_v53, %v7446_v19 }
 0x223   : > { %v2792_v1 = vadd.f32 %v2760_v30, %v2688_v27  ;;  %v3143_v21 = vadd.f32 %v3111_v0, %v3039_v26  ;;  %v2464_v41 = vsel %vm2428_vm4, %v7437_v2, 0.0  ;;  %v2536_v34 = vsel %vm2500_vm5, %v7443_v9, 0.0 }
 0x224   : > { %v2568_v36 = vadd.f32 %v2536_v34, %v2464_v41  ;;  %v2640_v8 = vsel %vm2604_vm6, %v7449_v18, 0.0  ;;  %vm2708_vm7 = vcmp.eq.s32.totalorder %v6245_v53, %v7452_v10  ;;  %vm2883_vm8 = vcmp.eq.s32.totalorder %v6245_v53, %v7472_v38 }
 0x225   : > { %5126 = vmatprep.subr.mxu0 %v2792_v1  ;;  %v3247_v39 = vadd.f32 %v3215_v50, %v3143_v21  ;;  %v2744_v52 = vsel %vm2708_vm7, %v7460_v11, 0.0  ;;  %v2919_v30 = vsel %vm2883_vm8, %v7475_v45, 0.0  ;;  %vm2955_vm9 = vcmp.eq.s32.totalorder %v6245_v53, %v7478_v13 }
 0x226   : > { %v2672_v43 = vadd.f32 %v2640_v8, %v2568_v36  ;;  %v2991_v27 = vsel %vm2955_vm9, %v7481_v40, 0.0  ;;  %vm3059_vm10 = vcmp.eq.s32.totalorder %v6245_v53, %v7484_v35  ;;  %vm3163_vm11 = vcmp.eq.s32.totalorder %v6245_v53, %v7492_v28 }
 0x227   : > { %5161 = vmatprep.subr.mxu1 %v3247_v39  ;;  %v3023_v26 = vadd.f32 %v2991_v27, %v2919_v30  ;;  %v3095_v0 = vsel %vm3059_vm10, %v7489_v42, 0.0  ;;  %v3199_v50 = vsel %vm3163_vm11, %v7501_v46, 0.0  ;;  %vm2443_vm12 = vcmp.eq.s32.totalorder %v6250_v20, %v7434_v6 }
 0x228   : > { %v2776_v1 = vadd.f32 %v2744_v52, %v2672_v43  ;;  %v2479_v21 = vsel %vm2443_vm12, %v7437_v2, 0.0  ;;  %vm2515_vm13 = vcmp.eq.s32.totalorder %v6250_v20, %v7440_v61  ;;  %vm2619_vm14 = vcmp.eq.s32.totalorder %v6250_v20, %v7446_v19 }
 0x229   : > { %v3127_v41 = vadd.f32 %v3095_v0, %v3023_v26  ;;  %v2551_v34 = vsel %vm2515_vm13, %v7443_v9, 0.0  ;;  %v2655_v36 = vsel %vm2619_vm14, %v7449_v18, 0.0  ;;  %vm2723_vm15 = vcmp.eq.s32.totalorder %v6250_v20, %v7452_v10 }
 0x22a   : > { %5127 = vmatpush3.msra.mxu0 %v2776_v1  ;;  %v2583_v8 = vadd.f32 %v2551_v34, %v2479_v21  ;;  %v2759_v39 = vsel %vm2723_vm15, %v7460_v11, 0.0  ;;  %vm2898_vm0 = vcmp.eq.s32.totalorder %v6250_v20, %v7472_v38  ;;  %vm2970_vm1 = vcmp.eq.s32.totalorder %v6250_v20, %v7478_v13 }
 0x22b   : > { %v3231_v52 = vadd.f32 %v3199_v50, %v3127_v41  ;;  %v2934_v30 = vsel %vm2898_vm0, %v7475_v45, 0.0  ;;  %v3006_v43 = vsel %vm2970_vm1, %v7481_v40, 0.0  ;;  %vm3074_vm2 = vcmp.eq.s32.totalorder %v6250_v20, %v7484_v35 }
 0x22c   : > { %v2687_v27 = vadd.f32 %v2655_v36, %v2583_v8  ;;  %v3038_v26 = vadd.f32 %v3006_v43, %v2934_v30  ;;  %v3110_v0 = vsel %vm3074_vm2, %v7489_v42, 0.0  ;;  %vm3178_vm3 = vcmp.eq.s32.totalorder %v6250_v20, %v7492_v28 }
 0x22d   : > { %5162 = vmatpush3.msra.mxu1 %v3231_v52  ;;  %v3214_v1 = vsel %vm3178_vm3, %v7501_v46, 0.0  ;;  %vm2427_vm4 = vcmp.eq.s32.totalorder %v6300_v49, %v7434_v6  ;;  %vm2499_vm5 = vcmp.eq.s32.totalorder %v6300_v49, %v7440_v61  ;;  %vm2603_vm6 = vcmp.eq.s32.totalorder %v6300_v49, %v7446_v19 }
 0x22e   : > { %v2791_v50 = vadd.f32 %v2759_v39, %v2687_v27  ;;  %v3142_v21 = vadd.f32 %v3110_v0, %v3038_v26  ;;  %v2463_v41 = vsel %vm2427_vm4, %v7437_v2, 0.0  ;;  %v2535_v34 = vsel %vm2499_vm5, %v7443_v9, 0.0 }
 0x22f   : > { %v2567_v36 = vadd.f32 %v2535_v34, %v2463_v41  ;;  %v2639_v8 = vsel %vm2603_vm6, %v7449_v18, 0.0  ;;  %vm2707_vm7 = vcmp.eq.s32.totalorder %v6300_v49, %v7452_v10  ;;  %vm2882_vm8 = vcmp.eq.s32.totalorder %v6300_v49, %v7472_v38 }
 0x230   : > { %5128 = vmatprep.subr.mxu0 %v2791_v50  ;;  %v3246_v52 = vadd.f32 %v3214_v1, %v3142_v21  ;;  %v2743_v30 = vsel %vm2707_vm7, %v7460_v11, 0.0  ;;  %v2918_v39 = vsel %vm2882_vm8, %v7475_v45, 0.0  ;;  %vm2954_vm9 = vcmp.eq.s32.totalorder %v6300_v49, %v7478_v13  ;;  %v9631_v50 = vld [vmem:[#allocation13_spill] sm:$0xff] }
 0x231   : > { %v2671_v43 = vadd.f32 %v2639_v8, %v2567_v36  ;;  %v2990_v27 = vsel %vm2954_vm9, %v7481_v40, 0.0  ;;  %vm3058_vm10 = vcmp.eq.s32.totalorder %v6300_v49, %v7484_v35  ;;  %vm3162_vm11 = vcmp.eq.s32.totalorder %v6300_v49, %v7492_v28 }
 0x232   : > { %5163 = vmatprep.subr.mxu1 %v3246_v52  ;;  %v3022_v26 = vadd.f32 %v2990_v27, %v2918_v39  ;;  %v3094_v0 = vsel %vm3058_vm10, %v7489_v42, 0.0  ;;  %v3198_v1 = vsel %vm3162_vm11, %v7501_v46, 0.0  ;;  %vm2442_vm12 = vcmp.eq.s32.totalorder %v9631_v50, %v7434_v6 }
 0x233   : > { %v2775_v21 = vadd.f32 %v2743_v30, %v2671_v43  ;;  %v2478_v41 = vsel %vm2442_vm12, %v7437_v2, 0.0  ;;  %vm2514_vm13 = vcmp.eq.s32.totalorder %v9631_v50, %v7440_v61  ;;  %vm2618_vm14 = vcmp.eq.s32.totalorder %v9631_v50, %v7446_v19 }
 0x234   : > { %v3126_v34 = vadd.f32 %v3094_v0, %v3022_v26  ;;  %v2550_v36 = vsel %vm2514_vm13, %v7443_v9, 0.0  ;;  %v2654_v8 = vsel %vm2618_vm14, %v7449_v18, 0.0  ;;  %vm2722_vm15 = vcmp.eq.s32.totalorder %v9631_v50, %v7452_v10 }
 0x235   : > { %5129 = vmatpush3.msra.mxu0 %v2775_v21  ;;  %v2582_v52 = vadd.f32 %v2550_v36, %v2478_v41  ;;  %v2758_v30 = vsel %vm2722_vm15, %v7460_v11, 0.0  ;;  %vm2897_vm0 = vcmp.eq.s32.totalorder %v9631_v50, %v7472_v38  ;;  %vm2969_vm1 = vcmp.eq.s32.totalorder %v9631_v50, %v7478_v13  ;;  %v9632_v36 = vld [vmem:[#allocation14_spill] sm:$0xff] }
 0x236   : > { %v3230_v39 = vadd.f32 %v3198_v1, %v3126_v34  ;;  %v2933_v43 = vsel %vm2897_vm0, %v7475_v45, 0.0  ;;  %v3005_v27 = vsel %vm2969_vm1, %v7481_v40, 0.0  ;;  %vm3073_vm2 = vcmp.eq.s32.totalorder %v9631_v50, %v7484_v35 }
 0x237   : > { %v2686_v26 = vadd.f32 %v2654_v8, %v2582_v52  ;;  %v3037_v0 = vadd.f32 %v3005_v27, %v2933_v43  ;;  %v3109_v21 = vsel %vm3073_vm2, %v7489_v42, 0.0  ;;  %vm3177_vm3 = vcmp.eq.s32.totalorder %v9631_v50, %v7492_v28 }
 0x238   : > { %5164 = vmatpush3.msra.mxu1 %v3230_v39  ;;  %v3213_v41 = vsel %vm3177_vm3, %v7501_v46, 0.0  ;;  %vm2426_vm4 = vcmp.eq.s32.totalorder %v9632_v36, %v7434_v6  ;;  %vm2498_vm5 = vcmp.eq.s32.totalorder %v9632_v36, %v7440_v61  ;;  %vm2602_vm6 = vcmp.eq.s32.totalorder %v9632_v36, %v7446_v19 }
 0x239   : > { %v2790_v1 = vadd.f32 %v2758_v30, %v2686_v26  ;;  %v3141_v34 = vadd.f32 %v3109_v21, %v3037_v0  ;;  %v2462_v8 = vsel %vm2426_vm4, %v7437_v2, 0.0  ;;  %v2534_v52 = vsel %vm2498_vm5, %v7443_v9, 0.0 }
 0x23a   : > { %v2566_v43 = vadd.f32 %v2534_v52, %v2462_v8  ;;  %v2638_v39 = vsel %vm2602_vm6, %v7449_v18, 0.0  ;;  %vm2706_vm7 = vcmp.eq.s32.totalorder %v9632_v36, %v7452_v10  ;;  %vm2881_vm8 = vcmp.eq.s32.totalorder %v9632_v36, %v7472_v38 }
 0x23b   : > { %5130 = vmatprep.subr.mxu0 %v2790_v1  ;;  %v3245_v27 = vadd.f32 %v3213_v41, %v3141_v34  ;;  %v2742_v50 = vsel %vm2706_vm7, %v7460_v11, 0.0  ;;  %v2917_v30 = vsel %vm2881_vm8, %v7475_v45, 0.0  ;;  %vm2953_vm9 = vcmp.eq.s32.totalorder %v9632_v36, %v7478_v13  ;;  %v9633_v34 = vld [vmem:[#allocation15_spill] sm:$0xff] }
 0x23c   : > { %v2670_v26 = vadd.f32 %v2638_v39, %v2566_v43  ;;  %v2989_v0 = vsel %vm2953_vm9, %v7481_v40, 0.0  ;;  %vm3057_vm10 = vcmp.eq.s32.totalorder %v9632_v36, %v7484_v35  ;;  %vm3161_vm11 = vcmp.eq.s32.totalorder %v9632_v36, %v7492_v28 }
 0x23d   : > { %5165 = vmatprep.subr.mxu1 %v3245_v27  ;;  %v3021_v21 = vadd.f32 %v2989_v0, %v2917_v30  ;;  %v3093_v41 = vsel %vm3057_vm10, %v7489_v42, 0.0  ;;  %v3197_v1 = vsel %vm3161_vm11, %v7501_v46, 0.0  ;;  %vm2441_vm12 = vcmp.eq.s32.totalorder %v9633_v34, %v7434_v6 }
 0x23e   : > { %v2774_v8 = vadd.f32 %v2742_v50, %v2670_v26  ;;  %v2477_v52 = vsel %vm2441_vm12, %v7437_v2, 0.0  ;;  %vm2513_vm13 = vcmp.eq.s32.totalorder %v9633_v34, %v7440_v61  ;;  %vm2617_vm14 = vcmp.eq.s32.totalorder %v9633_v34, %v7446_v19 }
 0x23f   : > { %v3125_v43 = vadd.f32 %v3093_v41, %v3021_v21  ;;  %v2549_v39 = vsel %vm2513_vm13, %v7443_v9, 0.0  ;;  %v2653_v27 = vsel %vm2617_vm14, %v7449_v18, 0.0  ;;  %vm2721_vm15 = vcmp.eq.s32.totalorder %v9633_v34, %v7452_v10 }
 0x240   : > { %5131 = vmatpush3.msra.mxu0 %v2774_v8  ;;  %v2581_v30 = vadd.f32 %v2549_v39, %v2477_v52  ;;  %v2757_v50 = vsel %vm2721_vm15, %v7460_v11, 0.0  ;;  %vm2896_vm0 = vcmp.eq.s32.totalorder %v9633_v34, %v7472_v38  ;;  %vm2968_vm1 = vcmp.eq.s32.totalorder %v9633_v34, %v7478_v13  ;;  %v9634_v39 = vld [vmem:[#allocation16_spill] sm:$0xff] }
 0x241   : > { %v3229_v26 = vadd.f32 %v3197_v1, %v3125_v43  ;;  %v2932_v0 = vsel %vm2896_vm0, %v7475_v45, 0.0  ;;  %v3004_v21 = vsel %vm2968_vm1, %v7481_v40, 0.0  ;;  %vm3072_vm2 = vcmp.eq.s32.totalorder %v9633_v34, %v7484_v35 }
 0x242   : > { %v2685_v41 = vadd.f32 %v2653_v27, %v2581_v30  ;;  %v3036_v36 = vadd.f32 %v3004_v21, %v2932_v0  ;;  %v3108_v8 = vsel %vm3072_vm2, %v7489_v42, 0.0  ;;  %vm3176_vm3 = vcmp.eq.s32.totalorder %v9633_v34, %v7492_v28 }
 0x243   : > { %5166 = vmatpush3.msra.mxu1 %v3229_v26  ;;  %v3212_v52 = vsel %vm3176_vm3, %v7501_v46, 0.0  ;;  %vm2425_vm4 = vcmp.eq.s32.totalorder %v9634_v39, %v7434_v6  ;;  %vm2497_vm5 = vcmp.eq.s32.totalorder %v9634_v39, %v7440_v61  ;;  %vm2601_vm6 = vcmp.eq.s32.totalorder %v9634_v39, %v7446_v19 }
 0x244   : > { %v2789_v1 = vadd.f32 %v2757_v50, %v2685_v41  ;;  %v3140_v43 = vadd.f32 %v3108_v8, %v3036_v36  ;;  %v2461_v27 = vsel %vm2425_vm4, %v7437_v2, 0.0  ;;  %v2533_v30 = vsel %vm2497_vm5, %v7443_v9, 0.0 }
 0x245   : > { %v2565_v0 = vadd.f32 %v2533_v30, %v2461_v27  ;;  %v2637_v26 = vsel %vm2601_vm6, %v7449_v18, 0.0  ;;  %vm2705_vm7 = vcmp.eq.s32.totalorder %v9634_v39, %v7452_v10  ;;  %vm2880_vm8 = vcmp.eq.s32.totalorder %v9634_v39, %v7472_v38 }
 0x246   : > { %5132 = vmatprep.subr.mxu0 %v2789_v1  ;;  %v3244_v21 = vadd.f32 %v3212_v52, %v3140_v43  ;;  %v2741_v34 = vsel %vm2705_vm7, %v7460_v11, 0.0  ;;  %v2916_v50 = vsel %vm2880_vm8, %v7475_v45, 0.0  ;;  %vm2952_vm9 = vcmp.eq.s32.totalorder %v9634_v39, %v7478_v13 }
 0x247   : > { %v2669_v36 = vadd.f32 %v2637_v26, %v2565_v0  ;;  %v2988_v41 = vsel %vm2952_vm9, %v7481_v40, 0.0  ;;  %vm3056_vm10 = vcmp.eq.s32.totalorder %v9634_v39, %v7484_v35  ;;  %vm3160_vm11 = vcmp.eq.s32.totalorder %v9634_v39, %v7492_v28 }
 0x248   : > { %5167 = vmatprep.subr.mxu1 %v3244_v21  ;;  %v3020_v8 = vadd.f32 %v2988_v41, %v2916_v50  ;;  %v3092_v52 = vsel %vm3056_vm10, %v7489_v42, 0.0  ;;  %v3196_v1 = vsel %vm3160_vm11, %v7501_v46, 0.0  ;;  %vm2440_vm12 = vcmp.eq.s32.totalorder %v9628_v3, %v7434_v6 }
 0x249   : > { %v2773_v43 = vadd.f32 %v2741_v34, %v2669_v36  ;;  %v2476_v27 = vsel %vm2440_vm12, %v7437_v2, 0.0  ;;  %vm2512_vm13 = vcmp.eq.s32.totalorder %v9628_v3, %v7440_v61  ;;  %vm2616_vm14 = vcmp.eq.s32.totalorder %v9628_v3, %v7446_v19 }
 0x24a   : > { %v3124_v30 = vadd.f32 %v3092_v52, %v3020_v8  ;;  %v2548_v0 = vsel %vm2512_vm13, %v7443_v9, 0.0  ;;  %v2652_v26 = vsel %vm2616_vm14, %v7449_v18, 0.0  ;;  %vm2720_vm15 = vcmp.eq.s32.totalorder %v9628_v3, %v7452_v10 }
 0x24b   : > { %5133 = vmatpush3.msra.mxu0 %v2773_v43  ;;  %v2580_v21 = vadd.f32 %v2548_v0, %v2476_v27  ;;  %v2756_v34 = vsel %vm2720_vm15, %v7460_v11, 0.0  ;;  %vm2895_vm0 = vcmp.eq.s32.totalorder %v9628_v3, %v7472_v38  ;;  %vm2967_vm1 = vcmp.eq.s32.totalorder %v9628_v3, %v7478_v13 }
 0x24c   : > { %v3228_v50 = vadd.f32 %v3196_v1, %v3124_v30  ;;  %v2931_v36 = vsel %vm2895_vm0, %v7475_v45, 0.0  ;;  %v3003_v41 = vsel %vm2967_vm1, %v7481_v40, 0.0  ;;  %vm3071_vm2 = vcmp.eq.s32.totalorder %v9628_v3, %v7484_v35 }
 0x24d   : > { %v2684_v8 = vadd.f32 %v2652_v26, %v2580_v21  ;;  %v3035_v52 = vadd.f32 %v3003_v41, %v2931_v36  ;;  %v3107_v43 = vsel %vm3071_vm2, %v7489_v42, 0.0  ;;  %vm3175_vm3 = vcmp.eq.s32.totalorder %v9628_v3, %v7492_v28 }
 0x24e   : > { %5168 = vmatpush3.msra.mxu1 %v3228_v50  ;;  %v3211_v27 = vsel %vm3175_vm3, %v7501_v46, 0.0  ;;  %vm2424_vm4 = vcmp.eq.s32.totalorder %v6439_v37, %v7434_v6  ;;  %vm2496_vm5 = vcmp.eq.s32.totalorder %v6439_v37, %v7440_v61  ;;  %vm2600_vm6 = vcmp.eq.s32.totalorder %v6439_v37, %v7446_v19 }
 0x24f   : > { %v2788_v1 = vadd.f32 %v2756_v34, %v2684_v8  ;;  %v3139_v30 = vadd.f32 %v3107_v43, %v3035_v52  ;;  %v2460_v0 = vsel %vm2424_vm4, %v7437_v2, 0.0  ;;  %v2532_v26 = vsel %vm2496_vm5, %v7443_v9, 0.0 }
 0x250   : > { %v2564_v21 = vadd.f32 %v2532_v26, %v2460_v0  ;;  %v2636_v50 = vsel %vm2600_vm6, %v7449_v18, 0.0  ;;  %vm2704_vm7 = vcmp.eq.s32.totalorder %v6439_v37, %v7452_v10  ;;  %vm2879_vm8 = vcmp.eq.s32.totalorder %v6439_v37, %v7472_v38 }
 0x251   : > { %5134 = vmatprep.subr.mxu0 %v2788_v1  ;;  %v3243_v36 = vadd.f32 %v3211_v27, %v3139_v30  ;;  %v2740_v41 = vsel %vm2704_vm7, %v7460_v11, 0.0  ;;  %v2915_v34 = vsel %vm2879_vm8, %v7475_v45, 0.0  ;;  %vm2951_vm9 = vcmp.eq.s32.totalorder %v6439_v37, %v7478_v13  ;;  %v9635_v30 = vld [vmem:[#allocation19_spill] sm:$0xff] }
 0x252   : > { %v2668_v8 = vadd.f32 %v2636_v50, %v2564_v21  ;;  %v2987_v52 = vsel %vm2951_vm9, %v7481_v40, 0.0  ;;  %vm3055_vm10 = vcmp.eq.s32.totalorder %v6439_v37, %v7484_v35  ;;  %vm3159_vm11 = vcmp.eq.s32.totalorder %v6439_v37, %v7492_v28 }
 0x253   : > { %5169 = vmatprep.subr.mxu1 %v3243_v36  ;;  %v3019_v43 = vadd.f32 %v2987_v52, %v2915_v34  ;;  %v3091_v27 = vsel %vm3055_vm10, %v7489_v42, 0.0  ;;  %v3195_v1 = vsel %vm3159_vm11, %v7501_v46, 0.0  ;;  %vm2439_vm12 = vcmp.eq.s32.totalorder %v9635_v30, %v7434_v6 }
 0x254   : > { %v2772_v0 = vadd.f32 %v2740_v41, %v2668_v8  ;;  %v2475_v26 = vsel %vm2439_vm12, %v7437_v2, 0.0  ;;  %vm2511_vm13 = vcmp.eq.s32.totalorder %v9635_v30, %v7440_v61  ;;  %vm2615_vm14 = vcmp.eq.s32.totalorder %v9635_v30, %v7446_v19 }
 0x255   : > { %v3123_v21 = vadd.f32 %v3091_v27, %v3019_v43  ;;  %v2547_v50 = vsel %vm2511_vm13, %v7443_v9, 0.0  ;;  %v2651_v36 = vsel %vm2615_vm14, %v7449_v18, 0.0  ;;  %vm2719_vm15 = vcmp.eq.s32.totalorder %v9635_v30, %v7452_v10 }
 0x256   : > { %5135 = vmatpush3.msra.mxu0 %v2772_v0  ;;  %v2579_v34 = vadd.f32 %v2547_v50, %v2475_v26  ;;  %v2755_v41 = vsel %vm2719_vm15, %v7460_v11, 0.0  ;;  %vm2894_vm0 = vcmp.eq.s32.totalorder %v9635_v30, %v7472_v38  ;;  %vm2966_vm1 = vcmp.eq.s32.totalorder %v9635_v30, %v7478_v13 }
 0x257   : > { %v3227_v8 = vadd.f32 %v3195_v1, %v3123_v21  ;;  %v2930_v52 = vsel %vm2894_vm0, %v7475_v45, 0.0  ;;  %v3002_v43 = vsel %vm2966_vm1, %v7481_v40, 0.0  ;;  %vm3070_vm2 = vcmp.eq.s32.totalorder %v9635_v30, %v7484_v35 }
 0x258   : > { %v2683_v27 = vadd.f32 %v2651_v36, %v2579_v34  ;;  %v3034_v37 = vadd.f32 %v3002_v43, %v2930_v52  ;;  %v3106_v0 = vsel %vm3070_vm2, %v7489_v42, 0.0  ;;  %vm3174_vm3 = vcmp.eq.s32.totalorder %v9635_v30, %v7492_v28 }
 0x259   : > { %5170 = vmatpush3.msra.mxu1 %v3227_v8  ;;  %v3210_v26 = vsel %vm3174_vm3, %v7501_v46, 0.0  ;;  %vm2423_vm4 = vcmp.eq.s32.totalorder %v9629_v29, %v7434_v6  ;;  %vm2495_vm5 = vcmp.eq.s32.totalorder %v9629_v29, %v7440_v61  ;;  %vm2599_vm6 = vcmp.eq.s32.totalorder %v9629_v29, %v7446_v19 }
 0x25a   : > { %v2787_v1 = vadd.f32 %v2755_v41, %v2683_v27  ;;  %v3138_v21 = vadd.f32 %v3106_v0, %v3034_v37  ;;  %v2459_v50 = vsel %vm2423_vm4, %v7437_v2, 0.0  ;;  %v2531_v36 = vsel %vm2495_vm5, %v7443_v9, 0.0 }
 0x25b   : > { %v2563_v34 = vadd.f32 %v2531_v36, %v2459_v50  ;;  %v2635_v8 = vsel %vm2599_vm6, %v7449_v18, 0.0  ;;  %vm2703_vm7 = vcmp.eq.s32.totalorder %v9629_v29, %v7452_v10  ;;  %vm2878_vm8 = vcmp.eq.s32.totalorder %v9629_v29, %v7472_v38 }
 0x25c   : > { %5136 = vmatprep.subr.mxu0 %v2787_v1  ;;  %v3242_v52 = vadd.f32 %v3210_v26, %v3138_v21  ;;  %v2739_v43 = vsel %vm2703_vm7, %v7460_v11, 0.0  ;;  %v2914_v41 = vsel %vm2878_vm8, %v7475_v45, 0.0  ;;  %vm2950_vm9 = vcmp.eq.s32.totalorder %v9629_v29, %v7478_v13 }
 0x25d   : > { %v2667_v37 = vadd.f32 %v2635_v8, %v2563_v34  ;;  %v2986_v27 = vsel %vm2950_vm9, %v7481_v40, 0.0  ;;  %vm3054_vm10 = vcmp.eq.s32.totalorder %v9629_v29, %v7484_v35  ;;  %vm3158_vm11 = vcmp.eq.s32.totalorder %v9629_v29, %v7492_v28 }
 0x25e   : > { %5171 = vmatprep.subr.mxu1 %v3242_v52  ;;  %v3018_v0 = vadd.f32 %v2986_v27, %v2914_v41  ;;  %v3090_v26 = vsel %vm3054_vm10, %v7489_v42, 0.0  ;;  %v3194_v1 = vsel %vm3158_vm11, %v7501_v46, 0.0  ;;  %vm2438_vm12 = vcmp.eq.s32.totalorder %v6448_v57, %v7434_v6 }
 0x25f   : > { %v2771_v21 = vadd.f32 %v2739_v43, %v2667_v37  ;;  %v2474_v50 = vsel %vm2438_vm12, %v7437_v2, 0.0  ;;  %vm2510_vm13 = vcmp.eq.s32.totalorder %v6448_v57, %v7440_v61  ;;  %vm2614_vm14 = vcmp.eq.s32.totalorder %v6448_v57, %v7446_v19 }
 0x260   : > { %v3122_v36 = vadd.f32 %v3090_v26, %v3018_v0  ;;  %v2546_v34 = vsel %vm2510_vm13, %v7443_v9, 0.0  ;;  %v2650_v8 = vsel %vm2614_vm14, %v7449_v18, 0.0  ;;  %vm2718_vm15 = vcmp.eq.s32.totalorder %v6448_v57, %v7452_v10 }
 0x261   : > { %5137 = vmatpush3.msra.mxu0 %v2771_v21  ;;  %v2578_v52 = vadd.f32 %v2546_v34, %v2474_v50  ;;  %v2754_v43 = vsel %vm2718_vm15, %v7460_v11, 0.0  ;;  %vm2893_vm0 = vcmp.eq.s32.totalorder %v6448_v57, %v7472_v38  ;;  %vm2965_vm1 = vcmp.eq.s32.totalorder %v6448_v57, %v7478_v13 }
 0x262   : > { %v3226_v41 = vadd.f32 %v3194_v1, %v3122_v36  ;;  %v2929_v37 = vsel %vm2893_vm0, %v7475_v45, 0.0  ;;  %v3001_v27 = vsel %vm2965_vm1, %v7481_v40, 0.0  ;;  %vm3069_vm2 = vcmp.eq.s32.totalorder %v6448_v57, %v7484_v35 }
 0x263   : > { %v2682_v0 = vadd.f32 %v2650_v8, %v2578_v52  ;;  %v3033_v26 = vadd.f32 %v3001_v27, %v2929_v37  ;;  %v3105_v21 = vsel %vm3069_vm2, %v7489_v42, 0.0  ;;  %vm3173_vm3 = vcmp.eq.s32.totalorder %v6448_v57, %v7492_v28 }
 0x264   : > { %5172 = vmatpush3.msra.mxu1 %v3226_v41  ;;  %v3209_v50 = vsel %vm3173_vm3, %v7501_v46, 0.0  ;;  %vm2422_vm4 = vcmp.eq.s32.totalorder %v5629_v7, %v7434_v6  ;;  %vm2494_vm5 = vcmp.eq.s32.totalorder %v5629_v7, %v7440_v61  ;;  %vm2598_vm6 = vcmp.eq.s32.totalorder %v5629_v7, %v7446_v19 }
 0x265   : > { %v2786_v1 = vadd.f32 %v2754_v43, %v2682_v0  ;;  %v3137_v36 = vadd.f32 %v3105_v21, %v3033_v26  ;;  %v2458_v34 = vsel %vm2422_vm4, %v7437_v2, 0.0  ;;  %v2530_v8 = vsel %vm2494_vm5, %v7443_v9, 0.0  ;;  %v5387_v26 = vld [vmem:[%s6567_s20] sm:$0xff] }
 0x266   : > { %v2562_v52 = vadd.f32 %v2530_v8, %v2458_v34  ;;  %v2634_v41 = vsel %vm2598_vm6, %v7449_v18, 0.0  ;;  %vm2702_vm7 = vcmp.eq.s32.totalorder %v5629_v7, %v7452_v10  ;;  %vm2877_vm8 = vcmp.eq.s32.totalorder %v5629_v7, %v7472_v38  ;;  %v9636_v21 = vld [vmem:[#allocation12_spill] sm:$0xff]  ;;  %v9637_v34 = vld [vmem:[#allocation22_spill] sm:$0xff] }
 0x267   : > { %5138 = vmatprep.subr.mxu0 %v2786_v1  ;;  %v3241_v6 = vadd.f32 %v3209_v50, %v3137_v36  ;;  %v2738_v61 = vsel %vm2702_vm7, %v7460_v11, 0.0  ;;  %v2913_v19 = vsel %vm2877_vm8, %v7475_v45, 0.0  ;;  %vm2949_vm9 = vcmp.eq.s32.totalorder %v5629_v7, %v7478_v13 }
 0x268   : > { %v2666_v2 = vadd.f32 %v2634_v41, %v2562_v52  ;;  %v2985_v9 = vsel %vm2949_vm9, %v7481_v40, 0.0  ;;  %vm3053_vm10 = vcmp.eq.s32.totalorder %v5629_v7, %v7484_v35  ;;  %vm3157_vm11 = vcmp.eq.s32.totalorder %v5629_v7, %v7492_v28 }
 0x269   : > { %5173 = vmatprep.subr.mxu1 %v3241_v6  ;;  %v3017_v18 = vadd.f32 %v2985_v9, %v2913_v19  ;;  %v3089_v10 = vsel %vm3053_vm10, %v7489_v42, 0.0  ;;  %v3330_v11 = vsub.s32 6, %v5629_v7  ;;  %v3193_v45 = vsel %vm3157_vm11, %v7501_v46, 0.0 }
 0x26a   : > { %v2770_v38 = vadd.f32 %v2738_v61, %v2666_v2  ;;  %v3785_v13 = vsub.s32 7, %v5629_v7 }
 0x26b   : > { %v3121_v43 = vadd.f32 %v3089_v10, %v3017_v18  ;;  %v8255_v40 = vrot.slane %v5689_v54, %v3330_v11  ;;  %v8258_v35 = vrot.slane %v5694_v56, %v3330_v11  ;;  %v8261_v28 = vrot.slane %v5705_v62, %v3330_v11 }
 0x26c   : > { %5139 = vmatpush3.msra.mxu0 %v2770_v38  ;;  %v8264_v42 = vrot.slane %v5702_v60, %v3330_v11  ;;  %v8267_v37 = vrot.slane %v5708_v63, %v3330_v11  ;;  %v8270_v46 = vrot.slane %v5724_v4, %v3330_v11  ;;  %v8273_v27 = vrot.slane %v5727_v5, %v3330_v11 }
 0x26d   : > { %v3225_v0 = vadd.f32 %v3193_v45, %v3121_v43  ;;  %2867 = vmatmul.mubr.f32.vlgmr.msra.gmra.mxu0 %v5387_v26  ;;  %vm3363_vm12 = vcmp.eq.s32.totalorder %v5638_v12, %v8255_v40  ;;  %vm3435_vm13 = vcmp.eq.s32.totalorder %v5638_v12, %v8261_v28  ;;  %v8281_v50 = vrot.slane %v9636_v21, %v3330_v11 }
 0x26e   : > { %v3399_v1 = vsel %vm3363_vm12, %v8258_v35, 0.0  ;;  %v3471_v36 = vsel %vm3435_vm13, %v8264_v42, 0.0  ;;  %vm3539_vm14 = vcmp.eq.s32.totalorder %v5638_v12, %v8267_v37  ;;  %vm3643_vm15 = vcmp.eq.s32.totalorder %v5638_v12, %v8273_v27  ;;  %3776 = vmatprep.mubr.f32.mxu0 %v9637_v34 }
 0x26f   : > { %5174 = vmatpush3.msra.mxu1 %v3225_v0  ;;  %v3503_v8 = vadd.f32 %v3471_v36, %v3399_v1  ;;  %v3575_v52 = vsel %vm3539_vm14, %v8270_v46, 0.0  ;;  %v3679_v41 = vsel %vm3643_vm15, %v8281_v50, 0.0  ;;  %v8293_v6 = vrot.slane %v5689_v54, %v3785_v13 }
 0x270   : > { %3322 = vmatmul.mubr.f32.vlgmr.msra.gmra.mxu1 %v5387_v26  ;;  %v8296_v61 = vrot.slane %v5694_v56, %v3785_v13  ;;  %v8299_v19 = vrot.slane %v5705_v62, %v3785_v13  ;;  %v8302_v2 = vrot.slane %v5702_v60, %v3785_v13  ;;  %v8305_v9 = vrot.slane %v5708_v63, %v3785_v13 }
 0x271   : > { %v3607_v18 = vadd.f32 %v3575_v52, %v3503_v8  ;;  %vm3818_vm0 = vcmp.eq.s32.totalorder %v5638_v12, %v8293_v6  ;;  %v8310_v54 = vrot.slane %v5724_v4, %v3785_v13  ;;  %v8313_v10 = vrot.slane %v5727_v5, %v3785_v13  ;;  %4231 = vmatprep.mubr.f32.mxu1 %v9637_v34 }
 0x272   : > { %v3854_v56 = vsel %vm3818_vm0, %v8296_v61, 0.0  ;;  %vm3890_vm1 = vcmp.eq.s32.totalorder %v5638_v12, %v8299_v19  ;;  %vm3994_vm2 = vcmp.eq.s32.totalorder %v5638_v12, %v8305_v9  ;;  %v8322_v60 = vrot.slane %v9636_v21, %v3785_v13 }
 0x273   : > { %v3711_v62 = vadd.f32 %v3679_v41, %v3607_v18  ;;  %v3926_v63 = vsel %vm3890_vm1, %v8302_v2, 0.0  ;;  %v4030_v4 = vsel %vm3994_vm2, %v8310_v54, 0.0  ;;  %vm4098_vm3 = vcmp.eq.s32.totalorder %v5638_v12, %v8313_v10 }
 0x274   : > { %v3958_v5 = vadd.f32 %v3926_v63, %v3854_v56  ;;  %v4134_v11 = vsel %vm4098_vm3, %v8322_v60, 0.0  ;;  %vm3347_vm4 = vcmp.eq.s32.totalorder %v5647_v15, %v8255_v40  ;;  %vm3419_vm5 = vcmp.eq.s32.totalorder %v5647_v15, %v8261_v28 }
 0x275   : > { %5178 = vmatprep.subr.mxu0 %v3711_v62  ;;  %v3383_v38 = vsel %vm3347_vm4, %v8258_v35, 0.0  ;;  %v3455_v45 = vsel %vm3419_vm5, %v8264_v42, 0.0  ;;  %vm3523_vm6 = vcmp.eq.s32.totalorder %v5647_v15, %v8267_v37  ;;  %vm3627_vm7 = vcmp.eq.s32.totalorder %v5647_v15, %v8273_v27 }
 0x276   : > { %v4062_v13 = vadd.f32 %v4030_v4, %v3958_v5  ;;  %v3487_v43 = vadd.f32 %v3455_v45, %v3383_v38  ;;  %v3559_v0 = vsel %vm3523_vm6, %v8270_v46, 0.0  ;;  %v3663_v26 = vsel %vm3627_vm7, %v8281_v50, 0.0 }
 0x277   : > { %vm3802_vm8 = vcmp.eq.s32.totalorder %v5647_v15, %v8293_v6  ;;  %vm3874_vm9 = vcmp.eq.s32.totalorder %v5647_v15, %v8299_v19  ;;  %vm3978_vm10 = vcmp.eq.s32.totalorder %v5647_v15, %v8305_v9  ;;  %vm4082_vm11 = vcmp.eq.s32.totalorder %v5647_v15, %v8313_v10 }
 0x278   : > { %v4166_v21 = vadd.f32 %v4134_v11, %v4062_v13  ;;  %v3591_v1 = vadd.f32 %v3559_v0, %v3487_v43  ;;  %v3838_v36 = vsel %vm3802_vm8, %v8296_v61, 0.0  ;;  %v3910_v8 = vsel %vm3874_vm9, %v8302_v2, 0.0 }
 0x279   : > { %v3942_v52 = vadd.f32 %v3910_v8, %v3838_v36  ;;  %v4014_v41 = vsel %vm3978_vm10, %v8310_v54, 0.0  ;;  %v4118_v18 = vsel %vm4082_vm11, %v8322_v60, 0.0  ;;  %vm3362_vm12 = vcmp.eq.s32.totalorder %v5650_v16, %v8255_v40 }
 0x27a   : > { %5213 = vmatprep.subr.mxu1 %v4166_v21  ;;  %v3695_v56 = vadd.f32 %v3663_v26, %v3591_v1  ;;  %v3398_v62 = vsel %vm3362_vm12, %v8258_v35, 0.0  ;;  %vm3434_vm13 = vcmp.eq.s32.totalorder %v5650_v16, %v8261_v28  ;;  %vm3538_vm14 = vcmp.eq.s32.totalorder %v5650_v16, %v8267_v37 }
 0x27b   : > { %v4046_v63 = vadd.f32 %v4014_v41, %v3942_v52  ;;  %v3470_v4 = vsel %vm3434_vm13, %v8264_v42, 0.0  ;;  %v3574_v5 = vsel %vm3538_vm14, %v8270_v46, 0.0  ;;  %vm3642_vm15 = vcmp.eq.s32.totalorder %v5650_v16, %v8273_v27 }
 0x27c   : > { %5179 = vmatpush3.msra.mxu0 %v3695_v56  ;;  %v3502_v11 = vadd.f32 %v3470_v4, %v3398_v62  ;;  %v3678_v38 = vsel %vm3642_vm15, %v8281_v50, 0.0  ;;  %vm3817_vm0 = vcmp.eq.s32.totalorder %v5650_v16, %v8293_v6  ;;  %vm3889_vm1 = vcmp.eq.s32.totalorder %v5650_v16, %v8299_v19 }
 0x27d   : > { %v4150_v45 = vadd.f32 %v4118_v18, %v4046_v63  ;;  %v3853_v13 = vsel %vm3817_vm0, %v8296_v61, 0.0  ;;  %v3925_v43 = vsel %vm3889_vm1, %v8302_v2, 0.0  ;;  %vm3993_vm2 = vcmp.eq.s32.totalorder %v5650_v16, %v8305_v9 }
 0x27e   : > { %v3606_v0 = vadd.f32 %v3574_v5, %v3502_v11  ;;  %v3957_v26 = vadd.f32 %v3925_v43, %v3853_v13  ;;  %v4029_v21 = vsel %vm3993_vm2, %v8310_v54, 0.0  ;;  %vm4097_vm3 = vcmp.eq.s32.totalorder %v5650_v16, %v8313_v10 }
 0x27f   : > { %5214 = vmatpush3.msra.mxu1 %v4150_v45  ;;  %v4133_v1 = vsel %vm4097_vm3, %v8322_v60, 0.0  ;;  %vm3346_vm4 = vcmp.eq.s32.totalorder %v5653_v17, %v8255_v40  ;;  %vm3418_vm5 = vcmp.eq.s32.totalorder %v5653_v17, %v8261_v28  ;;  %vm3522_vm6 = vcmp.eq.s32.totalorder %v5653_v17, %v8267_v37 }
 0x280   : > { %v3710_v36 = vadd.f32 %v3678_v38, %v3606_v0  ;;  %v4061_v8 = vadd.f32 %v4029_v21, %v3957_v26  ;;  %v3382_v52 = vsel %vm3346_vm4, %v8258_v35, 0.0  ;;  %v3454_v41 = vsel %vm3418_vm5, %v8264_v42, 0.0 }
 0x281   : > { %v3486_v18 = vadd.f32 %v3454_v41, %v3382_v52  ;;  %v3558_v56 = vsel %vm3522_vm6, %v8270_v46, 0.0  ;;  %vm3626_vm7 = vcmp.eq.s32.totalorder %v5653_v17, %v8273_v27  ;;  %vm3801_vm8 = vcmp.eq.s32.totalorder %v5653_v17, %v8293_v6 }
 0x282   : > { %5180 = vmatprep.subr.mxu0 %v3710_v36  ;;  %v4165_v62 = vadd.f32 %v4133_v1, %v4061_v8  ;;  %v3662_v63 = vsel %vm3626_vm7, %v8281_v50, 0.0  ;;  %v3837_v4 = vsel %vm3801_vm8, %v8296_v61, 0.0  ;;  %vm3873_vm9 = vcmp.eq.s32.totalorder %v5653_v17, %v8299_v19 }
 0x283   : > { %v3590_v5 = vadd.f32 %v3558_v56, %v3486_v18  ;;  %v3909_v11 = vsel %vm3873_vm9, %v8302_v2, 0.0  ;;  %vm3977_vm10 = vcmp.eq.s32.totalorder %v5653_v17, %v8305_v9  ;;  %vm4081_vm11 = vcmp.eq.s32.totalorder %v5653_v17, %v8313_v10 }
 0x284   : > { %5215 = vmatprep.subr.mxu1 %v4165_v62  ;;  %v3941_v38 = vadd.f32 %v3909_v11, %v3837_v4  ;;  %v4013_v45 = vsel %vm3977_vm10, %v8310_v54, 0.0  ;;  %v4117_v13 = vsel %vm4081_vm11, %v8322_v60, 0.0  ;;  %vm3361_vm12 = vcmp.eq.s32.totalorder %v5656_v22, %v8255_v40 }
 0x285   : > { %v3694_v43 = vadd.f32 %v3662_v63, %v3590_v5  ;;  %v3397_v0 = vsel %vm3361_vm12, %v8258_v35, 0.0  ;;  %vm3433_vm13 = vcmp.eq.s32.totalorder %v5656_v22, %v8261_v28  ;;  %vm3537_vm14 = vcmp.eq.s32.totalorder %v5656_v22, %v8267_v37 }
 0x286   : > { %v4045_v26 = vadd.f32 %v4013_v45, %v3941_v38  ;;  %v3469_v21 = vsel %vm3433_vm13, %v8264_v42, 0.0  ;;  %v3573_v1 = vsel %vm3537_vm14, %v8270_v46, 0.0  ;;  %vm3641_vm15 = vcmp.eq.s32.totalorder %v5656_v22, %v8273_v27 }
 0x287   : > { %5181 = vmatpush3.msra.mxu0 %v3694_v43  ;;  %v3501_v36 = vadd.f32 %v3469_v21, %v3397_v0  ;;  %v3677_v8 = vsel %vm3641_vm15, %v8281_v50, 0.0  ;;  %vm3816_vm0 = vcmp.eq.s32.totalorder %v5656_v22, %v8293_v6  ;;  %vm3888_vm1 = vcmp.eq.s32.totalorder %v5656_v22, %v8299_v19 }
 0x288   : > { %v4149_v52 = vadd.f32 %v4117_v13, %v4045_v26  ;;  %v3852_v41 = vsel %vm3816_vm0, %v8296_v61, 0.0  ;;  %v3924_v18 = vsel %vm3888_vm1, %v8302_v2, 0.0  ;;  %vm3992_vm2 = vcmp.eq.s32.totalorder %v5656_v22, %v8305_v9 }
 0x289   : > { %v3605_v56 = vadd.f32 %v3573_v1, %v3501_v36  ;;  %v3956_v62 = vadd.f32 %v3924_v18, %v3852_v41  ;;  %v4028_v63 = vsel %vm3992_vm2, %v8310_v54, 0.0  ;;  %vm4096_vm3 = vcmp.eq.s32.totalorder %v5656_v22, %v8313_v10 }
 0x28a   : > { %5216 = vmatpush3.msra.mxu1 %v4149_v52  ;;  %v4132_v4 = vsel %vm4096_vm3, %v8322_v60, 0.0  ;;  %vm3345_vm4 = vcmp.eq.s32.totalorder %v5659_v23, %v8255_v40  ;;  %vm3417_vm5 = vcmp.eq.s32.totalorder %v5659_v23, %v8261_v28  ;;  %vm3521_vm6 = vcmp.eq.s32.totalorder %v5659_v23, %v8267_v37 }
 0x28b   : > { %v3709_v5 = vadd.f32 %v3677_v8, %v3605_v56  ;;  %v4060_v11 = vadd.f32 %v4028_v63, %v3956_v62  ;;  %v3381_v38 = vsel %vm3345_vm4, %v8258_v35, 0.0  ;;  %v3453_v45 = vsel %vm3417_vm5, %v8264_v42, 0.0 }
 0x28c   : > { %v3485_v13 = vadd.f32 %v3453_v45, %v3381_v38  ;;  %v3557_v43 = vsel %vm3521_vm6, %v8270_v46, 0.0  ;;  %vm3625_vm7 = vcmp.eq.s32.totalorder %v5659_v23, %v8273_v27  ;;  %vm3800_vm8 = vcmp.eq.s32.totalorder %v5659_v23, %v8293_v6 }
 0x28d   : > { %5182 = vmatprep.subr.mxu0 %v3709_v5  ;;  %v4164_v0 = vadd.f32 %v4132_v4, %v4060_v11  ;;  %v3661_v26 = vsel %vm3625_vm7, %v8281_v50, 0.0  ;;  %v3836_v21 = vsel %vm3800_vm8, %v8296_v61, 0.0  ;;  %vm3872_vm9 = vcmp.eq.s32.totalorder %v5659_v23, %v8299_v19 }
 0x28e   : > { %v3589_v1 = vadd.f32 %v3557_v43, %v3485_v13  ;;  %v3908_v36 = vsel %vm3872_vm9, %v8302_v2, 0.0  ;;  %vm3976_vm10 = vcmp.eq.s32.totalorder %v5659_v23, %v8305_v9  ;;  %vm4080_vm11 = vcmp.eq.s32.totalorder %v5659_v23, %v8313_v10 }
 0x28f   : > { %5217 = vmatprep.subr.mxu1 %v4164_v0  ;;  %v3940_v8 = vadd.f32 %v3908_v36, %v3836_v21  ;;  %v4012_v52 = vsel %vm3976_vm10, %v8310_v54, 0.0  ;;  %v4116_v41 = vsel %vm4080_vm11, %v8322_v60, 0.0  ;;  %vm3360_vm12 = vcmp.eq.s32.totalorder %v5662_v24, %v8255_v40 }
 0x290   : > { %v3693_v18 = vadd.f32 %v3661_v26, %v3589_v1  ;;  %v3396_v56 = vsel %vm3360_vm12, %v8258_v35, 0.0  ;;  %vm3432_vm13 = vcmp.eq.s32.totalorder %v5662_v24, %v8261_v28  ;;  %vm3536_vm14 = vcmp.eq.s32.totalorder %v5662_v24, %v8267_v37 }
 0x291   : > { %v4044_v62 = vadd.f32 %v4012_v52, %v3940_v8  ;;  %v3468_v63 = vsel %vm3432_vm13, %v8264_v42, 0.0  ;;  %v3572_v4 = vsel %vm3536_vm14, %v8270_v46, 0.0  ;;  %vm3640_vm15 = vcmp.eq.s32.totalorder %v5662_v24, %v8273_v27 }
 0x292   : > { %5183 = vmatpush3.msra.mxu0 %v3693_v18  ;;  %v3500_v5 = vadd.f32 %v3468_v63, %v3396_v56  ;;  %v3676_v11 = vsel %vm3640_vm15, %v8281_v50, 0.0  ;;  %vm3815_vm0 = vcmp.eq.s32.totalorder %v5662_v24, %v8293_v6  ;;  %vm3887_vm1 = vcmp.eq.s32.totalorder %v5662_v24, %v8299_v19 }
 0x293   : > { %v4148_v38 = vadd.f32 %v4116_v41, %v4044_v62  ;;  %v3851_v45 = vsel %vm3815_vm0, %v8296_v61, 0.0  ;;  %v3923_v13 = vsel %vm3887_vm1, %v8302_v2, 0.0  ;;  %vm3991_vm2 = vcmp.eq.s32.totalorder %v5662_v24, %v8305_v9 }
 0x294   : > { %v3604_v43 = vadd.f32 %v3572_v4, %v3500_v5  ;;  %v3955_v0 = vadd.f32 %v3923_v13, %v3851_v45  ;;  %v4027_v26 = vsel %vm3991_vm2, %v8310_v54, 0.0  ;;  %vm4095_vm3 = vcmp.eq.s32.totalorder %v5662_v24, %v8313_v10 }
 0x295   : > { %5218 = vmatpush3.msra.mxu1 %v4148_v38  ;;  %v4131_v21 = vsel %vm4095_vm3, %v8322_v60, 0.0  ;;  %vm3344_vm4 = vcmp.eq.s32.totalorder %v5665_v25, %v8255_v40  ;;  %vm3416_vm5 = vcmp.eq.s32.totalorder %v5665_v25, %v8261_v28  ;;  %vm3520_vm6 = vcmp.eq.s32.totalorder %v5665_v25, %v8267_v37 }
 0x296   : > { %v3708_v1 = vadd.f32 %v3676_v11, %v3604_v43  ;;  %v4059_v36 = vadd.f32 %v4027_v26, %v3955_v0  ;;  %v3380_v8 = vsel %vm3344_vm4, %v8258_v35, 0.0  ;;  %v3452_v52 = vsel %vm3416_vm5, %v8264_v42, 0.0 }
 0x297   : > { %v3484_v41 = vadd.f32 %v3452_v52, %v3380_v8  ;;  %v3556_v18 = vsel %vm3520_vm6, %v8270_v46, 0.0  ;;  %vm3624_vm7 = vcmp.eq.s32.totalorder %v5665_v25, %v8273_v27  ;;  %vm3799_vm8 = vcmp.eq.s32.totalorder %v5665_v25, %v8293_v6 }
 0x298   : > { %5184 = vmatprep.subr.mxu0 %v3708_v1  ;;  %v4163_v56 = vadd.f32 %v4131_v21, %v4059_v36  ;;  %v3660_v62 = vsel %vm3624_vm7, %v8281_v50, 0.0  ;;  %v3835_v63 = vsel %vm3799_vm8, %v8296_v61, 0.0  ;;  %vm3871_vm9 = vcmp.eq.s32.totalorder %v5665_v25, %v8299_v19 }
 0x299   : > { %v3588_v4 = vadd.f32 %v3556_v18, %v3484_v41  ;;  %v3907_v5 = vsel %vm3871_vm9, %v8302_v2, 0.0  ;;  %vm3975_vm10 = vcmp.eq.s32.totalorder %v5665_v25, %v8305_v9  ;;  %vm4079_vm11 = vcmp.eq.s32.totalorder %v5665_v25, %v8313_v10 }
 0x29a   : > { %5219 = vmatprep.subr.mxu1 %v4163_v56  ;;  %v3939_v11 = vadd.f32 %v3907_v5, %v3835_v63  ;;  %v4011_v38 = vsel %vm3975_vm10, %v8310_v54, 0.0  ;;  %v4115_v45 = vsel %vm4079_vm11, %v8322_v60, 0.0  ;;  %vm3359_vm12 = vcmp.eq.s32.totalorder %v5668_v31, %v8255_v40 }
 0x29b   : > { %v3692_v13 = vadd.f32 %v3660_v62, %v3588_v4  ;;  %v3395_v43 = vsel %vm3359_vm12, %v8258_v35, 0.0  ;;  %vm3431_vm13 = vcmp.eq.s32.totalorder %v5668_v31, %v8261_v28  ;;  %vm3535_vm14 = vcmp.eq.s32.totalorder %v5668_v31, %v8267_v37 }
 0x29c   : > { %v4043_v0 = vadd.f32 %v4011_v38, %v3939_v11  ;;  %v3467_v26 = vsel %vm3431_vm13, %v8264_v42, 0.0  ;;  %v3571_v21 = vsel %vm3535_vm14, %v8270_v46, 0.0  ;;  %vm3639_vm15 = vcmp.eq.s32.totalorder %v5668_v31, %v8273_v27 }
 0x29d   : > { %5185 = vmatpush3.msra.mxu0 %v3692_v13  ;;  %v3499_v1 = vadd.f32 %v3467_v26, %v3395_v43  ;;  %v3675_v36 = vsel %vm3639_vm15, %v8281_v50, 0.0  ;;  %vm3814_vm0 = vcmp.eq.s32.totalorder %v5668_v31, %v8293_v6  ;;  %vm3886_vm1 = vcmp.eq.s32.totalorder %v5668_v31, %v8299_v19 }
 0x29e   : > { %v4147_v8 = vadd.f32 %v4115_v45, %v4043_v0  ;;  %v3850_v52 = vsel %vm3814_vm0, %v8296_v61, 0.0  ;;  %v3922_v41 = vsel %vm3886_vm1, %v8302_v2, 0.0  ;;  %vm3990_vm2 = vcmp.eq.s32.totalorder %v5668_v31, %v8305_v9 }
 0x29f   : > { %v3603_v18 = vadd.f32 %v3571_v21, %v3499_v1  ;;  %v3954_v56 = vadd.f32 %v3922_v41, %v3850_v52  ;;  %v4026_v62 = vsel %vm3990_vm2, %v8310_v54, 0.0  ;;  %vm4094_vm3 = vcmp.eq.s32.totalorder %v5668_v31, %v8313_v10 }
 0x2a0   : > { %5220 = vmatpush3.msra.mxu1 %v4147_v8  ;;  %v4130_v63 = vsel %vm4094_vm3, %v8322_v60, 0.0  ;;  %vm3343_vm4 = vcmp.eq.s32.totalorder %v5671_v32, %v8255_v40  ;;  %vm3415_vm5 = vcmp.eq.s32.totalorder %v5671_v32, %v8261_v28  ;;  %vm3519_vm6 = vcmp.eq.s32.totalorder %v5671_v32, %v8267_v37 }
 0x2a1   : > { %v3707_v4 = vadd.f32 %v3675_v36, %v3603_v18  ;;  %v4058_v5 = vadd.f32 %v4026_v62, %v3954_v56  ;;  %v3379_v11 = vsel %vm3343_vm4, %v8258_v35, 0.0  ;;  %v3451_v38 = vsel %vm3415_vm5, %v8264_v42, 0.0 }
 0x2a2   : > { %v3483_v45 = vadd.f32 %v3451_v38, %v3379_v11  ;;  %v3555_v13 = vsel %vm3519_vm6, %v8270_v46, 0.0  ;;  %vm3623_vm7 = vcmp.eq.s32.totalorder %v5671_v32, %v8273_v27  ;;  %vm3798_vm8 = vcmp.eq.s32.totalorder %v5671_v32, %v8293_v6 }
 0x2a3   : > { %5186 = vmatprep.subr.mxu0 %v3707_v4  ;;  %v4162_v43 = vadd.f32 %v4130_v63, %v4058_v5  ;;  %v3659_v0 = vsel %vm3623_vm7, %v8281_v50, 0.0  ;;  %v3834_v26 = vsel %vm3798_vm8, %v8296_v61, 0.0  ;;  %vm3870_vm9 = vcmp.eq.s32.totalorder %v5671_v32, %v8299_v19 }
 0x2a4   : > { %v3587_v21 = vadd.f32 %v3555_v13, %v3483_v45  ;;  %v3906_v1 = vsel %vm3870_vm9, %v8302_v2, 0.0  ;;  %vm3974_vm10 = vcmp.eq.s32.totalorder %v5671_v32, %v8305_v9  ;;  %vm4078_vm11 = vcmp.eq.s32.totalorder %v5671_v32, %v8313_v10 }
 0x2a5   : > { %5221 = vmatprep.subr.mxu1 %v4162_v43  ;;  %v3938_v36 = vadd.f32 %v3906_v1, %v3834_v26  ;;  %v4010_v8 = vsel %vm3974_vm10, %v8310_v54, 0.0  ;;  %v4114_v52 = vsel %vm4078_vm11, %v8322_v60, 0.0  ;;  %vm3358_vm12 = vcmp.eq.s32.totalorder %v5674_v33, %v8255_v40 }
 0x2a6   : > { %v3691_v41 = vadd.f32 %v3659_v0, %v3587_v21  ;;  %v3394_v18 = vsel %vm3358_vm12, %v8258_v35, 0.0  ;;  %vm3430_vm13 = vcmp.eq.s32.totalorder %v5674_v33, %v8261_v28  ;;  %vm3534_vm14 = vcmp.eq.s32.totalorder %v5674_v33, %v8267_v37 }
 0x2a7   : > { %v4042_v56 = vadd.f32 %v4010_v8, %v3938_v36  ;;  %v3466_v62 = vsel %vm3430_vm13, %v8264_v42, 0.0  ;;  %v3570_v63 = vsel %vm3534_vm14, %v8270_v46, 0.0  ;;  %vm3638_vm15 = vcmp.eq.s32.totalorder %v5674_v33, %v8273_v27 }
 0x2a8   : > { %5187 = vmatpush3.msra.mxu0 %v3691_v41  ;;  %v3498_v4 = vadd.f32 %v3466_v62, %v3394_v18  ;;  %v3674_v5 = vsel %vm3638_vm15, %v8281_v50, 0.0  ;;  %vm3813_vm0 = vcmp.eq.s32.totalorder %v5674_v33, %v8293_v6  ;;  %vm3885_vm1 = vcmp.eq.s32.totalorder %v5674_v33, %v8299_v19 }
 0x2a9   : > { %v4146_v11 = vadd.f32 %v4114_v52, %v4042_v56  ;;  %v3849_v38 = vsel %vm3813_vm0, %v8296_v61, 0.0  ;;  %v3921_v45 = vsel %vm3885_vm1, %v8302_v2, 0.0  ;;  %vm3989_vm2 = vcmp.eq.s32.totalorder %v5674_v33, %v8305_v9 }
 0x2aa   : > { %v3602_v13 = vadd.f32 %v3570_v63, %v3498_v4  ;;  %v3953_v43 = vadd.f32 %v3921_v45, %v3849_v38  ;;  %v4025_v0 = vsel %vm3989_vm2, %v8310_v54, 0.0  ;;  %vm4093_vm3 = vcmp.eq.s32.totalorder %v5674_v33, %v8313_v10 }
 0x2ab   : > { %5222 = vmatpush3.msra.mxu1 %v4146_v11  ;;  %v4129_v26 = vsel %vm4093_vm3, %v8322_v60, 0.0  ;;  %vm3342_vm4 = vcmp.eq.s32.totalorder %v5683_v47, %v8255_v40  ;;  %vm3414_vm5 = vcmp.eq.s32.totalorder %v5683_v47, %v8261_v28  ;;  %vm3518_vm6 = vcmp.eq.s32.totalorder %v5683_v47, %v8267_v37 }
 0x2ac   : > { %v3706_v21 = vadd.f32 %v3674_v5, %v3602_v13  ;;  %v4057_v1 = vadd.f32 %v4025_v0, %v3953_v43  ;;  %v3378_v36 = vsel %vm3342_vm4, %v8258_v35, 0.0  ;;  %v3450_v8 = vsel %vm3414_vm5, %v8264_v42, 0.0 }
 0x2ad   : > { %v3482_v52 = vadd.f32 %v3450_v8, %v3378_v36  ;;  %v3554_v41 = vsel %vm3518_vm6, %v8270_v46, 0.0  ;;  %vm3622_vm7 = vcmp.eq.s32.totalorder %v5683_v47, %v8273_v27  ;;  %vm3797_vm8 = vcmp.eq.s32.totalorder %v5683_v47, %v8293_v6 }
 0x2ae   : > { %5188 = vmatprep.subr.mxu0 %v3706_v21  ;;  %v4161_v18 = vadd.f32 %v4129_v26, %v4057_v1  ;;  %v3658_v56 = vsel %vm3622_vm7, %v8281_v50, 0.0  ;;  %v3833_v62 = vsel %vm3797_vm8, %v8296_v61, 0.0  ;;  %vm3869_vm9 = vcmp.eq.s32.totalorder %v5683_v47, %v8299_v19 }
 0x2af   : > { %v3586_v63 = vadd.f32 %v3554_v41, %v3482_v52  ;;  %v3905_v4 = vsel %vm3869_vm9, %v8302_v2, 0.0  ;;  %vm3973_vm10 = vcmp.eq.s32.totalorder %v5683_v47, %v8305_v9  ;;  %vm4077_vm11 = vcmp.eq.s32.totalorder %v5683_v47, %v8313_v10 }
 0x2b0   : > { %5223 = vmatprep.subr.mxu1 %v4161_v18  ;;  %v3937_v5 = vadd.f32 %v3905_v4, %v3833_v62  ;;  %v4009_v11 = vsel %vm3973_vm10, %v8310_v54, 0.0  ;;  %v4113_v38 = vsel %vm4077_vm11, %v8322_v60, 0.0  ;;  %vm3357_vm12 = vcmp.eq.s32.totalorder %v5687_v51, %v8255_v40 }
 0x2b1   : > { %v3690_v45 = vadd.f32 %v3658_v56, %v3586_v63  ;;  %v3393_v13 = vsel %vm3357_vm12, %v8258_v35, 0.0  ;;  %vm3429_vm13 = vcmp.eq.s32.totalorder %v5687_v51, %v8261_v28  ;;  %vm3533_vm14 = vcmp.eq.s32.totalorder %v5687_v51, %v8267_v37 }
 0x2b2   : > { %v4041_v43 = vadd.f32 %v4009_v11, %v3937_v5  ;;  %v3465_v0 = vsel %vm3429_vm13, %v8264_v42, 0.0  ;;  %v3569_v26 = vsel %vm3533_vm14, %v8270_v46, 0.0  ;;  %vm3637_vm15 = vcmp.eq.s32.totalorder %v5687_v51, %v8273_v27 }
 0x2b3   : > { %5189 = vmatpush3.msra.mxu0 %v3690_v45  ;;  %v3497_v21 = vadd.f32 %v3465_v0, %v3393_v13  ;;  %v3673_v1 = vsel %vm3637_vm15, %v8281_v50, 0.0  ;;  %vm3812_vm0 = vcmp.eq.s32.totalorder %v5687_v51, %v8293_v6  ;;  %vm3884_vm1 = vcmp.eq.s32.totalorder %v5687_v51, %v8299_v19 }
 0x2b4   : > { %v4145_v36 = vadd.f32 %v4113_v38, %v4041_v43  ;;  %v3848_v8 = vsel %vm3812_vm0, %v8296_v61, 0.0  ;;  %v3920_v52 = vsel %vm3884_vm1, %v8302_v2, 0.0  ;;  %vm3988_vm2 = vcmp.eq.s32.totalorder %v5687_v51, %v8305_v9 }
 0x2b5   : > { %v3601_v41 = vadd.f32 %v3569_v26, %v3497_v21  ;;  %v3952_v18 = vadd.f32 %v3920_v52, %v3848_v8  ;;  %v4024_v56 = vsel %vm3988_vm2, %v8310_v54, 0.0  ;;  %vm4092_vm3 = vcmp.eq.s32.totalorder %v5687_v51, %v8313_v10 }
 0x2b6   : > { %5224 = vmatpush3.msra.mxu1 %v4145_v36  ;;  %v4128_v62 = vsel %vm4092_vm3, %v8322_v60, 0.0  ;;  %vm3341_vm4 = vcmp.eq.s32.totalorder %v5692_v55, %v8255_v40  ;;  %vm3413_vm5 = vcmp.eq.s32.totalorder %v5692_v55, %v8261_v28  ;;  %vm3517_vm6 = vcmp.eq.s32.totalorder %v5692_v55, %v8267_v37 }
 0x2b7   : > { %v3705_v63 = vadd.f32 %v3673_v1, %v3601_v41  ;;  %v4056_v4 = vadd.f32 %v4024_v56, %v3952_v18  ;;  %v3377_v5 = vsel %vm3341_vm4, %v8258_v35, 0.0  ;;  %v3449_v11 = vsel %vm3413_vm5, %v8264_v42, 0.0 }
 0x2b8   : > { %v3481_v38 = vadd.f32 %v3449_v11, %v3377_v5  ;;  %v3553_v45 = vsel %vm3517_vm6, %v8270_v46, 0.0  ;;  %vm3621_vm7 = vcmp.eq.s32.totalorder %v5692_v55, %v8273_v27  ;;  %vm3796_vm8 = vcmp.eq.s32.totalorder %v5692_v55, %v8293_v6 }
 0x2b9   : > { %5190 = vmatprep.subr.mxu0 %v3705_v63  ;;  %v4160_v13 = vadd.f32 %v4128_v62, %v4056_v4  ;;  %v3657_v43 = vsel %vm3621_vm7, %v8281_v50, 0.0  ;;  %v3832_v0 = vsel %vm3796_vm8, %v8296_v61, 0.0  ;;  %vm3868_vm9 = vcmp.eq.s32.totalorder %v5692_v55, %v8299_v19 }
 0x2ba   : > { %v3585_v26 = vadd.f32 %v3553_v45, %v3481_v38  ;;  %v3904_v21 = vsel %vm3868_vm9, %v8302_v2, 0.0  ;;  %vm3972_vm10 = vcmp.eq.s32.totalorder %v5692_v55, %v8305_v9  ;;  %vm4076_vm11 = vcmp.eq.s32.totalorder %v5692_v55, %v8313_v10 }
 0x2bb   : > { %5225 = vmatprep.subr.mxu1 %v4160_v13  ;;  %v3936_v1 = vadd.f32 %v3904_v21, %v3832_v0  ;;  %v4008_v36 = vsel %vm3972_vm10, %v8310_v54, 0.0  ;;  %v4112_v8 = vsel %vm4076_vm11, %v8322_v60, 0.0  ;;  %vm3356_vm12 = vcmp.eq.s32.totalorder %v5697_v58, %v8255_v40 }
 0x2bc   : > { %v3689_v52 = vadd.f32 %v3657_v43, %v3585_v26  ;;  %v3392_v41 = vsel %vm3356_vm12, %v8258_v35, 0.0  ;;  %vm3428_vm13 = vcmp.eq.s32.totalorder %v5697_v58, %v8261_v28  ;;  %vm3532_vm14 = vcmp.eq.s32.totalorder %v5697_v58, %v8267_v37 }
 0x2bd   : > { %v4040_v18 = vadd.f32 %v4008_v36, %v3936_v1  ;;  %v3464_v56 = vsel %vm3428_vm13, %v8264_v42, 0.0  ;;  %v3568_v62 = vsel %vm3532_vm14, %v8270_v46, 0.0  ;;  %vm3636_vm15 = vcmp.eq.s32.totalorder %v5697_v58, %v8273_v27 }
 0x2be   : > { %5191 = vmatpush3.msra.mxu0 %v3689_v52  ;;  %v3496_v63 = vadd.f32 %v3464_v56, %v3392_v41  ;;  %v3672_v4 = vsel %vm3636_vm15, %v8281_v50, 0.0  ;;  %vm3811_vm0 = vcmp.eq.s32.totalorder %v5697_v58, %v8293_v6  ;;  %vm3883_vm1 = vcmp.eq.s32.totalorder %v5697_v58, %v8299_v19 }
 0x2bf   : > { %v4144_v5 = vadd.f32 %v4112_v8, %v4040_v18  ;;  %v3847_v11 = vsel %vm3811_vm0, %v8296_v61, 0.0  ;;  %v3919_v38 = vsel %vm3883_vm1, %v8302_v2, 0.0  ;;  %vm3987_vm2 = vcmp.eq.s32.totalorder %v5697_v58, %v8305_v9 }
 0x2c0   : > { %v3600_v45 = vadd.f32 %v3568_v62, %v3496_v63  ;;  %v3951_v13 = vadd.f32 %v3919_v38, %v3847_v11  ;;  %v4023_v43 = vsel %vm3987_vm2, %v8310_v54, 0.0  ;;  %vm4091_vm3 = vcmp.eq.s32.totalorder %v5697_v58, %v8313_v10 }
 0x2c1   : > { %5226 = vmatpush3.msra.mxu1 %v4144_v5  ;;  %v4127_v0 = vsel %vm4091_vm3, %v8322_v60, 0.0  ;;  %vm3340_vm4 = vcmp.eq.s32.totalorder %v5700_v59, %v8255_v40  ;;  %vm3412_vm5 = vcmp.eq.s32.totalorder %v5700_v59, %v8261_v28  ;;  %vm3516_vm6 = vcmp.eq.s32.totalorder %v5700_v59, %v8267_v37 }
 0x2c2   : > { %v3704_v26 = vadd.f32 %v3672_v4, %v3600_v45  ;;  %v4055_v21 = vadd.f32 %v4023_v43, %v3951_v13  ;;  %v3376_v1 = vsel %vm3340_vm4, %v8258_v35, 0.0  ;;  %v3448_v36 = vsel %vm3412_vm5, %v8264_v42, 0.0 }
 0x2c3   : > { %v3480_v8 = vadd.f32 %v3448_v36, %v3376_v1  ;;  %v3552_v52 = vsel %vm3516_vm6, %v8270_v46, 0.0  ;;  %vm3620_vm7 = vcmp.eq.s32.totalorder %v5700_v59, %v8273_v27  ;;  %vm3795_vm8 = vcmp.eq.s32.totalorder %v5700_v59, %v8293_v6 }
 0x2c4   : > { %5192 = vmatprep.subr.mxu0 %v3704_v26  ;;  %v4159_v41 = vadd.f32 %v4127_v0, %v4055_v21  ;;  %v3656_v18 = vsel %vm3620_vm7, %v8281_v50, 0.0  ;;  %v3831_v56 = vsel %vm3795_vm8, %v8296_v61, 0.0  ;;  %vm3867_vm9 = vcmp.eq.s32.totalorder %v5700_v59, %v8299_v19 }
 0x2c5   : > { %v3584_v62 = vadd.f32 %v3552_v52, %v3480_v8  ;;  %v3903_v63 = vsel %vm3867_vm9, %v8302_v2, 0.0  ;;  %vm3971_vm10 = vcmp.eq.s32.totalorder %v5700_v59, %v8305_v9  ;;  %vm4075_vm11 = vcmp.eq.s32.totalorder %v5700_v59, %v8313_v10 }
 0x2c6   : > { %5227 = vmatprep.subr.mxu1 %v4159_v41  ;;  %v3935_v4 = vadd.f32 %v3903_v63, %v3831_v56  ;;  %v4007_v5 = vsel %vm3971_vm10, %v8310_v54, 0.0  ;;  %v4111_v11 = vsel %vm4075_vm11, %v8322_v60, 0.0  ;;  %vm3355_vm12 = vcmp.eq.s32.totalorder %v6165_v44, %v8255_v40 }
 0x2c7   : > { %v3688_v38 = vadd.f32 %v3656_v18, %v3584_v62  ;;  %v3391_v45 = vsel %vm3355_vm12, %v8258_v35, 0.0  ;;  %vm3427_vm13 = vcmp.eq.s32.totalorder %v6165_v44, %v8261_v28  ;;  %vm3531_vm14 = vcmp.eq.s32.totalorder %v6165_v44, %v8267_v37 }
 0x2c8   : > { %v4039_v13 = vadd.f32 %v4007_v5, %v3935_v4  ;;  %v3463_v43 = vsel %vm3427_vm13, %v8264_v42, 0.0  ;;  %v3567_v0 = vsel %vm3531_vm14, %v8270_v46, 0.0  ;;  %vm3635_vm15 = vcmp.eq.s32.totalorder %v6165_v44, %v8273_v27 }
 0x2c9   : > { %5193 = vmatpush3.msra.mxu0 %v3688_v38  ;;  %v3495_v26 = vadd.f32 %v3463_v43, %v3391_v45  ;;  %v3671_v21 = vsel %vm3635_vm15, %v8281_v50, 0.0  ;;  %vm3810_vm0 = vcmp.eq.s32.totalorder %v6165_v44, %v8293_v6  ;;  %vm3882_vm1 = vcmp.eq.s32.totalorder %v6165_v44, %v8299_v19 }
 0x2ca   : > { %v4143_v1 = vadd.f32 %v4111_v11, %v4039_v13  ;;  %v3846_v36 = vsel %vm3810_vm0, %v8296_v61, 0.0  ;;  %v3918_v8 = vsel %vm3882_vm1, %v8302_v2, 0.0  ;;  %vm3986_vm2 = vcmp.eq.s32.totalorder %v6165_v44, %v8305_v9 }
 0x2cb   : > { %v3599_v52 = vadd.f32 %v3567_v0, %v3495_v26  ;;  %v3950_v41 = vadd.f32 %v3918_v8, %v3846_v36  ;;  %v4022_v18 = vsel %vm3986_vm2, %v8310_v54, 0.0  ;;  %vm4090_vm3 = vcmp.eq.s32.totalorder %v6165_v44, %v8313_v10 }
 0x2cc   : > { %5228 = vmatpush3.msra.mxu1 %v4143_v1  ;;  %v4126_v56 = vsel %vm4090_vm3, %v8322_v60, 0.0  ;;  %vm3339_vm4 = vcmp.eq.s32.totalorder %v6169_v48, %v8255_v40  ;;  %vm3411_vm5 = vcmp.eq.s32.totalorder %v6169_v48, %v8261_v28  ;;  %vm3515_vm6 = vcmp.eq.s32.totalorder %v6169_v48, %v8267_v37 }
 0x2cd   : > { %v3703_v62 = vadd.f32 %v3671_v21, %v3599_v52  ;;  %v4054_v63 = vadd.f32 %v4022_v18, %v3950_v41  ;;  %v3375_v4 = vsel %vm3339_vm4, %v8258_v35, 0.0  ;;  %v3447_v5 = vsel %vm3411_vm5, %v8264_v42, 0.0 }
 0x2ce   : > { %v3479_v11 = vadd.f32 %v3447_v5, %v3375_v4  ;;  %v3551_v38 = vsel %vm3515_vm6, %v8270_v46, 0.0  ;;  %vm3619_vm7 = vcmp.eq.s32.totalorder %v6169_v48, %v8273_v27  ;;  %vm3794_vm8 = vcmp.eq.s32.totalorder %v6169_v48, %v8293_v6 }
 0x2cf   : > { %5194 = vmatprep.subr.mxu0 %v3703_v62  ;;  %v4158_v45 = vadd.f32 %v4126_v56, %v4054_v63  ;;  %v3655_v13 = vsel %vm3619_vm7, %v8281_v50, 0.0  ;;  %v3830_v43 = vsel %vm3794_vm8, %v8296_v61, 0.0  ;;  %vm3866_vm9 = vcmp.eq.s32.totalorder %v6169_v48, %v8299_v19 }
 0x2d0   : > { %v3583_v0 = vadd.f32 %v3551_v38, %v3479_v11  ;;  %v3902_v26 = vsel %vm3866_vm9, %v8302_v2, 0.0  ;;  %vm3970_vm10 = vcmp.eq.s32.totalorder %v6169_v48, %v8305_v9  ;;  %vm4074_vm11 = vcmp.eq.s32.totalorder %v6169_v48, %v8313_v10 }
 0x2d1   : > { %5229 = vmatprep.subr.mxu1 %v4158_v45  ;;  %v3934_v21 = vadd.f32 %v3902_v26, %v3830_v43  ;;  %v4006_v1 = vsel %vm3970_vm10, %v8310_v54, 0.0  ;;  %v4110_v36 = vsel %vm4074_vm11, %v8322_v60, 0.0  ;;  %vm3354_vm12 = vcmp.eq.s32.totalorder %v6172_v14, %v8255_v40 }
 0x2d2   : > { %v3687_v8 = vadd.f32 %v3655_v13, %v3583_v0  ;;  %v3390_v52 = vsel %vm3354_vm12, %v8258_v35, 0.0  ;;  %vm3426_vm13 = vcmp.eq.s32.totalorder %v6172_v14, %v8261_v28  ;;  %vm3530_vm14 = vcmp.eq.s32.totalorder %v6172_v14, %v8267_v37 }
 0x2d3   : > { %v4038_v41 = vadd.f32 %v4006_v1, %v3934_v21  ;;  %v3462_v18 = vsel %vm3426_vm13, %v8264_v42, 0.0  ;;  %v3566_v56 = vsel %vm3530_vm14, %v8270_v46, 0.0  ;;  %vm3634_vm15 = vcmp.eq.s32.totalorder %v6172_v14, %v8273_v27 }
 0x2d4   : > { %5195 = vmatpush3.msra.mxu0 %v3687_v8  ;;  %v3494_v62 = vadd.f32 %v3462_v18, %v3390_v52  ;;  %v3670_v63 = vsel %vm3634_vm15, %v8281_v50, 0.0  ;;  %vm3809_vm0 = vcmp.eq.s32.totalorder %v6172_v14, %v8293_v6  ;;  %vm3881_vm1 = vcmp.eq.s32.totalorder %v6172_v14, %v8299_v19 }
 0x2d5   : > { %v4142_v4 = vadd.f32 %v4110_v36, %v4038_v41  ;;  %v3845_v5 = vsel %vm3809_vm0, %v8296_v61, 0.0  ;;  %v3917_v11 = vsel %vm3881_vm1, %v8302_v2, 0.0  ;;  %vm3985_vm2 = vcmp.eq.s32.totalorder %v6172_v14, %v8305_v9 }
 0x2d6   : > { %v3598_v38 = vadd.f32 %v3566_v56, %v3494_v62  ;;  %v3949_v45 = vadd.f32 %v3917_v11, %v3845_v5  ;;  %v4021_v13 = vsel %vm3985_vm2, %v8310_v54, 0.0  ;;  %vm4089_vm3 = vcmp.eq.s32.totalorder %v6172_v14, %v8313_v10 }
 0x2d7   : > { %5230 = vmatpush3.msra.mxu1 %v4142_v4  ;;  %v4125_v43 = vsel %vm4089_vm3, %v8322_v60, 0.0  ;;  %vm3338_vm4 = vcmp.eq.s32.totalorder %v6245_v53, %v8255_v40  ;;  %vm3410_vm5 = vcmp.eq.s32.totalorder %v6245_v53, %v8261_v28  ;;  %vm3514_vm6 = vcmp.eq.s32.totalorder %v6245_v53, %v8267_v37 }
 0x2d8   : > { %v3702_v0 = vadd.f32 %v3670_v63, %v3598_v38  ;;  %v4053_v26 = vadd.f32 %v4021_v13, %v3949_v45  ;;  %v3374_v21 = vsel %vm3338_vm4, %v8258_v35, 0.0  ;;  %v3446_v1 = vsel %vm3410_vm5, %v8264_v42, 0.0 }
 0x2d9   : > { %v3478_v36 = vadd.f32 %v3446_v1, %v3374_v21  ;;  %v3550_v8 = vsel %vm3514_vm6, %v8270_v46, 0.0  ;;  %vm3618_vm7 = vcmp.eq.s32.totalorder %v6245_v53, %v8273_v27  ;;  %vm3793_vm8 = vcmp.eq.s32.totalorder %v6245_v53, %v8293_v6 }
 0x2da   : > { %5196 = vmatprep.subr.mxu0 %v3702_v0  ;;  %v4157_v52 = vadd.f32 %v4125_v43, %v4053_v26  ;;  %v3654_v41 = vsel %vm3618_vm7, %v8281_v50, 0.0  ;;  %v3829_v18 = vsel %vm3793_vm8, %v8296_v61, 0.0  ;;  %vm3865_vm9 = vcmp.eq.s32.totalorder %v6245_v53, %v8299_v19 }
 0x2db   : > { %v3582_v56 = vadd.f32 %v3550_v8, %v3478_v36  ;;  %v3901_v62 = vsel %vm3865_vm9, %v8302_v2, 0.0  ;;  %vm3969_vm10 = vcmp.eq.s32.totalorder %v6245_v53, %v8305_v9  ;;  %vm4073_vm11 = vcmp.eq.s32.totalorder %v6245_v53, %v8313_v10 }
 0x2dc   : > { %5231 = vmatprep.subr.mxu1 %v4157_v52  ;;  %v3933_v63 = vadd.f32 %v3901_v62, %v3829_v18  ;;  %v4005_v4 = vsel %vm3969_vm10, %v8310_v54, 0.0  ;;  %v4109_v5 = vsel %vm4073_vm11, %v8322_v60, 0.0  ;;  %vm3353_vm12 = vcmp.eq.s32.totalorder %v6250_v20, %v8255_v40 }
 0x2dd   : > { %v3686_v11 = vadd.f32 %v3654_v41, %v3582_v56  ;;  %v3389_v38 = vsel %vm3353_vm12, %v8258_v35, 0.0  ;;  %vm3425_vm13 = vcmp.eq.s32.totalorder %v6250_v20, %v8261_v28  ;;  %vm3529_vm14 = vcmp.eq.s32.totalorder %v6250_v20, %v8267_v37 }
 0x2de   : > { %v4037_v45 = vadd.f32 %v4005_v4, %v3933_v63  ;;  %v3461_v13 = vsel %vm3425_vm13, %v8264_v42, 0.0  ;;  %v3565_v43 = vsel %vm3529_vm14, %v8270_v46, 0.0  ;;  %vm3633_vm15 = vcmp.eq.s32.totalorder %v6250_v20, %v8273_v27 }
 0x2df   : > { %5197 = vmatpush3.msra.mxu0 %v3686_v11  ;;  %v3493_v0 = vadd.f32 %v3461_v13, %v3389_v38  ;;  %v3669_v26 = vsel %vm3633_vm15, %v8281_v50, 0.0  ;;  %vm3808_vm0 = vcmp.eq.s32.totalorder %v6250_v20, %v8293_v6  ;;  %vm3880_vm1 = vcmp.eq.s32.totalorder %v6250_v20, %v8299_v19 }
 0x2e0   : > { %v4141_v21 = vadd.f32 %v4109_v5, %v4037_v45  ;;  %v3844_v1 = vsel %vm3808_vm0, %v8296_v61, 0.0  ;;  %v3916_v36 = vsel %vm3880_vm1, %v8302_v2, 0.0  ;;  %vm3984_vm2 = vcmp.eq.s32.totalorder %v6250_v20, %v8305_v9 }
 0x2e1   : > { %v3597_v8 = vadd.f32 %v3565_v43, %v3493_v0  ;;  %v3948_v52 = vadd.f32 %v3916_v36, %v3844_v1  ;;  %v4020_v41 = vsel %vm3984_vm2, %v8310_v54, 0.0  ;;  %vm4088_vm3 = vcmp.eq.s32.totalorder %v6250_v20, %v8313_v10  ;;  %v9638_v36 = vld [vmem:[#allocation13_spill] sm:$0xff] }
 0x2e2   : > { %5232 = vmatpush3.msra.mxu1 %v4141_v21  ;;  %v4124_v18 = vsel %vm4088_vm3, %v8322_v60, 0.0  ;;  %vm3337_vm4 = vcmp.eq.s32.totalorder %v6300_v49, %v8255_v40  ;;  %vm3409_vm5 = vcmp.eq.s32.totalorder %v6300_v49, %v8261_v28  ;;  %vm3513_vm6 = vcmp.eq.s32.totalorder %v6300_v49, %v8267_v37 }
 0x2e3   : > { %v3701_v56 = vadd.f32 %v3669_v26, %v3597_v8  ;;  %v4052_v62 = vadd.f32 %v4020_v41, %v3948_v52  ;;  %v3373_v63 = vsel %vm3337_vm4, %v8258_v35, 0.0  ;;  %v3445_v4 = vsel %vm3409_vm5, %v8264_v42, 0.0 }
 0x2e4   : > { %v3477_v5 = vadd.f32 %v3445_v4, %v3373_v63  ;;  %v3549_v11 = vsel %vm3513_vm6, %v8270_v46, 0.0  ;;  %vm3617_vm7 = vcmp.eq.s32.totalorder %v6300_v49, %v8273_v27  ;;  %vm3792_vm8 = vcmp.eq.s32.totalorder %v6300_v49, %v8293_v6 }
 0x2e5   : > { %5198 = vmatprep.subr.mxu0 %v3701_v56  ;;  %v4156_v38 = vadd.f32 %v4124_v18, %v4052_v62  ;;  %v3653_v45 = vsel %vm3617_vm7, %v8281_v50, 0.0  ;;  %v3828_v13 = vsel %vm3792_vm8, %v8296_v61, 0.0  ;;  %vm3864_vm9 = vcmp.eq.s32.totalorder %v6300_v49, %v8299_v19 }
 0x2e6   : > { %v3581_v43 = vadd.f32 %v3549_v11, %v3477_v5  ;;  %v3900_v0 = vsel %vm3864_vm9, %v8302_v2, 0.0  ;;  %vm3968_vm10 = vcmp.eq.s32.totalorder %v6300_v49, %v8305_v9  ;;  %vm4072_vm11 = vcmp.eq.s32.totalorder %v6300_v49, %v8313_v10 }
 0x2e7   : > { %5233 = vmatprep.subr.mxu1 %v4156_v38  ;;  %v3932_v26 = vadd.f32 %v3900_v0, %v3828_v13  ;;  %v4004_v21 = vsel %vm3968_vm10, %v8310_v54, 0.0  ;;  %v4108_v1 = vsel %vm4072_vm11, %v8322_v60, 0.0  ;;  %vm3352_vm12 = vcmp.eq.s32.totalorder %v9638_v36, %v8255_v40  ;;  %v9639_v0 = vld [vmem:[#allocation14_spill] sm:$0xff] }
 0x2e8   : > { %v3685_v8 = vadd.f32 %v3653_v45, %v3581_v43  ;;  %v3388_v52 = vsel %vm3352_vm12, %v8258_v35, 0.0  ;;  %vm3424_vm13 = vcmp.eq.s32.totalorder %v9638_v36, %v8261_v28  ;;  %vm3528_vm14 = vcmp.eq.s32.totalorder %v9638_v36, %v8267_v37 }
 0x2e9   : > { %v4036_v41 = vadd.f32 %v4004_v21, %v3932_v26  ;;  %v3460_v18 = vsel %vm3424_vm13, %v8264_v42, 0.0  ;;  %v3564_v56 = vsel %vm3528_vm14, %v8270_v46, 0.0  ;;  %vm3632_vm15 = vcmp.eq.s32.totalorder %v9638_v36, %v8273_v27 }
 0x2ea   : > { %5199 = vmatpush3.msra.mxu0 %v3685_v8  ;;  %v3492_v62 = vadd.f32 %v3460_v18, %v3388_v52  ;;  %v3668_v63 = vsel %vm3632_vm15, %v8281_v50, 0.0  ;;  %vm3807_vm0 = vcmp.eq.s32.totalorder %v9638_v36, %v8293_v6  ;;  %vm3879_vm1 = vcmp.eq.s32.totalorder %v9638_v36, %v8299_v19 }
 0x2eb   : > { %v4140_v4 = vadd.f32 %v4108_v1, %v4036_v41  ;;  %v3843_v5 = vsel %vm3807_vm0, %v8296_v61, 0.0  ;;  %v3915_v11 = vsel %vm3879_vm1, %v8302_v2, 0.0  ;;  %vm3983_vm2 = vcmp.eq.s32.totalorder %v9638_v36, %v8305_v9 }
 0x2ec   : > { %v3596_v38 = vadd.f32 %v3564_v56, %v3492_v62  ;;  %v3947_v45 = vadd.f32 %v3915_v11, %v3843_v5  ;;  %v4019_v13 = vsel %vm3983_vm2, %v8310_v54, 0.0  ;;  %vm4087_vm3 = vcmp.eq.s32.totalorder %v9638_v36, %v8313_v10 }
 0x2ed   : > { %5234 = vmatpush3.msra.mxu1 %v4140_v4  ;;  %v4123_v43 = vsel %vm4087_vm3, %v8322_v60, 0.0  ;;  %vm3336_vm4 = vcmp.eq.s32.totalorder %v9639_v0, %v8255_v40  ;;  %vm3408_vm5 = vcmp.eq.s32.totalorder %v9639_v0, %v8261_v28  ;;  %vm3512_vm6 = vcmp.eq.s32.totalorder %v9639_v0, %v8267_v37 }
 0x2ee   : > { %v3700_v26 = vadd.f32 %v3668_v63, %v3596_v38  ;;  %v4051_v21 = vadd.f32 %v4019_v13, %v3947_v45  ;;  %v3372_v1 = vsel %vm3336_vm4, %v8258_v35, 0.0  ;;  %v3444_v8 = vsel %vm3408_vm5, %v8264_v42, 0.0  ;;  %v9640_v45 = vld [vmem:[#allocation15_spill] sm:$0xff] }
 0x2ef   : > { %v3476_v52 = vadd.f32 %v3444_v8, %v3372_v1  ;;  %v3548_v41 = vsel %vm3512_vm6, %v8270_v46, 0.0  ;;  %vm3616_vm7 = vcmp.eq.s32.totalorder %v9639_v0, %v8273_v27  ;;  %vm3791_vm8 = vcmp.eq.s32.totalorder %v9639_v0, %v8293_v6 }
 0x2f0   : > { %5200 = vmatprep.subr.mxu0 %v3700_v26  ;;  %v4155_v18 = vadd.f32 %v4123_v43, %v4051_v21  ;;  %v3652_v56 = vsel %vm3616_vm7, %v8281_v50, 0.0  ;;  %v3827_v62 = vsel %vm3791_vm8, %v8296_v61, 0.0  ;;  %vm3863_vm9 = vcmp.eq.s32.totalorder %v9639_v0, %v8299_v19 }
 0x2f1   : > { %v3580_v63 = vadd.f32 %v3548_v41, %v3476_v52  ;;  %v3899_v4 = vsel %vm3863_vm9, %v8302_v2, 0.0  ;;  %vm3967_vm10 = vcmp.eq.s32.totalorder %v9639_v0, %v8305_v9  ;;  %vm4071_vm11 = vcmp.eq.s32.totalorder %v9639_v0, %v8313_v10 }
 0x2f2   : > { %5235 = vmatprep.subr.mxu1 %v4155_v18  ;;  %v3931_v5 = vadd.f32 %v3899_v4, %v3827_v62  ;;  %v4003_v11 = vsel %vm3967_vm10, %v8310_v54, 0.0  ;;  %v4107_v38 = vsel %vm4071_vm11, %v8322_v60, 0.0  ;;  %vm3351_vm12 = vcmp.eq.s32.totalorder %v9640_v45, %v8255_v40 }
 0x2f3   : > { %v3684_v13 = vadd.f32 %v3652_v56, %v3580_v63  ;;  %v3387_v43 = vsel %vm3351_vm12, %v8258_v35, 0.0  ;;  %vm3423_vm13 = vcmp.eq.s32.totalorder %v9640_v45, %v8261_v28  ;;  %vm3527_vm14 = vcmp.eq.s32.totalorder %v9640_v45, %v8267_v37 }
 0x2f4   : > { %v4035_v26 = vadd.f32 %v4003_v11, %v3931_v5  ;;  %v3459_v21 = vsel %vm3423_vm13, %v8264_v42, 0.0  ;;  %v3563_v1 = vsel %vm3527_vm14, %v8270_v46, 0.0  ;;  %vm3631_vm15 = vcmp.eq.s32.totalorder %v9640_v45, %v8273_v27 }
 0x2f5   : > { %5201 = vmatpush3.msra.mxu0 %v3684_v13  ;;  %v3491_v8 = vadd.f32 %v3459_v21, %v3387_v43  ;;  %v3667_v52 = vsel %vm3631_vm15, %v8281_v50, 0.0  ;;  %vm3806_vm0 = vcmp.eq.s32.totalorder %v9640_v45, %v8293_v6  ;;  %vm3878_vm1 = vcmp.eq.s32.totalorder %v9640_v45, %v8299_v19 }
 0x2f6   : > { %v4139_v41 = vadd.f32 %v4107_v38, %v4035_v26  ;;  %v3842_v18 = vsel %vm3806_vm0, %v8296_v61, 0.0  ;;  %v3914_v56 = vsel %vm3878_vm1, %v8302_v2, 0.0  ;;  %vm3982_vm2 = vcmp.eq.s32.totalorder %v9640_v45, %v8305_v9 }
 0x2f7   : > { %v3595_v62 = vadd.f32 %v3563_v1, %v3491_v8  ;;  %v3946_v63 = vadd.f32 %v3914_v56, %v3842_v18  ;;  %v4018_v4 = vsel %vm3982_vm2, %v8310_v54, 0.0  ;;  %vm4086_vm3 = vcmp.eq.s32.totalorder %v9640_v45, %v8313_v10 }
 0x2f8   : > { %5236 = vmatpush3.msra.mxu1 %v4139_v41  ;;  %v4122_v5 = vsel %vm4086_vm3, %v8322_v60, 0.0  ;;  %vm3335_vm4 = vcmp.eq.s32.totalorder %v9634_v39, %v8255_v40  ;;  %vm3407_vm5 = vcmp.eq.s32.totalorder %v9634_v39, %v8261_v28  ;;  %vm3511_vm6 = vcmp.eq.s32.totalorder %v9634_v39, %v8267_v37 }
 0x2f9   : > { %v3699_v11 = vadd.f32 %v3667_v52, %v3595_v62  ;;  %v4050_v38 = vadd.f32 %v4018_v4, %v3946_v63  ;;  %v3371_v13 = vsel %vm3335_vm4, %v8258_v35, 0.0  ;;  %v3443_v43 = vsel %vm3407_vm5, %v8264_v42, 0.0 }
 0x2fa   : > { %v3475_v26 = vadd.f32 %v3443_v43, %v3371_v13  ;;  %v3547_v21 = vsel %vm3511_vm6, %v8270_v46, 0.0  ;;  %vm3615_vm7 = vcmp.eq.s32.totalorder %v9634_v39, %v8273_v27  ;;  %vm3790_vm8 = vcmp.eq.s32.totalorder %v9634_v39, %v8293_v6 }
 0x2fb   : > { %5202 = vmatprep.subr.mxu0 %v3699_v11  ;;  %v4154_v1 = vadd.f32 %v4122_v5, %v4050_v38  ;;  %v3651_v8 = vsel %vm3615_vm7, %v8281_v50, 0.0  ;;  %v3826_v52 = vsel %vm3790_vm8, %v8296_v61, 0.0  ;;  %vm3862_vm9 = vcmp.eq.s32.totalorder %v9634_v39, %v8299_v19 }
 0x2fc   : > { %v3579_v41 = vadd.f32 %v3547_v21, %v3475_v26  ;;  %v3898_v18 = vsel %vm3862_vm9, %v8302_v2, 0.0  ;;  %vm3966_vm10 = vcmp.eq.s32.totalorder %v9634_v39, %v8305_v9  ;;  %vm4070_vm11 = vcmp.eq.s32.totalorder %v9634_v39, %v8313_v10 }
 0x2fd   : > { %5237 = vmatprep.subr.mxu1 %v4154_v1  ;;  %v3930_v56 = vadd.f32 %v3898_v18, %v3826_v52  ;;  %v4002_v62 = vsel %vm3966_vm10, %v8310_v54, 0.0  ;;  %v4106_v63 = vsel %vm4070_vm11, %v8322_v60, 0.0  ;;  %vm3350_vm12 = vcmp.eq.s32.totalorder %v9628_v3, %v8255_v40 }
 0x2fe   : > { %v3683_v4 = vadd.f32 %v3651_v8, %v3579_v41  ;;  %v3386_v5 = vsel %vm3350_vm12, %v8258_v35, 0.0  ;;  %vm3422_vm13 = vcmp.eq.s32.totalorder %v9628_v3, %v8261_v28  ;;  %vm3526_vm14 = vcmp.eq.s32.totalorder %v9628_v3, %v8267_v37 }
 0x2ff   : > { %v4034_v11 = vadd.f32 %v4002_v62, %v3930_v56  ;;  %v3458_v38 = vsel %vm3422_vm13, %v8264_v42, 0.0  ;;  %v3562_v13 = vsel %vm3526_vm14, %v8270_v46, 0.0  ;;  %vm3630_vm15 = vcmp.eq.s32.totalorder %v9628_v3, %v8273_v27  ;;  %v9641_v62 = vld [vmem:[#allocation18_spill] sm:$0xff] }
 0x300   : > { %5203 = vmatpush3.msra.mxu0 %v3683_v4  ;;  %v3490_v43 = vadd.f32 %v3458_v38, %v3386_v5  ;;  %v3666_v26 = vsel %vm3630_vm15, %v8281_v50, 0.0  ;;  %vm3805_vm0 = vcmp.eq.s32.totalorder %v9628_v3, %v8293_v6  ;;  %vm3877_vm1 = vcmp.eq.s32.totalorder %v9628_v3, %v8299_v19 }
 0x301   : > { %v4138_v21 = vadd.f32 %v4106_v63, %v4034_v11  ;;  %v3841_v1 = vsel %vm3805_vm0, %v8296_v61, 0.0  ;;  %v3913_v8 = vsel %vm3877_vm1, %v8302_v2, 0.0  ;;  %vm3981_vm2 = vcmp.eq.s32.totalorder %v9628_v3, %v8305_v9 }
 0x302   : > { %v3594_v52 = vadd.f32 %v3562_v13, %v3490_v43  ;;  %v3945_v41 = vadd.f32 %v3913_v8, %v3841_v1  ;;  %v4017_v18 = vsel %vm3981_vm2, %v8310_v54, 0.0  ;;  %vm4085_vm3 = vcmp.eq.s32.totalorder %v9628_v3, %v8313_v10 }
 0x303   : > { %5238 = vmatpush3.msra.mxu1 %v4138_v21  ;;  %v4121_v56 = vsel %vm4085_vm3, %v8322_v60, 0.0  ;;  %vm3334_vm4 = vcmp.eq.s32.totalorder %v9641_v62, %v8255_v40  ;;  %vm3406_vm5 = vcmp.eq.s32.totalorder %v9641_v62, %v8261_v28  ;;  %vm3510_vm6 = vcmp.eq.s32.totalorder %v9641_v62, %v8267_v37 }
 0x304   : > { %v3698_v63 = vadd.f32 %v3666_v26, %v3594_v52  ;;  %v4049_v4 = vadd.f32 %v4017_v18, %v3945_v41  ;;  %v3370_v5 = vsel %vm3334_vm4, %v8258_v35, 0.0  ;;  %v3442_v11 = vsel %vm3406_vm5, %v8264_v42, 0.0 }
 0x305   : > { %v3474_v38 = vadd.f32 %v3442_v11, %v3370_v5  ;;  %v3546_v13 = vsel %vm3510_vm6, %v8270_v46, 0.0  ;;  %vm3614_vm7 = vcmp.eq.s32.totalorder %v9641_v62, %v8273_v27  ;;  %vm3789_vm8 = vcmp.eq.s32.totalorder %v9641_v62, %v8293_v6 }
 0x306   : > { %5204 = vmatprep.subr.mxu0 %v3698_v63  ;;  %v4153_v43 = vadd.f32 %v4121_v56, %v4049_v4  ;;  %v3650_v21 = vsel %vm3614_vm7, %v8281_v50, 0.0  ;;  %v3825_v26 = vsel %vm3789_vm8, %v8296_v61, 0.0  ;;  %vm3861_vm9 = vcmp.eq.s32.totalorder %v9641_v62, %v8299_v19 }
 0x307   : > { %v3578_v1 = vadd.f32 %v3546_v13, %v3474_v38  ;;  %v3897_v8 = vsel %vm3861_vm9, %v8302_v2, 0.0  ;;  %vm3965_vm10 = vcmp.eq.s32.totalorder %v9641_v62, %v8305_v9  ;;  %vm4069_vm11 = vcmp.eq.s32.totalorder %v9641_v62, %v8313_v10 }
 0x308   : > { %5239 = vmatprep.subr.mxu1 %v4153_v43  ;;  %v3929_v52 = vadd.f32 %v3897_v8, %v3825_v26  ;;  %v4001_v41 = vsel %vm3965_vm10, %v8310_v54, 0.0  ;;  %v4105_v18 = vsel %vm4069_vm11, %v8322_v60, 0.0  ;;  %vm3349_vm12 = vcmp.eq.s32.totalorder %v9635_v30, %v8255_v40 }
 0x309   : > { %v3682_v56 = vadd.f32 %v3650_v21, %v3578_v1  ;;  %v3385_v63 = vsel %vm3349_vm12, %v8258_v35, 0.0  ;;  %vm3421_vm13 = vcmp.eq.s32.totalorder %v9635_v30, %v8261_v28  ;;  %vm3525_vm14 = vcmp.eq.s32.totalorder %v9635_v30, %v8267_v37 }
 0x30a   : > { %v4033_v4 = vadd.f32 %v4001_v41, %v3929_v52  ;;  %v3457_v5 = vsel %vm3421_vm13, %v8264_v42, 0.0  ;;  %v3561_v11 = vsel %vm3525_vm14, %v8270_v46, 0.0  ;;  %vm3629_vm15 = vcmp.eq.s32.totalorder %v9635_v30, %v8273_v27 }
 0x30b   : > { %5205 = vmatpush3.msra.mxu0 %v3682_v56  ;;  %v3489_v38 = vadd.f32 %v3457_v5, %v3385_v63  ;;  %v3665_v13 = vsel %vm3629_vm15, %v8281_v50, 0.0  ;;  %vm3804_vm0 = vcmp.eq.s32.totalorder %v9635_v30, %v8293_v6  ;;  %vm3876_vm1 = vcmp.eq.s32.totalorder %v9635_v30, %v8299_v19 }
 0x30c   : > { %v4137_v43 = vadd.f32 %v4105_v18, %v4033_v4  ;;  %v3840_v21 = vsel %vm3804_vm0, %v8296_v61, 0.0  ;;  %v3912_v26 = vsel %vm3876_vm1, %v8302_v2, 0.0  ;;  %vm3980_vm2 = vcmp.eq.s32.totalorder %v9635_v30, %v8305_v9 }
 0x30d   : > { %v3593_v1 = vadd.f32 %v3561_v11, %v3489_v38  ;;  %v3944_v8 = vadd.f32 %v3912_v26, %v3840_v21  ;;  %v4016_v52 = vsel %vm3980_vm2, %v8310_v54, 0.0  ;;  %vm4084_vm3 = vcmp.eq.s32.totalorder %v9635_v30, %v8313_v10 }
 0x30e   : > { %5240 = vmatpush3.msra.mxu1 %v4137_v43  ;;  %v4120_v41 = vsel %vm4084_vm3, %v8322_v60, 0.0  ;;  %vm3333_vm4 = vcmp.eq.s32.totalorder %v9629_v29, %v8255_v40  ;;  %vm3405_vm5 = vcmp.eq.s32.totalorder %v9629_v29, %v8261_v28  ;;  %vm3509_vm6 = vcmp.eq.s32.totalorder %v9629_v29, %v8267_v37 }
 0x30f   : > { %v3697_v18 = vadd.f32 %v3665_v13, %v3593_v1  ;;  %v4048_v56 = vadd.f32 %v4016_v52, %v3944_v8  ;;  %v3369_v63 = vsel %vm3333_vm4, %v8258_v35, 0.0  ;;  %v3441_v4 = vsel %vm3405_vm5, %v8264_v42, 0.0 }
 0x310   : > { %v3473_v5 = vadd.f32 %v3441_v4, %v3369_v63  ;;  %v3545_v11 = vsel %vm3509_vm6, %v8270_v46, 0.0  ;;  %vm3613_vm7 = vcmp.eq.s32.totalorder %v9629_v29, %v8273_v27  ;;  %vm3788_vm8 = vcmp.eq.s32.totalorder %v9629_v29, %v8293_v6  ;;  %v5035_v63 = vpop.f32.mrf.mxu1 }
 0x311   : > { %5206 = vmatprep.subr.mxu0 %v3697_v18  ;;  %v4152_v38 = vadd.f32 %v4120_v41, %v4048_v56  ;;  %v3649_v43 = vsel %vm3613_vm7, %v8281_v50, 0.0  ;;  %v3824_v13 = vsel %vm3788_vm8, %v8296_v61, 0.0  ;;  %vm3860_vm9 = vcmp.eq.s32.totalorder %v9629_v29, %v8299_v19  ;;  %v5000_v41 = vpop.f32.mrf.mxu0 }
 0x312   : > { %v3577_v21 = vadd.f32 %v3545_v11, %v3473_v5  ;;  %v3896_v26 = vsel %vm3860_vm9, %v8302_v2, 0.0  ;;  %vm3964_vm10 = vcmp.eq.s32.totalorder %v9629_v29, %v8305_v9  ;;  %vm4068_vm11 = vcmp.eq.s32.totalorder %v9629_v29, %v8313_v10 }
 0x313   : > { %5241 = vmatprep.subr.mxu1 %v4152_v38  ;;  %v3928_v1 = vadd.f32 %v3896_v26, %v3824_v13  ;;  %v4000_v8 = vsel %vm3964_vm10, %v8310_v54, 0.0  ;;  %v4104_v52 = vsel %vm4068_vm11, %v8322_v60, 0.0  ;;  %vm3348_vm12 = vcmp.eq.s32.totalorder %v6448_v57, %v8255_v40 }
 0x314   : > { %v3681_v18 = vadd.f32 %v3649_v43, %v3577_v21  ;;  %v3384_v56 = vsel %vm3348_vm12, %v8258_v35, 0.0  ;;  %vm3420_vm13 = vcmp.eq.s32.totalorder %v6448_v57, %v8261_v28  ;;  %vm3524_vm14 = vcmp.eq.s32.totalorder %v6448_v57, %v8267_v37 }
 0x315   : > { %v4032_v4 = vadd.f32 %v4000_v8, %v3928_v1  ;;  %v3456_v5 = vsel %vm3420_vm13, %v8264_v42, 0.0  ;;  %v3560_v11 = vsel %vm3524_vm14, %v8270_v46, 0.0  ;;  %vm3628_vm15 = vcmp.eq.s32.totalorder %v6448_v57, %v8273_v27  ;;  %v5001_v1 = vpop.f32.mrf.mxu0 }
 0x316   : > { %5207 = vmatpush3.msra.mxu0 %v3681_v18  ;;  %v3488_v38 = vadd.f32 %v3456_v5, %v3384_v56  ;;  %v3664_v43 = vsel %vm3628_vm15, %v8281_v50, 0.0  ;;  %vm3803_vm0 = vcmp.eq.s32.totalorder %v6448_v57, %v8293_v6  ;;  %vm3875_vm1 = vcmp.eq.s32.totalorder %v6448_v57, %v8299_v19  ;;  %v5036_v5 = vpop.f32.mrf.mxu1 }
 0x317   : > { %v4136_v13 = vadd.f32 %v4104_v52, %v4032_v4  ;;  %v3839_v21 = vsel %vm3803_vm0, %v8296_v61, 0.0  ;;  %v3911_v26 = vsel %vm3875_vm1, %v8302_v2, 0.0  ;;  %vm3979_vm2 = vcmp.eq.s32.totalorder %v6448_v57, %v8305_v9  ;;  %v5070_v4 = vpop.f32.mrf.mxu0 }
 0x318   : > { %v3592_v8 = vadd.f32 %v3560_v11, %v3488_v38  ;;  %v3943_v18 = vadd.f32 %v3911_v26, %v3839_v21  ;;  %v4015_v56 = vsel %vm3979_vm2, %v8310_v54, 0.0  ;;  %vm4083_vm3 = vcmp.eq.s32.totalorder %v6448_v57, %v8313_v10 }
 0x319   : > { %5242 = vmatpush3.msra.mxu1 %v4136_v13  ;;  %v4119_v52 = vsel %vm4083_vm3, %v8322_v60, 0.0  ;;  %vm3332_vm4 = vcmp.eq.s32.totalorder %v5629_v7, %v8255_v40  ;;  %vm3404_vm5 = vcmp.eq.s32.totalorder %v5629_v7, %v8261_v28  ;;  %vm3508_vm6 = vcmp.eq.s32.totalorder %v5629_v7, %v8267_v37  ;;  %v5105_v13 = vpop.f32.mrf.mxu1  ;;  %v455_v40 = vld [vmem:[%s394_s29 + $0x8] sm:$0x1]  ;;  %s4949_s29 = sshll.u32 %s5624_s10, 3 }
 0x31a   : > { %v3696_v11 = vadd.f32 %v3664_v43, %v3592_v8  ;;  %v4047_v38 = vadd.f32 %v4015_v56, %v3943_v18  ;;  %v3368_v21 = vsel %vm3332_vm4, %v8258_v35, 0.0  ;;  %v3440_v26 = vsel %vm3404_vm5, %v8264_v42, 0.0  ;;  %v457_v42 = vld [vmem:[%s401_s19 + $0x8] sm:$0x1]  ;;  %s4963_s19 = sshll.u32 %s5469_s25, 1  ;;  %s447_s14 = scalar_lea.vmem [#allocation6], %s4949_s29 }
 0x31b   : > { %v3472_v57 = vadd.f32 %v3440_v26, %v3368_v21  ;;  %v3544_v29 = vsel %vm3508_vm6, %v8270_v46, 0.0  ;;  %vm3612_vm7 = vcmp.eq.s32.totalorder %v5629_v7, %v8273_v27  ;;  %vm3787_vm8 = vcmp.eq.s32.totalorder %v5629_v7, %v8293_v6  ;;  %v5071_v27 = vpop.f32.mrf.mxu0  ;;  %v9078_v26 = vld [vmem:[%s6567_s20] sm:$0xff]  ;;  %s4800_s15 = sshll.u32 %s447_s14, 4  ;;  %s4801_s15 = int_to_ptr.vmem [resolvable:$true] %s4800_s15 }
 0x31c   : > { %5208 = vmatprep.subr.mxu0 %v3696_v11  ;;  %v4151_v28 = vadd.f32 %v4119_v52, %v4047_v38  ;;  %v3648_v37 = vsel %vm3612_vm7, %v8281_v50, 0.0  ;;  %v3823_v35 = vsel %vm3787_vm8, %v8296_v61, 0.0  ;;  %vm3859_vm9 = vcmp.eq.s32.totalorder %v5629_v7, %v8299_v19  ;;  %v5106_v19 = vpop.f32.mrf.mxu1  ;;  %s5389_s18 = scalar_lea.vmem %s4801_s15, 128 }
 0x31d   : > { %v3576_v46 = vadd.f32 %v3544_v29, %v3472_v57  ;;  %v3895_v43 = vsel %vm3859_vm9, %v8302_v2, 0.0  ;;  %vm3963_vm10 = vcmp.eq.s32.totalorder %v5629_v7, %v8305_v9  ;;  %vm4067_vm11 = vcmp.eq.s32.totalorder %v5629_v7, %v8313_v10  ;;  %p5390_p2 = scmp.ne.s32.totalorder %s4801_s15, %s5389_s18 }
 0x31e   : > { %5243 = vmatprep.subr.mxu1 %v4151_v28  ;;  %v3927_v6 = vadd.f32 %v3895_v43, %v3823_v35  ;;  %v3999_v50 = vsel %vm3963_vm10, %v8310_v54, 0.0  ;;  %v4103_v61 = vsel %vm4067_vm11, %v8322_v60, 0.0  ;;  %v461_v8 = vfloor.f32 %v455_v40  ;;  %v459_v43 = vld [vmem:[%s408_s9 + $0x8] sm:$0x1]  ;;  %s4796_s9 = sadd.s32 %s5465_s24, %s4963_s19  ;;  %s5486_s24 = smov [#allocation6]  }
 0x31f   : > { %v3680_v18 = vadd.f32 %v3648_v37, %v3576_v46  ;;  %v463_v57 = vfloor.f32 %v457_v42  ;;  %v5002_v29 = vadd.f32 %v5001_v1, %v5000_v41  ;;  %v5037_v2 = vadd.f32 %v5036_v5, %v5035_v63  ;;  %s4964_s13 = sshll.u32 %s4796_s9, 7  ;;  %p5391_p3 = pnand %p5390_p2, %p5582_p8 }
 0x320   : > { %v4031_v56 = vadd.f32 %v3999_v50, %v3927_v6  ;;  %v465_v52 = vsub.f32 %v455_v40, %v461_v8  ;;  %v5304_v9 = vtrunc.f32 %v461_v8  ;;  %v5072_v11 = vadd.f32 %v5071_v27, %v5070_v4  ;;  %s9516_s7 = scalar_lea.hbm %s9569_s6, %s4964_s13  ;;  %s5393_s25 = sshll.u32 %s5486_s24, 4  ;;  %s5394_s25 = int_to_ptr.vmem [resolvable:$false] %s5393_s25 }
 0x321   : > { %5209 = vmatpush3.msra.mxu0 %v3680_v18  ;;  %v467_v10 = vsub.f32 %v457_v42, %v463_v57  ;;  %v5308_v38 = vtrunc.f32 %v463_v57  ;;  %1052 = vst [vmem:[#allocation2] sm:$0xf] %v5002_v29  ;;  %1507 = vst [vmem:[#allocation2 + $0x4] sm:$0xf] %v5037_v2  ;;  %v5107_v21 = vadd.f32 %v5106_v19, %v5105_v13  ;;  %v9642_v37 = vmov 0.0   ;;  %p5392_p4 = pneg %p5391_p3  ;;  %s5395_s30 = scalar_lea.vmem %s5394_s25, 256 }
 0x322   : > { %v4135_v54 = vadd.f32 %v4103_v61, %v4031_v56  ;;  %3777 = vmatmul.mubr.f32.vlgmr.msra.gmra.mxu0 %v9078_v26  ;;  %v5305_v60 = vcvt.f32.s32 %v5304_v9  ;;  %v517_v28 = vsub.f32 1.0, %v465_v52  ;;  %1962 = vst [vmem:[#allocation2 + $0x8] sm:$0xf] %v5072_v11  ;;  %p5396_p5 = scmp.lt.s32.totalorder %s4801_s15, %s5394_s25  ;;  %p5397_p6 = scmp.lt.s32.totalorder %s5395_s30, %s5389_s18 }
 0x323   : > { %v5309_v41 = vcvt.f32.s32 %v5308_v38  ;;  %v519_v63 = vsub.f32 1.0, %v467_v10  ;;  %v545_v1 = vmul.f32 %v467_v10, %v465_v52  ;;  %4686 = vmatprep.mubr.f32.mxu0 %v9637_v34  ;;  %2417 = vst [vmem:[#allocation2 + $0xc] sm:$0xf] %v5107_v21  ;;  %v9643_v38 = vld [vmem:[#allocation11_spill] sm:$0xff] }
 0x324   : > { %5244 = vmatpush3.msra.mxu1 %v4135_v54  ;;  %v473_v5 = vadd.s32 1, %v5305_v60  ;;  %vm477_vm12 = vcmp.ge.s32.totalorder %v5305_v60, 0  ;;  %vm479_vm13 = vcmp.lt.s32.totalorder %v5305_v60, 16  ;;  %v529_v4 = vmul.f32 %v517_v28, %v467_v10  ;;  %p5398_p7 = por %p5397_p6, %p5396_p5 }
 0x325   : > { %4232 = vmatmul.mubr.f32.vlgmr.msra.gmra.mxu1 %v9078_v26  ;;  %v475_v13 = vadd.s32 1, %v5309_v41  ;;  %vm481_vm14 = vmand %vm477_vm12, %vm479_vm13  ;;  %vm497_vm15 = vcmp.ge.s32.totalorder %v5309_v41, 0  ;;  %vm499_vm0 = vcmp.lt.s32.totalorder %v5309_v41, 16  ;;  %v521_v40 = vmul.f32 %v519_v63, %v517_v28  ;;  %5289 = vmatprep.subr.mxu1 %v9642_v37 }
 0x326   : > { %v4953_v35 = vsel %vm481_vm14, 1.0, %v9642_v37  ;;  %vm487_vm1 = vcmp.ge.s32.totalorder %v473_v5, 0  ;;  %vm489_vm2 = vcmp.lt.s32.totalorder %v473_v5, 16  ;;  %vm501_vm3 = vmand %vm497_vm15, %vm499_vm0  ;;  %v537_v34 = vmul.f32 %v519_v63, %v465_v52  ;;  %p5399_p10 = pnand %p5398_p7, %p5392_p4 }
 0x327   : > { %vm491_vm4 = vmand %vm487_vm1, %vm489_vm2  ;;  %v4957_v42 = vsel %vm501_vm3, 1.0, %v9642_v37  ;;  %vm507_vm5 = vcmp.ge.s32.totalorder %v475_v13, 0  ;;  %vm509_vm6 = vcmp.lt.s32.totalorder %v475_v13, 16  ;;  %v523_v46 = vmul.f32 %v4953_v35, %v521_v40 }
 0x328   : > { %v4955_v27 = vsel %vm491_vm4, 1.0, %v9642_v37  ;;  %vm511_vm7 = vmand %vm507_vm5, %vm509_vm6  ;;  %v531_v6 = vmul.f32 %v4953_v35, %v529_v4  ;;  %v553_v50 = vmul.u32 16, %v5305_v60 }
 0x329   : > { %v4959_v61 = vsel %vm511_vm7, 1.0, %v9642_v37  ;;  %v525_v8 = vmul.f32 %v4957_v42, %v523_v46  ;;  %v539_v19 = vmul.f32 %v4955_v27, %v537_v34  ;;  %v547_v18 = vmul.f32 %v4955_v27, %v545_v1 }
 0x32a   : > { %v533_v57 = vmul.f32 %v4959_v61, %v531_v6  ;;  %v555_v29 = vadd.s32 %v5309_v41, %v553_v50 }
 0x32b   : > { %v527_v2 = vmul.f32 %v525_v8, %v459_v43  ;;  %v541_v56 = vmul.f32 %v4957_v42, %v539_v19  ;;  %v549_v52 = vmul.f32 %v4959_v61, %v547_v18 }
 0x32c   : > { %v535_v9 = vmul.f32 %v533_v57, %v459_v43  ;;  %v557_v11 = vadd.s32 1, %v555_v29  ;;  %v559_v10 = vadd.s32 16, %v555_v29  ;;  %v9091_v21 = vrot.slane %v555_v29, %v9643_v38 }
 0x32d   : > { %v543_v54 = vmul.f32 %v541_v56, %v459_v43  ;;  %v551_v28 = vmul.f32 %v549_v52, %v459_v43  ;;  %v9094_v60 = vrot.slane %v527_v2, %v9643_v38 }
 0x32e   : > { %v561_v63 = vadd.s32 1, %v559_v10  ;;  %vm4273_vm8 = vcmp.eq.s32.totalorder %v5638_v12, %v9091_v21  ;;  %v9099_v41 = vrot.slane %v557_v11, %v9643_v38  ;;  %v9102_v1 = vrot.slane %v535_v9, %v9643_v38 }
 0x32f   : > { %v4309_v5 = vsel %vm4273_vm8, %v9094_v60, 0.0  ;;  %v9106_v4 = vrot.slane %v559_v10, %v9643_v38  ;;  %v9109_v13 = vrot.slane %v543_v54, %v9643_v38  ;;  %v9112_v40 = vrot.slane %v551_v28, %v9643_v38 }
 0x330   : > { %vm4345_vm9 = vcmp.eq.s32.totalorder %v5638_v12, %v9099_v41  ;;  %v9117_v35 = vrot.slane %v561_v63, %v9643_v38  ;;  %vm4257_vm10 = vcmp.eq.s32.totalorder %v5647_v15, %v9091_v21  ;;  %vm4329_vm11 = vcmp.eq.s32.totalorder %v5647_v15, %v9099_v41 }
 0x331   : > { %v4381_v34 = vsel %vm4345_vm9, %v9102_v1, 0.0  ;;  %vm4449_vm12 = vcmp.eq.s32.totalorder %v5638_v12, %v9106_v4  ;;  %v4293_v42 = vsel %vm4257_vm10, %v9094_v60, 0.0  ;;  %v4365_v46 = vsel %vm4329_vm11, %v9102_v1, 0.0 }
 0x332   : > { %v4413_v43 = vadd.f32 %v4381_v34, %v4309_v5  ;;  %v4485_v27 = vsel %vm4449_vm12, %v9109_v13, 0.0  ;;  %vm4553_vm13 = vcmp.eq.s32.totalorder %v5638_v12, %v9117_v35  ;;  %v4397_v6 = vadd.f32 %v4365_v46, %v4293_v42 }
 0x333   : > { %v4589_v50 = vsel %vm4553_vm13, %v9112_v40, 0.0  ;;  %vm4433_vm14 = vcmp.eq.s32.totalorder %v5647_v15, %v9106_v4  ;;  %vm4537_vm15 = vcmp.eq.s32.totalorder %v5647_v15, %v9117_v35  ;;  %vm4272_vm0 = vcmp.eq.s32.totalorder %v5650_v16, %v9091_v21 }
 0x334   : > { %v4517_v61 = vadd.f32 %v4485_v27, %v4413_v43  ;;  %v4469_v8 = vsel %vm4433_vm14, %v9109_v13, 0.0  ;;  %v4573_v19 = vsel %vm4537_vm15, %v9112_v40, 0.0  ;;  %v4308_v18 = vsel %vm4272_vm0, %v9094_v60, 0.0 }
 0x335   : > { %v4501_v12 = vadd.f32 %v4469_v8, %v4397_v6  ;;  %vm4344_vm1 = vcmp.eq.s32.totalorder %v5650_v16, %v9099_v41  ;;  %vm4448_vm2 = vcmp.eq.s32.totalorder %v5650_v16, %v9106_v4  ;;  %vm4552_vm3 = vcmp.eq.s32.totalorder %v5650_v16, %v9117_v35 }
 0x336   : > { %v4621_v15 = vadd.f32 %v4589_v50, %v4517_v61  ;;  %v4380_v57 = vsel %vm4344_vm1, %v9102_v1, 0.0  ;;  %v4484_v29 = vsel %vm4448_vm2, %v9109_v13, 0.0  ;;  %v4588_v2 = vsel %vm4552_vm3, %v9112_v40, 0.0 }
 0x337   : > { %v4605_v56 = vadd.f32 %v4573_v19, %v4501_v12  ;;  %v4412_v52 = vadd.f32 %v4380_v57, %v4308_v18  ;;  %vm4256_vm4 = vcmp.eq.s32.totalorder %v5653_v17, %v9091_v21  ;;  %vm4328_vm5 = vcmp.eq.s32.totalorder %v5653_v17, %v9099_v41 }
 0x338   : > { %5248 = vmatprep.subr.mxu0 %v4621_v15  ;;  %v4292_v9 = vsel %vm4256_vm4, %v9094_v60, 0.0  ;;  %v4364_v16 = vsel %vm4328_vm5, %v9102_v1, 0.0  ;;  %vm4432_vm6 = vcmp.eq.s32.totalorder %v5653_v17, %v9106_v4  ;;  %vm4536_vm7 = vcmp.eq.s32.totalorder %v5653_v17, %v9117_v35 }
 0x339   : > { %5249 = vmatpush3.msra.mxu0 %v4605_v56  ;;  %v4516_v11 = vadd.f32 %v4484_v29, %v4412_v52  ;;  %v4396_v10 = vadd.f32 %v4364_v16, %v4292_v9  ;;  %v4468_v38 = vsel %vm4432_vm6, %v9109_v13, 0.0  ;;  %v4572_v54 = vsel %vm4536_vm7, %v9112_v40, 0.0 }
 0x33a   : > { %vm4271_vm8 = vcmp.eq.s32.totalorder %v5656_v22, %v9091_v21  ;;  %vm4343_vm9 = vcmp.eq.s32.totalorder %v5656_v22, %v9099_v41  ;;  %vm4447_vm10 = vcmp.eq.s32.totalorder %v5656_v22, %v9106_v4  ;;  %vm4551_vm11 = vcmp.eq.s32.totalorder %v5656_v22, %v9117_v35 }
 0x33b   : > { %v4620_v17 = vadd.f32 %v4588_v2, %v4516_v11  ;;  %v4500_v28 = vadd.f32 %v4468_v38, %v4396_v10  ;;  %v4307_v63 = vsel %vm4271_vm8, %v9094_v60, 0.0  ;;  %v4379_v5 = vsel %vm4343_vm9, %v9102_v1, 0.0 }
 0x33c   : > { %v4411_v34 = vadd.f32 %v4379_v5, %v4307_v63  ;;  %v4483_v42 = vsel %vm4447_vm10, %v9109_v13, 0.0  ;;  %v4587_v46 = vsel %vm4551_vm11, %v9112_v40, 0.0  ;;  %vm4255_vm12 = vcmp.eq.s32.totalorder %v5659_v23, %v9091_v21 }
 0x33d   : > { %5250 = vmatprep.subr.mxu0 %v4620_v17  ;;  %v4604_v43 = vadd.f32 %v4572_v54, %v4500_v28  ;;  %v4291_v27 = vsel %vm4255_vm12, %v9094_v60, 0.0  ;;  %vm4327_vm13 = vcmp.eq.s32.totalorder %v5659_v23, %v9099_v41  ;;  %vm4431_vm14 = vcmp.eq.s32.totalorder %v5659_v23, %v9106_v4 }
 0x33e   : > { %v4515_v22 = vadd.f32 %v4483_v42, %v4411_v34  ;;  %v4363_v6 = vsel %vm4327_vm13, %v9102_v1, 0.0  ;;  %v4467_v50 = vsel %vm4431_vm14, %v9109_v13, 0.0  ;;  %vm4535_vm15 = vcmp.eq.s32.totalorder %v5659_v23, %v9117_v35 }
 0x33f   : > { %5251 = vmatpush3.msra.mxu0 %v4604_v43  ;;  %v4395_v61 = vadd.f32 %v4363_v6, %v4291_v27  ;;  %v4571_v8 = vsel %vm4535_vm15, %v9112_v40, 0.0  ;;  %vm4270_vm0 = vcmp.eq.s32.totalorder %v5662_v24, %v9091_v21  ;;  %vm4342_vm1 = vcmp.eq.s32.totalorder %v5662_v24, %v9099_v41 }
 0x340   : > { %v4619_v19 = vadd.f32 %v4587_v46, %v4515_v22  ;;  %v4306_v18 = vsel %vm4270_vm0, %v9094_v60, 0.0  ;;  %v4378_v12 = vsel %vm4342_vm1, %v9102_v1, 0.0  ;;  %vm4446_vm2 = vcmp.eq.s32.totalorder %v5662_v24, %v9106_v4 }
 0x341   : > { %v4499_v15 = vadd.f32 %v4467_v50, %v4395_v61  ;;  %v4410_v23 = vadd.f32 %v4378_v12, %v4306_v18  ;;  %v4482_v57 = vsel %vm4446_vm2, %v9109_v13, 0.0  ;;  %vm4550_vm3 = vcmp.eq.s32.totalorder %v5662_v24, %v9117_v35 }
 0x342   : > { %5252 = vmatprep.subr.mxu0 %v4619_v19  ;;  %v4586_v29 = vsel %vm4550_vm3, %v9112_v40, 0.0  ;;  %vm4254_vm4 = vcmp.eq.s32.totalorder %v5665_v25, %v9091_v21  ;;  %vm4326_vm5 = vcmp.eq.s32.totalorder %v5665_v25, %v9099_v41  ;;  %vm4430_vm6 = vcmp.eq.s32.totalorder %v5665_v25, %v9106_v4 }
 0x343   : > { %v4603_v2 = vadd.f32 %v4571_v8, %v4499_v15  ;;  %v4514_v56 = vadd.f32 %v4482_v57, %v4410_v23  ;;  %v4290_v52 = vsel %vm4254_vm4, %v9094_v60, 0.0  ;;  %v4362_v9 = vsel %vm4326_vm5, %v9102_v1, 0.0 }
 0x344   : > { %v4394_v16 = vadd.f32 %v4362_v9, %v4290_v52  ;;  %v4466_v24 = vsel %vm4430_vm6, %v9109_v13, 0.0  ;;  %vm4534_vm7 = vcmp.eq.s32.totalorder %v5665_v25, %v9117_v35  ;;  %vm4269_vm8 = vcmp.eq.s32.totalorder %v5668_v31, %v9091_v21 }
 0x345   : > { %5253 = vmatpush3.msra.mxu0 %v4603_v2  ;;  %v4618_v11 = vadd.f32 %v4586_v29, %v4514_v56  ;;  %v4570_v10 = vsel %vm4534_vm7, %v9112_v40, 0.0  ;;  %v4305_v38 = vsel %vm4269_vm8, %v9094_v60, 0.0  ;;  %vm4341_vm9 = vcmp.eq.s32.totalorder %v5668_v31, %v9099_v41 }
 0x346   : > { %v4498_v54 = vadd.f32 %v4466_v24, %v4394_v16  ;;  %v4377_v17 = vsel %vm4341_vm9, %v9102_v1, 0.0  ;;  %vm4445_vm10 = vcmp.eq.s32.totalorder %v5668_v31, %v9106_v4  ;;  %vm4549_vm11 = vcmp.eq.s32.totalorder %v5668_v31, %v9117_v35 }
 0x347   : > { %5254 = vmatprep.subr.mxu0 %v4618_v11  ;;  %v4409_v25 = vadd.f32 %v4377_v17, %v4305_v38  ;;  %v4481_v28 = vsel %vm4445_vm10, %v9109_v13, 0.0  ;;  %v4585_v63 = vsel %vm4549_vm11, %v9112_v40, 0.0  ;;  %vm4253_vm12 = vcmp.eq.s32.totalorder %v5671_v32, %v9091_v21 }
 0x348   : > { %v4602_v5 = vadd.f32 %v4570_v10, %v4498_v54  ;;  %v4289_v34 = vsel %vm4253_vm12, %v9094_v60, 0.0  ;;  %vm4325_vm13 = vcmp.eq.s32.totalorder %v5671_v32, %v9099_v41  ;;  %vm4429_vm14 = vcmp.eq.s32.totalorder %v5671_v32, %v9106_v4 }
 0x349   : > { %v4513_v42 = vadd.f32 %v4481_v28, %v4409_v25  ;;  %v4361_v31 = vsel %vm4325_vm13, %v9102_v1, 0.0  ;;  %v4465_v46 = vsel %vm4429_vm14, %v9109_v13, 0.0  ;;  %vm4533_vm15 = vcmp.eq.s32.totalorder %v5671_v32, %v9117_v35 }
 0x34a   : > { %5255 = vmatpush3.msra.mxu0 %v4602_v5  ;;  %v4393_v43 = vadd.f32 %v4361_v31, %v4289_v34  ;;  %v4569_v27 = vsel %vm4533_vm15, %v9112_v40, 0.0  ;;  %vm4268_vm0 = vcmp.eq.s32.totalorder %v5674_v33, %v9091_v21  ;;  %vm4340_vm1 = vcmp.eq.s32.totalorder %v5674_v33, %v9099_v41 }
 0x34b   : > { %v4617_v22 = vadd.f32 %v4585_v63, %v4513_v42  ;;  %v4304_v6 = vsel %vm4268_vm0, %v9094_v60, 0.0  ;;  %v4376_v50 = vsel %vm4340_vm1, %v9102_v1, 0.0  ;;  %vm4444_vm2 = vcmp.eq.s32.totalorder %v5674_v33, %v9106_v4 }
 0x34c   : > { %v4497_v61 = vadd.f32 %v4465_v46, %v4393_v43  ;;  %v4408_v32 = vadd.f32 %v4376_v50, %v4304_v6  ;;  %v4480_v8 = vsel %vm4444_vm2, %v9109_v13, 0.0  ;;  %vm4548_vm3 = vcmp.eq.s32.totalorder %v5674_v33, %v9117_v35 }
 0x34d   : > { %5256 = vmatprep.subr.mxu0 %v4617_v22  ;;  %v4584_v19 = vsel %vm4548_vm3, %v9112_v40, 0.0  ;;  %vm4252_vm4 = vcmp.eq.s32.totalorder %v5683_v47, %v9091_v21  ;;  %vm4324_vm5 = vcmp.eq.s32.totalorder %v5683_v47, %v9099_v41  ;;  %vm4428_vm6 = vcmp.eq.s32.totalorder %v5683_v47, %v9106_v4 }
 0x34e   : > { %v4601_v18 = vadd.f32 %v4569_v27, %v4497_v61  ;;  %v4512_v12 = vadd.f32 %v4480_v8, %v4408_v32  ;;  %v4288_v15 = vsel %vm4252_vm4, %v9094_v60, 0.0  ;;  %v4360_v23 = vsel %vm4324_vm5, %v9102_v1, 0.0 }
 0x34f   : > { %v4392_v57 = vadd.f32 %v4360_v23, %v4288_v15  ;;  %v4464_v33 = vsel %vm4428_vm6, %v9109_v13, 0.0  ;;  %vm4532_vm7 = vcmp.eq.s32.totalorder %v5683_v47, %v9117_v35  ;;  %vm4267_vm8 = vcmp.eq.s32.totalorder %v5687_v51, %v9091_v21 }
 0x350   : > { %5257 = vmatpush3.msra.mxu0 %v4601_v18  ;;  %v4616_v29 = vadd.f32 %v4584_v19, %v4512_v12  ;;  %v4568_v2 = vsel %vm4532_vm7, %v9112_v40, 0.0  ;;  %v4303_v56 = vsel %vm4267_vm8, %v9094_v60, 0.0  ;;  %vm4339_vm9 = vcmp.eq.s32.totalorder %v5687_v51, %v9099_v41 }
 0x351   : > { %v4496_v52 = vadd.f32 %v4464_v33, %v4392_v57  ;;  %v4375_v9 = vsel %vm4339_vm9, %v9102_v1, 0.0  ;;  %vm4443_vm10 = vcmp.eq.s32.totalorder %v5687_v51, %v9106_v4  ;;  %vm4547_vm11 = vcmp.eq.s32.totalorder %v5687_v51, %v9117_v35 }
 0x352   : > { %5258 = vmatprep.subr.mxu0 %v4616_v29  ;;  %v4407_v47 = vadd.f32 %v4375_v9, %v4303_v56  ;;  %v4479_v16 = vsel %vm4443_vm10, %v9109_v13, 0.0  ;;  %v4583_v24 = vsel %vm4547_vm11, %v9112_v40, 0.0  ;;  %vm4251_vm12 = vcmp.eq.s32.totalorder %v5692_v55, %v9091_v21 }
 0x353   : > { %v4600_v11 = vadd.f32 %v4568_v2, %v4496_v52  ;;  %v4287_v10 = vsel %vm4251_vm12, %v9094_v60, 0.0  ;;  %vm4323_vm13 = vcmp.eq.s32.totalorder %v5692_v55, %v9099_v41  ;;  %vm4427_vm14 = vcmp.eq.s32.totalorder %v5692_v55, %v9106_v4 }
 0x354   : > { %v4511_v38 = vadd.f32 %v4479_v16, %v4407_v47  ;;  %v4359_v51 = vsel %vm4323_vm13, %v9102_v1, 0.0  ;;  %v4463_v54 = vsel %vm4427_vm14, %v9109_v13, 0.0  ;;  %vm4531_vm15 = vcmp.eq.s32.totalorder %v5692_v55, %v9117_v35 }
 0x355   : > { %5259 = vmatpush3.msra.mxu0 %v4600_v11  ;;  %v4391_v17 = vadd.f32 %v4359_v51, %v4287_v10  ;;  %v4567_v25 = vsel %vm4531_vm15, %v9112_v40, 0.0  ;;  %vm4266_vm0 = vcmp.eq.s32.totalorder %v5697_v58, %v9091_v21  ;;  %vm4338_vm1 = vcmp.eq.s32.totalorder %v5697_v58, %v9099_v41 }
 0x356   : > { %v4615_v28 = vadd.f32 %v4583_v24, %v4511_v38  ;;  %v4302_v63 = vsel %vm4266_vm0, %v9094_v60, 0.0  ;;  %v4374_v5 = vsel %vm4338_vm1, %v9102_v1, 0.0  ;;  %vm4442_vm2 = vcmp.eq.s32.totalorder %v5697_v58, %v9106_v4 }
 0x357   : > { %v4495_v34 = vadd.f32 %v4463_v54, %v4391_v17  ;;  %v4406_v55 = vadd.f32 %v4374_v5, %v4302_v63  ;;  %v4478_v42 = vsel %vm4442_vm2, %v9109_v13, 0.0  ;;  %vm4546_vm3 = vcmp.eq.s32.totalorder %v5697_v58, %v9117_v35 }
 0x358   : > { %5260 = vmatprep.subr.mxu0 %v4615_v28  ;;  %v4582_v31 = vsel %vm4546_vm3, %v9112_v40, 0.0  ;;  %vm4250_vm4 = vcmp.eq.s32.totalorder %v5700_v59, %v9091_v21  ;;  %vm4322_vm5 = vcmp.eq.s32.totalorder %v5700_v59, %v9099_v41  ;;  %vm4426_vm6 = vcmp.eq.s32.totalorder %v5700_v59, %v9106_v4 }
 0x359   : > { %v4599_v46 = vadd.f32 %v4567_v25, %v4495_v34  ;;  %v4510_v43 = vadd.f32 %v4478_v42, %v4406_v55  ;;  %v4286_v27 = vsel %vm4250_vm4, %v9094_v60, 0.0  ;;  %v4358_v22 = vsel %vm4322_vm5, %v9102_v1, 0.0 }
 0x35a   : > { %v4390_v6 = vadd.f32 %v4358_v22, %v4286_v27  ;;  %v4462_v58 = vsel %vm4426_vm6, %v9109_v13, 0.0  ;;  %vm4530_vm7 = vcmp.eq.s32.totalorder %v5700_v59, %v9117_v35  ;;  %vm4265_vm8 = vcmp.eq.s32.totalorder %v6165_v44, %v9091_v21 }
 0x35b   : > { %5261 = vmatpush3.msra.mxu0 %v4599_v46  ;;  %v4614_v50 = vadd.f32 %v4582_v31, %v4510_v43  ;;  %v4566_v61 = vsel %vm4530_vm7, %v9112_v40, 0.0  ;;  %v4301_v32 = vsel %vm4265_vm8, %v9094_v60, 0.0  ;;  %vm4337_vm9 = vcmp.eq.s32.totalorder %v6165_v44, %v9099_v41 }
 0x35c   : > { %v4494_v8 = vadd.f32 %v4462_v58, %v4390_v6  ;;  %v4373_v19 = vsel %vm4337_vm9, %v9102_v1, 0.0  ;;  %vm4441_vm10 = vcmp.eq.s32.totalorder %v6165_v44, %v9106_v4  ;;  %vm4545_vm11 = vcmp.eq.s32.totalorder %v6165_v44, %v9117_v35 }
 0x35d   : > { %5262 = vmatprep.subr.mxu0 %v4614_v50  ;;  %v4405_v59 = vadd.f32 %v4373_v19, %v4301_v32  ;;  %v4477_v18 = vsel %vm4441_vm10, %v9109_v13, 0.0  ;;  %v4581_v12 = vsel %vm4545_vm11, %v9112_v40, 0.0  ;;  %vm4249_vm12 = vcmp.eq.s32.totalorder %v6169_v48, %v9091_v21 }
 0x35e   : > { %v4598_v15 = vadd.f32 %v4566_v61, %v4494_v8  ;;  %v4285_v23 = vsel %vm4249_vm12, %v9094_v60, 0.0  ;;  %vm4321_vm13 = vcmp.eq.s32.totalorder %v6169_v48, %v9099_v41  ;;  %vm4425_vm14 = vcmp.eq.s32.totalorder %v6169_v48, %v9106_v4 }
 0x35f   : > { %v4509_v57 = vadd.f32 %v4477_v18, %v4405_v59  ;;  %v4357_v44 = vsel %vm4321_vm13, %v9102_v1, 0.0  ;;  %v4461_v33 = vsel %vm4425_vm14, %v9109_v13, 0.0  ;;  %vm4529_vm15 = vcmp.eq.s32.totalorder %v6169_v48, %v9117_v35 }
 0x360   : > { %5263 = vmatpush3.msra.mxu0 %v4598_v15  ;;  %v4389_v29 = vadd.f32 %v4357_v44, %v4285_v23  ;;  %v4565_v2 = vsel %vm4529_vm15, %v9112_v40, 0.0  ;;  %vm4264_vm0 = vcmp.eq.s32.totalorder %v6172_v14, %v9091_v21  ;;  %vm4336_vm1 = vcmp.eq.s32.totalorder %v6172_v14, %v9099_v41 }
 0x361   : > { %v4613_v56 = vadd.f32 %v4581_v12, %v4509_v57  ;;  %v4300_v52 = vsel %vm4264_vm0, %v9094_v60, 0.0  ;;  %v4372_v9 = vsel %vm4336_vm1, %v9102_v1, 0.0  ;;  %vm4440_vm2 = vcmp.eq.s32.totalorder %v6172_v14, %v9106_v4 }
 0x362   : > { %v4493_v47 = vadd.f32 %v4461_v33, %v4389_v29  ;;  %v4404_v48 = vadd.f32 %v4372_v9, %v4300_v52  ;;  %v4476_v16 = vsel %vm4440_vm2, %v9109_v13, 0.0  ;;  %vm4544_vm3 = vcmp.eq.s32.totalorder %v6172_v14, %v9117_v35 }
 0x363   : > { %5264 = vmatprep.subr.mxu0 %v4613_v56  ;;  %v4580_v24 = vsel %vm4544_vm3, %v9112_v40, 0.0  ;;  %vm4248_vm4 = vcmp.eq.s32.totalorder %v6245_v53, %v9091_v21  ;;  %vm4320_vm5 = vcmp.eq.s32.totalorder %v6245_v53, %v9099_v41  ;;  %vm4424_vm6 = vcmp.eq.s32.totalorder %v6245_v53, %v9106_v4 }
 0x364   : > { %v4597_v11 = vadd.f32 %v4565_v2, %v4493_v47  ;;  %v4508_v10 = vadd.f32 %v4476_v16, %v4404_v48  ;;  %v4284_v38 = vsel %vm4248_vm4, %v9094_v60, 0.0  ;;  %v4356_v51 = vsel %vm4320_vm5, %v9102_v1, 0.0 }
 0x365   : > { %v4388_v54 = vadd.f32 %v4356_v51, %v4284_v38  ;;  %v4460_v14 = vsel %vm4424_vm6, %v9109_v13, 0.0  ;;  %vm4528_vm7 = vcmp.eq.s32.totalorder %v6245_v53, %v9117_v35  ;;  %vm4263_vm8 = vcmp.eq.s32.totalorder %v6250_v20, %v9091_v21 }
 0x366   : > { %5265 = vmatpush3.msra.mxu0 %v4597_v11  ;;  %v4612_v17 = vadd.f32 %v4580_v24, %v4508_v10  ;;  %v4564_v25 = vsel %vm4528_vm7, %v9112_v40, 0.0  ;;  %v4299_v28 = vsel %vm4263_vm8, %v9094_v60, 0.0  ;;  %vm4335_vm9 = vcmp.eq.s32.totalorder %v6250_v20, %v9099_v41 }
 0x367   : > { %v4492_v63 = vadd.f32 %v4460_v14, %v4388_v54  ;;  %v4371_v5 = vsel %vm4335_vm9, %v9102_v1, 0.0  ;;  %vm4439_vm10 = vcmp.eq.s32.totalorder %v6250_v20, %v9106_v4  ;;  %vm4543_vm11 = vcmp.eq.s32.totalorder %v6250_v20, %v9117_v35 }
 0x368   : > { %5266 = vmatprep.subr.mxu0 %v4612_v17  ;;  %v4403_v53 = vadd.f32 %v4371_v5, %v4299_v28  ;;  %v4475_v34 = vsel %vm4439_vm10, %v9109_v13, 0.0  ;;  %v4579_v55 = vsel %vm4543_vm11, %v9112_v40, 0.0  ;;  %vm4247_vm12 = vcmp.eq.s32.totalorder %v6300_v49, %v9091_v21 }
 0x369   : > { %v4596_v42 = vadd.f32 %v4564_v25, %v4492_v63  ;;  %v4283_v31 = vsel %vm4247_vm12, %v9094_v60, 0.0  ;;  %vm4319_vm13 = vcmp.eq.s32.totalorder %v6300_v49, %v9099_v41  ;;  %vm4423_vm14 = vcmp.eq.s32.totalorder %v6300_v49, %v9106_v4 }
 0x36a   : > { %v4507_v46 = vadd.f32 %v4475_v34, %v4403_v53  ;;  %v4355_v20 = vsel %vm4319_vm13, %v9102_v1, 0.0  ;;  %v4459_v43 = vsel %vm4423_vm14, %v9109_v13, 0.0  ;;  %vm4527_vm15 = vcmp.eq.s32.totalorder %v6300_v49, %v9117_v35 }
 0x36b   : > { %5267 = vmatpush3.msra.mxu0 %v4596_v42  ;;  %v4387_v27 = vadd.f32 %v4355_v20, %v4283_v31  ;;  %v4563_v22 = vsel %vm4527_vm15, %v9112_v40, 0.0  ;;  %vm4262_vm0 = vcmp.eq.s32.totalorder %v9638_v36, %v9091_v21  ;;  %vm4334_vm1 = vcmp.eq.s32.totalorder %v9638_v36, %v9099_v41 }
 0x36c   : > { %v4611_v6 = vadd.f32 %v4579_v55, %v4507_v46  ;;  %v4298_v58 = vsel %vm4262_vm0, %v9094_v60, 0.0  ;;  %v4370_v50 = vsel %vm4334_vm1, %v9102_v1, 0.0  ;;  %vm4438_vm2 = vcmp.eq.s32.totalorder %v9638_v36, %v9106_v4 }
 0x36d   : > { %v4491_v61 = vadd.f32 %v4459_v43, %v4387_v27  ;;  %v4402_v49 = vadd.f32 %v4370_v50, %v4298_v58  ;;  %v4474_v32 = vsel %vm4438_vm2, %v9109_v13, 0.0  ;;  %vm4542_vm3 = vcmp.eq.s32.totalorder %v9638_v36, %v9117_v35  ;;  %v9644_v43 = vld [vmem:[#allocation20_spill] sm:$0xff] }
 0x36e   : > { %5268 = vmatprep.subr.mxu0 %v4611_v6  ;;  %v4578_v8 = vsel %vm4542_vm3, %v9112_v40, 0.0  ;;  %vm4246_vm4 = vcmp.eq.s32.totalorder %v9639_v0, %v9091_v21  ;;  %vm4318_vm5 = vcmp.eq.s32.totalorder %v9639_v0, %v9099_v41  ;;  %vm4422_vm6 = vcmp.eq.s32.totalorder %v9639_v0, %v9106_v4  ;;  %v5140_v6 = vpop.f32.mrf.mxu0 }
 0x36f   : > { %v4595_v19 = vadd.f32 %v4563_v22, %v4491_v61  ;;  %v4506_v59 = vadd.f32 %v4474_v32, %v4402_v49  ;;  %v4282_v18 = vsel %vm4246_vm4, %v9094_v60, 0.0  ;;  %v4354_v12 = vsel %vm4318_vm5, %v9102_v1, 0.0  ;;  %v5175_v61 = vpop.f32.mrf.mxu1 }
 0x370   : > { %v4386_v15 = vadd.f32 %v4354_v12, %v4282_v18  ;;  %v4458_v36 = vsel %vm4422_vm6, %v9109_v13, 0.0  ;;  %vm4526_vm7 = vcmp.eq.s32.totalorder %v9639_v0, %v9117_v35  ;;  %vm4261_vm8 = vcmp.eq.s32.totalorder %v9640_v45, %v9091_v21 }
 0x371   : > { %5269 = vmatpush3.msra.mxu0 %v4595_v19  ;;  %v4610_v23 = vadd.f32 %v4578_v8, %v4506_v59  ;;  %v4562_v57 = vsel %vm4526_vm7, %v9112_v40, 0.0  ;;  %v4297_v44 = vsel %vm4261_vm8, %v9094_v60, 0.0  ;;  %vm4333_vm9 = vcmp.eq.s32.totalorder %v9640_v45, %v9099_v41  ;;  %v9645_v8 = vld [vmem:[#allocation21_spill] sm:$0xff] }
 0x372   : > { %v4490_v33 = vadd.f32 %v4458_v36, %v4386_v15  ;;  %v4369_v29 = vsel %vm4333_vm9, %v9102_v1, 0.0  ;;  %vm4437_vm10 = vcmp.eq.s32.totalorder %v9640_v45, %v9106_v4  ;;  %vm4541_vm11 = vcmp.eq.s32.totalorder %v9640_v45, %v9117_v35 }
 0x373   : > { %5270 = vmatprep.subr.mxu0 %v4610_v23  ;;  %v4401_v0 = vadd.f32 %v4369_v29, %v4297_v44  ;;  %v4473_v2 = vsel %vm4437_vm10, %v9109_v13, 0.0  ;;  %v4577_v56 = vsel %vm4541_vm11, %v9112_v40, 0.0  ;;  %vm4245_vm12 = vcmp.eq.s32.totalorder %v9634_v39, %v9091_v21  ;;  %v5141_v23 = vpop.f32.mrf.mxu0  ;;  %v5176_v44 = vpop.f32.mrf.mxu1 }
 0x374   : > { %v4594_v52 = vadd.f32 %v4562_v57, %v4490_v33  ;;  %v4281_v9 = vsel %vm4245_vm12, %v9094_v60, 0.0  ;;  %vm4317_vm13 = vcmp.eq.s32.totalorder %v9634_v39, %v9099_v41  ;;  %vm4421_vm14 = vcmp.eq.s32.totalorder %v9634_v39, %v9106_v4 }
 0x375   : > { %v4505_v47 = vadd.f32 %v4473_v2, %v4401_v0  ;;  %v4353_v45 = vsel %vm4317_vm13, %v9102_v1, 0.0  ;;  %v4457_v48 = vsel %vm4421_vm14, %v9109_v13, 0.0  ;;  %vm4525_vm15 = vcmp.eq.s32.totalorder %v9634_v39, %v9117_v35 }
 0x376   : > { %5271 = vmatpush3.msra.mxu0 %v4594_v52  ;;  %v4385_v16 = vadd.f32 %v4353_v45, %v4281_v9  ;;  %v4561_v24 = vsel %vm4525_vm15, %v9112_v40, 0.0  ;;  %vm4260_vm0 = vcmp.eq.s32.totalorder %v9628_v3, %v9091_v21  ;;  %vm4332_vm1 = vcmp.eq.s32.totalorder %v9628_v3, %v9099_v41 }
 0x377   : > { %v4609_v11 = vadd.f32 %v4577_v56, %v4505_v47  ;;  %v4296_v10 = vsel %vm4260_vm0, %v9094_v60, 0.0  ;;  %v4368_v38 = vsel %vm4332_vm1, %v9102_v1, 0.0  ;;  %vm4436_vm2 = vcmp.eq.s32.totalorder %v9628_v3, %v9106_v4 }
 0x378   : > { %v4489_v51 = vadd.f32 %v4457_v48, %v4385_v16  ;;  %v4400_v39 = vadd.f32 %v4368_v38, %v4296_v10  ;;  %v4472_v54 = vsel %vm4436_vm2, %v9109_v13, 0.0  ;;  %vm4540_vm3 = vcmp.eq.s32.totalorder %v9628_v3, %v9117_v35 }
 0x379   : > { %5272 = vmatprep.subr.mxu0 %v4609_v11  ;;  %v4576_v14 = vsel %vm4540_vm3, %v9112_v40, 0.0  ;;  %vm4244_vm4 = vcmp.eq.s32.totalorder %v9641_v62, %v9091_v21  ;;  %vm4316_vm5 = vcmp.eq.s32.totalorder %v9641_v62, %v9099_v41  ;;  %vm4420_vm6 = vcmp.eq.s32.totalorder %v9641_v62, %v9106_v4 }
 0x37a   : > { %v4593_v17 = vadd.f32 %v4561_v24, %v4489_v51  ;;  %v4504_v25 = vadd.f32 %v4472_v54, %v4400_v39  ;;  %v4280_v28 = vsel %vm4244_vm4, %v9094_v60, 0.0  ;;  %v4352_v63 = vsel %vm4316_vm5, %v9102_v1, 0.0  ;;  %v4695_v39 = vld [vmem:[#allocation2 + $0x8] sm:$0xff]  ;;  %v4699_v54 = vld [vmem:[%s9567_s4] sm:$0xff] }
 0x37b   : > { %v4384_v5 = vadd.f32 %v4352_v63, %v4280_v28  ;;  %v4456_v3 = vsel %vm4420_vm6, %v9109_v13, 0.0  ;;  %vm4524_vm7 = vcmp.eq.s32.totalorder %v9641_v62, %v9117_v35  ;;  %vm4259_vm8 = vcmp.eq.s32.totalorder %v9635_v30, %v9091_v21 }
 0x37c   : > { %5273 = vmatpush3.msra.mxu0 %v4593_v17  ;;  %v4608_v53 = vadd.f32 %v4576_v14, %v4504_v25  ;;  %v4560_v34 = vsel %vm4524_vm7, %v9112_v40, 0.0  ;;  %v4295_v55 = vsel %vm4259_vm8, %v9094_v60, 0.0  ;;  %vm4331_vm9 = vcmp.eq.s32.totalorder %v9635_v30, %v9099_v41  ;;  %v4694_v14 = vld [vmem:[#allocation2] sm:$0xff] }
 0x37d   : > { %v4488_v42 = vadd.f32 %v4456_v3, %v4384_v5  ;;  %v4367_v31 = vsel %vm4331_vm9, %v9102_v1, 0.0  ;;  %vm4435_vm10 = vcmp.eq.s32.totalorder %v9635_v30, %v9106_v4  ;;  %vm4539_vm11 = vcmp.eq.s32.totalorder %v9635_v30, %v9117_v35 }
 0x37e   : > { %5274 = vmatprep.subr.mxu0 %v4608_v53  ;;  %v4399_v62 = vadd.f32 %v4367_v31, %v4295_v55  ;;  %v4471_v46 = vsel %vm4435_vm10, %v9109_v13, 0.0  ;;  %v4575_v20 = vsel %vm4539_vm11, %v9112_v40, 0.0  ;;  %vm4243_vm12 = vcmp.eq.s32.totalorder %v9644_v43, %v9091_v21 }
 0x37f   : > { %v4592_v27 = vadd.f32 %v4560_v34, %v4488_v42  ;;  %v4279_v22 = vsel %vm4243_vm12, %v9094_v60, 0.0  ;;  %vm4315_vm13 = vcmp.eq.s32.totalorder %v9644_v43, %v9099_v41  ;;  %vm4419_vm14 = vcmp.eq.s32.totalorder %v9644_v43, %v9106_v4 }
 0x380   : > { %v4503_v30 = vadd.f32 %v4471_v46, %v4399_v62  ;;  %v4351_v58 = vsel %vm4315_vm13, %v9102_v1, 0.0  ;;  %v4455_v50 = vsel %vm4419_vm14, %v9109_v13, 0.0  ;;  %vm4523_vm15 = vcmp.eq.s32.totalorder %v9644_v43, %v9117_v35 }
 0x381   : > { %5275 = vmatpush3.msra.mxu0 %v4592_v27  ;;  %v4383_v49 = vadd.f32 %v4351_v58, %v4279_v22  ;;  %v4559_v32 = vsel %vm4523_vm15, %v9112_v40, 0.0  ;;  %vm4258_vm0 = vcmp.eq.s32.totalorder %v9645_v8, %v9091_v21  ;;  %vm4330_vm1 = vcmp.eq.s32.totalorder %v9645_v8, %v9099_v41 }
 0x382   : > { %v4607_v19 = vadd.f32 %v4575_v20, %v4503_v30  ;;  %v4294_v59 = vsel %vm4258_vm0, %v9094_v60, 0.0  ;;  %v4366_v18 = vsel %vm4330_vm1, %v9102_v1, 0.0  ;;  %vm4434_vm2 = vcmp.eq.s32.totalorder %v9645_v8, %v9106_v4 }
 0x383   : > { %v4487_v12 = vadd.f32 %v4455_v50, %v4383_v49  ;;  %v4398_v15 = vadd.f32 %v4366_v18, %v4294_v59  ;;  %v4470_v36 = vsel %vm4434_vm2, %v9109_v13, 0.0  ;;  %vm4538_vm3 = vcmp.eq.s32.totalorder %v9645_v8, %v9117_v35 }
 0x384   : > { %5276 = vmatprep.subr.mxu0 %v4607_v19  ;;  %v4574_v57 = vsel %vm4538_vm3, %v9112_v40, 0.0  ;;  %vm4242_vm4 = vcmp.eq.s32.totalorder %v5629_v7, %v9091_v21  ;;  %vm4314_vm5 = vcmp.eq.s32.totalorder %v5629_v7, %v9099_v41  ;;  %vm4418_vm6 = vcmp.eq.s32.totalorder %v5629_v7, %v9106_v4 }
 0x385   : > { %v4591_v33 = vadd.f32 %v4559_v32, %v4487_v12  ;;  %v4502_v29 = vadd.f32 %v4470_v36, %v4398_v15  ;;  %v4278_v0 = vsel %vm4242_vm4, %v9094_v60, 0.0  ;;  %v4350_v2 = vsel %vm4314_vm5, %v9102_v1, 0.0 }
 0x386   : > { %v4382_v56 = vadd.f32 %v4350_v2, %v4278_v0  ;;  %v4454_v52 = vsel %vm4418_vm6, %v9109_v13, 0.0  ;;  %vm4522_vm7 = vcmp.eq.s32.totalorder %v5629_v7, %v9117_v35  ;;  %v5142_v21 = vadd.f32 %v5141_v23, %v5140_v6  ;;  %v4693_v7 = vld [vmem:[%s9568_s5] sm:$0xff] }
 0x387   : > { %5277 = vmatpush3.msra.mxu0 %v4591_v33  ;;  %v4606_v9 = vadd.f32 %v4574_v57, %v4502_v29  ;;  %v4558_v41 = vsel %vm4522_vm7, %v9112_v40, 0.0  ;;  %v5177_v47 = vadd.f32 %v5176_v44, %v5175_v61  ;;  %vm5484_vm8 = vmmov 0  }
 0x388   : > { %v4486_v4 = vadd.f32 %v4454_v52, %v4382_v56  ;;  %2872 = vst [vmem:[#allocation2 + $0x10] sm:$0xf] %v5142_v21  ;;  %5299 = vmatprep.mubr.msk.f32.mxu1 %vm5484_vm8, %v9642_v37  ;;  %v5485_v13 = vmov 0   ;;  %vm4709_vm9 = vcmask 1043456   ;;  %vm4705_vm10 = vcmask 293888  }
 0x389   : > { %5278 = vmatprep.subr.mxu0 %v4606_v9  ;;  %3327 = vst [vmem:[#allocation2 + $0x14] sm:$0xf] %v5177_v47  ;;  %5384 = vset.pattern.permute.xlu0 %v5485_v13 }
 0x38a   : > { %v4590_v45 = vadd.f32 %v4558_v41, %v4486_v4  ;;  %4702 = vperm.xlu0 %5384, %v4693_v7  }
 0x38c   : > { %5279 = vmatpush3.msra.mxu0 %v4590_v45 }
 0x38d   : > { %4687 = vmatmul.mubr.f32.vlgmr.msra.gmra.mxu0 %v9078_v26 }
 0x390   : > { %v4696_v51 = vld [vmem:[#allocation2 + $0x10] sm:$0xff] }
 0x3e2   : > { %v5210_v60 = vpop.f32.mrf.mxu0 }
 0x3e4   : > { %v5211_v1 = vpop.f32.mrf.mxu0 }
 0x3e5   : > { %v5245_v40 = vpop.f32.mrf.mxu1  ;;  %v5212_v35 = vadd.f32 %v5211_v1, %v5210_v60 }
 0x3e7   : > { %3782 = vst [vmem:[#allocation2 + $0x18] sm:$0xf] %v5212_v35  ;;  %v5246_v48 = vpop.f32.mrf.mxu1 }
 0x3e8   : > { %v5247_v16 = vadd.f32 %v5246_v48, %v5245_v40 }
 0x3ea   : > { %4237 = vst [vmem:[#allocation2 + $0x1c] sm:$0xf] %v5247_v16 }
 0x3f1   : > { %v4697_v38 = vld [vmem:[#allocation2 + $0x18] sm:$0xff] }
 0x405   : > { %v4703_v17 = vpop.permute.xlu0 %4702 }
 0x44d   : > { %v5280_v24 = vpop.f32.mrf.mxu0 }
 0x44f   : > { %v5281_v26 = vpop.f32.mrf.mxu0 }
 0x450   : > { %v5282_v11 = vadd.f32 %v5281_v26, %v5280_v24 }
 0x452   : > { %4692 = vst [vmem:[#allocation2 + $0x20] sm:$0xf] %v5282_v11 }
 0x459   : > { %v4698_v10 = vld [vmem:[#allocation2 + $0x20] sm:$0xf] }
 0x45a   : > { %5290 = vmatpush3.msk.msra.mxu1 %vm4709_vm9, %v4698_v10 }
 0x45b   : > { %5291 = vmatprep.subr.mxu1 %v9642_v37 }
 0x45c   : > { %5292 = vmatpush3.msra.mxu1 %v4697_v38 }
 0x45d   : > { %5293 = vmatprep.subr.mxu1 %v9642_v37 }
 0x45e   : > { %5294 = vmatpush3.msra.mxu1 %v4696_v51 }
 0x45f   : > { %5295 = vmatprep.subr.mxu1 %v9642_v37 }
 0x460   : > { %5296 = vmatpush3.msra.mxu1 %v4695_v39 }
 0x461   : > { %5297 = vmatprep.subr.mxu1 %v9642_v37 }
 0x462   : > { %5298 = vmatpush3.msra.mxu1 %v4694_v14 }
 0x463   : > { %5300 = vmatmul.mubr.msk.f32.vlgmr.msra.gmra.mxu1 %vm4705_vm10, %v4699_v54 }
 0x523   : > { %v4779_v25 = vpop.f32.mrf.mxu1 }
 0x524   : > { %v4780_v28 = vadd.f32 %v4779_v25, %v4703_v17 }
 0x525   : > { %v5301_v37 = vpop.f32.mrf.mxu1 }
 0x526   : > { %4783 = vst [vmem:[%s447_s14] sm:$0xff] %v4780_v28 }
 0x527   : > { %5402 = shalt.err (!%p5399_p10)
}
 0x528   : > { %s5403_s29 = scalar_lea.hbm %s9516_s7, 128  ;;  %s5407_s9 = scalar_lea.hbm %s9569_s6, 512 }
 0x529   : > { %p5404_p11 = scmp.ne.s32.totalorder %s9516_s7, %s5403_s29  ;;  %p5408_p0 = scmp.lt.s32.totalorder %s9516_s7, %s9569_s6 }
 0x52a   : > { %p5409_p1 = scmp.lt.s32.totalorder %s5407_s9, %s5403_s29 }
 0x52b   : > { %p5405_p12 = pnand %p5404_p11, %p5582_p8 }
 0x52c   : > { %p5410_p2 = por %p5409_p1, %p5408_p0 }
 0x52d   : > { %p5406_p13 = pneg %p5405_p12 }
 0x52f   : > { %p5411_p3 = pnand %p5410_p2, %p5406_p13 }
 0x531   : > { %5414 = shalt.err (!%p5411_p3)
}
 0x532   : > { %5310 = dma.vmem_to_hbm [thread:$0]  (%p5582_p8), %s4801_s15, 128, %s9516_s7, %s4785_s8  }
 0x533 PF: > { %p5316_p4 = scmp.ge.s32.totalorder %s5481_s28, 2  ;;  %s4812_s17 = sand.u32 1, %s5453_s21  }
 0x534   : > { %s4813_s20 = scalar_lea.sflag [#allocation7], %s4812_s17 }
 0x535   : > { %p5313_p5 = pnand %p5316_p4, %p5586_p9 }
 0x537   : > { %p5314_p6 = pneg %p5313_p5 }
 0x539   : > { %5448 = dma.done.wait (%p5314_p6), %s4813_s20, 128  }
 0x53a   : > { %5450 = vsyncadd (%p5314_p6), %s4813_s20, 4294967168  ;;  %s19_s28 = sadd.s32 1, %s5481_s28   ;;  %s9646_s11 = sld [smem:[#allocation9_spill]] }
 0x53b   : > { %p16_p7 = scmp.ge.s32.totalorder %s19_s28, 6   ;;  %s9647_s15 = sld [smem:[#allocation10_spill]] }
 0x53c   : > { %s9648_s21 = smov %s5457_s22  ;;  %s9649_s22 = smov %s5461_s23 }
 0x53d   : > { %s9650_s23 = smov %s5594_s16  ;;  %s9651_s24 = smov %s5473_s26 }
 0x53e   : > { %s9652_s25 = smov %s5477_s27  ;;  %18 = sbr.rel (!%p16_p7) target bundleno = 5 (0x5), region = 217 }
 0x540   : > { %s9653_s26 = smov %s9646_s11 }
 0x541   : > { %s9654_s27 = smov %s9647_s15 }
 0x543   :  { %4818 = vsyncpa [#allocation7], 1 }
 0x544   :  { %4820 = vsyncpa [#allocation7 + $0x1], 1 }

</bundles_post_ra>
